<compile_context>
chip_gen: v6e
topology: v6e:2x2x1
jax: 0.10.0
libtpu: 0.0.40
codegen_flags: <defaults>
</compile_context>

<pallas_src>
import functools

import jax
import jax.numpy as jnp
from jax.experimental import pallas as pl
from jax.experimental.pallas import tpu as pltpu

LN_EPS = 1e-5  # nn.LayerNorm default eps


def _pick_block(dim, target, quantum):
    """Largest multiple of `quantum` that divides `dim` and is <= `target`;
    falls back to the full dim (always a legal BlockSpec size)."""
    if dim <= target:
        return dim
    b = (target // quantum) * quantum
    while b >= quantum:
        if dim % b == 0:
            return b
        b -= quantum
    return dim


# ---------------------------------------------------------------------------
# Stage 1: LayerNorm + fused left|right projection, emitted directly in the
# h-leading (B, 2H, M, N) layout that stage 2 consumes (no XLA transpose).
# ---------------------------------------------------------------------------
def ln_proj_kernel(x_ref, gamma_ref, beta_ref, wt_ref, b_ref, lr_ref, *,
                   compute_dtype):
    x = x_ref[0].astype(jnp.float32)                       # (tm1, tn1, D)
    tm1, tn1, d = x.shape

    # LayerNorm over channels, f32 on the VPU.
    mu = jnp.mean(x, axis=-1, keepdims=True)
    var = jnp.mean(jnp.square(x - mu), axis=-1, keepdims=True)
    xn = (x - mu) * jax.lax.rsqrt(var + LN_EPS)
    xn = xn * gamma_ref[...] + beta_ref[...]               # (1, D) broadcasts

    # Fused left|right projection as a single contract-last MXU matmul with the
    # (pre-transposed) weight on the LHS -> result is already h-leading.
    xn_flat = xn.reshape(tm1 * tn1, d).astype(compute_dtype)   # leading-dim merge
    w_t = wt_ref[...].astype(compute_dtype)                    # (2H, D)
    lr = jnp.einsum("cd,nd->cn", w_t, xn_flat,
                    preferred_element_type=jnp.float32)        # (2H, tm1*tn1)
    lr = (lr + b_ref[...]).astype(lr_ref.dtype)

    # Scatter the tm1 MSA rows into the (1, 2H, tm1, tn1) block (static unroll,
    # tm1 is small by default).
    for r in range(tm1):
        lr_ref[0, :, r, :] = lr[:, r * tn1:(r + 1) * tn1]


# ---------------------------------------------------------------------------
# Stage 2: outer-product mean over m (MXU batched contraction) with the
# H -> D output projection fused into the last-m emit.  Writes the final
# (B, N, N, D) tensor; no (B, H, N, N) intermediate ever hits HBM.
# ---------------------------------------------------------------------------
def outer_proj_kernel(l_ref, r_ref, wo_ref, bo_ref, o_ref, acc_ref, *,
                      inv_m, compute_dtype):
    m_idx = pl.program_id(3)

    @pl.when(m_idx == 0)
    def _init():
        acc_ref[...] = jnp.zeros_like(acc_ref)

    left = l_ref[0]                                        # (H, tm, ti)
    right = r_ref[0]                                       # (H, tm, tj)
    acc_ref[...] += jnp.einsum("hmi,hmj->hij", left, right,
                               preferred_element_type=jnp.float32)

    @pl.when(m_idx == pl.num_programs(3) - 1)
    def _emit():
        h, ti, tj = acc_ref.shape
        outer = acc_ref[...] * inv_m                       # (H, ti, tj) f32
        # (H, ti*tj) -> 2D transpose -> (ti*tj, H): amortized over M/tm m-steps.
        outer_t = outer.reshape(h, ti * tj).T.astype(compute_dtype)
        out = jnp.dot(outer_t, wo_ref[...].astype(compute_dtype),
                      preferred_element_type=jnp.float32)  # (ti*tj, D)
        out = out + bo_ref[...]                            # (1, D)
        o_ref[0] = out.reshape(ti, tj, -1).astype(o_ref.dtype)


def outer_mean(x, params, *, block_i=None, block_j=None, block_m=None,
               block_m1=None, block_n1=None, compute_dtype=jnp.bfloat16):
    """x: (B, M, N, D). Returns (B, N, N, D). Weights stored as (in, out)."""
    gamma, beta, wl, bl, wr, br, wo, bo = params
    assert x.ndim == 4
    B, M, N, D = x.shape
    H = wl.shape[1]
    H2 = 2 * H

    # ---- block-size defaults (tune per generation; see header) ----
    ti = _pick_block(N, 128, 128) if block_i is None else block_i
    tj = _pick_block(N, 128, 128) if block_j is None else block_j
    tm = _pick_block(M, 256, 8) if block_m is None else block_m
    tm1 = _pick_block(M, 8, 8) if block_m1 is None else block_m1          # small: unrolled row stores
    tn1 = _pick_block(N, 1024, 128) if block_n1 is None else block_n1

    # grid divisibility + (8, 128) layout constraints on minor block dims
    assert N % ti == 0 and N % tj == 0 and M % tm == 0
    assert M % tm1 == 0 and N % tn1 == 0
    assert ti == N or ti % 128 == 0
    assert tj == N or tj % 128 == 0
    assert tm == M or tm % 8 == 0
    assert tm1 == M or tm1 % 8 == 0
    assert tn1 == N or tn1 % 128 == 0

    lr_dtype = jnp.dtype(compute_dtype)       # bf16 intermediates in production
    out_dtype = x.dtype

    # Fused left|right projection weight, pre-transposed to (2H, D); rows [0:H)
    # are the left projection, [H:2H) the right projection.
    w_lr_t = jnp.concatenate([wl, wr], axis=1).T           # (2H, D)
    b_lr = jnp.concatenate([bl, br], axis=1).T             # (2H, 1)

    # ---- Stage 1: LN + fused projections, tiled over (M, B, N) ----
    lr = pl.pallas_call(
        functools.partial(ln_proj_kernel, compute_dtype=compute_dtype),
        out_shape=jax.ShapeDtypeStruct((B, H2, M, N), lr_dtype),
        grid_spec=pltpu.PrefetchScalarGridSpec(
            num_scalar_prefetch=0,
            grid=(M // tm1, B, N // tn1),
            in_specs=[
                pl.BlockSpec((1, tm1, tn1, D), lambda mi, b, ni: (b, mi, ni, 0)),
                pl.BlockSpec((1, D), lambda mi, b, ni: (0, 0)),
                pl.BlockSpec((1, D), lambda mi, b, ni: (0, 0)),
                pl.BlockSpec((H2, D), lambda mi, b, ni: (0, 0)),
                pl.BlockSpec((H2, 1), lambda mi, b, ni: (0, 0)),
            ],
            out_specs=pl.BlockSpec((1, H2, tm1, tn1),
                                   lambda mi, b, ni: (b, 0, mi, ni)),
        ),
        compiler_params=pltpu.CompilerParams(
            dimension_semantics=("parallel", "parallel", "parallel")),
    )(x, gamma, beta, w_lr_t, b_lr)

    # ---- Stage 2: outer mean over m + fused output projection ----
    lr_bytes = lr_dtype.itemsize
    out_bytes = jnp.dtype(out_dtype).itemsize
    # Real DMA traffic: left panel re-read N/tj times, right panel N/ti times.
    flops = 2 * B * H * N * N * M + 2 * B * N * N * H * D
    bytes_accessed = (B * H * M * N * lr_bytes * (N // tj)
                      + B * H * M * N * lr_bytes * (N // ti)
                      + B * N * N * D * out_bytes)
    vmem_est = (2 * (H * tm * ti + H * tm * tj) * lr_bytes   # double-buffered inputs
                + 2 * ti * tj * D * out_bytes                # output block
                + H * ti * tj * 4                            # f32 accumulator scratch
                + (H * D + D) * 4                            # weights/bias
                + (4 << 20))                                 # slack
    vmem_limit = int(min(100 * (1 << 20), max(32 * (1 << 20), vmem_est)))

    out = pl.pallas_call(
        functools.partial(outer_proj_kernel, inv_m=1.0 / M,
                          compute_dtype=compute_dtype),
        out_shape=jax.ShapeDtypeStruct((B, N, N, D), out_dtype),
        grid_spec=pltpu.PrefetchScalarGridSpec(
            num_scalar_prefetch=0,
            # i leads so a single-batch problem still shards across v7x's 2 TCs;
            # m is last (reduction) with the resident accumulator.
            grid=(N // ti, N // tj, B, M // tm),
            in_specs=[
                # left = channels [0:H), right = channels [H:2H) of lr
                pl.BlockSpec((1, H, tm, ti), lambda i, j, b, m: (b, 0, m, i)),
                pl.BlockSpec((1, H, tm, tj), lambda i, j, b, m: (b, 1, m, j)),
                pl.BlockSpec((H, D), lambda i, j, b, m: (0, 0)),
                pl.BlockSpec((1, D), lambda i, j, b, m: (0, 0)),
            ],
            out_specs=pl.BlockSpec((1, ti, tj, D),
                                   lambda i, j, b, m: (b, i, j, 0)),
            scratch_shapes=[pltpu.VMEM((H, ti, tj), jnp.float32)],
        ),
        compiler_params=pltpu.CompilerParams(
            dimension_semantics=("parallel", "parallel", "parallel", "arbitrary"),
            vmem_limit_bytes=vmem_limit),
        cost_estimate=pl.CostEstimate(flops=flops, transcendentals=0,
                                      bytes_accessed=bytes_accessed),
    )(lr, lr, wo, bo)

    return out


def reference(x, params):
    """Pure-JAX reference matching the PyTorch forward (mask=None)."""
    gamma, beta, wl, bl, wr, br, wo, bo = params
    mu = x.mean(-1, keepdims=True)
    var = ((x - mu) ** 2).mean(-1, keepdims=True)
    xn = (x - mu) / jnp.sqrt(var + LN_EPS) * gamma.reshape(-1) + beta.reshape(-1)
    left = xn @ wl + bl.reshape(-1)      # (B, M, N, H)
    right = xn @ wr + br.reshape(-1)     # (B, M, N, H)
    outer = (left[:, :, :, None, :] * right[:, :, None, :, :]).mean(axis=1)
    return outer @ wo + bo.reshape(-1)   # (B, N, N, D)


def _make_params(key, D, H):
    ks = jax.random.split(key, 8)
    gamma = 1.0 + 0.1 * jax.random.normal(ks[0], (1, D), dtype=jnp.float32)
    beta = 0.1 * jax.random.normal(ks[1], (1, D), dtype=jnp.float32)
    wl = 0.1 * jax.random.normal(ks[2], (D, H), dtype=jnp.float32)
    bl = 0.1 * jax.random.normal(ks[3], (1, H), dtype=jnp.float32)
    wr = 0.1 * jax.random.normal(ks[4], (D, H), dtype=jnp.float32)
    br = 0.1 * jax.random.normal(ks[5], (1, H), dtype=jnp.float32)
    wo = 0.1 * jax.random.normal(ks[6], (H, D), dtype=jnp.float32)
    bo = 0.1 * jax.random.normal(ks[7], (1, D), dtype=jnp.float32)
    return (gamma, beta, wl, bl, wr, br, wo, bo)


if __name__ == "__main__":
    key = jax.random.PRNGKey(0)

    # --- check 1: f32 compute path, full-dim blocks, tight tolerance ---
    B, M, N, D, H = 2, 8, 128, 32, 32
    k1, k2, key = jax.random.split(key, 3)
    x = jax.random.normal(k1, (B, M, N, D), dtype=jnp.float32)
    params = _make_params(k2, D, H)
    out = jax.block_until_ready(outer_mean(x, params, compute_dtype=jnp.float32))
    ref = reference(x, params)
    assert out.shape == (B, N, N, D), out.shape
    err = float(jnp.max(jnp.abs(out - ref)))
    assert err < 1e-4, err

    # --- check 2: default bf16 production path, genuinely tiled grid
    #     (2x2 (i, j) tiles, 2 m reduction steps per tile) ---
    B, M, N, D, H = 1, 32, 256, 64, 32
    k1, k2, key = jax.random.split(key, 3)
    x = jax.random.normal(k1, (B, M, N, D), dtype=jnp.float32)
    params = _make_params(k2, D, H)
    out = jax.block_until_ready(
        outer_mean(x, params, block_i=128, block_j=128, block_m=16))
    ref = reference(x, params)
    assert out.shape == (B, N, N, D), out.shape
    err = float(jnp.max(jnp.abs(out - ref)))
    assert err < 5e-2, err   # bf16 MXU operands / bf16 intermediates

    print("KERNEL_OK")
</pallas_src>

<mosaic_0001>
module attributes {stable_mosaic.version = 11 : i64} {
  func.func @ln_proj_kernel(%arg0: i32, %arg1: i32, %arg2: i32, %arg3: memref<1x8x128x32xf32, #tpu.memory_space<vmem>>, %arg4: memref<1x32xf32, #tpu.memory_space<vmem>>, %arg5: memref<1x32xf32, #tpu.memory_space<vmem>>, %arg6: memref<64x32xf32, #tpu.memory_space<vmem>>, %arg7: memref<64x1xf32, #tpu.memory_space<vmem>>, %arg8: memref<1x64x8x128xf32, #tpu.memory_space<vmem>>) attributes {dimension_semantics = [#tpu.dimension_semantics<parallel>, #tpu.dimension_semantics<parallel>, #tpu.dimension_semantics<parallel>], iteration_bounds = array<i64: 1, 2, 1>, scalar_prefetch = 0 : i64, scratch_operands = 0 : i64, tpu.core_type = #tpu.core_type<tc>, window_params = [{transform_indices = @transform_0, window_bounds = array<i64: 1, 8, 128, 32>}, {pipeline_mode = #tpu.pipeline_mode<synchronous>, transform_indices = @transform_1, window_bounds = array<i64: 1, 32>}, {pipeline_mode = #tpu.pipeline_mode<synchronous>, transform_indices = @transform_2, window_bounds = array<i64: 1, 32>}, {pipeline_mode = #tpu.pipeline_mode<synchronous>, transform_indices = @transform_3, window_bounds = array<i64: 64, 32>}, {pipeline_mode = #tpu.pipeline_mode<synchronous>, transform_indices = @transform_4, window_bounds = array<i64: 64, 1>}, {transform_indices = @transform_5, window_bounds = array<i64: 1, 64, 8, 128>}]} {
    %c0 = arith.constant 0 : index
    %c0_0 = arith.constant 0 : index
    %c0_1 = arith.constant 0 : index
    %c0_2 = arith.constant 0 : index
    %0 = vector.load %arg3[%c0, %c0_0, %c0_1, %c0_2] : memref<1x8x128x32xf32, #tpu.memory_space<vmem>>, vector<1x8x128x32xf32>
    %1 = vector.shape_cast %0 : vector<1x8x128x32xf32> to vector<8x128x32xf32>
    %cst = arith.constant dense<0.000000e+00> : vector<8x128xf32>
    %2 = vector.multi_reduction <add>, %1, %cst [2] : vector<8x128x32xf32> to vector<8x128xf32>
    %3 = vector.shape_cast %2 : vector<8x128xf32> to vector<8x128x1xf32>
    %cst_3 = arith.constant 3.200000e+01 : f32
    %4 = vector.broadcast %cst_3 : f32 to vector<8x128x1xf32>
    %5 = arith.divf %3, %4 : vector<8x128x1xf32>
    %6 = vector.broadcast %5 : vector<8x128x1xf32> to vector<8x128x32xf32>
    %7 = arith.subf %1, %6 : vector<8x128x32xf32>
    %8 = arith.mulf %7, %7 : vector<8x128x32xf32>
    %cst_4 = arith.constant dense<0.000000e+00> : vector<8x128xf32>
    %9 = vector.multi_reduction <add>, %8, %cst_4 [2] : vector<8x128x32xf32> to vector<8x128xf32>
    %10 = vector.shape_cast %9 : vector<8x128xf32> to vector<8x128x1xf32>
    %cst_5 = arith.constant 3.200000e+01 : f32
    %11 = vector.broadcast %cst_5 : f32 to vector<8x128x1xf32>
    %12 = arith.divf %10, %11 : vector<8x128x1xf32>
    %13 = vector.broadcast %5 : vector<8x128x1xf32> to vector<8x128x32xf32>
    %14 = arith.subf %1, %13 : vector<8x128x32xf32>
    %cst_6 = arith.constant 9.99999974E-6 : f32
    %15 = vector.broadcast %cst_6 : f32 to vector<8x128x1xf32>
    %16 = arith.addf %12, %15 : vector<8x128x1xf32>
    %17 = math.rsqrt %16 : vector<8x128x1xf32>
    %18 = vector.broadcast %17 : vector<8x128x1xf32> to vector<8x128x32xf32>
    %19 = arith.mulf %14, %18 : vector<8x128x32xf32>
    %c0_7 = arith.constant 0 : index
    %c0_8 = arith.constant 0 : index
    %20 = vector.load %arg4[%c0_7, %c0_8] : memref<1x32xf32, #tpu.memory_space<vmem>>, vector<1x32xf32>
    %21 = vector.shape_cast %20 : vector<1x32xf32> to vector<1x1x32xf32>
    %22 = vector.broadcast %21 : vector<1x1x32xf32> to vector<8x128x32xf32>
    %23 = arith.mulf %19, %22 : vector<8x128x32xf32>
    %c0_9 = arith.constant 0 : index
    %c0_10 = arith.constant 0 : index
    %24 = vector.load %arg5[%c0_9, %c0_10] : memref<1x32xf32, #tpu.memory_space<vmem>>, vector<1x32xf32>
    %25 = vector.shape_cast %24 : vector<1x32xf32> to vector<1x1x32xf32>
    %26 = vector.broadcast %25 : vector<1x1x32xf32> to vector<8x128x32xf32>
    %27 = arith.addf %23, %26 : vector<8x128x32xf32>
    %28 = vector.shape_cast %27 : vector<8x128x32xf32> to vector<1024x32xf32>
    %c0_11 = arith.constant 0 : index
    %c0_12 = arith.constant 0 : index
    %29 = vector.load %arg6[%c0_11, %c0_12] : memref<64x32xf32, #tpu.memory_space<vmem>>, vector<64x32xf32>
    "tpu.trace_start"() <{level = 10 : i32, message = "cd,nd->cn"}> : () -> ()
    %cst_13 = arith.constant dense<0.000000e+00> : vector<64x1024xf32>
    %30 = tpu.matmul %29, %28, %cst_13 {dimension_numbers = #tpu.dot_dimension_numbers<[1], [1], [0], [0], [0, 0, 1, 0], [], []>} : vector<64x32xf32>, vector<1024x32xf32>, vector<64x1024xf32> -> vector<64x1024xf32>
    "tpu.trace_stop"() : () -> ()
    %c0_14 = arith.constant 0 : index
    %c0_15 = arith.constant 0 : index
    %31 = vector.load %arg7[%c0_14, %c0_15] : memref<64x1xf32, #tpu.memory_space<vmem>>, vector<64x1xf32>
    %32 = vector.broadcast %31 : vector<64x1xf32> to vector<64x1024xf32>
    %33 = arith.addf %30, %32 : vector<64x1024xf32>
    %34 = vector.extract_strided_slice %33 {offsets = [0, 0], sizes = [64, 128], strides = [1, 1]} : vector<64x1024xf32> to vector<64x128xf32>
    %c0_16 = arith.constant 0 : index
    %c0_17 = arith.constant 0 : index
    %c0_18 = arith.constant 0 : index
    %c0_19 = arith.constant 0 : index
    %35 = vector.load %arg8[%c0_16, %c0_17, %c0_18, %c0_19] : memref<1x64x8x128xf32, #tpu.memory_space<vmem>>, vector<1x64x1x128xf32>
    %36 = vector.shape_cast %35 : vector<1x64x1x128xf32> to vector<64x128xf32>
    %37 = vector.shape_cast %34 : vector<64x128xf32> to vector<1x64x1x128xf32>
    tpu.vector_store %arg8[%c0_16, %c0_17, %c0_18, %c0_19], %37 {strides = array<i32>} : memref<1x64x8x128xf32, #tpu.memory_space<vmem>>, vector<1x64x1x128xf32>,
    %38 = vector.extract_strided_slice %33 {offsets = [0, 128], sizes = [64, 128], strides = [1, 1]} : vector<64x1024xf32> to vector<64x128xf32>
    %c0_20 = arith.constant 0 : index
    %c0_21 = arith.constant 0 : index
    %c1 = arith.constant 1 : index
    %c0_22 = arith.constant 0 : index
    %39 = vector.load %arg8[%c0_20, %c0_21, %c1, %c0_22] : memref<1x64x8x128xf32, #tpu.memory_space<vmem>>, vector<1x64x1x128xf32>
    %40 = vector.shape_cast %39 : vector<1x64x1x128xf32> to vector<64x128xf32>
    %41 = vector.shape_cast %38 : vector<64x128xf32> to vector<1x64x1x128xf32>
    tpu.vector_store %arg8[%c0_20, %c0_21, %c1, %c0_22], %41 {strides = array<i32>} : memref<1x64x8x128xf32, #tpu.memory_space<vmem>>, vector<1x64x1x128xf32>,
    %42 = vector.extract_strided_slice %33 {offsets = [0, 256], sizes = [64, 128], strides = [1, 1]} : vector<64x1024xf32> to vector<64x128xf32>
    %c0_23 = arith.constant 0 : index
    %c0_24 = arith.constant 0 : index
    %c2 = arith.constant 2 : index
    %c0_25 = arith.constant 0 : index
    %43 = vector.load %arg8[%c0_23, %c0_24, %c2, %c0_25] : memref<1x64x8x128xf32, #tpu.memory_space<vmem>>, vector<1x64x1x128xf32>
    %44 = vector.shape_cast %43 : vector<1x64x1x128xf32> to vector<64x128xf32>
    %45 = vector.shape_cast %42 : vector<64x128xf32> to vector<1x64x1x128xf32>
    tpu.vector_store %arg8[%c0_23, %c0_24, %c2, %c0_25], %45 {strides = array<i32>} : memref<1x64x8x128xf32, #tpu.memory_space<vmem>>, vector<1x64x1x128xf32>,
    %46 = vector.extract_strided_slice %33 {offsets = [0, 384], sizes = [64, 128], strides = [1, 1]} : vector<64x1024xf32> to vector<64x128xf32>
    %c0_26 = arith.constant 0 : index
    %c0_27 = arith.constant 0 : index
    %c3 = arith.constant 3 : index
    %c0_28 = arith.constant 0 : index
    %47 = vector.load %arg8[%c0_26, %c0_27, %c3, %c0_28] : memref<1x64x8x128xf32, #tpu.memory_space<vmem>>, vector<1x64x1x128xf32>
    %48 = vector.shape_cast %47 : vector<1x64x1x128xf32> to vector<64x128xf32>
    %49 = vector.shape_cast %46 : vector<64x128xf32> to vector<1x64x1x128xf32>
    tpu.vector_store %arg8[%c0_26, %c0_27, %c3, %c0_28], %49 {strides = array<i32>} : memref<1x64x8x128xf32, #tpu.memory_space<vmem>>, vector<1x64x1x128xf32>,
    %50 = vector.extract_strided_slice %33 {offsets = [0, 512], sizes = [64, 128], strides = [1, 1]} : vector<64x1024xf32> to vector<64x128xf32>
    %c0_29 = arith.constant 0 : index
    %c0_30 = arith.constant 0 : index
    %c4 = arith.constant 4 : index
    %c0_31 = arith.constant 0 : index
    %51 = vector.load %arg8[%c0_29, %c0_30, %c4, %c0_31] : memref<1x64x8x128xf32, #tpu.memory_space<vmem>>, vector<1x64x1x128xf32>
    %52 = vector.shape_cast %51 : vector<1x64x1x128xf32> to vector<64x128xf32>
    %53 = vector.shape_cast %50 : vector<64x128xf32> to vector<1x64x1x128xf32>
    tpu.vector_store %arg8[%c0_29, %c0_30, %c4, %c0_31], %53 {strides = array<i32>} : memref<1x64x8x128xf32, #tpu.memory_space<vmem>>, vector<1x64x1x128xf32>,
    %54 = vector.extract_strided_slice %33 {offsets = [0, 640], sizes = [64, 128], strides = [1, 1]} : vector<64x1024xf32> to vector<64x128xf32>
    %c0_32 = arith.constant 0 : index
    %c0_33 = arith.constant 0 : index
    %c5 = arith.constant 5 : index
    %c0_34 = arith.constant 0 : index
    %55 = vector.load %arg8[%c0_32, %c0_33, %c5, %c0_34] : memref<1x64x8x128xf32, #tpu.memory_space<vmem>>, vector<1x64x1x128xf32>
    %56 = vector.shape_cast %55 : vector<1x64x1x128xf32> to vector<64x128xf32>
    %57 = vector.shape_cast %54 : vector<64x128xf32> to vector<1x64x1x128xf32>
    tpu.vector_store %arg8[%c0_32, %c0_33, %c5, %c0_34], %57 {strides = array<i32>} : memref<1x64x8x128xf32, #tpu.memory_space<vmem>>, vector<1x64x1x128xf32>,
    %58 = vector.extract_strided_slice %33 {offsets = [0, 768], sizes = [64, 128], strides = [1, 1]} : vector<64x1024xf32> to vector<64x128xf32>
    %c0_35 = arith.constant 0 : index
    %c0_36 = arith.constant 0 : index
    %c6 = arith.constant 6 : index
    %c0_37 = arith.constant 0 : index
    %59 = vector.load %arg8[%c0_35, %c0_36, %c6, %c0_37] : memref<1x64x8x128xf32, #tpu.memory_space<vmem>>, vector<1x64x1x128xf32>
    %60 = vector.shape_cast %59 : vector<1x64x1x128xf32> to vector<64x128xf32>
    %61 = vector.shape_cast %58 : vector<64x128xf32> to vector<1x64x1x128xf32>
    tpu.vector_store %arg8[%c0_35, %c0_36, %c6, %c0_37], %61 {strides = array<i32>} : memref<1x64x8x128xf32, #tpu.memory_space<vmem>>, vector<1x64x1x128xf32>,
    %62 = vector.extract_strided_slice %33 {offsets = [0, 896], sizes = [64, 128], strides = [1, 1]} : vector<64x1024xf32> to vector<64x128xf32>
    %c0_38 = arith.constant 0 : index
    %c0_39 = arith.constant 0 : index
    %c7 = arith.constant 7 : index
    %c0_40 = arith.constant 0 : index
    %63 = vector.load %arg8[%c0_38, %c0_39, %c7, %c0_40] : memref<1x64x8x128xf32, #tpu.memory_space<vmem>>, vector<1x64x1x128xf32>
    %64 = vector.shape_cast %63 : vector<1x64x1x128xf32> to vector<64x128xf32>
    %65 = vector.shape_cast %62 : vector<64x128xf32> to vector<1x64x1x128xf32>
    tpu.vector_store %arg8[%c0_38, %c0_39, %c7, %c0_40], %65 {strides = array<i32>} : memref<1x64x8x128xf32, #tpu.memory_space<vmem>>, vector<1x64x1x128xf32>,
    return
  }
  func.func @transform_0(%arg0: i32, %arg1: i32, %arg2: i32) -> (i32, i32, i32, i32) {
    %c0_i32 = arith.constant 0 : i32
    %c0_i32_0 = arith.constant 0 : i32
    return %arg1, %arg0, %arg2, %c0_i32 : i32, i32, i32, i32
  }
  func.func @transform_1(%arg0: i32, %arg1: i32, %arg2: i32) -> (i32, i32) {
    %c0_i32 = arith.constant 0 : i32
    %c0_i32_0 = arith.constant 0 : i32
    %c0_i32_1 = arith.constant 0 : i32
    return %c0_i32, %c0_i32_0 : i32, i32
  }
  func.func @transform_2(%arg0: i32, %arg1: i32, %arg2: i32) -> (i32, i32) {
    %c0_i32 = arith.constant 0 : i32
    %c0_i32_0 = arith.constant 0 : i32
    %c0_i32_1 = arith.constant 0 : i32
    return %c0_i32, %c0_i32_0 : i32, i32
  }
  func.func @transform_3(%arg0: i32, %arg1: i32, %arg2: i32) -> (i32, i32) {
    %c0_i32 = arith.constant 0 : i32
    %c0_i32_0 = arith.constant 0 : i32
    %c0_i32_1 = arith.constant 0 : i32
    return %c0_i32, %c0_i32_0 : i32, i32
  }
  func.func @transform_4(%arg0: i32, %arg1: i32, %arg2: i32) -> (i32, i32) {
    %c0_i32 = arith.constant 0 : i32
    %c0_i32_0 = arith.constant 0 : i32
    %c0_i32_1 = arith.constant 0 : i32
    return %c0_i32, %c0_i32_0 : i32, i32
  }
  func.func @transform_5(%arg0: i32, %arg1: i32, %arg2: i32) -> (i32, i32, i32, i32) {
    %c0_i32 = arith.constant 0 : i32
    %c0_i32_0 = arith.constant 0 : i32
    return %arg1, %c0_i32, %arg0, %arg2 : i32, i32, i32, i32
  }
}

</mosaic_0001>

<bundles_post_ra>
// kernel: tpu_custom_call.1
= control target key start
LH: loop header
LB: loop body
LE: loop exit
PB: predicated region body
PF: predicated region fallthrough
CT: control target
= control target key end

     0   :  { %10 = vsyncpa [#allocation3], 0  ;;  %s12048_s0 = inlined_call_operand.vmem [shape: f32[2,8,128,32], index: 0, kind: input, shape index: {}]   ;;  %s12049_s1 = inlined_call_operand.vmem [shape: f32[1,32], index: 1, kind: input, shape index: {}]   ;;  %s12050_s2 = inlined_call_operand.vmem [shape: f32[1,32], index: 2, kind: input, shape index: {}]   ;;  %s12051_s3 = inlined_call_operand.vmem [shape: f32[64,32], index: 3, kind: input, shape index: {}]   ;;  %s12052_s4 = inlined_call_operand.vmem [shape: f32[64,1], index: 4, kind: input, shape index: {}]   ;;  %s12053_s5 = inlined_call_operand.hbm [shape: f32[2,64,8,128], index: 5, kind: output, shape index: {}]  }
   0x1   :  { %12 = vsyncpa [#allocation3 + $0x1], 0  ;;  %s8747_s18 = smov 0   ;;  %s8749_s19 = smov 0  }
   0x2   :  { %s8751_s20 = smov 0   ;;  %s8753_s21 = smov 0  }
   0x3   :  { %s8755_s22 = smov 0   ;;  %s8757_s23 = smov 0  }
   0x4 LB: > { %s7589_s24 = sadd.s32 4294967295, %s8710_s23   ;;  %s7590_s25 = sadd.s32 4294967294, %s8710_s23   ;;  %s8710_s23 = sphi %s8757_s23, %s18_s23   ;;  %s8706_s22 = sphi %s8755_s22, %s12325_s22   ;;  %s8702_s21 = sphi %s8753_s21, %s12324_s21   ;;  %s8698_s20 = sphi %s8751_s20, %s12323_s20   ;;  %s8694_s19 = sphi %s8749_s19, %s12322_s19   ;;  %s8690_s18 = sphi %s8747_s18, %s12321_s18  }
   0x5   : > { %s33_s26 = sadd.s32 1, %s8706_s22  ;;  %s162_s27 = sadd.s32 1, %s8698_s20 }
   0x6   : > { %p35_p0 = scmp.ge.s32.totalorder %s33_s26, 2  ;;  %p172_p1 = scmp.ne.s32.totalorder %s8698_s20, %s8694_s19 }
   0x7   : > { %p173_p2 = scmp.eq.s32.totalorder %s7589_s24, 1  ;;  %p178_p3 = scmp.ne.s32.totalorder %s8694_s19, %s8690_s18 }
   0x8   : > { %s12327_s26 = smov (%p35_p0, %s33_s26), 0  ;;  %p179_p5 = scmp.eq.s32.totalorder %s7590_s25, 1 }
   0x9   : > { %p8787_p4 = por %p173_p2, %p172_p1  ;;  %s155_s29 = ssub.s32 %s8706_s22, %s12327_s26 }
   0xa   : > { %p7593_p6 = scmp.ge.s32.totalorder %s8710_s23, 1  ;;  %p160_p7 = scmp.eq.s32.totalorder %s155_s29, 0 }
   0xb   : > { %p8794_p8 = por %p179_p5, %p178_p3  ;;  %p228_p9 = scmp.lt.s32.totalorder %s8710_s23, 3 }
   0xc   : > { %s8800_s6 = scalar_select %p160_p7, %s8698_s20, %s162_s27  }
   0xd   : > { %p229_p10 = pnand %p7593_p6, %p228_p9 }
   0xf   : > { %232 = sbr.rel (%p229_p10) target bundleno = 1079 (0x437), region = 40 }
  0x14   : > { %p267_p11 = scmp.lt.s32.totalorder %s8702_s21, 1  ;;  %vm409_vm0 = vcmask 261120   ;;  %s262_s12 = sand.u32 1, %s8694_s19  }
  0x15   : > { %s7594_s13 = sshll.u32 %s262_s12, 9  ;;  %s8021_s15 = sshll.u32 %s8702_s21, 13 }
  0x16   : > { %s268_s7 = scalar_select %p267_p11, %s8702_s21, 1 }
  0x17   : > { %s11006_s14 = scalar_lea.vmem [#allocation2], %s7594_s13  ;;  %s11994_s25 = scalar_lea.hbm %s12053_s5, %s8021_s15 }
  0x18   : > { %s8020_s8 = sshll.u32 %s268_s7, 10  ;;  %s7501_s16 = sshll.u32 %s11006_s14, 4  ;;  %s11996_s16 = int_to_ptr.vmem [resolvable:$true] %s7501_s16 }
  0x19   : > { %s8807_s11 = scalar_lea.vmem %s12048_s0, %s8020_s8  ;;  %s12003_s21 = scalar_lea.sflag [#allocation3], %s262_s12 }
  0x1a   : > { %v283_v0 = vld [vmem:[%s8807_s11 + $0x10] sm:$0xff]  ;;  %v281_v1 = vld [vmem:[%s8807_s11] sm:$0xff]  ;;  %v284_v2 = vld [vmem:[%s8807_s11 + $0x18] sm:$0xff]  ;;  %s8634_s27 = scalar_lea.vmem %s11996_s16, 8192  ;;  %s8714_s29 = smov [#allocation2]  }
  0x1b   : > { %v416_v3 = vsel %vm409_vm0, %v283_v0, 0.0  ;;  %v410_v4 = vsel %vm409_vm0, %v281_v1, 0.0  ;;  %v282_v5 = vld [vmem:[%s8807_s11 + $0x8] sm:$0xff]  ;;  %v419_v6 = vsel %vm409_vm0, %v284_v2, 0.0  ;;  %v285_v9 = vld [vmem:[%s8807_s11 + $0x20] sm:$0xff]  ;;  %v288_v12 = vld [vmem:[%s8807_s11 + $0x38] sm:$0xff]  ;;  %p8635_p12 = scmp.ne.s32.totalorder %s11996_s16, %s8634_s27 }
  0x1c   : > { %417 = vadd.xlane.f32.xlu1 %v416_v3  ;;  %411 = vadd.xlane.f32.xlu0 %v410_v4  ;;  %v413_v7 = vsel %vm409_vm0, %v282_v5, 0.0  ;;  %v286_v8 = vld [vmem:[%s8807_s11 + $0x28] sm:$0xff]  ;;  %v422_v11 = vsel %vm409_vm0, %v285_v9, 0.0  ;;  %v287_v13 = vld [vmem:[%s8807_s11 + $0x30] sm:$0xff]  ;;  %v431_v14 = vsel %vm409_vm0, %v288_v12, 0.0  ;;  %v289_v17 = vld [vmem:[%s8807_s11 + $0x40] sm:$0xff] }
  0x1d   : > { %v425_v10 = vsel %vm409_vm0, %v286_v8, 0.0  ;;  %v428_v15 = vsel %vm409_vm0, %v287_v13, 0.0  ;;  %v8826_v16 = vld [vmem:[%s8807_s11 + $0x48] sm:$0xff]  ;;  %v434_v19 = vsel %vm409_vm0, %v289_v17, 0.0  ;;  %v8833_v20 = vld [vmem:[%s8807_s11 + $0x58] sm:$0xff]  ;;  %v8836_v21 = vld [vmem:[%s8807_s11 + $0x50] sm:$0xff]  ;;  %p8636_p13 = pnand %p8635_p12, %p8787_p4 }
  0x1e   : > { %v437_v18 = vsel %vm409_vm0, %v8826_v16, 0.0  ;;  %v443_v22 = vsel %vm409_vm0, %v8833_v20, 0.0  ;;  %v440_v23 = vsel %vm409_vm0, %v8836_v21, 0.0  ;;  %v8843_v24 = vld [vmem:[%s8807_s11 + $0x68] sm:$0xff]  ;;  %v8846_v25 = vld [vmem:[%s8807_s11 + $0x60] sm:$0xff]  ;;  %v8853_v28 = vld [vmem:[%s8807_s11 + $0x1f8] sm:$0xff] }
  0x1f   : > { %v449_v26 = vsel %vm409_vm0, %v8843_v24, 0.0  ;;  %v446_v27 = vsel %vm409_vm0, %v8846_v25, 0.0  ;;  %v8856_v29 = vld [vmem:[%s8807_s11 + $0xf8] sm:$0xff]  ;;  %v599_v30 = vsel %vm409_vm0, %v8853_v28, 0.0  ;;  %v8873_v36 = vld [vmem:[%s8807_s11 + $0x1f0] sm:$0xff]  ;;  %v8893_v44 = vld [vmem:[%s8807_s11 + $0x1e8] sm:$0xff]  ;;  %p8637_p0 = pneg %p8636_p13 }
  0x20   : > { %420 = vadd.xlane.f32.xlu1 %v419_v6  ;;  %414 = vadd.xlane.f32.xlu0 %v413_v7  ;;  %v503_v31 = vsel %vm409_vm0, %v8856_v29, 0.0  ;;  %v8863_v32 = vld [vmem:[%s8807_s11 + $0x178] sm:$0xff]  ;;  %v8876_v37 = vld [vmem:[%s8807_s11 + $0xf0] sm:$0xff]  ;;  %v596_v38 = vsel %vm409_vm0, %v8873_v36, 0.0  ;;  %v8896_v45 = vld [vmem:[%s8807_s11 + $0xe8] sm:$0xff]  ;;  %v593_v46 = vsel %vm409_vm0, %v8893_v44, 0.0 }
  0x21   : > { %v8866_v33 = vld [vmem:[%s8807_s11 + $0x78] sm:$0xff]  ;;  %v551_v34 = vsel %vm409_vm0, %v8863_v32, 0.0  ;;  %v500_v39 = vsel %vm409_vm0, %v8876_v37, 0.0  ;;  %v8883_v40 = vld [vmem:[%s8807_s11 + $0x170] sm:$0xff]  ;;  %v497_v47 = vsel %vm409_vm0, %v8896_v45, 0.0  ;;  %v8903_v48 = vld [vmem:[%s8807_s11 + $0xe0] sm:$0xff] }
  0x22   : > { %v455_v35 = vsel %vm409_vm0, %v8866_v33, 0.0  ;;  %v8886_v41 = vld [vmem:[%s8807_s11 + $0x70] sm:$0xff]  ;;  %v548_v42 = vsel %vm409_vm0, %v8883_v40, 0.0  ;;  %v8906_v49 = vld [vmem:[%s8807_s11 + $0x168] sm:$0xff]  ;;  %v494_v50 = vsel %vm409_vm0, %v8903_v48, 0.0  ;;  %v8913_v52 = vld [vmem:[%s8807_s11 + $0x160] sm:$0xff] }
  0x23   : > { %v452_v43 = vsel %vm409_vm0, %v8886_v41, 0.0  ;;  %v545_v51 = vsel %vm409_vm0, %v8906_v49, 0.0  ;;  %v8916_v53 = vld [vmem:[%s8807_s11 + $0x1e0] sm:$0xff]  ;;  %v542_v54 = vsel %vm409_vm0, %v8913_v52, 0.0  ;;  %v8923_v56 = vld [vmem:[%s8807_s11 + $0x1d8] sm:$0xff]  ;;  %v8933_v60 = vld [vmem:[%s8807_s11 + $0xd0] sm:$0xff] }
  0x24   : > { %426 = vadd.xlane.f32.xlu1 %v425_v10  ;;  %423 = vadd.xlane.f32.xlu0 %v422_v11  ;;  %v590_v55 = vsel %vm409_vm0, %v8916_v53, 0.0  ;;  %v8926_v57 = vld [vmem:[%s8807_s11 + $0xd8] sm:$0xff]  ;;  %v587_v58 = vsel %vm409_vm0, %v8923_v56, 0.0  ;;  %v488_v62 = vsel %vm409_vm0, %v8933_v60, 0.0  ;;  %v8943_v0 = vld [vmem:[%s8807_s11 + $0x150] sm:$0xff]  ;;  %v8953_v4 = vld [vmem:[%s8807_s11 + $0x1c8] sm:$0xff] }
  0x25   : > { %v491_v59 = vsel %vm409_vm0, %v8926_v57, 0.0  ;;  %v8936_v61 = vld [vmem:[%s8807_s11 + $0x158] sm:$0xff]  ;;  %v8946_v1 = vld [vmem:[%s8807_s11 + $0x1d0] sm:$0xff]  ;;  %v536_v2 = vsel %vm409_vm0, %v8943_v0, 0.0  ;;  %v8956_v5 = vld [vmem:[%s8807_s11 + $0xc8] sm:$0xff]  ;;  %v581_v6 = vsel %vm409_vm0, %v8953_v4, 0.0 }
  0x26   : > { %v539_v63 = vsel %vm409_vm0, %v8936_v61, 0.0  ;;  %v584_v3 = vsel %vm409_vm0, %v8946_v1, 0.0  ;;  %v485_v7 = vsel %vm409_vm0, %v8956_v5, 0.0  ;;  %v8963_v8 = vld [vmem:[%s8807_s11 + $0xc0] sm:$0xff]  ;;  %v8966_v9 = vld [vmem:[%s8807_s11 + $0x148] sm:$0xff]  ;;  %v8983_v17 = vld [vmem:[%s8807_s11 + $0x1b8] sm:$0xff] }
  0x27   : > { %v482_v10 = vsel %vm409_vm0, %v8963_v8, 0.0  ;;  %v533_v11 = vsel %vm409_vm0, %v8966_v9, 0.0  ;;  %v8973_v12 = vld [vmem:[%s8807_s11 + $0x140] sm:$0xff]  ;;  %s8638_s7 = sshll.u32 %s8714_s29, 4  ;;  %s8639_s7 = int_to_ptr.vmem [resolvable:$false] %s8638_s7 }
  0x28   : > { %432 = vadd.xlane.f32.xlu1 %v431_v14  ;;  %429 = vadd.xlane.f32.xlu0 %v428_v15  ;;  %v8976_v13 = vld [vmem:[%s8807_s11 + $0x1c0] sm:$0xff]  ;;  %v530_v14 = vsel %vm409_vm0, %v8973_v12, 0.0  ;;  %s8640_s8 = scalar_lea.vmem %s8639_s7, 16384  ;;  %p8641_p1 = scmp.lt.s32.totalorder %s11996_s16, %s8639_s7 }
  0x29   : > { %v578_v15 = vsel %vm409_vm0, %v8976_v13, 0.0  ;;  %p8642_p2 = scmp.lt.s32.totalorder %s8640_s8, %s8634_s27 }
  0x2b   : > { %p8643_p3 = por %p8642_p2, %p8641_p1 }
  0x2c   : > { %438 = vadd.xlane.f32.xlu1 %v437_v18  ;;  %435 = vadd.xlane.f32.xlu0 %v434_v19  ;;  %v8986_v18 = vld [vmem:[%s8807_s11 + $0xb8] sm:$0xff]  ;;  %v575_v19 = vsel %vm409_vm0, %v8983_v17, 0.0 }
  0x2d   : > { %p8644_p5 = pnand %p8643_p3, %p8637_p0 }
  0x30   : > { %444 = vadd.xlane.f32.xlu1 %v443_v22  ;;  %441 = vadd.xlane.f32.xlu0 %v440_v23  ;;  %v479_v22 = vsel %vm409_vm0, %v8986_v18, 0.0  ;;  %v8993_v23 = vld [vmem:[%s8807_s11 + $0xb0] sm:$0xff] }
  0x34   : > { %450 = vadd.xlane.f32.xlu1 %v449_v26  ;;  %447 = vadd.xlane.f32.xlu0 %v446_v27  ;;  %v8996_v26 = vld [vmem:[%s8807_s11 + $0x138] sm:$0xff]  ;;  %v476_v27 = vsel %vm409_vm0, %v8993_v23, 0.0 }
  0x38   : > { %600 = vadd.xlane.f32.xlu1 %v599_v30  ;;  %504 = vadd.xlane.f32.xlu0 %v503_v31  ;;  %v527_v30 = vsel %vm409_vm0, %v8996_v26, 0.0  ;;  %v9003_v31 = vld [vmem:[%s8807_s11 + $0x130] sm:$0xff] }
  0x3c   : > { %552 = vadd.xlane.f32.xlu1 %v551_v34  ;;  %456 = vadd.xlane.f32.xlu0 %v455_v35  ;;  %v9006_v34 = vld [vmem:[%s8807_s11 + $0x1b0] sm:$0xff]  ;;  %v524_v35 = vsel %vm409_vm0, %v9003_v31, 0.0 }
  0x40   : > { %597 = vadd.xlane.f32.xlu1 %v596_v38  ;;  %501 = vadd.xlane.f32.xlu0 %v500_v39  ;;  %v572_v38 = vsel %vm409_vm0, %v9006_v34, 0.0  ;;  %v334_v39 = vld [vmem:[%s8807_s11 + $0x1a8] sm:$0xff] }
  0x44   : > { %549 = vadd.xlane.f32.xlu1 %v548_v42  ;;  %453 = vadd.xlane.f32.xlu0 %v452_v43  ;;  %v302_v42 = vld [vmem:[%s8807_s11 + $0xa8] sm:$0xff]  ;;  %v569_v43 = vsel %vm409_vm0, %v334_v39, 0.0 }
  0x48   : > { %594 = vadd.xlane.f32.xlu1 %v593_v46  ;;  %498 = vadd.xlane.f32.xlu0 %v497_v47  ;;  %v473_v46 = vsel %vm409_vm0, %v302_v42, 0.0  ;;  %v301_v47 = vld [vmem:[%s8807_s11 + $0xa0] sm:$0xff] }
  0x49   : > { %v297_v42 = vld [vmem:[%s8807_s11 + $0x80] sm:$0xff] }
  0x4c   : > { %495 = vadd.xlane.f32.xlu1 %v494_v50  ;;  %546 = vadd.xlane.f32.xlu0 %v545_v51  ;;  %v318_v50 = vld [vmem:[%s8807_s11 + $0x128] sm:$0xff]  ;;  %v470_v51 = vsel %vm409_vm0, %v301_v47, 0.0 }
  0x50   : > { %543 = vadd.xlane.f32.xlu1 %v542_v54  ;;  %591 = vadd.xlane.f32.xlu0 %v590_v55  ;;  %v521_v54 = vsel %vm409_vm0, %v318_v50, 0.0  ;;  %v317_v55 = vld [vmem:[%s8807_s11 + $0x120] sm:$0xff] }
  0x51   : > { %v313_v50 = vld [vmem:[%s8807_s11 + $0x100] sm:$0xff] }
  0x54   : > { %588 = vadd.xlane.f32.xlu1 %v587_v58  ;;  %492 = vadd.xlane.f32.xlu0 %v491_v59  ;;  %v333_v58 = vld [vmem:[%s8807_s11 + $0x1a0] sm:$0xff]  ;;  %v518_v59 = vsel %vm409_vm0, %v317_v55, 0.0 }
  0x58   : > { %489 = vadd.xlane.f32.xlu1 %v488_v62  ;;  %540 = vadd.xlane.f32.xlu0 %v539_v63  ;;  %v566_v62 = vsel %vm409_vm0, %v333_v58, 0.0  ;;  %v332_v63 = vld [vmem:[%s8807_s11 + $0x198] sm:$0xff] }
  0x59   : > { %v408_v58 = vld [vmem:[%s8807_s11 + $0x3f8] sm:$0xff] }
  0x5c   : > { %537 = vadd.xlane.f32.xlu1 %v536_v2  ;;  %585 = vadd.xlane.f32.xlu0 %v584_v3  ;;  %v300_v2 = vld [vmem:[%s8807_s11 + $0x98] sm:$0xff]  ;;  %v563_v3 = vsel %vm409_vm0, %v332_v63, 0.0 }
  0x60   : > { %582 = vadd.xlane.f32.xlu1 %v581_v6  ;;  %486 = vadd.xlane.f32.xlu0 %v485_v7  ;;  %v467_v6 = vsel %vm409_vm0, %v300_v2, 0.0  ;;  %v299_v7 = vld [vmem:[%s8807_s11 + $0x90] sm:$0xff]  ;;  %v392_v2 = vld [vmem:[%s8807_s11 + $0x378] sm:$0xff] }
  0x64   : > { %483 = vadd.xlane.f32.xlu1 %v482_v10  ;;  %534 = vadd.xlane.f32.xlu0 %v533_v11  ;;  %v316_v10 = vld [vmem:[%s8807_s11 + $0x118] sm:$0xff]  ;;  %v464_v11 = vsel %vm409_vm0, %v299_v7, 0.0 }
  0x68   : > { %531 = vadd.xlane.f32.xlu1 %v530_v14  ;;  %579 = vadd.xlane.f32.xlu0 %v578_v15  ;;  %v515_v14 = vsel %vm409_vm0, %v316_v10, 0.0  ;;  %v315_v15 = vld [vmem:[%s8807_s11 + $0x110] sm:$0xff] }
  0x69   : > { %v407_v10 = vld [vmem:[%s8807_s11 + $0x3f0] sm:$0xff] }
  0x6c   : > { %576 = vadd.xlane.f32.xlu1 %v575_v19  ;;  %480 = vadd.xlane.f32.xlu0 %v479_v22  ;;  %v331_v19 = vld [vmem:[%s8807_s11 + $0x190] sm:$0xff]  ;;  %v512_v22 = vsel %vm409_vm0, %v315_v15, 0.0 }
  0x70   : > { %477 = vadd.xlane.f32.xlu1 %v476_v27  ;;  %528 = vadd.xlane.f32.xlu0 %v527_v30  ;;  %v560_v27 = vsel %vm409_vm0, %v331_v19, 0.0  ;;  %v330_v30 = vld [vmem:[%s8807_s11 + $0x188] sm:$0xff]  ;;  %v391_v19 = vld [vmem:[%s8807_s11 + $0x370] sm:$0xff] }
  0x74   : > { %525 = vadd.xlane.f32.xlu1 %v524_v35  ;;  %573 = vadd.xlane.f32.xlu0 %v572_v38  ;;  %v298_v35 = vld [vmem:[%s8807_s11 + $0x88] sm:$0xff]  ;;  %v557_v38 = vsel %vm409_vm0, %v330_v30, 0.0 }
  0x75   : > { %v461_v39 = vsel %vm409_vm0, %v298_v35, 0.0  ;;  %v740_v35 = vsel %vm409_vm0, %v391_v19, 0.0 }
  0x78   : > { %570 = vadd.xlane.f32.xlu1 %v569_v43  ;;  %474 = vadd.xlane.f32.xlu0 %v473_v46  ;;  %v314_v43 = vld [vmem:[%s8807_s11 + $0x108] sm:$0xff]  ;;  %v458_v46 = vsel %vm409_vm0, %v297_v42, 0.0 }
  0x79   : > { %v509_v47 = vsel %vm409_vm0, %v314_v43, 0.0  ;;  %v374_v42 = vld [vmem:[%s8807_s11 + $0x2e8] sm:$0xff] }
  0x7c   : > { %471 = vadd.xlane.f32.xlu1 %v470_v51  ;;  %522 = vadd.xlane.f32.xlu0 %v521_v54  ;;  %v329_v51 = vld [vmem:[%s8807_s11 + $0x180] sm:$0xff]  ;;  %v506_v54 = vsel %vm409_vm0, %v313_v50, 0.0  ;;  %v689_v50 = vsel %vm409_vm0, %v374_v42, 0.0 }
  0x7d   : > { %v554_v55 = vsel %vm409_vm0, %v329_v51, 0.0  ;;  %v390_v51 = vld [vmem:[%s8807_s11 + $0x368] sm:$0xff] }
  0x80   : > { %519 = vadd.xlane.f32.xlu1 %v518_v59  ;;  %567 = vadd.xlane.f32.xlu0 %v566_v62  ;;  %v376_v59 = vld [vmem:[%s8807_s11 + $0x2f8] sm:$0xff]  ;;  %v791_v62 = vsel %vm409_vm0, %v408_v58, 0.0 }
  0x81   : > { %v695_v63 = vsel %vm409_vm0, %v376_v59, 0.0  ;;  %v737_v59 = vsel %vm409_vm0, %v390_v51, 0.0 }
  0x84   : > { %564 = vadd.xlane.f32.xlu1 %v563_v3  ;;  %468 = vadd.xlane.f32.xlu0 %v467_v6  ;;  %v360_v3 = vld [vmem:[%s8807_s11 + $0x278] sm:$0xff]  ;;  %v743_v6 = vsel %vm409_vm0, %v392_v2, 0.0  ;;  %v373_v2 = vld [vmem:[%s8807_s11 + $0x2e0] sm:$0xff] }
  0x85   : > { %v647_v7 = vsel %vm409_vm0, %v360_v3, 0.0 }
  0x88   : > { %465 = vadd.xlane.f32.xlu1 %v464_v11  ;;  %516 = vadd.xlane.f32.xlu0 %v515_v14  ;;  %v375_v11 = vld [vmem:[%s8807_s11 + $0x2f0] sm:$0xff]  ;;  %v788_v14 = vsel %vm409_vm0, %v407_v10, 0.0  ;;  %v686_v10 = vsel %vm409_vm0, %v373_v2, 0.0 }
  0x89   : > { %v692_v15 = vsel %vm409_vm0, %v375_v11, 0.0  ;;  %v389_v11 = vld [vmem:[%s8807_s11 + $0x360] sm:$0xff] }
  0x8c   : > { %513 = vadd.xlane.f32.xlu1 %v512_v22  ;;  %561 = vadd.xlane.f32.xlu0 %v560_v27  ;;  %v359_v22 = vld [vmem:[%s8807_s11 + $0x270] sm:$0xff] }
  0x90   : > { %558 = vadd.xlane.f32.xlu1 %v557_v38  ;;  %462 = vadd.xlane.f32.xlu0 %v461_v39  ;;  %v644_v38 = vsel %vm409_vm0, %v359_v22, 0.0  ;;  %v406_v39 = vld [vmem:[%s8807_s11 + $0x3e8] sm:$0xff]  ;;  %v734_v22 = vsel %vm409_vm0, %v389_v11, 0.0 }
  0x94   : > { %459 = vadd.xlane.f32.xlu1 %v458_v46  ;;  %510 = vadd.xlane.f32.xlu0 %v509_v47  ;;  %v785_v47 = vsel %vm409_vm0, %v406_v39, 0.0 }
  0x98   : > { %507 = vadd.xlane.f32.xlu1 %v506_v54  ;;  %555 = vadd.xlane.f32.xlu0 %v554_v55  ;;  %v358_v54 = vld [vmem:[%s8807_s11 + $0x268] sm:$0xff] }
  0x9c   : > { %792 = vadd.xlane.f32.xlu1 %v791_v62  ;;  %696 = vadd.xlane.f32.xlu0 %v695_v63  ;;  %v641_v62 = vsel %vm409_vm0, %v358_v54, 0.0  ;;  %v405_v63 = vld [vmem:[%s8807_s11 + $0x3e0] sm:$0xff] }
  0xa0   : > { %744 = vadd.xlane.f32.xlu1 %v743_v6  ;;  %648 = vadd.xlane.f32.xlu0 %v647_v7  ;;  %v782_v7 = vsel %vm409_vm0, %v405_v63, 0.0 }
  0xa4   : > { %789 = vadd.xlane.f32.xlu1 %v788_v14  ;;  %693 = vadd.xlane.f32.xlu0 %v692_v15  ;;  %v357_v14 = vld [vmem:[%s8807_s11 + $0x260] sm:$0xff] }
  0xa5   : > { %v9062_v27 = vpop.xlane.xlu1 %417  ;;  %v9064_v30 = vpop.xlane.xlu0 %411 }
  0xa6   : > { %12141 = vst [vmem:[#allocation5_spill] sm:$0xff] %v9062_v27  ;;  %12142 = vst [vmem:[#allocation6_spill] sm:$0xff] %v9064_v30 }
  0xa8   : > { %741 = vadd.xlane.f32.xlu1 %v740_v35  ;;  %645 = vadd.xlane.f32.xlu0 %v644_v38  ;;  %v638_v35 = vsel %vm409_vm0, %v357_v14, 0.0 }
  0xa9   : > { %v9070_v43 = vpop.xlane.xlu1 %420  ;;  %v9072_v46 = vpop.xlane.xlu0 %414 }
  0xaa   : > { %12143 = vst [vmem:[#allocation7_spill] sm:$0xff] %v9070_v43  ;;  %12144 = vst [vmem:[#allocation8_spill] sm:$0xff] %v9072_v46  ;;  %v356_v43 = vld [vmem:[%s8807_s11 + $0x258] sm:$0xff] }
  0xac   : > { %786 = vadd.xlane.f32.xlu1 %v785_v47  ;;  %690 = vadd.xlane.f32.xlu0 %v689_v50 }
  0xad   : > { %v9078_v55 = vpop.xlane.xlu1 %426  ;;  %v9080_v58 = vpop.xlane.xlu0 %423 }
  0xb0   : > { %738 = vadd.xlane.f32.xlu1 %v737_v59  ;;  %642 = vadd.xlane.f32.xlu0 %v641_v62 }
  0xb1   : > { %v9086_v3 = vpop.xlane.xlu1 %432  ;;  %v9088_v6 = vpop.xlane.xlu0 %429 }
  0xb4   : > { %783 = vadd.xlane.f32.xlu1 %v782_v7  ;;  %687 = vadd.xlane.f32.xlu0 %v686_v10 }
  0xb5   : > { %v9094_v15 = vpop.xlane.xlu1 %438  ;;  %v9096_v19 = vpop.xlane.xlu0 %435 }
  0xb8   : > { %735 = vadd.xlane.f32.xlu1 %v734_v22  ;;  %639 = vadd.xlane.f32.xlu0 %v638_v35 }
  0xb9   : > { %v9100_v38 = vpop.xlane.xlu1 %444  ;;  %v9102_v39 = vpop.xlane.xlu0 %441 }
  0xbd   : > { %v9104_v42 = vpop.xlane.xlu1 %450  ;;  %v9106_v47 = vpop.xlane.xlu0 %447 }
  0xc1   : > { %v601_v50 = vpop.xlane.xlu1 %600  ;;  %v505_v51 = vpop.xlane.xlu0 %504 }
  0xc2   : > { %v858_v54 = vmul.f32 0.03125, %v601_v50  ;;  %v826_v59 = vmul.f32 0.03125, %v505_v51 }
  0xc4   : > { %v9109_v62 = vsub.f32 %v8853_v28, %v858_v54  ;;  %v9112_v63 = vsub.f32 %v8856_v29, %v826_v59 }
  0xc5   : > { %v553_v2 = vpop.xlane.xlu1 %552  ;;  %v457_v7 = vpop.xlane.xlu0 %456 }
  0xc6   : > { %v842_v10 = vmul.f32 0.03125, %v553_v2  ;;  %v810_v11 = vmul.f32 0.03125, %v457_v7  ;;  %v1114_v14 = vmul.f32 %v9109_v62, %v9109_v62  ;;  %v1082_v22 = vmul.f32 %v9112_v63, %v9112_v63 }
  0xc8   : > { %v9119_v35 = vsub.f32 %v8863_v32, %v842_v10  ;;  %v9122_v28 = vsub.f32 %v8866_v33, %v810_v11  ;;  %v1368_v29 = vsel %vm409_vm0, %v1114_v14, 0.0  ;;  %v1272_v50 = vsel %vm409_vm0, %v1082_v22, 0.0  ;;  %v404_v32 = vld [vmem:[%s8807_s11 + $0x3d8] sm:$0xff] }
  0xc9   : > { %1369 = vadd.xlane.f32.xlu1 %v1368_v29  ;;  %1273 = vadd.xlane.f32.xlu0 %v1272_v50  ;;  %v598_v51 = vpop.xlane.xlu1 %597  ;;  %v502_v54 = vpop.xlane.xlu0 %501  ;;  %v372_v33 = vld [vmem:[%s8807_s11 + $0x2d8] sm:$0xff]  ;;  %v779_v22 = vsel %vm409_vm0, %v404_v32, 0.0  ;;  %v635_v32 = vsel %vm409_vm0, %v356_v43, 0.0 }
  0xca   : > { %v1098_v59 = vmul.f32 %v9119_v35, %v9119_v35  ;;  %v1066_v2 = vmul.f32 %v9122_v28, %v9122_v28  ;;  %v857_v7 = vmul.f32 0.03125, %v598_v51  ;;  %v825_v10 = vmul.f32 0.03125, %v502_v54  ;;  %v388_v51 = vld [vmem:[%s8807_s11 + $0x358] sm:$0xff] }
  0xcb   : > { %v683_v29 = vsel %vm409_vm0, %v372_v33, 0.0 }
  0xcc   : > { %v1320_v11 = vsel %vm409_vm0, %v1098_v59, 0.0  ;;  %v1224_v14 = vsel %vm409_vm0, %v1066_v2, 0.0  ;;  %v9137_v46 = vsub.f32 %v8873_v36, %v857_v7  ;;  %v9140_v27 = vsub.f32 %v8876_v37, %v825_v10 }
  0xcd   : > { %1321 = vadd.xlane.f32.xlu1 %v1320_v11  ;;  %1225 = vadd.xlane.f32.xlu0 %v1224_v14  ;;  %v550_v50 = vpop.xlane.xlu1 %549  ;;  %v454_v30 = vpop.xlane.xlu0 %453  ;;  %v731_v2 = vsel %vm409_vm0, %v388_v51, 0.0 }
  0xce   : > { %12145 = vst [vmem:[#allocation9_spill] sm:$0xff] %v9137_v46  ;;  %12146 = vst [vmem:[#allocation10_spill] sm:$0xff] %v9140_v27  ;;  %v841_v54 = vmul.f32 0.03125, %v550_v50  ;;  %v809_v59 = vmul.f32 0.03125, %v454_v30  ;;  %v1113_v37 = vmul.f32 %v9137_v46, %v9137_v46  ;;  %v1081_v30 = vmul.f32 %v9140_v27, %v9140_v27  ;;  %v355_v27 = vld [vmem:[%s8807_s11 + $0x250] sm:$0xff] }
  0xd0   : > { %v9147_v14 = vsub.f32 %v8883_v40, %v841_v54  ;;  %v9150_v36 = vsub.f32 %v8886_v41, %v809_v59  ;;  %v1365_v10 = vsel %vm409_vm0, %v1113_v37, 0.0  ;;  %v1269_v40 = vsel %vm409_vm0, %v1081_v30, 0.0  ;;  %v403_v59 = vld [vmem:[%s8807_s11 + $0x3d0] sm:$0xff] }
  0xd1   : > { %780 = vadd.xlane.f32.xlu1 %v779_v22  ;;  %684 = vadd.xlane.f32.xlu0 %v683_v29  ;;  %v595_v11 = vpop.xlane.xlu1 %594  ;;  %v499_v33 = vpop.xlane.xlu0 %498 }
  0xd2   : > { %12147 = vst [vmem:[#allocation11_spill] sm:$0xff] %v9147_v14  ;;  %12148 = vst [vmem:[#allocation12_spill] sm:$0xff] %v9150_v36  ;;  %v1097_v41 = vmul.f32 %v9147_v14, %v9147_v14  ;;  %v1065_v22 = vmul.f32 %v9150_v36, %v9150_v36  ;;  %v824_v37 = vmul.f32 0.03125, %v499_v33  ;;  %v387_v36 = vld [vmem:[%s8807_s11 + $0x350] sm:$0xff] }
  0xd4   : > { %v1317_v51 = vsel %vm409_vm0, %v1097_v41, 0.0  ;;  %v1221_v54 = vsel %vm409_vm0, %v1065_v22, 0.0  ;;  %v808_v41 = vmul.f32 0.03125, %v9104_v42 }
  0xd5   : > { %732 = vadd.xlane.f32.xlu1 %v731_v2  ;;  %636 = vadd.xlane.f32.xlu0 %v635_v32  ;;  %v496_v7 = vpop.xlane.xlu1 %495  ;;  %v547_v43 = vpop.xlane.xlu0 %546  ;;  %v371_v2 = vld [vmem:[%s8807_s11 + $0x2d0] sm:$0xff]  ;;  %v856_v32 = vmul.f32 0.03125, %v595_v11  ;;  %v9179_v11 = vsub.f32 %v8896_v45, %v824_v37 }
  0xd6   : > { %v840_v33 = vmul.f32 0.03125, %v547_v43  ;;  %v9188_v46 = vsub.f32 %v8843_v24, %v808_v41  ;;  %v402_v41 = vld [vmem:[%s8807_s11 + $0x3c8] sm:$0xff] }
  0xd7   : > { %v9176_v22 = vsub.f32 %v8893_v44, %v856_v32  ;;  %12150 = vst [vmem:[#allocation14_spill] sm:$0xff] %v9179_v11  ;;  %v1080_v42 = vmul.f32 %v9179_v11, %v9179_v11  ;;  %v386_v11 = vld [vmem:[%s8807_s11 + $0x348] sm:$0xff] }
  0xd8   : > { %12151 = vst [vmem:[#allocation15_spill] sm:$0xff] %v9188_v46  ;;  %v9191_v44 = vsub.f32 %v8906_v49, %v840_v33  ;;  %v1064_v49 = vmul.f32 %v9188_v46, %v9188_v46  ;;  %v823_v33 = vmul.f32 0.03125, %v496_v7  ;;  %v773_v46 = vsel %vm409_vm0, %v402_v41, 0.0 }
  0xd9   : > { %1366 = vadd.xlane.f32.xlu1 %v1365_v10  ;;  %1270 = vadd.xlane.f32.xlu0 %v1269_v40  ;;  %v544_v29 = vpop.xlane.xlu1 %543  ;;  %v592_v50 = vpop.xlane.xlu0 %591  ;;  %v776_v10 = vsel %vm409_vm0, %v403_v59, 0.0  ;;  %v680_v40 = vsel %vm409_vm0, %v371_v2, 0.0  ;;  %12149 = vst [vmem:[#allocation13_spill] sm:$0xff] %v9176_v22  ;;  %v728_v59 = vsel %vm409_vm0, %v387_v36, 0.0  ;;  %v632_v2 = vsel %vm409_vm0, %v355_v27, 0.0 }
  0xda   : > { %12152 = vst [vmem:[#allocation16_spill] sm:$0xff] %v9191_v44  ;;  %v1112_v45 = vmul.f32 %v9176_v22, %v9176_v22  ;;  %v1266_v27 = vsel %vm409_vm0, %v1080_v42, 0.0  ;;  %v1096_v32 = vmul.f32 %v9191_v44, %v9191_v44  ;;  %v354_v44 = vld [vmem:[%s8807_s11 + $0x248] sm:$0xff]  ;;  %v807_v22 = vmul.f32 0.03125, %v9106_v47 }
  0xdb   : > { %v9225_v7 = vsub.f32 %v8903_v48, %v823_v33  ;;  %v725_v41 = vsel %vm409_vm0, %v386_v11, 0.0 }
  0xdc   : > { %v1362_v24 = vsel %vm409_vm0, %v1112_v45, 0.0  ;;  %v1314_v45 = vsel %vm409_vm0, %v1096_v32, 0.0 }
  0xdd   : > { %1318 = vadd.xlane.f32.xlu1 %v1317_v51  ;;  %1222 = vadd.xlane.f32.xlu0 %v1221_v54  ;;  %v9166_v30 = vpop.xlane.xlu1 %588  ;;  %v9168_v14 = vpop.xlane.xlu0 %492  ;;  %12153 = vst [vmem:[#allocation17_spill] sm:$0xff] %v9225_v7 }
  0xe1   : > { %777 = vadd.xlane.f32.xlu1 %v776_v10  ;;  %681 = vadd.xlane.f32.xlu0 %v680_v40  ;;  %v9181_v51 = vpop.xlane.xlu1 %489  ;;  %v9183_v54 = vpop.xlane.xlu0 %540  ;;  %v370_v40 = vld [vmem:[%s8807_s11 + $0x2c8] sm:$0xff] }
  0xe5   : > { %729 = vadd.xlane.f32.xlu1 %v728_v59  ;;  %633 = vadd.xlane.f32.xlu0 %v632_v2  ;;  %v9197_v43 = vpop.xlane.xlu1 %537  ;;  %v9199_v36 = vpop.xlane.xlu0 %585  ;;  %v855_v59 = vmul.f32 0.03125, %v592_v50  ;;  %v1218_v2 = vsel %vm409_vm0, %v1064_v49, 0.0  ;;  %v839_v50 = vmul.f32 0.03125, %v544_v29 }
  0xe7   : > { %v9228_v49 = vsub.f32 %v8916_v53, %v855_v59  ;;  %v9240_v48 = vsub.f32 %v8913_v52, %v839_v50  ;;  %v1079_v53 = vmul.f32 %v9225_v7, %v9225_v7  ;;  %v369_v59 = vld [vmem:[%s8807_s11 + $0x2c0] sm:$0xff]  ;;  %v854_v50 = vmul.f32 0.03125, %v9166_v30 }
  0xe8   : > { %v385_v7 = vld [vmem:[%s8807_s11 + $0x340] sm:$0xff]  ;;  %v806_v30 = vmul.f32 0.03125, %v9100_v38 }
  0xe9   : > { %1363 = vadd.xlane.f32.xlu1 %v1362_v24  ;;  %1267 = vadd.xlane.f32.xlu0 %v1266_v27  ;;  %v9207_v37 = vpop.xlane.xlu1 %582  ;;  %v9209_v10 = vpop.xlane.xlu0 %486  ;;  %v677_v27 = vsel %vm409_vm0, %v370_v40, 0.0  ;;  %v629_v40 = vsel %vm409_vm0, %v354_v44, 0.0  ;;  %12155 = vst [vmem:[#allocation19_spill] sm:$0xff] %v9240_v48  ;;  %v1095_v11 = vmul.f32 %v9240_v48, %v9240_v48  ;;  %v353_v48 = vld [vmem:[%s8807_s11 + $0x240] sm:$0xff] }
  0xea   : > { %v9289_v38 = vsub.f32 %v8833_v20, %v806_v30  ;;  %v368_v30 = vld [vmem:[%s8807_s11 + $0x2b8] sm:$0xff] }
  0xec   : > { %12158 = vst [vmem:[#allocation22_spill] sm:$0xff] %v9289_v38 }
  0xed   : > { %1219 = vadd.xlane.f32.xlu0 %v1218_v2  ;;  %1315 = vadd.xlane.f32.xlu1 %v1314_v45  ;;  %v9215_v42 = vpop.xlane.xlu1 %483  ;;  %v9217_v24 = vpop.xlane.xlu0 %534  ;;  %v9237_v45 = vsub.f32 %v8846_v25, %v807_v22  ;;  %v1263_v25 = vsel %vm409_vm0, %v1079_v53, 0.0  ;;  %v1311_v53 = vsel %vm409_vm0, %v1095_v11, 0.0  ;;  %v838_v11 = vmul.f32 0.03125, %v9183_v54 }
  0xef   : > { %12154 = vst [vmem:[#allocation18_spill] sm:$0xff] %v9237_v45  ;;  %v1063_v52 = vmul.f32 %v9237_v45, %v9237_v45 }
  0xf1   : > { %678 = vadd.xlane.f32.xlu0 %v677_v27  ;;  %774 = vadd.xlane.f32.xlu1 %v773_v46  ;;  %v9230_v32 = vpop.xlane.xlu1 %531  ;;  %v9232_v2 = vpop.xlane.xlu0 %579  ;;  %v1111_v46 = vmul.f32 %v9228_v49, %v9228_v49  ;;  %v401_v27 = vld [vmem:[%s8807_s11 + $0x3c0] sm:$0xff] }
  0xf2   : > { %v770_v45 = vsel %vm409_vm0, %v401_v27, 0.0  ;;  %v722_v27 = vsel %vm409_vm0, %v385_v7, 0.0 }
  0xf3   : > { %v1359_v22 = vsel %vm409_vm0, %v1111_v46, 0.0 }
  0xf5   : > { %630 = vadd.xlane.f32.xlu0 %v629_v40  ;;  %726 = vadd.xlane.f32.xlu1 %v725_v41  ;;  %v9246_v47 = vpop.xlane.xlu1 %576  ;;  %v9248_v29 = vpop.xlane.xlu0 %480  ;;  %v822_v40 = vmul.f32 0.03125, %v9168_v14  ;;  %v1215_v41 = vsel %vm409_vm0, %v1063_v52, 0.0  ;;  %v9276_v14 = vsub.f32 %v8923_v56, %v854_v50  ;;  %v9292_v56 = vsub.f32 %v8936_v61, %v838_v11  ;;  %v400_v11 = vld [vmem:[%s8807_s11 + $0x3b8] sm:$0xff] }
  0xf6   : > { %v1062_v61 = vmul.f32 %v9289_v38, %v9289_v38  ;;  %v671_v38 = vsel %vm409_vm0, %v368_v30, 0.0 }
  0xf7   : > { %12156 = vst [vmem:[#allocation20_spill] sm:$0xff] %v9276_v14  ;;  %v9279_v52 = vsub.f32 %v8926_v57, %v822_v40  ;;  %12159 = vst [vmem:[#allocation23_spill] sm:$0xff] %v9292_v56  ;;  %v1110_v57 = vmul.f32 %v9276_v14, %v9276_v14  ;;  %v1094_v50 = vmul.f32 %v9292_v56, %v9292_v56  ;;  %v767_v56 = vsel %vm409_vm0, %v400_v11, 0.0  ;;  %v384_v14 = vld [vmem:[%s8807_s11 + $0x338] sm:$0xff] }
  0xf8   : > { %v719_v11 = vsel %vm409_vm0, %v384_v14, 0.0 }
  0xf9   : > { %1264 = vadd.xlane.f32.xlu0 %v1263_v25  ;;  %1360 = vadd.xlane.f32.xlu1 %v1359_v22  ;;  %v9256_v44 = vpop.xlane.xlu1 %477  ;;  %v9258_v33 = vpop.xlane.xlu0 %528  ;;  %v674_v22 = vsel %vm409_vm0, %v369_v59, 0.0  ;;  %12157 = vst [vmem:[#allocation21_spill] sm:$0xff] %v9279_v52  ;;  %v626_v59 = vsel %vm409_vm0, %v353_v48, 0.0  ;;  %v1078_v54 = vmul.f32 %v9279_v52, %v9279_v52  ;;  %v1356_v20 = vsel %vm409_vm0, %v1110_v57, 0.0  ;;  %v352_v52 = vld [vmem:[%s8807_s11 + $0x238] sm:$0xff] }
  0xfa   : > { %v1212_v57 = vsel %vm409_vm0, %v1062_v61, 0.0  ;;  %v837_v61 = vmul.f32 0.03125, %v9197_v43  ;;  %v623_v30 = vsel %vm409_vm0, %v352_v52, 0.0 }
  0xfb   : > { %v1260_v7 = vsel %vm409_vm0, %v1078_v54, 0.0  ;;  %v1308_v54 = vsel %vm409_vm0, %v1094_v50, 0.0 }
  0xfd   : > { %1216 = vadd.xlane.f32.xlu0 %v1215_v41  ;;  %1312 = vadd.xlane.f32.xlu1 %v1311_v53  ;;  %v9266_v46 = vpop.xlane.xlu1 %525  ;;  %v9268_v25 = vpop.xlane.xlu0 %573 }
 0x101   : > { %675 = vadd.xlane.f32.xlu0 %v674_v22  ;;  %771 = vadd.xlane.f32.xlu1 %v770_v45  ;;  %v9282_v41 = vpop.xlane.xlu1 %570  ;;  %v9284_v53 = vpop.xlane.xlu0 %474 }
 0x105   : > { %627 = vadd.xlane.f32.xlu0 %v626_v59  ;;  %723 = vadd.xlane.f32.xlu1 %v722_v27  ;;  %v9298_v45 = vpop.xlane.xlu1 %471  ;;  %v9300_v48 = vpop.xlane.xlu0 %522  ;;  %v821_v59 = vmul.f32 0.03125, %v9181_v51  ;;  %v853_v27 = vmul.f32 0.03125, %v9199_v36  ;;  %v805_v51 = vmul.f32 0.03125, %v9102_v39 }
 0x107   : > { %v9328_v36 = vsub.f32 %v8933_v60, %v821_v59  ;;  %v9332_v50 = vsub.f32 %v8946_v1, %v853_v27  ;;  %v9341_v39 = vsub.f32 %v8836_v21, %v805_v51  ;;  %v9344_v60 = vsub.f32 %v8943_v0, %v837_v61  ;;  %v367_v51 = vld [vmem:[%s8807_s11 + $0x2b0] sm:$0xff] }
 0x108   : > { %v399_v61 = vld [vmem:[%s8807_s11 + $0x3b0] sm:$0xff] }
 0x109   : > { %1357 = vadd.xlane.f32.xlu1 %v1356_v20  ;;  %1261 = vadd.xlane.f32.xlu0 %v1260_v7  ;;  %v9308_v40 = vpop.xlane.xlu1 %519  ;;  %v9310_v22 = vpop.xlane.xlu0 %567  ;;  %12160 = vst [vmem:[#allocation24_spill] sm:$0xff] %v9328_v36  ;;  %12161 = vst [vmem:[#allocation25_spill] sm:$0xff] %v9332_v50  ;;  %v1077_v1 = vmul.f32 %v9328_v36, %v9328_v36  ;;  %v1109_v43 = vmul.f32 %v9332_v50, %v9332_v50  ;;  %v351_v36 = vld [vmem:[%s8807_s11 + $0x230] sm:$0xff] }
 0x10a   : > { %12162 = vst [vmem:[#allocation26_spill] sm:$0xff] %v9341_v39  ;;  %12163 = vst [vmem:[#allocation27_spill] sm:$0xff] %v9344_v60  ;;  %v1061_v0 = vmul.f32 %v9341_v39, %v9341_v39  ;;  %v668_v39 = vsel %vm409_vm0, %v367_v51, 0.0  ;;  %v383_v50 = vld [vmem:[%s8807_s11 + $0x330] sm:$0xff]  ;;  %v620_v51 = vsel %vm409_vm0, %v351_v36, 0.0 }
 0x10b   : > { %v1257_v21 = vsel %vm409_vm0, %v1077_v1, 0.0  ;;  %v1353_v14 = vsel %vm409_vm0, %v1109_v43, 0.0 }
 0x10c   : > { %v1209_v1 = vsel %vm409_vm0, %v1061_v0, 0.0 }
 0x10d   : > { %1213 = vadd.xlane.f32.xlu0 %v1212_v57  ;;  %1309 = vadd.xlane.f32.xlu1 %v1308_v54  ;;  %v9318_v20 = vpop.xlane.xlu1 %564  ;;  %v9320_v7 = vpop.xlane.xlu0 %468 }
 0x111   : > { %672 = vadd.xlane.f32.xlu0 %v671_v38  ;;  %768 = vadd.xlane.f32.xlu1 %v767_v56  ;;  %v9334_v57 = vpop.xlane.xlu1 %465  ;;  %v9336_v54 = vpop.xlane.xlu0 %516  ;;  %v1093_v56 = vmul.f32 %v9344_v60, %v9344_v60  ;;  %v764_v60 = vsel %vm409_vm0, %v399_v61, 0.0  ;;  %v716_v61 = vsel %vm409_vm0, %v383_v50, 0.0 }
 0x113   : > { %v1305_v43 = vsel %vm409_vm0, %v1093_v56, 0.0  ;;  %v836_v56 = vmul.f32 0.03125, %v9217_v24 }
 0x115   : > { %624 = vadd.xlane.f32.xlu0 %v623_v30  ;;  %720 = vadd.xlane.f32.xlu1 %v719_v11  ;;  %v9350_v38 = vpop.xlane.xlu1 %513  ;;  %v9352_v52 = vpop.xlane.xlu0 %561  ;;  %v852_v30 = vmul.f32 0.03125, %v9207_v37  ;;  %v820_v11 = vmul.f32 0.03125, %v9209_v10  ;;  %v804_v37 = vmul.f32 0.03125, %v9094_v15 }
 0x117   : > { %v9380_v10 = vsub.f32 %v8953_v4, %v852_v30  ;;  %v9383_v0 = vsub.f32 %v8956_v5, %v820_v11  ;;  %v9393_v15 = vsub.f32 %v8826_v16, %v804_v37  ;;  %v9396_v4 = vsub.f32 %v8966_v9, %v836_v56  ;;  %v366_v37 = vld [vmem:[%s8807_s11 + $0x2a8] sm:$0xff] }
 0x118   : > { %v398_v56 = vld [vmem:[%s8807_s11 + $0x3a8] sm:$0xff] }
 0x119   : > { %1258 = vadd.xlane.f32.xlu0 %v1257_v21  ;;  %1354 = vadd.xlane.f32.xlu1 %v1353_v14  ;;  %v9360_v59 = vpop.xlane.xlu1 %558  ;;  %v9362_v27 = vpop.xlane.xlu0 %462  ;;  %12164 = vst [vmem:[#allocation28_spill] sm:$0xff] %v9380_v10  ;;  %12165 = vst [vmem:[#allocation29_spill] sm:$0xff] %v9383_v0  ;;  %v1108_v5 = vmul.f32 %v9380_v10, %v9380_v10  ;;  %v1076_v24 = vmul.f32 %v9383_v0, %v9383_v0  ;;  %v382_v0 = vld [vmem:[%s8807_s11 + $0x328] sm:$0xff] }
 0x11a   : > { %12166 = vst [vmem:[#allocation30_spill] sm:$0xff] %v9393_v15  ;;  %12167 = vst [vmem:[#allocation31_spill] sm:$0xff] %v9396_v4  ;;  %v1060_v9 = vmul.f32 %v9393_v15, %v9393_v15  ;;  %v350_v10 = vld [vmem:[%s8807_s11 + $0x228] sm:$0xff] }
 0x11b   : > { %v1350_v16 = vsel %vm409_vm0, %v1108_v5, 0.0  ;;  %v1254_v50 = vsel %vm409_vm0, %v1076_v24, 0.0 }
 0x11c   : > { %v1206_v5 = vsel %vm409_vm0, %v1060_v9, 0.0  ;;  %v835_v9 = vmul.f32 0.03125, %v9230_v32 }
 0x11d   : > { %1210 = vadd.xlane.f32.xlu0 %v1209_v1  ;;  %1306 = vadd.xlane.f32.xlu1 %v1305_v43  ;;  %v9370_v21 = vpop.xlane.xlu1 %459  ;;  %v9372_v14 = vpop.xlane.xlu0 %510 }
 0x121   : > { %669 = vadd.xlane.f32.xlu0 %v668_v39  ;;  %765 = vadd.xlane.f32.xlu1 %v764_v60  ;;  %v9386_v1 = vpop.xlane.xlu1 %507  ;;  %v9388_v43 = vpop.xlane.xlu0 %555  ;;  %v1092_v60 = vmul.f32 %v9396_v4, %v9396_v4 }
 0x123   : > { %v1302_v24 = vsel %vm409_vm0, %v1092_v60, 0.0 }
 0x125   : > { %621 = vadd.xlane.f32.xlu0 %v620_v51  ;;  %717 = vadd.xlane.f32.xlu1 %v716_v61  ;;  %v9402_v39 = vpop.xlane.xlu1 %792  ;;  %v9404_v36 = vpop.xlane.xlu0 %696  ;;  %v819_v51 = vmul.f32 0.03125, %v9215_v42  ;;  %v851_v61 = vmul.f32 0.03125, %v9232_v2  ;;  %v803_v42 = vmul.f32 0.03125, %v9096_v19  ;;  %v9444_v19 = vsub.f32 %v8973_v12, %v835_v9  ;;  %v365_v9 = vld [vmem:[%s8807_s11 + $0x2a0] sm:$0xff] }
 0x127   : > { %v9432_v2 = vsub.f32 %v8963_v8, %v819_v51  ;;  %v9436_v60 = vsub.f32 %v8976_v13, %v851_v61  ;;  %12171 = vst [vmem:[#allocation35_spill] sm:$0xff] %v9444_v19  ;;  %v1091_v12 = vmul.f32 %v9444_v19, %v9444_v19  ;;  %v802_v19 = vmul.f32 0.03125, %v9086_v3  ;;  %v8532_v3 = vld [vmem:[%s8807_s11 + $0x38] sm:$0xff] }
 0x129   : > { %1351 = vadd.xlane.f32.xlu1 %v1350_v16  ;;  %1255 = vadd.xlane.f32.xlu0 %v1254_v50  ;;  %v9412_v30 = vpop.xlane.xlu1 %744  ;;  %v9414_v11 = vpop.xlane.xlu0 %648  ;;  %v665_v16 = vsel %vm409_vm0, %v366_v37, 0.0  ;;  %v761_v50 = vsel %vm409_vm0, %v398_v56, 0.0  ;;  %12168 = vst [vmem:[#allocation32_spill] sm:$0xff] %v9432_v2  ;;  %12169 = vst [vmem:[#allocation33_spill] sm:$0xff] %v9436_v60  ;;  %v713_v37 = vsel %vm409_vm0, %v382_v0, 0.0  ;;  %v617_v56 = vsel %vm409_vm0, %v350_v10, 0.0 }
 0x12a   : > { %v1107_v8 = vmul.f32 %v9436_v60, %v9436_v60  ;;  %v1075_v13 = vmul.f32 %v9432_v2, %v9432_v2 }
 0x12c   : > { %v1347_v10 = vsel %vm409_vm0, %v1107_v8, 0.0  ;;  %v1251_v0 = vsel %vm409_vm0, %v1075_v13, 0.0 }
 0x12d   : > { %1207 = vadd.xlane.f32.xlu0 %v1206_v5  ;;  %1303 = vadd.xlane.f32.xlu1 %v1302_v24  ;;  %v9424_v15 = vpop.xlane.xlu1 %789  ;;  %v9426_v4 = vpop.xlane.xlu0 %693  ;;  %v8531_v5 = vld [vmem:[%s8807_s11 + $0x40] sm:$0xff] }
 0x12e   : > { %v9441_v24 = vsub.f32 %v8531_v5, %v803_v42  ;;  %v397_v42 = vld [vmem:[%s8807_s11 + $0x3a0] sm:$0xff]  ;;  %v1299_v5 = vsel %vm409_vm0, %v1091_v12, 0.0 }
 0x12f   : > { %v758_v13 = vsel %vm409_vm0, %v397_v42, 0.0 }
 0x130   : > { %12170 = vst [vmem:[#allocation34_spill] sm:$0xff] %v9441_v24  ;;  %v1059_v61 = vmul.f32 %v9441_v24, %v9441_v24  ;;  %v349_v24 = vld [vmem:[%s8807_s11 + $0x220] sm:$0xff] }
 0x131   : > { %666 = vadd.xlane.f32.xlu0 %v665_v16  ;;  %762 = vadd.xlane.f32.xlu1 %v761_v50  ;;  %v9450_v32 = vpop.xlane.xlu1 %741  ;;  %v9452_v51 = vpop.xlane.xlu0 %645 }
 0x132   : > { %v1203_v8 = vsel %vm409_vm0, %v1059_v61, 0.0 }
 0x135   : > { %714 = vadd.xlane.f32.xlu1 %v713_v37  ;;  %618 = vadd.xlane.f32.xlu0 %v617_v56  ;;  %v9460_v16 = vpop.xlane.xlu1 %786  ;;  %v9462_v50 = vpop.xlane.xlu0 %690  ;;  %v850_v37 = vmul.f32 0.03125, %v9246_v47  ;;  %v818_v56 = vmul.f32 0.03125, %v9248_v29  ;;  %v834_v29 = vmul.f32 0.03125, %v9258_v33 }
 0x137   : > { %v9476_v2 = vsub.f32 %v8983_v17, %v850_v37  ;;  %v9479_v47 = vsub.f32 %v8986_v18, %v818_v56  ;;  %v9489_v17 = vsub.f32 %v8532_v3, %v802_v19  ;;  %v9492_v18 = vsub.f32 %v8996_v26, %v834_v29 }
 0x138   : > { %v849_v29 = vmul.f32 0.03125, %v9268_v25 }
 0x139   : > { %1348 = vadd.xlane.f32.xlu1 %v1347_v10  ;;  %1252 = vadd.xlane.f32.xlu0 %v1251_v0  ;;  %v662_v10 = vsel %vm409_vm0, %v365_v9, 0.0  ;;  %v381_v0 = vld [vmem:[%s8807_s11 + $0x320] sm:$0xff]  ;;  %12172 = vst [vmem:[#allocation36_spill] sm:$0xff] %v9476_v2  ;;  %12173 = vst [vmem:[#allocation37_spill] sm:$0xff] %v9479_v47  ;;  %v9482_v12 = vpop.xlane.xlu1 %738  ;;  %v9484_v61 = vpop.xlane.xlu0 %642  ;;  %v614_v9 = vsel %vm409_vm0, %v349_v24, 0.0  ;;  %v1106_v33 = vmul.f32 %v9476_v2, %v9476_v2 }
 0x13a   : > { %v710_v42 = vsel %vm409_vm0, %v381_v0, 0.0  ;;  %12174 = vst [vmem:[#allocation38_spill] sm:$0xff] %v9489_v17  ;;  %12175 = vst [vmem:[#allocation39_spill] sm:$0xff] %v9492_v18  ;;  %v1074_v37 = vmul.f32 %v9479_v47, %v9479_v47  ;;  %v1090_v26 = vmul.f32 %v9492_v18, %v9492_v18  ;;  %v817_v0 = vmul.f32 0.03125, %v9256_v44  ;;  %v380_v44 = vld [vmem:[%s8807_s11 + $0x318] sm:$0xff]  ;;  %v8533_v18 = vld [vmem:[%s8807_s11 + $0x30] sm:$0xff] }
 0x13b   : > { %v1344_v24 = vsel %vm409_vm0, %v1106_v33, 0.0 }
 0x13c   : > { %v1248_v19 = vsel %vm409_vm0, %v1074_v37, 0.0  ;;  %v9524_v25 = vsub.f32 %v8993_v23, %v817_v0 }
 0x13d   : > { %1300 = vadd.xlane.f32.xlu1 %v1299_v5  ;;  %1204 = vadd.xlane.f32.xlu0 %v1203_v8  ;;  %v9498_v56 = vpop.xlane.xlu1 %783  ;;  %v9500_v5 = vpop.xlane.xlu0 %687  ;;  %v1058_v8 = vmul.f32 %v9489_v17, %v9489_v17  ;;  %v348_v17 = vld [vmem:[%s8807_s11 + $0x218] sm:$0xff] }
 0x13e   : > { %12176 = vst [vmem:[#allocation40_spill] sm:$0xff] %v9524_v25 }
 0x141   : > { %759 = vadd.xlane.f32.xlu1 %v758_v13  ;;  %663 = vadd.xlane.f32.xlu0 %v662_v10  ;;  %v396_v13 = vld [vmem:[%s8807_s11 + $0x398] sm:$0xff]  ;;  %v9514_v3 = vpop.xlane.xlu1 %735  ;;  %v9516_v33 = vpop.xlane.xlu0 %639 }
 0x142   : > { %v364_v10 = vld [vmem:[%s8807_s11 + $0x298] sm:$0xff]  ;;  %v755_v37 = vsel %vm409_vm0, %v396_v13, 0.0  ;;  %v707_v13 = vsel %vm409_vm0, %v380_v44, 0.0 }
 0x145   : > { %711 = vadd.xlane.f32.xlu1 %v710_v42  ;;  %615 = vadd.xlane.f32.xlu0 %v614_v9  ;;  %v1296_v42 = vsel %vm409_vm0, %v1090_v26, 0.0  ;;  %v1200_v9 = vsel %vm409_vm0, %v1058_v8, 0.0  ;;  %v833_v26 = vmul.f32 0.03125, %v9266_v46  ;;  %v9528_v8 = vsub.f32 %v9006_v34, %v849_v29 }
 0x146   : > { %v1073_v46 = vmul.f32 %v9524_v25, %v9524_v25 }
 0x147   : > { %12177 = vst [vmem:[#allocation41_spill] sm:$0xff] %v9528_v8  ;;  %v9536_v23 = vsub.f32 %v9003_v31, %v833_v26  ;;  %v1105_v34 = vmul.f32 %v9528_v8, %v9528_v8 }
 0x148   : > { %v1245_v44 = vsel %vm409_vm0, %v1073_v46, 0.0  ;;  %v816_v46 = vmul.f32 0.03125, %v9284_v53 }
 0x149   : > { %1345 = vadd.xlane.f32.xlu1 %v1344_v24  ;;  %1249 = vadd.xlane.f32.xlu0 %v1248_v19  ;;  %v659_v24 = vsel %vm409_vm0, %v364_v10, 0.0  ;;  %v801_v19 = vmul.f32 0.03125, %v9088_v6  ;;  %v611_v10 = vsel %vm409_vm0, %v348_v17, 0.0  ;;  %12179 = vst [vmem:[#allocation43_spill] sm:$0xff] %v9536_v23 }
 0x14b   : > { %v9533_v6 = vsub.f32 %v8533_v18, %v801_v19  ;;  %v1341_v19 = vsel %vm409_vm0, %v1105_v34, 0.0  ;;  %v363_v34 = vld [vmem:[%s8807_s11 + $0x290] sm:$0xff] }
 0x14c   : > { %v656_v53 = vsel %vm409_vm0, %v363_v34, 0.0 }
 0x14d   : > { %1297 = vadd.xlane.f32.xlu1 %v1296_v42  ;;  %1201 = vadd.xlane.f32.xlu0 %v1200_v9  ;;  %12178 = vst [vmem:[#allocation42_spill] sm:$0xff] %v9533_v6  ;;  %v1057_v31 = vmul.f32 %v9533_v6, %v9533_v6 }
 0x151   : > { %756 = vadd.xlane.f32.xlu1 %v755_v37  ;;  %660 = vadd.xlane.f32.xlu0 %v659_v24 }
 0x152   : > { %v1370_v42 = vpop.xlane.xlu1 %1369  ;;  %v1274_v9 = vpop.xlane.xlu0 %1273 }
 0x153   : > { %v1626_v47 = vmul.f32 0.03125, %v1370_v42  ;;  %v1594_v2 = vmul.f32 0.03125, %v1274_v9  ;;  %v848_v42 = vmul.f32 0.03125, %v9282_v41  ;;  %v800_v41 = vmul.f32 0.03125, %v9078_v55  ;;  %v8536_v55 = vld [vmem:[%s8807_s11 + $0x28] sm:$0xff] }
 0x155   : > { %v1754_v0 = vadd.f32 1e-05, %v1626_v47  ;;  %v1722_v29 = vadd.f32 1e-05, %v1594_v2  ;;  %708 = vadd.xlane.f32.xlu1 %v707_v13  ;;  %612 = vadd.xlane.f32.xlu0 %v611_v10  ;;  %v1089_v2 = vmul.f32 %v9536_v23, %v9536_v23  ;;  %v395_v10 = vld [vmem:[%s8807_s11 + $0x390] sm:$0xff] }
 0x156   : > { %v1322_v37 = vpop.xlane.xlu1 %1321  ;;  %v1226_v17 = vpop.xlane.xlu0 %1225 }
 0x157   : > { %8275 = vrsqrt.f32 %v1754_v0  ;;  %v1610_v18 = vmul.f32 0.03125, %v1322_v37  ;;  %v1578_v24 = vmul.f32 0.03125, %v1226_v17  ;;  %v1293_v0 = vsel %vm409_vm0, %v1089_v2, 0.0  ;;  %v8534_v37 = vld [vmem:[%s8807_s11 + $0x1a8] sm:$0xff]  ;;  %v347_v2 = vld [vmem:[%s8807_s11 + $0x210] sm:$0xff] }
 0x158   : > { %8277 = vrsqrt.f32 %v1722_v29  ;;  %v1197_v29 = vsel %vm409_vm0, %v1057_v31, 0.0  ;;  %v9560_v17 = vsub.f32 %v8534_v37, %v848_v42  ;;  %v8535_v31 = vld [vmem:[%s8807_s11 + $0xa8] sm:$0xff]  ;;  %v9575_v42 = vsub.f32 %v8536_v55, %v800_v41  ;;  %v9589_v41 = vld [vmem:[%s12049_s1] ss:$0 sm:$0xff] }
 0x159   : > { %v1738_v47 = vadd.f32 1e-05, %v1610_v18  ;;  %v1706_v26 = vadd.f32 1e-05, %v1578_v24  ;;  %1342 = vadd.xlane.f32.xlu1 %v1341_v19  ;;  %1246 = vadd.xlane.f32.xlu0 %v1245_v44  ;;  %v752_v19 = vsel %vm409_vm0, %v395_v10, 0.0  ;;  %v379_v44 = vld [vmem:[%s8807_s11 + $0x310] sm:$0xff] }
 0x15a   : > { %v9549_v9 = vpop.xlane.xlu1 %780  ;;  %v9551_v13 = vpop.xlane.xlu0 %684  ;;  %12180 = vst [vmem:[#allocation44_spill] sm:$0xff] %v9560_v17  ;;  %12182 = vst [vmem:[#allocation46_spill] sm:$0xff] %v9575_v42  ;;  %v704_v37 = vsel %vm409_vm0, %v379_v44, 0.0  ;;  %v608_v10 = vsel %vm409_vm0, %v347_v2, 0.0  ;;  %v1104_v34 = vmul.f32 %v9560_v17, %v9560_v17 }
 0x15b   : > { %8279 = vrsqrt.f32 %v1738_v47  ;;  %v9571_v47 = vsub.f32 %v8535_v31, %v816_v46  ;;  %v8537_v31 = vld [vmem:[%s8807_s11 + $0x128] sm:$0xff] }
 0x15c   : > { %8281 = vrsqrt.f32 %v1706_v26  ;;  %v832_v26 = vmul.f32 0.03125, %v9300_v48 }
 0x15d   : > { %1294 = vadd.xlane.f32.xlu1 %v1293_v0  ;;  %1198 = vadd.xlane.f32.xlu0 %v1197_v29  ;;  %12181 = vst [vmem:[#allocation45_spill] sm:$0xff] %v9571_v47  ;;  %v1072_v48 = vmul.f32 %v9571_v47, %v9571_v47  ;;  %v1056_v47 = vmul.f32 %v9575_v42, %v9575_v42 }
 0x15e   : > { %v9562_v18 = vpop.xlane.xlu1 %732  ;;  %v9564_v24 = vpop.xlane.xlu0 %636  ;;  %v9582_v25 = vsub.f32 %v8537_v31, %v832_v26  ;;  %v1338_v26 = vsel %vm409_vm0, %v1104_v34, 0.0  ;;  %v9597_v31 = vld [vmem:[%s12050_s2] ss:$0 sm:$0xff] }
 0x160   : > { %12183 = vst [vmem:[#allocation47_spill] sm:$0xff] %v9582_v25 }
 0x161   : > { %753 = vadd.xlane.f32.xlu1 %v752_v19  ;;  %657 = vadd.xlane.f32.xlu0 %v656_v53 }
 0x162   : > { %v1367_v0 = vpop.xlane.xlu1 %1366  ;;  %v1271_v29 = vpop.xlane.xlu0 %1270 }
 0x163   : > { %v1625_v6 = vmul.f32 0.03125, %v1367_v0  ;;  %v1593_v23 = vmul.f32 0.03125, %v1271_v29 }
 0x164   : > { %v8276_v46 = vpop.eup %8275 }
 0x165   : > { %v8278_v19 = vpop.eup %8277  ;;  %v1753_v53 = vadd.f32 1e-05, %v1625_v6  ;;  %v1721_v44 = vadd.f32 1e-05, %v1593_v23  ;;  %705 = vadd.xlane.f32.xlu1 %v704_v37  ;;  %609 = vadd.xlane.f32.xlu0 %v608_v10  ;;  %v2010_v2 = vmul.f32 %v8276_v46, %v9109_v62  ;;  %v1242_v10 = vsel %vm409_vm0, %v1072_v48, 0.0 }
 0x166   : > { %v1319_v55 = vpop.xlane.xlu1 %1318  ;;  %v1223_v0 = vpop.xlane.xlu0 %1222  ;;  %v1978_v29 = vmul.f32 %v8278_v19, %v9112_v63  ;;  %v1088_v63 = vmul.f32 %v9582_v25, %v9582_v25  ;;  %v12190_v25 = vld [vmem:[#allocation10_spill] sm:$0xff] }
 0x167   : > { %8283 = vrsqrt.f32 %v1753_v53  ;;  %v1609_v6 = vmul.f32 0.03125, %v1319_v55  ;;  %v1577_v23 = vmul.f32 0.03125, %v1223_v0  ;;  %v2145_v37 = vmul.f32 %v9589_v41, %v2010_v2 }
 0x168   : > { %v8280_v62 = vpop.eup %8279  ;;  %8285 = vrsqrt.f32 %v1721_v44  ;;  %v2113_v34 = vmul.f32 %v9589_v41, %v1978_v29  ;;  %v815_v44 = vmul.f32 0.03125, %v9298_v45  ;;  %v847_v45 = vmul.f32 0.03125, %v9310_v22 }
 0x169   : > { %v8282_v46 = vpop.eup %8281  ;;  %v1737_v19 = vadd.f32 1e-05, %v1609_v6  ;;  %v1705_v17 = vadd.f32 1e-05, %v1577_v23  ;;  %1339 = vadd.xlane.f32.xlu1 %v1338_v26  ;;  %1243 = vadd.xlane.f32.xlu0 %v1242_v10  ;;  %v2280_v53 = vadd.f32 %v9597_v31, %v2145_v37  ;;  %v1994_v2 = vmul.f32 %v8280_v62, %v9119_v35  ;;  %v394_v23 = vld [vmem:[%s8807_s11 + $0x388] sm:$0xff]  ;;  %v8538_v10 = vld [vmem:[%s8807_s11 + $0xa0] sm:$0xff] }
 0x16a   : > { %v9609_v55 = vpop.xlane.xlu1 %777  ;;  %v9611_v48 = vpop.xlane.xlu0 %681  ;;  %v2248_v0 = vadd.f32 %v9597_v31, %v2113_v34  ;;  %v1962_v29 = vmul.f32 %v8282_v46, %v9122_v28  ;;  %v1194_v26 = vsel %vm409_vm0, %v1056_v47, 0.0  ;;  %v362_v35 = vld [vmem:[%s8807_s11 + $0x288] sm:$0xff]  ;;  %v1290_v37 = vsel %vm409_vm0, %v1088_v63, 0.0 }
 0x16b   : > { %8287 = vrsqrt.f32 %v1737_v19  ;;  %8070 = vmatprep.subr.msk.mxu1 %vm409_vm0, %v2280_v53  ;;  %v2129_v6 = vmul.f32 %v9589_v41, %v1994_v2  ;;  %v799_v62 = vmul.f32 0.03125, %v9080_v58  ;;  %v9627_v34 = vsub.f32 %v8538_v10, %v815_v44  ;;  %v378_v58 = vld [vmem:[%s8807_s11 + $0x308] sm:$0xff]  ;;  %v12187_v10 = vld [vmem:[#allocation7_spill] sm:$0xff] }
 0x16c   : > { %8289 = vrsqrt.f32 %v1705_v17  ;;  %8022 = vmatprep.subr.msk.mxu0 %vm409_vm0, %v2248_v0  ;;  %v2097_v28 = vmul.f32 %v9589_v41, %v1962_v29  ;;  %v749_v63 = vsel %vm409_vm0, %v394_v23, 0.0  ;;  %v653_v19 = vsel %vm409_vm0, %v362_v35, 0.0  ;;  %v346_v53 = vld [vmem:[%s8807_s11 + $0x208] sm:$0xff]  ;;  %v8539_v0 = vld [vmem:[%s8807_s11 + $0x1a0] sm:$0xff] }
 0x16d   : > { %1291 = vadd.xlane.f32.xlu1 %v1290_v37  ;;  %1195 = vadd.xlane.f32.xlu0 %v1194_v26  ;;  %v2264_v47 = vadd.f32 %v9597_v31, %v2129_v6  ;;  %12184 = vst [vmem:[#allocation48_spill] sm:$0xff] %v9627_v34  ;;  %v831_v2 = vmul.f32 0.03125, %v9308_v40  ;;  %v9641_v44 = vsub.f32 %v8539_v0, %v847_v45  ;;  %v8540_v29 = vld [vmem:[%s8807_s11 + $0x20] sm:$0xff]  ;;  %v701_v35 = vsel %vm409_vm0, %v378_v58, 0.0 }
 0x16e   : > { %v9629_v22 = vpop.xlane.xlu1 %729  ;;  %v9631_v17 = vpop.xlane.xlu0 %633  ;;  %v2232_v46 = vadd.f32 %v9597_v31, %v2097_v28  ;;  %v9645_v26 = vsub.f32 %v8540_v29, %v799_v62  ;;  %v605_v37 = vsel %vm409_vm0, %v346_v53, 0.0  ;;  %v1071_v40 = vmul.f32 %v9627_v34, %v9627_v34  ;;  %v12189_v58 = vld [vmem:[#allocation9_spill] sm:$0xff] }
 0x16f   : > { %8071 = vmatpush3.xpose.msk.msra.mxu1 %vm409_vm0, %v2264_v47  ;;  %12185 = vst [vmem:[#allocation49_spill] sm:$0xff] %v9641_v44  ;;  %v798_v0 = vmul.f32 0.03125, %v12187_v10  ;;  %v1103_v62 = vmul.f32 %v9641_v44, %v9641_v44  ;;  %v814_v10 = vmul.f32 0.03125, %v9320_v7 }
 0x170   : > { %8023 = vmatpush3.xpose.msk.msra.mxu0 %vm409_vm0, %v2232_v46  ;;  %12186 = vst [vmem:[#allocation50_spill] sm:$0xff] %v9645_v26  ;;  %v8541_v46 = vld [vmem:[%s8807_s11 + $0x120] sm:$0xff] }
 0x171   : > { %750 = vadd.xlane.f32.xlu1 %v749_v63  ;;  %654 = vadd.xlane.f32.xlu0 %v653_v19  ;;  %v9653_v42 = vsub.f32 %v8541_v46, %v831_v2  ;;  %v1239_v46 = vsel %vm409_vm0, %v1071_v40, 0.0 }
 0x172   : > { %v1364_v6 = vpop.xlane.xlu1 %1363  ;;  %v1268_v23 = vpop.xlane.xlu0 %1267 }
 0x173   : > { %v1624_v28 = vmul.f32 0.03125, %v1364_v6  ;;  %v1592_v47 = vmul.f32 0.03125, %v1268_v23  ;;  %12188 = vst [vmem:[#allocation7_spill] sm:$0xff] %v9653_v42  ;;  %v1055_v6 = vmul.f32 %v9645_v26, %v9645_v26  ;;  %v846_v23 = vmul.f32 0.03125, %v9318_v20 }
 0x174   : > { %v8284_v45 = vpop.eup %8283  ;;  %v1087_v7 = vmul.f32 %v9653_v42, %v9653_v42 }
 0x175   : > { %v8286_v63 = vpop.eup %8285  ;;  %v1752_v19 = vadd.f32 1e-05, %v1624_v28  ;;  %v1720_v29 = vadd.f32 1e-05, %v1592_v47  ;;  %702 = vadd.xlane.f32.xlu1 %v701_v35  ;;  %606 = vadd.xlane.f32.xlu0 %v605_v37  ;;  %v2009_v53 = vmul.f32 %v8284_v45, %v12189_v58  ;;  %v1335_v45 = vsel %vm409_vm0, %v1103_v62, 0.0 }
 0x176   : > { %v1316_v34 = vpop.xlane.xlu1 %1315  ;;  %v1220_v2 = vpop.xlane.xlu0 %1219  ;;  %v1977_v44 = vmul.f32 %v8286_v63, %v12190_v25 }
 0x177   : > { %8291 = vrsqrt.f32 %v1752_v19  ;;  %v1608_v28 = vmul.f32 0.03125, %v1316_v34  ;;  %v1576_v35 = vmul.f32 0.03125, %v1220_v2  ;;  %v2144_v37 = vmul.f32 %v9589_v41, %v2009_v53  ;;  %v12191_v34 = vld [vmem:[#allocation11_spill] sm:$0xff]  ;;  %v8542_v19 = vld [vmem:[%s8807_s11 + $0x18] sm:$0xff] }
 0x178   : > { %v8288_v47 = vpop.eup %8287  ;;  %8293 = vrsqrt.f32 %v1720_v29  ;;  %v2112_v20 = vmul.f32 %v9589_v41, %v1977_v44  ;;  %v9672_v62 = vsub.f32 %v8542_v19, %v798_v0  ;;  %v12193_v2 = vld [vmem:[#allocation12_spill] sm:$0xff]  ;;  %v393_v0 = vld [vmem:[%s8807_s11 + $0x380] sm:$0xff] }
 0x179   : > { %v8290_v58 = vpop.eup %8289  ;;  %v1736_v40 = vadd.f32 1e-05, %v1608_v28  ;;  %v1704_v26 = vadd.f32 1e-05, %v1576_v35  ;;  %1336 = vadd.xlane.f32.xlu1 %v1335_v45  ;;  %1240 = vadd.xlane.f32.xlu0 %v1239_v46  ;;  %v2279_v25 = vadd.f32 %v9597_v31, %v2144_v37  ;;  %v1993_v63 = vmul.f32 %v8288_v47, %v12191_v34  ;;  %v8543_v35 = vld [vmem:[%s8807_s11 + $0x198] sm:$0xff]  ;;  %v361_v47 = vld [vmem:[%s8807_s11 + $0x280] sm:$0xff] }
 0x17a   : > { %12192 = vst [vmem:[#allocation9_spill] sm:$0xff] %v9672_v62  ;;  %v9674_v29 = vpop.xlane.xlu1 %774  ;;  %v9676_v44 = vpop.xlane.xlu0 %678  ;;  %v2247_v53 = vadd.f32 %v9597_v31, %v2112_v20  ;;  %v1961_v28 = vmul.f32 %v8290_v58, %v12193_v2  ;;  %v9681_v45 = vsub.f32 %v8543_v35, %v846_v23  ;;  %v1191_v46 = vsel %vm409_vm0, %v1055_v6, 0.0  ;;  %v8544_v34 = vld [vmem:[%s8807_s11 + $0x98] sm:$0xff]  ;;  %v345_v35 = vld [vmem:[%s8807_s11 + $0x200] sm:$0xff] }
 0x17b   : > { %8295 = vrsqrt.f32 %v1736_v40  ;;  %8072 = vmatprep.subr.msk.mxu1 %vm409_vm0, %v2279_v25  ;;  %v2128_v37 = vmul.f32 %v9589_v41, %v1993_v63  ;;  %v9689_v19 = vsub.f32 %v8544_v34, %v814_v10  ;;  %v1287_v23 = vsel %vm409_vm0, %v1087_v7, 0.0  ;;  %v12196_v40 = vld [vmem:[#allocation5_spill] sm:$0xff]  ;;  %v12198_v2 = vld [vmem:[#allocation8_spill] sm:$0xff] }
 0x17c   : > { %12194 = vst [vmem:[#allocation10_spill] sm:$0xff] %v9681_v45  ;;  %8297 = vrsqrt.f32 %v1704_v26  ;;  %8024 = vmatprep.subr.msk.mxu0 %vm409_vm0, %v2247_v53  ;;  %v2096_v20 = vmul.f32 %v9589_v41, %v1961_v28  ;;  %v830_v58 = vmul.f32 0.03125, %v9336_v54  ;;  %v797_v25 = vmul.f32 0.03125, %v12196_v40  ;;  %v377_v28 = vld [vmem:[%s8807_s11 + $0x300] sm:$0xff] }
 0x17d   : > { %12195 = vst [vmem:[#allocation11_spill] sm:$0xff] %v9689_v19  ;;  %1288 = vadd.xlane.f32.xlu1 %v1287_v23  ;;  %1192 = vadd.xlane.f32.xlu0 %v1191_v46  ;;  %v2263_v6 = vadd.f32 %v9597_v31, %v2128_v37  ;;  %v746_v7 = vsel %vm409_vm0, %v393_v0, 0.0  ;;  %v650_v53 = vsel %vm409_vm0, %v361_v47, 0.0  ;;  %v796_v54 = vmul.f32 0.03125, %v12198_v2  ;;  %v8545_v47 = vld [vmem:[%s8807_s11 + $0x118] sm:$0xff] }
 0x17e   : > { %v9697_v10 = vpop.xlane.xlu1 %726  ;;  %v9699_v26 = vpop.xlane.xlu0 %630  ;;  %v2231_v63 = vadd.f32 %v9597_v31, %v2096_v20  ;;  %v1054_v46 = vmul.f32 %v9672_v62, %v9672_v62  ;;  %v813_v37 = vmul.f32 0.03125, %v9334_v57  ;;  %v1102_v34 = vmul.f32 %v9681_v45, %v9681_v45  ;;  %v8546_v20 = vld [vmem:[%s8807_s11 + $0x10] sm:$0xff]  ;;  %v8547_v45 = vld [vmem:[%s8807_s11 + $0x8] sm:$0xff] }
 0x17f   : > { %12197 = vst [vmem:[#allocation12_spill] sm:$0xff] %v9699_v26  ;;  %8073 = vmatpush3.xpose.msk.msra.mxu1 %vm409_vm0, %v2263_v6  ;;  %v1070_v0 = vmul.f32 %v9689_v19, %v9689_v19  ;;  %v9717_v23 = vsub.f32 %v8545_v47, %v830_v58  ;;  %v9720_v6 = vsub.f32 %v8546_v20, %v797_v25  ;;  %v845_v40 = vmul.f32 0.03125, %v9352_v52  ;;  %v8548_v47 = vld [vmem:[%s8807_s11 + $0x90] sm:$0xff] }
 0x180   : > { %8025 = vmatpush3.xpose.msk.msra.mxu0 %vm409_vm0, %v2231_v63  ;;  %v698_v63 = vsel %vm409_vm0, %v377_v28, 0.0  ;;  %v602_v62 = vsel %vm409_vm0, %v345_v35, 0.0  ;;  %v9726_v42 = vsub.f32 %v8547_v45, %v796_v54  ;;  %v9730_v25 = vsub.f32 %v8548_v47, %v813_v37  ;;  %v12201_v45 = vld [vmem:[#allocation13_spill] sm:$0xff]  ;;  %v12202_v47 = vld [vmem:[#allocation14_spill] sm:$0xff] }
 0x181   : > { %747 = vadd.xlane.f32.xlu1 %v746_v7  ;;  %651 = vadd.xlane.f32.xlu0 %v650_v53  ;;  %12199 = vst [vmem:[#allocation5_spill] sm:$0xff] %v9720_v6  ;;  %v1188_v7 = vsel %vm409_vm0, %v1054_v46, 0.0  ;;  %v829_v52 = vmul.f32 0.03125, %v9350_v38  ;;  %v1332_v20 = vsel %vm409_vm0, %v1102_v34, 0.0  ;;  %v1236_v28 = vsel %vm409_vm0, %v1070_v0, 0.0 }
 0x182   : > { %v1361_v57 = vpop.xlane.xlu1 %1360  ;;  %v1265_v2 = vpop.xlane.xlu0 %1264  ;;  %12200 = vst [vmem:[#allocation8_spill] sm:$0xff] %v9726_v42  ;;  %v1086_v46 = vmul.f32 %v9717_v23, %v9717_v23  ;;  %v844_v38 = vmul.f32 0.03125, %v9360_v59  ;;  %v812_v34 = vmul.f32 0.03125, %v9362_v27  ;;  %v1069_v59 = vmul.f32 %v9730_v25, %v9730_v25 }
 0x183   : > { %v1623_v19 = vmul.f32 0.03125, %v1361_v57  ;;  %v1591_v58 = vmul.f32 0.03125, %v1265_v2  ;;  %v8549_v57 = vld [vmem:[%s8807_s11 + $0x190] sm:$0xff] }
 0x184   : > { %v8292_v53 = vpop.eup %8291  ;;  %v9739_v37 = vsub.f32 %v8549_v57, %v845_v40 }
 0x185   : > { %v8294_v8 = vpop.eup %8293  ;;  %v1751_v35 = vadd.f32 1e-05, %v1623_v19  ;;  %v1719_v60 = vadd.f32 1e-05, %v1591_v58  ;;  %699 = vadd.xlane.f32.xlu1 %v698_v63  ;;  %603 = vadd.xlane.f32.xlu0 %v602_v62  ;;  %v2008_v54 = vmul.f32 %v8292_v53, %v12201_v45  ;;  %v8550_v45 = vld [vmem:[%s8807_s11 + $0x110] sm:$0xff] }
 0x186   : > { %v1313_v2 = vpop.xlane.xlu1 %1312  ;;  %v1217_v0 = vpop.xlane.xlu0 %1216  ;;  %v1976_v19 = vmul.f32 %v8294_v8, %v12202_v47  ;;  %v9746_v26 = vsub.f32 %v8550_v45, %v829_v52  ;;  %v1284_v47 = vsel %vm409_vm0, %v1086_v46, 0.0  ;;  %v828_v46 = vmul.f32 0.03125, %v9372_v14 }
 0x187   : > { %8299 = vrsqrt.f32 %v1751_v35  ;;  %v1607_v63 = vmul.f32 0.03125, %v1313_v2  ;;  %v1575_v58 = vmul.f32 0.03125, %v1217_v0  ;;  %v2143_v62 = vmul.f32 %v9589_v41, %v2008_v54  ;;  %v12204_v54 = vld [vmem:[#allocation16_spill] sm:$0xff] }
 0x188   : > { %v8296_v53 = vpop.eup %8295  ;;  %12203 = vst [vmem:[#allocation13_spill] sm:$0xff] %v9746_v26  ;;  %8301 = vrsqrt.f32 %v1719_v60  ;;  %v2111_v40 = vmul.f32 %v9589_v41, %v1976_v19  ;;  %v12205_v19 = vld [vmem:[#allocation15_spill] sm:$0xff]  ;;  %v1053_v14 = vmul.f32 %v9720_v6, %v9720_v6  ;;  %v12211_v6 = vld [vmem:[#allocation17_spill] sm:$0xff] }
 0x189   : > { %v8298_v27 = vpop.eup %8297  ;;  %v1735_v57 = vadd.f32 1e-05, %v1607_v63  ;;  %v1703_v8 = vadd.f32 1e-05, %v1575_v58  ;;  %1333 = vadd.xlane.f32.xlu1 %v1332_v20  ;;  %1237 = vadd.xlane.f32.xlu0 %v1236_v28  ;;  %v2278_v35 = vadd.f32 %v9597_v31, %v2143_v62  ;;  %v1992_v2 = vmul.f32 %v8296_v53, %v12204_v54  ;;  %v8551_v58 = vld [vmem:[%s8807_s11 + $0x188] sm:$0xff] }
 0x18a   : > { %v9753_v0 = vpop.xlane.xlu1 %771  ;;  %v9755_v52 = vpop.xlane.xlu0 %675  ;;  %v2246_v60 = vadd.f32 %v9597_v31, %v2111_v40  ;;  %v1960_v45 = vmul.f32 %v8298_v27, %v12205_v19  ;;  %v1101_v63 = vmul.f32 %v9739_v37, %v9739_v37  ;;  %v9763_v20 = vsub.f32 %v8551_v58, %v844_v38  ;;  %v8552_v28 = vld [vmem:[%s8807_s11 + $0x88] sm:$0xff] }
 0x18b   : > { %v9766_v62 = vsub.f32 %v8552_v28, %v812_v34  ;;  %8303 = vrsqrt.f32 %v1735_v57  ;;  %8074 = vmatprep.subr.msk.mxu1 %vm409_vm0, %v2278_v35  ;;  %v2127_v53 = vmul.f32 %v9589_v41, %v1992_v2  ;;  %v811_v40 = vmul.f32 0.03125, %v9370_v21  ;;  %v12208_v34 = vld [vmem:[#allocation6_spill] sm:$0xff] }
 0x18c   : > { %12206 = vst [vmem:[#allocation14_spill] sm:$0xff] %v9763_v20  ;;  %8305 = vrsqrt.f32 %v1703_v8  ;;  %8026 = vmatprep.subr.msk.mxu0 %vm409_vm0, %v2246_v60  ;;  %v2095_v27 = vmul.f32 %v9589_v41, %v1960_v45  ;;  %v795_v57 = vmul.f32 0.03125, %v12208_v34  ;;  %v1329_v8 = vsel %vm409_vm0, %v1101_v63, 0.0  ;;  %v8554_v45 = vld [vmem:[%s8807_s11 + $0x108] sm:$0xff] }
 0x18d   : > { %12207 = vst [vmem:[#allocation16_spill] sm:$0xff] %v9766_v62  ;;  %1285 = vadd.xlane.f32.xlu1 %v1284_v47  ;;  %1189 = vadd.xlane.f32.xlu0 %v1188_v7  ;;  %v2262_v38 = vadd.f32 %v9597_v31, %v2127_v53  ;;  %v1233_v7 = vsel %vm409_vm0, %v1069_v59, 0.0  ;;  %v1085_v2 = vmul.f32 %v9746_v26, %v9746_v26  ;;  %v8553_v47 = vld [vmem:[%s8807_s11 + $0x80] sm:$0xff]  ;;  %v827_v63 = vmul.f32 0.03125, %v9386_v1 }
 0x18e   : > { %v9776_v35 = vpop.xlane.xlu1 %723  ;;  %v9778_v54 = vpop.xlane.xlu0 %627  ;;  %v2230_v21 = vadd.f32 %v9597_v31, %v2095_v27  ;;  %v1052_v60 = vmul.f32 %v9726_v42, %v9726_v42  ;;  %v9791_v19 = vsub.f32 %v8553_v47, %v811_v40  ;;  %v9794_v58 = vsub.f32 %v8554_v45, %v828_v46  ;;  %v8555_v53 = vld [vmem:[%s8807_s11] sm:$0xff] }
 0x18f   : > { %8075 = vmatpush3.xpose.msk.msra.mxu1 %vm409_vm0, %v2262_v38  ;;  %v1100_v28 = vmul.f32 %v9763_v20, %v9763_v20  ;;  %v1068_v59 = vmul.f32 %v9766_v62, %v9766_v62  ;;  %v9803_v27 = vsub.f32 %v8555_v53, %v795_v57  ;;  %v843_v40 = vmul.f32 0.03125, %v9388_v43  ;;  %v8556_v53 = vld [vmem:[%s8807_s11 + $0x100] sm:$0xff] }
 0x190   : > { %12209 = vst [vmem:[#allocation15_spill] sm:$0xff] %v9791_v19  ;;  %12210 = vst [vmem:[#allocation6_spill] sm:$0xff] %v9794_v58  ;;  %8027 = vmatpush3.xpose.msk.msra.mxu0 %vm409_vm0, %v2230_v21  ;;  %v1185_v34 = vsel %vm409_vm0, %v1053_v14, 0.0  ;;  %v1281_v45 = vsel %vm409_vm0, %v1085_v2, 0.0  ;;  %v1182_v42 = vsel %vm409_vm0, %v1052_v60, 0.0  ;;  %v1084_v57 = vmul.f32 %v9794_v58, %v9794_v58 }
 0x191   : > { %1330 = vadd.xlane.f32.xlu1 %v1329_v8  ;;  %1234 = vadd.xlane.f32.xlu0 %v1233_v7  ;;  %v1326_v8 = vsel %vm409_vm0, %v1100_v28, 0.0  ;;  %v1230_v7 = vsel %vm409_vm0, %v1068_v59, 0.0  ;;  %v9815_v43 = vmul.f32 %v9791_v19, %v9791_v19  ;;  %v8557_v28 = vld [vmem:[%s8807_s11 + $0x180] sm:$0xff]  ;;  %v922_v59 = vmul.f32 0.03125, %v9402_v39 }
 0x192   : > { %v1358_v46 = vpop.xlane.xlu1 %1357  ;;  %v1262_v38 = vpop.xlane.xlu0 %1261  ;;  %v9822_v62 = vsub.f32 %v8557_v28, %v843_v40  ;;  %v890_v58 = vmul.f32 0.03125, %v9404_v36 }
 0x193   : > { %v1622_v21 = vmul.f32 0.03125, %v1358_v46  ;;  %v1590_v47 = vmul.f32 0.03125, %v1262_v38  ;;  %v9818_v46 = vsub.f32 %v8556_v53, %v827_v63 }
 0x194   : > { %v8300_v1 = vpop.eup %8299 }
 0x195   : > { %v8302_v14 = vpop.eup %8301  ;;  %v1750_v38 = vadd.f32 1e-05, %v1622_v21  ;;  %v1718_v2 = vadd.f32 1e-05, %v1590_v47  ;;  %1282 = vadd.xlane.f32.xlu1 %v1281_v45  ;;  %1186 = vadd.xlane.f32.xlu0 %v1185_v34  ;;  %v2007_v60 = vmul.f32 %v8300_v1, %v9228_v49  ;;  %v906_v34 = vmul.f32 0.03125, %v9412_v30 }
 0x196   : > { %v1310_v20 = vpop.xlane.xlu1 %1309  ;;  %v1214_v19 = vpop.xlane.xlu0 %1213  ;;  %v1975_v26 = vmul.f32 %v8302_v14, %v12211_v6  ;;  %v874_v49 = vmul.f32 0.03125, %v9414_v11  ;;  %v12213_v14 = vld [vmem:[#allocation18_spill] sm:$0xff] }
 0x197   : > { %8307 = vrsqrt.f32 %v1750_v38  ;;  %v1606_v63 = vmul.f32 0.03125, %v1310_v20  ;;  %v1574_v53 = vmul.f32 0.03125, %v1214_v19  ;;  %v2142_v21 = vmul.f32 %v9589_v41, %v2007_v60  ;;  %v12212_v20 = vld [vmem:[#allocation19_spill] sm:$0xff]  ;;  %v8559_v60 = vld [vmem:[%s8807_s11 + $0x2f8] sm:$0xff] }
 0x198   : > { %v8304_v47 = vpop.eup %8303  ;;  %8309 = vrsqrt.f32 %v1718_v2  ;;  %v2110_v39 = vmul.f32 %v9589_v41, %v1975_v26  ;;  %v1278_v26 = vsel %vm409_vm0, %v1084_v57, 0.0  ;;  %v9846_v28 = vsub.f32 %v8559_v60, %v890_v58  ;;  %v8561_v57 = vld [vmem:[%s8807_s11 + $0x278] sm:$0xff] }
 0x199   : > { %v8306_v36 = vpop.eup %8305  ;;  %v1734_v40 = vadd.f32 1e-05, %v1606_v63  ;;  %v1702_v45 = vadd.f32 1e-05, %v1574_v53  ;;  %1327 = vadd.xlane.f32.xlu1 %v1326_v8  ;;  %1231 = vadd.xlane.f32.xlu0 %v1230_v7  ;;  %v2277_v6 = vadd.f32 %v9597_v31, %v2142_v21  ;;  %v1991_v19 = vmul.f32 %v8304_v47, %v12212_v20  ;;  %v8558_v7 = vld [vmem:[%s8807_s11 + $0x3f8] sm:$0xff] }
 0x19a   : > { %v9833_v1 = vpop.xlane.xlu1 %768  ;;  %v9835_v30 = vpop.xlane.xlu0 %672  ;;  %v2245_v11 = vadd.f32 %v9597_v31, %v2110_v39  ;;  %v1959_v38 = vmul.f32 %v8306_v36, %v12213_v14  ;;  %v1099_v8 = vmul.f32 %v9822_v62, %v9822_v62  ;;  %v9843_v2 = vsub.f32 %v8558_v7, %v922_v59  ;;  %v8560_v53 = vld [vmem:[%s8807_s11 + $0x378] sm:$0xff] }
 0x19b   : > { %8311 = vrsqrt.f32 %v1734_v40  ;;  %8076 = vmatprep.subr.msk.mxu1 %vm409_vm0, %v2277_v6  ;;  %v2126_v63 = vmul.f32 %v9589_v41, %v1991_v19  ;;  %v9851_v21 = vsub.f32 %v8560_v53, %v906_v34  ;;  %v9854_v47 = vsub.f32 %v8561_v57, %v874_v49 }
 0x19c   : > { %8313 = vrsqrt.f32 %v1702_v45  ;;  %8028 = vmatprep.subr.msk.mxu0 %vm409_vm0, %v2245_v11  ;;  %v2094_v59 = vmul.f32 %v9589_v41, %v1959_v38  ;;  %v921_v39 = vmul.f32 0.03125, %v9424_v15  ;;  %v889_v36 = vmul.f32 0.03125, %v9426_v4  ;;  %v8563_v38 = vld [vmem:[%s8807_s11 + $0x2f0] sm:$0xff] }
 0x19d   : > { %12214 = vst [vmem:[#allocation17_spill] sm:$0xff] %v9854_v47  ;;  %1279 = vadd.xlane.f32.xlu1 %v1278_v26  ;;  %1183 = vadd.xlane.f32.xlu0 %v1182_v42  ;;  %v2261_v58 = vadd.f32 %v9597_v31, %v2126_v63  ;;  %v1083_v45 = vmul.f32 %v9818_v46, %v9818_v46  ;;  %v1323_v6 = vsel %vm409_vm0, %v1099_v8, 0.0  ;;  %v1227_v20 = vsel %vm409_vm0, %v9815_v43, 0.0  ;;  %v8562_v26 = vld [vmem:[%s8807_s11 + $0x3f0] sm:$0xff] }
 0x19e   : > { %v9861_v40 = vpop.xlane.xlu1 %720  ;;  %v9863_v34 = vpop.xlane.xlu0 %624  ;;  %v2229_v49 = vadd.f32 %v9597_v31, %v2094_v59  ;;  %v1051_v15 = vmul.f32 %v9803_v27, %v9803_v27  ;;  %v1178_v42 = vmul.f32 %v9843_v2, %v9843_v2  ;;  %v1146_v4 = vmul.f32 %v9846_v28, %v9846_v28 }
 0x19f   : > { %8077 = vmatpush3.xpose.msk.msra.mxu1 %vm409_vm0, %v2261_v58  ;;  %v1162_v19 = vmul.f32 %v9851_v21, %v9851_v21  ;;  %v1130_v11 = vmul.f32 %v9854_v47, %v9854_v47  ;;  %v9884_v14 = vsub.f32 %v8562_v26, %v921_v39  ;;  %v9887_v7 = vsub.f32 %v8563_v38, %v889_v36  ;;  %v12218_v47 = vld [vmem:[#allocation21_spill] sm:$0xff] }
 0x1a0   : > { %8029 = vmatpush3.xpose.msk.msra.mxu0 %vm409_vm0, %v2229_v49  ;;  %v1275_v8 = vsel %vm409_vm0, %v1083_v45, 0.0  ;;  %v1179_v43 = vsel %vm409_vm0, %v1051_v15, 0.0  ;;  %v1560_v59 = vsel %vm409_vm0, %v1178_v42, 0.0  ;;  %v1464_v58 = vsel %vm409_vm0, %v1146_v4, 0.0  ;;  %v12217_v15 = vld [vmem:[#allocation20_spill] sm:$0xff] }
 0x1a1   : > { %12215 = vst [vmem:[#allocation19_spill] sm:$0xff] %v9884_v14  ;;  %1324 = vadd.xlane.f32.xlu1 %v1323_v6  ;;  %1228 = vadd.xlane.f32.xlu0 %v1227_v20  ;;  %12216 = vst [vmem:[#allocation18_spill] sm:$0xff] %v9887_v7  ;;  %v905_v39 = vmul.f32 0.03125, %v9450_v32  ;;  %v873_v6 = vmul.f32 0.03125, %v9452_v51  ;;  %v1512_v36 = vsel %vm409_vm0, %v1162_v19, 0.0  ;;  %v1416_v20 = vsel %vm409_vm0, %v1130_v11, 0.0 }
 0x1a2   : > { %v1355_v60 = vpop.xlane.xlu1 %1354  ;;  %v1259_v63 = vpop.xlane.xlu0 %1258  ;;  %v1177_v42 = vmul.f32 %v9884_v14, %v9884_v14  ;;  %v920_v4 = vmul.f32 0.03125, %v9460_v16  ;;  %v888_v32 = vmul.f32 0.03125, %v9462_v50  ;;  %v1145_v11 = vmul.f32 %v9887_v7, %v9887_v7 }
 0x1a3   : > { %v1621_v53 = vmul.f32 0.03125, %v1355_v60  ;;  %v1589_v57 = vmul.f32 0.03125, %v1259_v63  ;;  %v872_v16 = vmul.f32 0.03125, %v9484_v61 }
 0x1a4   : > { %v8308_v49 = vpop.eup %8307 }
 0x1a5   : > { %v8310_v26 = vpop.eup %8309  ;;  %v1749_v38 = vadd.f32 1e-05, %v1621_v53  ;;  %v1717_v45 = vadd.f32 1e-05, %v1589_v57  ;;  %1276 = vadd.xlane.f32.xlu1 %v1275_v8  ;;  %1180 = vadd.xlane.f32.xlu0 %v1179_v43  ;;  %v2006_v60 = vmul.f32 %v8308_v49, %v12217_v15  ;;  %v904_v49 = vmul.f32 0.03125, %v9482_v12  ;;  %v8565_v12 = vld [vmem:[%s8807_s11 + $0x270] sm:$0xff] }
 0x1a6   : > { %v1307_v63 = vpop.xlane.xlu1 %1306  ;;  %v1211_v51 = vpop.xlane.xlu0 %1210  ;;  %v1974_v19 = vmul.f32 %v8310_v26, %v12218_v47  ;;  %v9915_v61 = vsub.f32 %v8565_v12, %v873_v6  ;;  %v8568_v6 = vld [vmem:[%s8807_s11 + $0x368] sm:$0xff] }
 0x1a7   : > { %8315 = vrsqrt.f32 %v1749_v38  ;;  %v1605_v8 = vmul.f32 0.03125, %v1307_v63  ;;  %v1573_v43 = vmul.f32 0.03125, %v1211_v51  ;;  %v2141_v53 = vmul.f32 %v9589_v41, %v2006_v60  ;;  %v12219_v63 = vld [vmem:[#allocation23_spill] sm:$0xff]  ;;  %v8569_v12 = vld [vmem:[%s8807_s11 + $0x268] sm:$0xff] }
 0x1a8   : > { %v8312_v57 = vpop.eup %8311  ;;  %8317 = vrsqrt.f32 %v1717_v45  ;;  %v2109_v50 = vmul.f32 %v9589_v41, %v1974_v19  ;;  %v8564_v60 = vld [vmem:[%s8807_s11 + $0x370] sm:$0xff]  ;;  %v9935_v14 = vsub.f32 %v8569_v12, %v872_v16 }
 0x1a9   : > { %v8314_v47 = vpop.eup %8313  ;;  %v1733_v26 = vadd.f32 1e-05, %v1605_v8  ;;  %v1701_v15 = vadd.f32 1e-05, %v1573_v43  ;;  %1561 = vadd.xlane.f32.xlu1 %v1560_v59  ;;  %1465 = vadd.xlane.f32.xlu0 %v1464_v58  ;;  %v2276_v38 = vadd.f32 %v9597_v31, %v2141_v53  ;;  %v1990_v51 = vmul.f32 %v8312_v57, %v12219_v63  ;;  %v12220_v59 = vld [vmem:[#allocation22_spill] sm:$0xff] }
 0x1aa   : > { %v9912_v7 = vsub.f32 %v8564_v60, %v905_v39  ;;  %v9917_v45 = vpop.xlane.xlu1 %765  ;;  %v9919_v19 = vpop.xlane.xlu0 %669  ;;  %v2244_v8 = vadd.f32 %v9597_v31, %v2109_v50  ;;  %v1958_v58 = vmul.f32 %v8314_v47, %v12220_v59  ;;  %v8566_v43 = vld [vmem:[%s8807_s11 + $0x3e8] sm:$0xff]  ;;  %v9932_v60 = vsub.f32 %v8568_v6, %v904_v49  ;;  %12222 = vst [vmem:[#allocation21_spill] sm:$0xff] %v9935_v14  ;;  %v8570_v59 = vld [vmem:[%s8807_s11 + $0x3e0] sm:$0xff] }
 0x1ab   : > { %v9924_v53 = vsub.f32 %v8566_v43, %v920_v4  ;;  %v8567_v57 = vld [vmem:[%s8807_s11 + $0x2e8] sm:$0xff]  ;;  %8319 = vrsqrt.f32 %v1733_v26  ;;  %8078 = vmatprep.subr.msk.mxu1 %vm409_vm0, %v2276_v38  ;;  %v2125_v39 = vmul.f32 %v9589_v41, %v1990_v51  ;;  %v919_v50 = vmul.f32 0.03125, %v9498_v56  ;;  %v8571_v43 = vld [vmem:[%s8807_s11 + $0x2e0] sm:$0xff] }
 0x1ac   : > { %v9927_v63 = vsub.f32 %v8567_v57, %v888_v32  ;;  %12221 = vst [vmem:[#allocation20_spill] sm:$0xff] %v9932_v60  ;;  %8321 = vrsqrt.f32 %v1701_v15  ;;  %8030 = vmatprep.subr.msk.mxu0 %vm409_vm0, %v2244_v8  ;;  %v2093_v4 = vmul.f32 %v9589_v41, %v1958_v58  ;;  %v887_v47 = vmul.f32 0.03125, %v9500_v5 }
 0x1ad   : > { %1513 = vadd.xlane.f32.xlu1 %v1512_v36  ;;  %1417 = vadd.xlane.f32.xlu0 %v1416_v20  ;;  %v2260_v32 = vadd.f32 %v9597_v31, %v2125_v39  ;;  %v1161_v15 = vmul.f32 %v9912_v7, %v9912_v7  ;;  %v1129_v56 = vmul.f32 %v9915_v61, %v9915_v61  ;;  %v1557_v20 = vsel %vm409_vm0, %v1177_v42, 0.0 }
 0x1ae   : > { %v9942_v26 = vpop.xlane.xlu1 %717  ;;  %v9944_v49 = vpop.xlane.xlu0 %621  ;;  %v2228_v16 = vadd.f32 %v9597_v31, %v2093_v4  ;;  %v1176_v36 = vmul.f32 %v9924_v53, %v9924_v53  ;;  %v1144_v5 = vmul.f32 %v9927_v63, %v9927_v63  ;;  %v1461_v38 = vsel %vm409_vm0, %v1145_v11, 0.0 }
 0x1af   : > { %8079 = vmatpush3.xpose.msk.msra.mxu1 %vm409_vm0, %v2260_v32  ;;  %v1160_v51 = vmul.f32 %v9932_v60, %v9932_v60  ;;  %v1128_v8 = vmul.f32 %v9935_v14, %v9935_v14  ;;  %v9964_v58 = vsub.f32 %v8570_v59, %v919_v50  ;;  %v9967_v57 = vsub.f32 %v8571_v43, %v887_v47  ;;  %v12226_v60 = vld [vmem:[#allocation24_spill] sm:$0xff] }
 0x1b0   : > { %8031 = vmatpush3.xpose.msk.msra.mxu0 %vm409_vm0, %v2228_v16  ;;  %v1509_v42 = vsel %vm409_vm0, %v1161_v15, 0.0  ;;  %v1413_v11 = vsel %vm409_vm0, %v1129_v56, 0.0  ;;  %v1554_v32 = vsel %vm409_vm0, %v1176_v36, 0.0  ;;  %v1458_v16 = vsel %vm409_vm0, %v1144_v5, 0.0  ;;  %v12225_v56 = vld [vmem:[#allocation25_spill] sm:$0xff] }
 0x1b1   : > { %12223 = vst [vmem:[#allocation23_spill] sm:$0xff] %v9964_v58  ;;  %1558 = vadd.xlane.f32.xlu1 %v1557_v20  ;;  %1462 = vadd.xlane.f32.xlu0 %v1461_v38  ;;  %12224 = vst [vmem:[#allocation22_spill] sm:$0xff] %v9967_v57  ;;  %v903_v50 = vmul.f32 0.03125, %v9514_v3  ;;  %v871_v20 = vmul.f32 0.03125, %v9516_v33  ;;  %v1506_v47 = vsel %vm409_vm0, %v1160_v51, 0.0  ;;  %v1410_v38 = vsel %vm409_vm0, %v1128_v8, 0.0 }
 0x1b2   : > { %v1352_v39 = vpop.xlane.xlu1 %1351  ;;  %v1256_v6 = vpop.xlane.xlu0 %1255  ;;  %v1175_v36 = vmul.f32 %v9964_v58, %v9964_v58  ;;  %v918_v5 = vmul.f32 0.03125, %v9549_v9  ;;  %v886_v3 = vmul.f32 0.03125, %v9551_v13  ;;  %v1143_v8 = vmul.f32 %v9967_v57, %v9967_v57 }
 0x1b3   : > { %v1620_v12 = vmul.f32 0.03125, %v1352_v39  ;;  %v1588_v4 = vmul.f32 0.03125, %v1256_v6  ;;  %v870_v9 = vmul.f32 0.03125, %v9564_v24 }
 0x1b4   : > { %v8316_v14 = vpop.eup %8315 }
 0x1b5   : > { %v8318_v59 = vpop.eup %8317  ;;  %v1748_v43 = vadd.f32 1e-05, %v1620_v12  ;;  %v1716_v15 = vadd.f32 1e-05, %v1588_v4  ;;  %1510 = vadd.xlane.f32.xlu1 %v1509_v42  ;;  %1414 = vadd.xlane.f32.xlu0 %v1413_v11  ;;  %v2005_v39 = vmul.f32 %v8316_v14, %v12225_v56  ;;  %v902_v4 = vmul.f32 0.03125, %v9562_v18  ;;  %v8573_v18 = vld [vmem:[%s8807_s11 + $0x260] sm:$0xff] }
 0x1b6   : > { %v1304_v6 = vpop.xlane.xlu1 %1303  ;;  %v1208_v33 = vpop.xlane.xlu0 %1207  ;;  %v1973_v51 = vmul.f32 %v8318_v59, %v12226_v60  ;;  %v9995_v24 = vsub.f32 %v8573_v18, %v871_v20  ;;  %v8576_v20 = vld [vmem:[%s8807_s11 + $0x358] sm:$0xff] }
 0x1b7   : > { %8323 = vrsqrt.f32 %v1748_v43  ;;  %v1604_v42 = vmul.f32 0.03125, %v1304_v6  ;;  %v1572_v11 = vmul.f32 0.03125, %v1208_v33  ;;  %v2140_v14 = vmul.f32 %v9589_v41, %v2005_v39  ;;  %v12227_v6 = vld [vmem:[#allocation27_spill] sm:$0xff]  ;;  %v8572_v39 = vld [vmem:[%s8807_s11 + $0x360] sm:$0xff]  ;;  %v8577_v18 = vld [vmem:[%s8807_s11 + $0x258] sm:$0xff] }
 0x1b8   : > { %v8320_v12 = vpop.eup %8319  ;;  %8325 = vrsqrt.f32 %v1716_v15  ;;  %v2108_v13 = vmul.f32 %v9589_v41, %v1973_v51  ;;  %v9992_v57 = vsub.f32 %v8572_v39, %v903_v50  ;;  %v10012_v39 = vsub.f32 %v8576_v20, %v902_v4 }
 0x1b9   : > { %v8322_v60 = vpop.eup %8321  ;;  %v1732_v59 = vadd.f32 1e-05, %v1604_v42  ;;  %v1700_v56 = vadd.f32 1e-05, %v1572_v11  ;;  %1555 = vadd.xlane.f32.xlu1 %v1554_v32  ;;  %1459 = vadd.xlane.f32.xlu0 %v1458_v16  ;;  %v2275_v43 = vadd.f32 %v9597_v31, %v2140_v14  ;;  %v1989_v33 = vmul.f32 %v8320_v12, %v12227_v6  ;;  %v12228_v32 = vld [vmem:[#allocation26_spill] sm:$0xff]  ;;  %v8574_v11 = vld [vmem:[%s8807_s11 + $0x3d8] sm:$0xff] }
 0x1ba   : > { %v9997_v15 = vpop.xlane.xlu1 %762  ;;  %v9999_v51 = vpop.xlane.xlu0 %666  ;;  %v2243_v42 = vadd.f32 %v9597_v31, %v2108_v13  ;;  %v1957_v16 = vmul.f32 %v8322_v60, %v12228_v32  ;;  %v10004_v14 = vsub.f32 %v8574_v11, %v918_v5  ;;  %v8575_v12 = vld [vmem:[%s8807_s11 + $0x2d8] sm:$0xff]  ;;  %12229 = vst [vmem:[#allocation25_spill] sm:$0xff] %v10012_v39  ;;  %v10015_v58 = vsub.f32 %v8577_v18, %v870_v9  ;;  %v8578_v32 = vld [vmem:[%s8807_s11 + $0x3d0] sm:$0xff] }
 0x1bb   : > { %v10007_v6 = vsub.f32 %v8575_v12, %v886_v3  ;;  %8327 = vrsqrt.f32 %v1732_v59  ;;  %8080 = vmatprep.subr.msk.mxu1 %vm409_vm0, %v2275_v43  ;;  %v2124_v50 = vmul.f32 %v9589_v41, %v1989_v33  ;;  %v917_v13 = vmul.f32 0.03125, %v9609_v55  ;;  %v8579_v11 = vld [vmem:[%s8807_s11 + $0x2d0] sm:$0xff] }
 0x1bc   : > { %12230 = vst [vmem:[#allocation24_spill] sm:$0xff] %v10015_v58  ;;  %8329 = vrsqrt.f32 %v1700_v56  ;;  %8032 = vmatprep.subr.msk.mxu0 %vm409_vm0, %v2243_v42  ;;  %v2092_v5 = vmul.f32 %v9589_v41, %v1957_v16  ;;  %v885_v60 = vmul.f32 0.03125, %v9611_v48  ;;  %v1159_v56 = vmul.f32 %v9992_v57, %v9992_v57 }
 0x1bd   : > { %1507 = vadd.xlane.f32.xlu1 %v1506_v47  ;;  %1411 = vadd.xlane.f32.xlu0 %v1410_v38  ;;  %v2259_v3 = vadd.f32 %v9597_v31, %v2124_v50  ;;  %v1127_v55 = vmul.f32 %v9995_v24, %v9995_v24  ;;  %v1174_v47 = vmul.f32 %v10004_v14, %v10004_v14  ;;  %v1551_v38 = vsel %vm409_vm0, %v1175_v36, 0.0 }
 0x1be   : > { %v10022_v59 = vpop.xlane.xlu1 %714  ;;  %v10024_v4 = vpop.xlane.xlu0 %618  ;;  %v2227_v9 = vadd.f32 %v9597_v31, %v2092_v5  ;;  %v1142_v48 = vmul.f32 %v10007_v6, %v10007_v6  ;;  %v1455_v43 = vsel %vm409_vm0, %v1143_v8, 0.0  ;;  %v1158_v33 = vmul.f32 %v10012_v39, %v10012_v39 }
 0x1bf   : > { %8081 = vmatpush3.xpose.msk.msra.mxu1 %vm409_vm0, %v2259_v3  ;;  %v1126_v42 = vmul.f32 %v10015_v58, %v10015_v58  ;;  %v10044_v16 = vsub.f32 %v8578_v32, %v917_v13  ;;  %v10047_v12 = vsub.f32 %v8579_v11, %v885_v60  ;;  %v1503_v36 = vsel %vm409_vm0, %v1159_v56, 0.0 }
 0x1c0   : > { %8033 = vmatpush3.xpose.msk.msra.mxu0 %vm409_vm0, %v2227_v9  ;;  %v1407_v8 = vsel %vm409_vm0, %v1127_v55, 0.0  ;;  %v1548_v3 = vsel %vm409_vm0, %v1174_v47, 0.0  ;;  %v1452_v9 = vsel %vm409_vm0, %v1142_v48, 0.0  ;;  %v901_v13 = vmul.f32 0.03125, %v9629_v22  ;;  %v12233_v55 = vld [vmem:[#allocation28_spill] sm:$0xff] }
 0x1c1   : > { %12231 = vst [vmem:[#allocation27_spill] sm:$0xff] %v10044_v16  ;;  %1552 = vadd.xlane.f32.xlu1 %v1551_v38  ;;  %1456 = vadd.xlane.f32.xlu0 %v1455_v43  ;;  %12232 = vst [vmem:[#allocation26_spill] sm:$0xff] %v10047_v12  ;;  %v869_v38 = vmul.f32 0.03125, %v9631_v17  ;;  %v1500_v60 = vsel %vm409_vm0, %v1158_v33, 0.0  ;;  %v1404_v43 = vsel %vm409_vm0, %v1126_v42, 0.0  ;;  %v10060_v47 = vmul.f32 %v10044_v16, %v10044_v16  ;;  %v12234_v33 = vld [vmem:[#allocation29_spill] sm:$0xff] }
 0x1c2   : > { %v1349_v50 = vpop.xlane.xlu1 %1348  ;;  %v1253_v20 = vpop.xlane.xlu0 %1252  ;;  %v916_v48 = vmul.f32 0.03125, %v9674_v29  ;;  %v884_v22 = vmul.f32 0.03125, %v9676_v44  ;;  %v1141_v42 = vmul.f32 %v10047_v12, %v10047_v12  ;;  %v12235_v29 = vld [vmem:[#allocation12_spill] sm:$0xff] }
 0x1c3   : > { %v1619_v18 = vmul.f32 0.03125, %v1349_v50  ;;  %v1587_v5 = vmul.f32 0.03125, %v1253_v20 }
 0x1c4   : > { %v8324_v58 = vpop.eup %8323 }
 0x1c5   : > { %v8326_v32 = vpop.eup %8325  ;;  %v1747_v11 = vadd.f32 1e-05, %v1619_v18  ;;  %v1715_v56 = vadd.f32 1e-05, %v1587_v5  ;;  %1504 = vadd.xlane.f32.xlu1 %v1503_v36  ;;  %1408 = vadd.xlane.f32.xlu0 %v1407_v8  ;;  %v2004_v50 = vmul.f32 %v8324_v58, %v12233_v55  ;;  %v900_v5 = vmul.f32 0.03125, %v9697_v10  ;;  %v8581_v10 = vld [vmem:[%s8807_s11 + $0x250] sm:$0xff] }
 0x1c6   : > { %v1301_v17 = vpop.xlane.xlu1 %1300  ;;  %v1205_v20 = vpop.xlane.xlu0 %1204  ;;  %v1972_v39 = vmul.f32 %v8326_v32, %v12234_v33  ;;  %v868_v55 = vmul.f32 0.03125, %v12235_v29 }
 0x1c7   : > { %8331 = vrsqrt.f32 %v1747_v11  ;;  %v1603_v36 = vmul.f32 0.03125, %v1301_v17  ;;  %v1571_v8 = vmul.f32 0.03125, %v1205_v20  ;;  %v2139_v58 = vmul.f32 %v9589_v41, %v2004_v50  ;;  %v12236_v17 = vld [vmem:[#allocation31_spill] sm:$0xff] }
 0x1c8   : > { %v8328_v18 = vpop.eup %8327  ;;  %8333 = vrsqrt.f32 %v1715_v56  ;;  %v2107_v44 = vmul.f32 %v9589_v41, %v1972_v39  ;;  %v8580_v50 = vld [vmem:[%s8807_s11 + $0x350] sm:$0xff]  ;;  %v10077_v56 = vsub.f32 %v8581_v10, %v869_v38  ;;  %v1545_v10 = vsel %vm409_vm0, %v10060_v47, 0.0 }
 0x1c9   : > { %v8330_v32 = vpop.eup %8329  ;;  %v1731_v33 = vadd.f32 1e-05, %v1603_v36  ;;  %v1699_v12 = vadd.f32 1e-05, %v1571_v8  ;;  %1549 = vadd.xlane.f32.xlu1 %v1548_v3  ;;  %1453 = vadd.xlane.f32.xlu0 %v1452_v9  ;;  %v2274_v11 = vadd.f32 %v9597_v31, %v2139_v58  ;;  %v1988_v20 = vmul.f32 %v8328_v18, %v12236_v17  ;;  %v12237_v3 = vld [vmem:[#allocation30_spill] sm:$0xff] }
 0x1ca   : > { %v10074_v16 = vsub.f32 %v8580_v50, %v901_v13  ;;  %v10079_v41 = vpop.xlane.xlu1 %759  ;;  %v10081_v39 = vpop.xlane.xlu0 %663  ;;  %v2242_v36 = vadd.f32 %v9597_v31, %v2107_v44  ;;  %v1956_v9 = vmul.f32 %v8330_v32, %v12237_v3  ;;  %v8582_v8 = vld [vmem:[%s8807_s11 + $0x3c8] sm:$0xff]  ;;  %v10095_v13 = vld [vmem:[%s12049_s1] ss:$0 sm:$0xff] }
 0x1cb   : > { %v10086_v58 = vsub.f32 %v8582_v8, %v916_v48  ;;  %v8583_v18 = vld [vmem:[%s8807_s11 + $0x2c8] sm:$0xff]  ;;  %8335 = vrsqrt.f32 %v1731_v33  ;;  %8082 = vmatprep.subr.msk.mxu1 %vm409_vm0, %v2274_v11  ;;  %v2123_v38 = vmul.f32 %v10095_v13, %v1988_v20  ;;  %v10110_v33 = vld [vmem:[%s12050_s2] ss:$0 sm:$0xff]  ;;  %v883_v11 = vmul.f32 0.03125, %v9755_v52 }
 0x1cc   : > { %v10089_v29 = vsub.f32 %v8583_v18, %v884_v22  ;;  %v8585_v17 = vld [vmem:[%s8807_s11 + $0x348] sm:$0xff]  ;;  %8337 = vrsqrt.f32 %v1699_v12  ;;  %8034 = vmatprep.subr.msk.mxu0 %vm409_vm0, %v2242_v36  ;;  %v2091_v48 = vmul.f32 %v10095_v13, %v1956_v9  ;;  %v915_v22 = vmul.f32 0.03125, %v9753_v0  ;;  %v8588_v8 = vld [vmem:[%s8807_s11 + $0x3c0] sm:$0xff] }
 0x1cd   : > { %v10099_v31 = vsub.f32 %v8585_v17, %v900_v5  ;;  %v8586_v44 = vld [vmem:[%s8807_s11 + $0x248] sm:$0xff]  ;;  %1501 = vadd.xlane.f32.xlu1 %v1500_v60  ;;  %1405 = vadd.xlane.f32.xlu0 %v1404_v43  ;;  %v2258_v5 = vadd.f32 %v10110_v33, %v2123_v38  ;;  %v1157_v0 = vmul.f32 %v10074_v16, %v10074_v16  ;;  %v2345_v43 = vld [vmem:[%s12051_s3] sm:$0xff]  ;;  %v1449_v36 = vsel %vm409_vm0, %v1141_v42, 0.0 }
 0x1ce   : > { %12238 = vst [vmem:[#allocation28_spill] sm:$0xff] %v10089_v29  ;;  %v10102_v32 = vsub.f32 %v8586_v44, %v868_v55  ;;  %v10114_v55 = vpop.xlane.xlu1 %711  ;;  %v10116_v12 = vpop.xlane.xlu0 %615  ;;  %v2226_v20 = vadd.f32 %v10110_v33, %v2091_v48  ;;  %v1125_v60 = vmul.f32 %v10077_v56, %v10077_v56  ;;  %v1172_v52 = vmul.f32 %v10086_v58, %v10086_v58  ;;  %v8589_v38 = vld [vmem:[%s8807_s11 + $0x2c0] sm:$0xff] }
 0x1cf   : > { %12239 = vst [vmem:[#allocation29_spill] sm:$0xff] %v10099_v31  ;;  %8083 = vmatpush3.xpose.msk.msra.mxu1 %vm409_vm0, %v2258_v5  ;;  %v1140_v50 = vmul.f32 %v10089_v29, %v10089_v29  ;;  %8054 = vmatprep.mubr.msk.f32.mxu0 %vm409_vm0, %v2345_v43  ;;  %v1156_v3 = vmul.f32 %v10099_v31, %v10099_v31  ;;  %v1497_v42 = vsel %vm409_vm0, %v1157_v0, 0.0  ;;  %v12244_v29 = vld [vmem:[#allocation32_spill] sm:$0xff] }
 0x1d0   : > { %12240 = vst [vmem:[#allocation12_spill] sm:$0xff] %v10102_v32  ;;  %8035 = vmatpush3.xpose.msk.msra.mxu0 %vm409_vm0, %v2226_v20  ;;  %v1124_v9 = vmul.f32 %v10102_v32, %v10102_v32  ;;  %8102 = vmatprep.mubr.msk.f32.mxu1 %vm409_vm0, %v2345_v43  ;;  %v10142_v18 = vsub.f32 %v8588_v8, %v915_v22  ;;  %v1401_v48 = vsel %vm409_vm0, %v1125_v60, 0.0  ;;  %v1542_v32 = vsel %vm409_vm0, %v1172_v52, 0.0  ;;  %v12243_v60 = vld [vmem:[#allocation33_spill] sm:$0xff] }
 0x1d1   : > { %1546 = vadd.xlane.f32.xlu1 %v1545_v10  ;;  %1450 = vadd.xlane.f32.xlu0 %v1449_v36  ;;  %v10145_v17 = vsub.f32 %v8589_v38, %v883_v11  ;;  %v1446_v43 = vsel %vm409_vm0, %v1140_v50, 0.0  ;;  %v899_v22 = vmul.f32 0.03125, %v9776_v35  ;;  %v867_v10 = vmul.f32 0.03125, %v9778_v54 }
 0x1d2   : > { %12241 = vst [vmem:[#allocation31_spill] sm:$0xff] %v10142_v18  ;;  %v1346_v44 = vpop.xlane.xlu1 %1345  ;;  %v1250_v47 = vpop.xlane.xlu0 %1249  ;;  %v1494_v11 = vsel %vm409_vm0, %v1156_v3, 0.0  ;;  %v1398_v36 = vsel %vm409_vm0, %v1124_v9, 0.0  ;;  %v1171_v52 = vmul.f32 %v10142_v18, %v10142_v18  ;;  %v914_v50 = vmul.f32 0.03125, %v9833_v1 }
 0x1d3   : > { %12242 = vst [vmem:[#allocation30_spill] sm:$0xff] %v10145_v17  ;;  %v1618_v5 = vmul.f32 0.03125, %v1346_v44  ;;  %v1586_v20 = vmul.f32 0.03125, %v1250_v47  ;;  %v882_v35 = vmul.f32 0.03125, %v9835_v30  ;;  %v1139_v9 = vmul.f32 %v10145_v17, %v10145_v17 }
 0x1d4   : > { %v8332_v31 = vpop.eup %8331  ;;  %v866_v1 = vmul.f32 0.03125, %v9863_v34 }
 0x1d5   : > { %v8334_v8 = vpop.eup %8333  ;;  %v1746_v38 = vadd.f32 1e-05, %v1618_v5  ;;  %v1714_v0 = vadd.f32 1e-05, %v1586_v20  ;;  %1498 = vadd.xlane.f32.xlu1 %v1497_v42  ;;  %1402 = vadd.xlane.f32.xlu0 %v1401_v48  ;;  %v2003_v44 = vmul.f32 %v8332_v31, %v12243_v60  ;;  %v898_v20 = vmul.f32 0.03125, %v9861_v40  ;;  %v8591_v40 = vld [vmem:[%s8807_s11 + $0x240] sm:$0xff] }
 0x1d6   : > { %v1298_v47 = vpop.xlane.xlu1 %1297  ;;  %v1202_v54 = vpop.xlane.xlu0 %1201  ;;  %v1971_v3 = vmul.f32 %v8334_v8, %v12244_v29  ;;  %v10173_v34 = vsub.f32 %v8591_v40, %v867_v10  ;;  %v8594_v10 = vld [vmem:[%s8807_s11 + $0x338] sm:$0xff] }
 0x1d7   : > { %8339 = vrsqrt.f32 %v1746_v38  ;;  %v1602_v42 = vmul.f32 0.03125, %v1298_v47  ;;  %v1570_v48 = vmul.f32 0.03125, %v1202_v54  ;;  %v2138_v31 = vmul.f32 %v10095_v13, %v2003_v44  ;;  %v12245_v47 = vld [vmem:[#allocation35_spill] sm:$0xff]  ;;  %v8590_v44 = vld [vmem:[%s8807_s11 + $0x340] sm:$0xff]  ;;  %v8595_v40 = vld [vmem:[%s8807_s11 + $0x238] sm:$0xff] }
 0x1d8   : > { %v8336_v5 = vpop.eup %8335  ;;  %8341 = vrsqrt.f32 %v1714_v0  ;;  %v2106_v30 = vmul.f32 %v10095_v13, %v1971_v3  ;;  %v10170_v17 = vsub.f32 %v8590_v44, %v899_v22  ;;  %v10190_v44 = vsub.f32 %v8594_v10, %v898_v20 }
 0x1d9   : > { %v8338_v29 = vpop.eup %8337  ;;  %v1730_v8 = vadd.f32 1e-05, %v1602_v42  ;;  %v1698_v60 = vadd.f32 1e-05, %v1570_v48  ;;  %1543 = vadd.xlane.f32.xlu1 %v1542_v32  ;;  %1447 = vadd.xlane.f32.xlu0 %v1446_v43  ;;  %v2273_v38 = vadd.f32 %v10110_v33, %v2138_v31  ;;  %v1987_v54 = vmul.f32 %v8336_v5, %v12245_v47  ;;  %v12246_v32 = vld [vmem:[#allocation34_spill] sm:$0xff]  ;;  %v8592_v48 = vld [vmem:[%s8807_s11 + $0x3b8] sm:$0xff] }
 0x1da   : > { %v10175_v0 = vpop.xlane.xlu1 %756  ;;  %v10177_v3 = vpop.xlane.xlu0 %660  ;;  %v2241_v42 = vadd.f32 %v10110_v33, %v2106_v30  ;;  %v1955_v43 = vmul.f32 %v8338_v29, %v12246_v32  ;;  %v10182_v31 = vsub.f32 %v8592_v48, %v914_v50  ;;  %v8593_v5 = vld [vmem:[%s8807_s11 + $0x2b8] sm:$0xff]  ;;  %12247 = vst [vmem:[#allocation33_spill] sm:$0xff] %v10190_v44  ;;  %v10193_v18 = vsub.f32 %v8595_v40, %v866_v1  ;;  %v8596_v32 = vld [vmem:[%s8807_s11 + $0x3b0] sm:$0xff] }
 0x1db   : > { %v10185_v47 = vsub.f32 %v8593_v5, %v882_v35  ;;  %8343 = vrsqrt.f32 %v1730_v8  ;;  %8084 = vmatprep.subr.msk.mxu1 %vm409_vm0, %v2273_v38  ;;  %v2122_v22 = vmul.f32 %v10095_v13, %v1987_v54  ;;  %v913_v30 = vmul.f32 0.03125, %v9917_v45  ;;  %v8597_v48 = vld [vmem:[%s8807_s11 + $0x2b0] sm:$0xff] }
 0x1dc   : > { %12248 = vst [vmem:[#allocation32_spill] sm:$0xff] %v10193_v18  ;;  %8345 = vrsqrt.f32 %v1698_v60  ;;  %8036 = vmatprep.subr.msk.mxu0 %vm409_vm0, %v2241_v42  ;;  %v2090_v50 = vmul.f32 %v10095_v13, %v1955_v43  ;;  %v881_v29 = vmul.f32 0.03125, %v9919_v19  ;;  %v1155_v60 = vmul.f32 %v10170_v17, %v10170_v17 }
 0x1dd   : > { %1495 = vadd.xlane.f32.xlu1 %v1494_v11  ;;  %1399 = vadd.xlane.f32.xlu0 %v1398_v36  ;;  %v2257_v35 = vadd.f32 %v10110_v33, %v2122_v22  ;;  %v1123_v45 = vmul.f32 %v10173_v34, %v10173_v34  ;;  %v1170_v11 = vmul.f32 %v10182_v31, %v10182_v31  ;;  %v1539_v36 = vsel %vm409_vm0, %v1171_v52, 0.0 }
 0x1de   : > { %v10200_v8 = vpop.xlane.xlu1 %708  ;;  %v10202_v20 = vpop.xlane.xlu0 %612  ;;  %v2225_v1 = vadd.f32 %v10110_v33, %v2090_v50  ;;  %v1138_v19 = vmul.f32 %v10185_v47, %v10185_v47  ;;  %v1443_v38 = vsel %vm409_vm0, %v1139_v9, 0.0  ;;  %v1154_v54 = vmul.f32 %v10190_v44, %v10190_v44  ;;  %v12252_v44 = vld [vmem:[#allocation37_spill] sm:$0xff] }
 0x1df   : > { %8085 = vmatpush3.xpose.msk.msra.mxu1 %vm409_vm0, %v2257_v35  ;;  %v1122_v42 = vmul.f32 %v10193_v18, %v10193_v18  ;;  %v10222_v43 = vsub.f32 %v8596_v32, %v913_v30  ;;  %v10225_v5 = vsub.f32 %v8597_v48, %v881_v29  ;;  %v1491_v52 = vsel %vm409_vm0, %v1155_v60, 0.0 }
 0x1e0   : > { %8037 = vmatpush3.xpose.msk.msra.mxu0 %vm409_vm0, %v2225_v1  ;;  %v1395_v9 = vsel %vm409_vm0, %v1123_v45, 0.0  ;;  %v1536_v35 = vsel %vm409_vm0, %v1170_v11, 0.0  ;;  %v1440_v1 = vsel %vm409_vm0, %v1138_v19, 0.0  ;;  %v897_v30 = vmul.f32 0.03125, %v9942_v26  ;;  %v12251_v45 = vld [vmem:[#allocation36_spill] sm:$0xff] }
 0x1e1   : > { %12249 = vst [vmem:[#allocation35_spill] sm:$0xff] %v10222_v43  ;;  %1540 = vadd.xlane.f32.xlu1 %v1539_v36  ;;  %1444 = vadd.xlane.f32.xlu0 %v1443_v38  ;;  %12250 = vst [vmem:[#allocation34_spill] sm:$0xff] %v10225_v5  ;;  %v865_v36 = vmul.f32 0.03125, %v9944_v49  ;;  %v1488_v29 = vsel %vm409_vm0, %v1154_v54, 0.0  ;;  %v1392_v38 = vsel %vm409_vm0, %v1122_v42, 0.0  ;;  %v1169_v11 = vmul.f32 %v10222_v43, %v10222_v43 }
 0x1e2   : > { %v1343_v22 = vpop.xlane.xlu1 %1342  ;;  %v1247_v10 = vpop.xlane.xlu0 %1246  ;;  %v912_v19 = vmul.f32 0.03125, %v9997_v15  ;;  %v880_v26 = vmul.f32 0.03125, %v9999_v51  ;;  %v1137_v42 = vmul.f32 %v10225_v5, %v10225_v5  ;;  %v864_v15 = vmul.f32 0.03125, %v10024_v4 }
 0x1e3   : > { %v1617_v40 = vmul.f32 0.03125, %v1343_v22  ;;  %v1585_v50 = vmul.f32 0.03125, %v1247_v10 }
 0x1e4   : > { %v8340_v18 = vpop.eup %8339 }
 0x1e5   : > { %v8342_v32 = vpop.eup %8341  ;;  %v1745_v48 = vadd.f32 1e-05, %v1617_v40  ;;  %v1713_v60 = vadd.f32 1e-05, %v1585_v50  ;;  %1492 = vadd.xlane.f32.xlu1 %v1491_v52  ;;  %1396 = vadd.xlane.f32.xlu0 %v1395_v9  ;;  %v2002_v22 = vmul.f32 %v8340_v18, %v12251_v45  ;;  %v896_v50 = vmul.f32 0.03125, %v10022_v59  ;;  %v8599_v59 = vld [vmem:[%s8807_s11 + $0x230] sm:$0xff] }
 0x1e6   : > { %v1295_v10 = vpop.xlane.xlu1 %1294  ;;  %v1199_v49 = vpop.xlane.xlu0 %1198  ;;  %v1970_v54 = vmul.f32 %v8342_v32, %v12252_v44  ;;  %v10253_v4 = vsub.f32 %v8599_v59, %v865_v36  ;;  %v8602_v36 = vld [vmem:[%s8807_s11 + $0x328] sm:$0xff] }
 0x1e7   : > { %8347 = vrsqrt.f32 %v1745_v48  ;;  %v1601_v52 = vmul.f32 0.03125, %v1295_v10  ;;  %v1569_v9 = vmul.f32 0.03125, %v1199_v49  ;;  %v2137_v18 = vmul.f32 %v10095_v13, %v2002_v22  ;;  %v12253_v10 = vld [vmem:[#allocation39_spill] sm:$0xff]  ;;  %v8603_v59 = vld [vmem:[%s8807_s11 + $0x228] sm:$0xff] }
 0x1e8   : > { %v8344_v40 = vpop.eup %8343  ;;  %8349 = vrsqrt.f32 %v1713_v60  ;;  %v2105_v51 = vmul.f32 %v10095_v13, %v1970_v54  ;;  %v8598_v22 = vld [vmem:[%s8807_s11 + $0x330] sm:$0xff]  ;;  %v10273_v43 = vsub.f32 %v8603_v59, %v864_v15 }
 0x1e9   : > { %v8346_v44 = vpop.eup %8345  ;;  %v1729_v32 = vadd.f32 1e-05, %v1601_v52  ;;  %v1697_v45 = vadd.f32 1e-05, %v1569_v9  ;;  %1537 = vadd.xlane.f32.xlu1 %v1536_v35  ;;  %1441 = vadd.xlane.f32.xlu0 %v1440_v1  ;;  %v2272_v48 = vadd.f32 %v10110_v33, %v2137_v18  ;;  %v1986_v49 = vmul.f32 %v8344_v40, %v12253_v10  ;;  %v12254_v35 = vld [vmem:[#allocation38_spill] sm:$0xff] }
 0x1ea   : > { %v10250_v5 = vsub.f32 %v8598_v22, %v897_v30  ;;  %v10255_v60 = vpop.xlane.xlu1 %753  ;;  %v10257_v54 = vpop.xlane.xlu0 %657  ;;  %v2240_v52 = vadd.f32 %v10110_v33, %v2105_v51  ;;  %v1954_v1 = vmul.f32 %v8346_v44, %v12254_v35  ;;  %v8600_v9 = vld [vmem:[%s8807_s11 + $0x3a8] sm:$0xff]  ;;  %v10270_v22 = vsub.f32 %v8602_v36, %v896_v50  ;;  %12256 = vst [vmem:[#allocation37_spill] sm:$0xff] %v10273_v43  ;;  %v8604_v35 = vld [vmem:[%s8807_s11 + $0x3a0] sm:$0xff] }
 0x1eb   : > { %v10262_v18 = vsub.f32 %v8600_v9, %v912_v19  ;;  %v8601_v40 = vld [vmem:[%s8807_s11 + $0x2a8] sm:$0xff]  ;;  %8351 = vrsqrt.f32 %v1729_v32  ;;  %8086 = vmatprep.subr.msk.mxu1 %vm409_vm0, %v2272_v48  ;;  %v2121_v30 = vmul.f32 %v10095_v13, %v1986_v49  ;;  %v911_v51 = vmul.f32 0.03125, %v10079_v41  ;;  %v8605_v9 = vld [vmem:[%s8807_s11 + $0x2a0] sm:$0xff] }
 0x1ec   : > { %v10265_v10 = vsub.f32 %v8601_v40, %v880_v26  ;;  %12255 = vst [vmem:[#allocation36_spill] sm:$0xff] %v10270_v22  ;;  %8353 = vrsqrt.f32 %v1697_v45  ;;  %8038 = vmatprep.subr.msk.mxu0 %vm409_vm0, %v2240_v52  ;;  %v2089_v19 = vmul.f32 %v10095_v13, %v1954_v1  ;;  %v879_v44 = vmul.f32 0.03125, %v10081_v39 }
 0x1ed   : > { %1489 = vadd.xlane.f32.xlu1 %v1488_v29  ;;  %1393 = vadd.xlane.f32.xlu0 %v1392_v38  ;;  %v2256_v26 = vadd.f32 %v10110_v33, %v2121_v30  ;;  %v1153_v45 = vmul.f32 %v10250_v5, %v10250_v5  ;;  %v1121_v41 = vmul.f32 %v10253_v4, %v10253_v4  ;;  %v1533_v38 = vsel %vm409_vm0, %v1169_v11, 0.0 }
 0x1ee   : > { %v10280_v32 = vpop.xlane.xlu1 %705  ;;  %v10282_v50 = vpop.xlane.xlu0 %609  ;;  %v2224_v15 = vadd.f32 %v10110_v33, %v2089_v19  ;;  %v1168_v29 = vmul.f32 %v10262_v18, %v10262_v18  ;;  %v1136_v39 = vmul.f32 %v10265_v10, %v10265_v10  ;;  %v1437_v48 = vsel %vm409_vm0, %v1137_v42, 0.0 }
 0x1ef   : > { %8087 = vmatpush3.xpose.msk.msra.mxu1 %vm409_vm0, %v2256_v26  ;;  %v1152_v49 = vmul.f32 %v10270_v22, %v10270_v22  ;;  %v1120_v52 = vmul.f32 %v10273_v43, %v10273_v43  ;;  %v10302_v1 = vsub.f32 %v8604_v35, %v911_v51  ;;  %v10305_v40 = vsub.f32 %v8605_v9, %v879_v44  ;;  %v12260_v22 = vld [vmem:[#allocation40_spill] sm:$0xff] }
 0x1f0   : > { %8039 = vmatpush3.xpose.msk.msra.mxu0 %vm409_vm0, %v2224_v15  ;;  %v1485_v11 = vsel %vm409_vm0, %v1153_v45, 0.0  ;;  %v1389_v42 = vsel %vm409_vm0, %v1121_v41, 0.0  ;;  %v1530_v26 = vsel %vm409_vm0, %v1168_v29, 0.0  ;;  %v1434_v15 = vsel %vm409_vm0, %v1136_v39, 0.0  ;;  %v12259_v41 = vld [vmem:[#allocation41_spill] sm:$0xff] }
 0x1f1   : > { %12257 = vst [vmem:[#allocation39_spill] sm:$0xff] %v10302_v1  ;;  %1534 = vadd.xlane.f32.xlu1 %v1533_v38  ;;  %1438 = vadd.xlane.f32.xlu0 %v1437_v48  ;;  %12258 = vst [vmem:[#allocation38_spill] sm:$0xff] %v10305_v40  ;;  %v895_v51 = vmul.f32 0.03125, %v10114_v55  ;;  %v863_v38 = vmul.f32 0.03125, %v10116_v12  ;;  %v1482_v44 = vsel %vm409_vm0, %v1152_v49, 0.0  ;;  %v1386_v48 = vsel %vm409_vm0, %v1120_v52, 0.0 }
 0x1f2   : > { %v1340_v30 = vpop.xlane.xlu1 %1339  ;;  %v1244_v36 = vpop.xlane.xlu0 %1243  ;;  %v1167_v29 = vmul.f32 %v10302_v1, %v10302_v1  ;;  %v910_v39 = vmul.f32 0.03125, %v10175_v0  ;;  %v878_v55 = vmul.f32 0.03125, %v10177_v3  ;;  %v1135_v52 = vmul.f32 %v10305_v40, %v10305_v40 }
 0x1f3   : > { %v1616_v59 = vmul.f32 0.03125, %v1340_v30  ;;  %v1584_v19 = vmul.f32 0.03125, %v1244_v36  ;;  %v862_v0 = vmul.f32 0.03125, %v10202_v20 }
 0x1f4   : > { %v8348_v43 = vpop.eup %8347 }
 0x1f5   : > { %v8350_v35 = vpop.eup %8349  ;;  %v1744_v9 = vadd.f32 1e-05, %v1616_v59  ;;  %v1712_v45 = vadd.f32 1e-05, %v1584_v19  ;;  %1486 = vadd.xlane.f32.xlu1 %v1485_v11  ;;  %1390 = vadd.xlane.f32.xlu0 %v1389_v42  ;;  %v2001_v30 = vmul.f32 %v8348_v43, %v12259_v41  ;;  %v894_v19 = vmul.f32 0.03125, %v10200_v8  ;;  %v8607_v8 = vld [vmem:[%s8807_s11 + $0x220] sm:$0xff] }
 0x1f6   : > { %v1292_v36 = vpop.xlane.xlu1 %1291  ;;  %v1196_v12 = vpop.xlane.xlu0 %1195  ;;  %v1969_v49 = vmul.f32 %v8350_v35, %v12260_v22  ;;  %v10333_v20 = vsub.f32 %v8607_v8, %v863_v38  ;;  %v8610_v38 = vld [vmem:[%s8807_s11 + $0x318] sm:$0xff] }
 0x1f7   : > { %8355 = vrsqrt.f32 %v1744_v9  ;;  %v1600_v11 = vmul.f32 0.03125, %v1292_v36  ;;  %v1568_v42 = vmul.f32 0.03125, %v1196_v12  ;;  %v2136_v43 = vmul.f32 %v10095_v13, %v2001_v30  ;;  %v12261_v36 = vld [vmem:[#allocation43_spill] sm:$0xff]  ;;  %v8606_v30 = vld [vmem:[%s8807_s11 + $0x320] sm:$0xff] }
 0x1f8   : > { %v8352_v59 = vpop.eup %8351  ;;  %8357 = vrsqrt.f32 %v1712_v45  ;;  %v2104_v3 = vmul.f32 %v10095_v13, %v1969_v49  ;;  %v10330_v40 = vsub.f32 %v8606_v30, %v895_v51  ;;  %v8611_v30 = vld [vmem:[%s8807_s11 + $0x218] sm:$0xff] }
 0x1f9   : > { %v8354_v22 = vpop.eup %8353  ;;  %v1728_v35 = vadd.f32 1e-05, %v1600_v11  ;;  %v1696_v41 = vadd.f32 1e-05, %v1568_v42  ;;  %1531 = vadd.xlane.f32.xlu1 %v1530_v26  ;;  %1435 = vadd.xlane.f32.xlu0 %v1434_v15  ;;  %v2271_v9 = vadd.f32 %v10110_v33, %v2136_v43  ;;  %v1985_v12 = vmul.f32 %v8352_v59, %v12261_v36  ;;  %v12262_v42 = vld [vmem:[#allocation42_spill] sm:$0xff]  ;;  %v8608_v15 = vld [vmem:[%s8807_s11 + $0x398] sm:$0xff] }
 0x1fa   : > { %v751_v45 = vpop.xlane.xlu1 %750  ;;  %v10335_v49 = vpop.xlane.xlu0 %654  ;;  %v2239_v11 = vadd.f32 %v10110_v33, %v2104_v3  ;;  %v1953_v26 = vmul.f32 %v8354_v22, %v12262_v42  ;;  %v10340_v1 = vsub.f32 %v8608_v15, %v910_v39  ;;  %v8609_v43 = vld [vmem:[%s8807_s11 + $0x298] sm:$0xff]  ;;  %v10348_v36 = vsub.f32 %v8610_v38, %v894_v19 }
 0x1fb   : > { %v10343_v59 = vsub.f32 %v8609_v43, %v878_v55  ;;  %8359 = vrsqrt.f32 %v1728_v35  ;;  %8088 = vmatprep.subr.msk.mxu1 %vm409_vm0, %v2271_v9  ;;  %v2120_v51 = vmul.f32 %v10095_v13, %v1985_v12  ;;  %v10351_v8 = vsub.f32 %v8611_v30, %v862_v0 }
 0x1fc   : > { %12263 = vst [vmem:[#allocation41_spill] sm:$0xff] %v10340_v1  ;;  %12265 = vst [vmem:[#allocation43_spill] sm:$0xff] %v10348_v36  ;;  %8361 = vrsqrt.f32 %v1696_v41  ;;  %8040 = vmatprep.subr.msk.mxu0 %vm409_vm0, %v2239_v11  ;;  %v2088_v39 = vmul.f32 %v10095_v13, %v1953_v26  ;;  %v909_v3 = vmul.f32 0.03125, %v10255_v60  ;;  %v1151_v0 = vmul.f32 %v10330_v40, %v10330_v40 }
 0x1fd   : > { %12264 = vst [vmem:[#allocation40_spill] sm:$0xff] %v10343_v59  ;;  %12266 = vst [vmem:[#allocation42_spill] sm:$0xff] %v10351_v8  ;;  %1483 = vadd.xlane.f32.xlu1 %v1482_v44  ;;  %1387 = vadd.xlane.f32.xlu0 %v1386_v48  ;;  %v2255_v55 = vadd.f32 %v10110_v33, %v2120_v51  ;;  %v1527_v41 = vsel %vm409_vm0, %v1167_v29, 0.0  ;;  %v1431_v9 = vsel %vm409_vm0, %v1135_v52, 0.0  ;;  %v877_v48 = vmul.f32 0.03125, %v10257_v54  ;;  %v8612_v52 = vld [vmem:[%s8807_s11 + $0x390] sm:$0xff] }
 0x1fe   : > { %v703_v22 = vpop.xlane.xlu1 %702  ;;  %v607_v35 = vpop.xlane.xlu0 %606  ;;  %v2223_v19 = vadd.f32 %v10110_v33, %v2088_v39  ;;  %v1119_v44 = vmul.f32 %v10333_v20, %v10333_v20  ;;  %v1166_v60 = vmul.f32 %v10340_v1, %v10340_v1  ;;  %v1134_v12 = vmul.f32 %v10343_v59, %v10343_v59  ;;  %v12268_v59 = vld [vmem:[#allocation45_spill] sm:$0xff] }
 0x1ff   : > { %8089 = vmatpush3.xpose.msk.msra.mxu1 %vm409_vm0, %v2255_v55  ;;  %v1150_v11 = vmul.f32 %v10348_v36, %v10348_v36  ;;  %v1118_v29 = vmul.f32 %v10351_v8, %v10351_v8  ;;  %v10376_v42 = vsub.f32 %v8612_v52, %v909_v3  ;;  %v1479_v54 = vsel %vm409_vm0, %v1151_v0, 0.0  ;;  %v8613_v55 = vld [vmem:[%s8807_s11 + $0x290] sm:$0xff] }
 0x200   : > { %8041 = vmatpush3.xpose.msk.msra.mxu0 %vm409_vm0, %v2223_v19  ;;  %v1383_v38 = vsel %vm409_vm0, %v1119_v44, 0.0  ;;  %v1524_v30 = vsel %vm409_vm0, %v1166_v60, 0.0  ;;  %v10382_v19 = vsub.f32 %v8613_v55, %v877_v48  ;;  %v893_v8 = vmul.f32 0.03125, %v10280_v32  ;;  %v12267_v44 = vld [vmem:[#allocation44_spill] sm:$0xff] }
 0x201   : > { %1528 = vadd.xlane.f32.xlu1 %v1527_v41  ;;  %1432 = vadd.xlane.f32.xlu0 %v1431_v9  ;;  %v1428_v41 = vsel %vm409_vm0, %v1134_v12, 0.0  ;;  %v1476_v9 = vsel %vm409_vm0, %v1150_v11, 0.0  ;;  %v1380_v3 = vsel %vm409_vm0, %v1118_v29, 0.0  ;;  %v861_v60 = vmul.f32 0.03125, %v10282_v50 }
 0x202   : > { %v1337_v26 = vpop.xlane.xlu1 %1336  ;;  %v1241_v15 = vpop.xlane.xlu0 %1240  ;;  %v908_v36 = vmul.f32 0.03125, %v751_v45  ;;  %v1165_v11 = vmul.f32 %v10376_v42, %v10376_v42 }
 0x203   : > { %v1615_v43 = vmul.f32 0.03125, %v1337_v26  ;;  %v1583_v51 = vmul.f32 0.03125, %v1241_v15 }
 0x204   : > { %v8356_v39 = vpop.eup %8355 }
 0x205   : > { %v8358_v52 = vpop.eup %8357  ;;  %v1743_v0 = vadd.f32 1e-05, %v1615_v43  ;;  %v1711_v26 = vadd.f32 1e-05, %v1583_v51  ;;  %1480 = vadd.xlane.f32.xlu1 %v1479_v54  ;;  %1384 = vadd.xlane.f32.xlu0 %v1383_v38  ;;  %v2000_v15 = vmul.f32 %v8356_v39, %v12267_v44  ;;  %v876_v54 = vmul.f32 0.03125, %v10335_v49 }
 0x206   : > { %v1289_v48 = vpop.xlane.xlu1 %1288  ;;  %v1193_v55 = vpop.xlane.xlu0 %1192  ;;  %v1968_v12 = vmul.f32 %v8358_v52, %v12268_v59  ;;  %v892_v51 = vmul.f32 0.03125, %v703_v22  ;;  %v12269_v52 = vld [vmem:[#allocation47_spill] sm:$0xff]  ;;  %v860_v44 = vmul.f32 0.03125, %v607_v35 }
 0x207   : > { %8363 = vrsqrt.f32 %v1743_v0  ;;  %v1599_v29 = vmul.f32 0.03125, %v1289_v48  ;;  %v1567_v1 = vmul.f32 0.03125, %v1193_v55  ;;  %v2135_v32 = vmul.f32 %v10095_v13, %v2000_v15 }
 0x208   : > { %v8360_v43 = vpop.eup %8359  ;;  %8365 = vrsqrt.f32 %v1711_v26  ;;  %v2103_v50 = vmul.f32 %v10095_v13, %v1968_v12  ;;  %v12270_v26 = vld [vmem:[#allocation46_spill] sm:$0xff]  ;;  %v1133_v55 = vmul.f32 %v10382_v19, %v10382_v19 }
 0x209   : > { %v8362_v45 = vpop.eup %8361  ;;  %v1727_v38 = vadd.f32 1e-05, %v1599_v29  ;;  %v1695_v59 = vadd.f32 1e-05, %v1567_v1  ;;  %1525 = vadd.xlane.f32.xlu1 %v1524_v30  ;;  %1429 = vadd.xlane.f32.xlu0 %v1428_v41  ;;  %v2270_v39 = vadd.f32 %v10110_v33, %v2135_v32  ;;  %v1984_v0 = vmul.f32 %v8360_v43, %v12269_v52  ;;  %v8614_v1 = vld [vmem:[%s8807_s11 + $0x310] sm:$0xff]  ;;  %v8616_v29 = vld [vmem:[%s8807_s11 + $0x388] sm:$0xff] }
 0x20a   : > { %v748_v15 = vpop.xlane.xlu1 %747  ;;  %v652_v49 = vpop.xlane.xlu0 %651  ;;  %v2238_v22 = vadd.f32 %v10110_v33, %v2103_v50  ;;  %v1952_v48 = vmul.f32 %v8362_v45, %v12270_v26  ;;  %v10403_v30 = vsub.f32 %v8614_v1, %v893_v8  ;;  %v8615_v41 = vld [vmem:[%s8807_s11 + $0x210] sm:$0xff]  ;;  %v10411_v32 = vsub.f32 %v8616_v29, %v908_v36  ;;  %v8617_v43 = vld [vmem:[%s8807_s11 + $0x288] sm:$0xff] }
 0x20b   : > { %v10406_v12 = vsub.f32 %v8615_v41, %v861_v60  ;;  %8367 = vrsqrt.f32 %v1727_v38  ;;  %8090 = vmatprep.subr.msk.mxu1 %vm409_vm0, %v2270_v39  ;;  %v2119_v35 = vmul.f32 %v10095_v13, %v1984_v0  ;;  %v10414_v50 = vsub.f32 %v8617_v43, %v876_v54  ;;  %v8618_v45 = vld [vmem:[%s8807_s11 + $0x308] sm:$0xff] }
 0x20c   : > { %12271 = vst [vmem:[#allocation44_spill] sm:$0xff] %v10411_v32  ;;  %8369 = vrsqrt.f32 %v1695_v59  ;;  %8042 = vmatprep.subr.msk.mxu0 %vm409_vm0, %v2238_v22  ;;  %v2087_v8 = vmul.f32 %v10095_v13, %v1952_v48  ;;  %v10419_v60 = vsub.f32 %v8618_v45, %v892_v51  ;;  %v8619_v39 = vld [vmem:[%s8807_s11 + $0x208] sm:$0xff]  ;;  %v1521_v59 = vsel %vm409_vm0, %v1165_v11, 0.0 }
 0x20d   : > { %12272 = vst [vmem:[#allocation45_spill] sm:$0xff] %v10414_v50  ;;  %1477 = vadd.xlane.f32.xlu1 %v1476_v9  ;;  %1381 = vadd.xlane.f32.xlu0 %v1380_v3  ;;  %v2254_v38 = vadd.f32 %v10110_v33, %v2119_v35  ;;  %v10423_v52 = vsub.f32 %v8619_v39, %v860_v44  ;;  %v1425_v22 = vsel %vm409_vm0, %v1133_v55, 0.0  ;;  %v907_v26 = vmul.f32 0.03125, %v748_v15 }
 0x20e   : > { %12273 = vst [vmem:[#allocation47_spill] sm:$0xff] %v10419_v60  ;;  %v700_v36 = vpop.xlane.xlu1 %699  ;;  %v604_v0 = vpop.xlane.xlu0 %603  ;;  %v2222_v54 = vadd.f32 %v10110_v33, %v2087_v8  ;;  %v1149_v9 = vmul.f32 %v10403_v30, %v10403_v30  ;;  %v1117_v3 = vmul.f32 %v10406_v12, %v10406_v12  ;;  %v1164_v51 = vmul.f32 %v10411_v32, %v10411_v32 }
 0x20f   : > { %12274 = vst [vmem:[#allocation46_spill] sm:$0xff] %v10423_v52  ;;  %8091 = vmatpush3.xpose.msk.msra.mxu1 %vm409_vm0, %v2254_v38  ;;  %v1132_v44 = vmul.f32 %v10414_v50, %v10414_v50  ;;  %v1148_v11 = vmul.f32 %v10419_v60, %v10419_v60  ;;  %v875_v48 = vmul.f32 0.03125, %v652_v49  ;;  %v1116_v41 = vmul.f32 %v10423_v52, %v10423_v52  ;;  %v8620_v52 = vld [vmem:[%s8807_s11 + $0x380] sm:$0xff] }
 0x210   : > { %8043 = vmatpush3.xpose.msk.msra.mxu0 %vm409_vm0, %v2222_v54  ;;  %v1473_v8 = vsel %vm409_vm0, %v1149_v9, 0.0  ;;  %v1377_v45 = vsel %vm409_vm0, %v1117_v3, 0.0  ;;  %v1518_v38 = vsel %vm409_vm0, %v1164_v51, 0.0  ;;  %v8621_v60 = vld [vmem:[%s8807_s11 + $0x280] sm:$0xff]  ;;  %v12276_v51 = vld [vmem:[#allocation48_spill] sm:$0xff] }
 0x211   : > { %1522 = vadd.xlane.f32.xlu1 %v1521_v59  ;;  %1426 = vadd.xlane.f32.xlu0 %v1425_v22  ;;  %v1422_v39 = vsel %vm409_vm0, %v1132_v44, 0.0  ;;  %v12275_v59 = vld [vmem:[#allocation49_spill] sm:$0xff]  ;;  %v10452_v9 = vsub.f32 %v8621_v60, %v875_v48  ;;  %v1374_v44 = vsel %vm409_vm0, %v1116_v41, 0.0 }
 0x212   : > { %v1334_v55 = vpop.xlane.xlu1 %1333  ;;  %v1238_v1 = vpop.xlane.xlu0 %1237 }
 0x213   : > { %v1614_v35 = vmul.f32 0.03125, %v1334_v55  ;;  %v1582_v29 = vmul.f32 0.03125, %v1238_v1  ;;  %v1470_v55 = vsel %vm409_vm0, %v1148_v11, 0.0  ;;  %v10449_v1 = vsub.f32 %v8620_v52, %v907_v26 }
 0x214   : > { %v8364_v43 = vpop.eup %8363  ;;  %v859_v11 = vmul.f32 0.03125, %v604_v0 }
 0x215   : > { %v8366_v15 = vpop.eup %8365  ;;  %v1742_v49 = vadd.f32 1e-05, %v1614_v35  ;;  %v1710_v54 = vadd.f32 1e-05, %v1582_v29  ;;  %1474 = vadd.xlane.f32.xlu1 %v1473_v8  ;;  %1378 = vadd.xlane.f32.xlu0 %v1377_v45  ;;  %v1999_v22 = vmul.f32 %v8364_v43, %v12275_v59  ;;  %v891_v45 = vmul.f32 0.03125, %v700_v36  ;;  %v12278_v36 = vld [vmem:[#allocation50_spill] sm:$0xff] }
 0x216   : > { %v1286_v3 = vpop.xlane.xlu1 %1285  ;;  %v1190_v50 = vpop.xlane.xlu0 %1189  ;;  %v1967_v32 = vmul.f32 %v8366_v15, %v12276_v51  ;;  %v12277_v15 = vld [vmem:[#allocation7_spill] sm:$0xff]  ;;  %v8622_v51 = vld [vmem:[%s8807_s11 + $0x300] sm:$0xff] }
 0x217   : > { %8371 = vrsqrt.f32 %v1742_v49  ;;  %v1598_v35 = vmul.f32 0.03125, %v1286_v3  ;;  %v1566_v29 = vmul.f32 0.03125, %v1190_v50  ;;  %v2134_v8 = vmul.f32 %v10095_v13, %v1999_v22 }
 0x218   : > { %v8368_v43 = vpop.eup %8367  ;;  %8373 = vrsqrt.f32 %v1710_v54  ;;  %v2102_v52 = vmul.f32 %v10095_v13, %v1967_v32  ;;  %v1163_v32 = vmul.f32 %v10449_v1, %v10449_v1  ;;  %v1131_v54 = vmul.f32 %v10452_v9, %v10452_v9 }
 0x219   : > { %v8370_v26 = vpop.eup %8369  ;;  %v1726_v60 = vadd.f32 1e-05, %v1598_v35  ;;  %v1694_v48 = vadd.f32 1e-05, %v1566_v29  ;;  %1519 = vadd.xlane.f32.xlu1 %v1518_v38  ;;  %1423 = vadd.xlane.f32.xlu0 %v1422_v39  ;;  %v2269_v41 = vadd.f32 %v10110_v33, %v2134_v8  ;;  %v1983_v49 = vmul.f32 %v8368_v43, %v12277_v15  ;;  %v8623_v29 = vld [vmem:[%s8807_s11 + $0x200] sm:$0xff] }
 0x21a   : > { %v1331_v50 = vpop.xlane.xlu1 %1330  ;;  %v1235_v59 = vpop.xlane.xlu0 %1234  ;;  %v2237_v22 = vadd.f32 %v10110_v33, %v2102_v52  ;;  %v1951_v0 = vmul.f32 %v8370_v26, %v12278_v36  ;;  %v10469_v35 = vsub.f32 %v8622_v51, %v891_v45  ;;  %v10472_v8 = vsub.f32 %v8623_v29, %v859_v11 }
 0x21b   : > { %8375 = vrsqrt.f32 %v1726_v60  ;;  %v1613_v38 = vmul.f32 0.03125, %v1331_v50  ;;  %v1581_v39 = vmul.f32 0.03125, %v1235_v59  ;;  %8092 = vmatprep.subr.msk.mxu1 %vm409_vm0, %v2269_v41  ;;  %v2118_v3 = vmul.f32 %v10095_v13, %v1983_v49 }
 0x21c   : > { %8377 = vrsqrt.f32 %v1694_v48  ;;  %8044 = vmatprep.subr.msk.mxu0 %vm409_vm0, %v2237_v22  ;;  %v2086_v43 = vmul.f32 %v10095_v13, %v1951_v0  ;;  %v1515_v11 = vsel %vm409_vm0, %v1163_v32, 0.0  ;;  %v1419_v48 = vsel %vm409_vm0, %v1131_v54, 0.0 }
 0x21d   : > { %v1741_v52 = vadd.f32 1e-05, %v1613_v38  ;;  %v1709_v26 = vadd.f32 1e-05, %v1581_v39  ;;  %1471 = vadd.xlane.f32.xlu1 %v1470_v55  ;;  %1375 = vadd.xlane.f32.xlu0 %v1374_v44  ;;  %v2253_v60 = vadd.f32 %v10110_v33, %v2118_v3  ;;  %v1147_v55 = vmul.f32 %v10469_v35, %v10469_v35 }
 0x21e   : > { %v1283_v41 = vpop.xlane.xlu1 %1282  ;;  %v1187_v15 = vpop.xlane.xlu0 %1186  ;;  %v2221_v49 = vadd.f32 %v10110_v33, %v2086_v43  ;;  %v1115_v44 = vmul.f32 %v10472_v8, %v10472_v8 }
 0x21f   : > { %8379 = vrsqrt.f32 %v1741_v52  ;;  %v1597_v45 = vmul.f32 0.03125, %v1283_v41  ;;  %v1565_v50 = vmul.f32 0.03125, %v1187_v15  ;;  %8093 = vmatpush3.xpose.msk.msra.mxu1 %vm409_vm0, %v2253_v60  ;;  %v1467_v3 = vsel %vm409_vm0, %v1147_v55, 0.0  ;;  %v12279_v52 = vld [vmem:[#allocation10_spill] sm:$0xff]  ;;  %v12280_v15 = vld [vmem:[#allocation11_spill] sm:$0xff] }
 0x220   : > { %8381 = vrsqrt.f32 %v1709_v26  ;;  %8045 = vmatpush3.xpose.msk.msra.mxu0 %vm409_vm0, %v2221_v49  ;;  %v1371_v54 = vsel %vm409_vm0, %v1115_v44, 0.0 }
 0x221   : > { %v1725_v59 = vadd.f32 1e-05, %v1597_v45  ;;  %v1693_v22 = vadd.f32 1e-05, %v1565_v50  ;;  %1516 = vadd.xlane.f32.xlu1 %v1515_v11  ;;  %1420 = vadd.xlane.f32.xlu0 %v1419_v48 }
 0x222   : > { %v1328_v36 = vpop.xlane.xlu1 %1327  ;;  %v1232_v0 = vpop.xlane.xlu0 %1231 }
 0x223   : > { %8383 = vrsqrt.f32 %v1725_v59  ;;  %v1612_v38 = vmul.f32 0.03125, %v1328_v36  ;;  %v1580_v32 = vmul.f32 0.03125, %v1232_v0 }
 0x224   : > { %v8372_v39 = vpop.eup %8371  ;;  %8385 = vrsqrt.f32 %v1693_v22 }
 0x225   : > { %v8374_v51 = vpop.eup %8373  ;;  %v1740_v29 = vadd.f32 1e-05, %v1612_v38  ;;  %v1708_v43 = vadd.f32 1e-05, %v1580_v32  ;;  %1468 = vadd.xlane.f32.xlu1 %v1467_v3  ;;  %1372 = vadd.xlane.f32.xlu0 %v1371_v54  ;;  %v1998_v26 = vmul.f32 %v8372_v39, %v12279_v52  ;;  %v12281_v3 = vld [vmem:[#allocation9_spill] sm:$0xff] }
 0x226   : > { %v1280_v60 = vpop.xlane.xlu1 %1279  ;;  %v1184_v41 = vpop.xlane.xlu0 %1183  ;;  %v1966_v49 = vmul.f32 %v8374_v51, %v12280_v15 }
 0x227   : > { %8387 = vrsqrt.f32 %v1740_v29  ;;  %v1596_v45 = vmul.f32 0.03125, %v1280_v60  ;;  %v1564_v50 = vmul.f32 0.03125, %v1184_v41  ;;  %v2133_v11 = vmul.f32 %v10095_v13, %v1998_v26 }
 0x228   : > { %v8376_v48 = vpop.eup %8375  ;;  %8389 = vrsqrt.f32 %v1708_v43  ;;  %v2101_v55 = vmul.f32 %v10095_v13, %v1966_v49 }
 0x229   : > { %v8378_v44 = vpop.eup %8377  ;;  %v1724_v59 = vadd.f32 1e-05, %v1596_v45  ;;  %v1692_v22 = vadd.f32 1e-05, %v1564_v50  ;;  %v2268_v36 = vadd.f32 %v10110_v33, %v2133_v11  ;;  %v1982_v0 = vmul.f32 %v8376_v48, %v9717_v23 }
 0x22a   : > { %v1325_v38 = vpop.xlane.xlu1 %1324  ;;  %v1229_v32 = vpop.xlane.xlu0 %1228  ;;  %v2236_v39 = vadd.f32 %v10110_v33, %v2101_v55  ;;  %v1950_v54 = vmul.f32 %v8378_v44, %v12281_v3 }
 0x22b   : > { %8391 = vrsqrt.f32 %v1724_v59  ;;  %v1611_v51 = vmul.f32 0.03125, %v1325_v38  ;;  %v1579_v29 = vmul.f32 0.03125, %v1229_v32  ;;  %8094 = vmatprep.subr.msk.mxu1 %vm409_vm0, %v2268_v36  ;;  %v2117_v43 = vmul.f32 %v10095_v13, %v1982_v0 }
 0x22c   : > { %v8380_v52 = vpop.eup %8379  ;;  %8393 = vrsqrt.f32 %v1692_v22  ;;  %8046 = vmatprep.subr.msk.mxu0 %vm409_vm0, %v2236_v39  ;;  %v2085_v26 = vmul.f32 %v10095_v13, %v1950_v54  ;;  %v12282_v39 = vld [vmem:[#allocation13_spill] sm:$0xff] }
 0x22d   : > { %v8382_v23 = vpop.eup %8381  ;;  %v1739_v60 = vadd.f32 1e-05, %v1611_v51  ;;  %v1707_v41 = vadd.f32 1e-05, %v1579_v29  ;;  %v2252_v15 = vadd.f32 %v10110_v33, %v2117_v43  ;;  %v1997_v49 = vmul.f32 %v8380_v52, %v9739_v37  ;;  %v12283_v29 = vld [vmem:[#allocation5_spill] sm:$0xff] }
 0x22e   : > { %v1277_v45 = vpop.xlane.xlu1 %1276  ;;  %v1181_v50 = vpop.xlane.xlu0 %1180  ;;  %v2220_v11 = vadd.f32 %v10110_v33, %v2085_v26  ;;  %v1965_v48 = vmul.f32 %v8382_v23, %v9730_v25 }
 0x22f   : > { %8395 = vrsqrt.f32 %v1739_v60  ;;  %v1595_v55 = vmul.f32 0.03125, %v1277_v45  ;;  %v1563_v44 = vmul.f32 0.03125, %v1181_v50  ;;  %8095 = vmatpush3.xpose.msk.msra.mxu1 %vm409_vm0, %v2252_v15  ;;  %v2132_v59 = vmul.f32 %v10095_v13, %v1997_v49 }
 0x230   : > { %v8384_v22 = vpop.eup %8383  ;;  %8397 = vrsqrt.f32 %v1707_v41  ;;  %8047 = vmatpush3.xpose.msk.msra.mxu0 %vm409_vm0, %v2220_v11  ;;  %v2100_v36 = vmul.f32 %v10095_v13, %v1965_v48  ;;  %v12284_v11 = vld [vmem:[#allocation14_spill] sm:$0xff] }
 0x231   : > { %v8386_v37 = vpop.eup %8385  ;;  %v1723_v0 = vadd.f32 1e-05, %v1595_v55  ;;  %v1691_v38 = vadd.f32 1e-05, %v1563_v44  ;;  %v2267_v32 = vadd.f32 %v10110_v33, %v2132_v59  ;;  %v1981_v25 = vmul.f32 %v8384_v22, %v12282_v39  ;;  %v12285_v22 = vld [vmem:[#allocation16_spill] sm:$0xff] }
 0x232   : > { %v1562_v3 = vpop.xlane.xlu1 %1561  ;;  %v1466_v54 = vpop.xlane.xlu0 %1465  ;;  %v2235_v51 = vadd.f32 %v10110_v33, %v2100_v36  ;;  %v1949_v43 = vmul.f32 %v8386_v37, %v12283_v29  ;;  %v12286_v29 = vld [vmem:[#allocation6_spill] sm:$0xff] }
 0x233   : > { %8399 = vrsqrt.f32 %v1723_v0  ;;  %v1690_v52 = vmul.f32 0.03125, %v1562_v3  ;;  %v1658_v26 = vmul.f32 0.03125, %v1466_v54  ;;  %8096 = vmatprep.subr.msk.mxu1 %vm409_vm0, %v2267_v32  ;;  %v2116_v23 = vmul.f32 %v10095_v13, %v1981_v25  ;;  %v10532_v54 = vld [vmem:[%s12050_s2] ss:$0 sm:$0xff] }
 0x234   : > { %v8388_v60 = vpop.eup %8387  ;;  %8401 = vrsqrt.f32 %v1691_v38  ;;  %8048 = vmatprep.subr.msk.mxu0 %vm409_vm0, %v2235_v51  ;;  %v2084_v41 = vmul.f32 %v10095_v13, %v1949_v43  ;;  %v10524_v13 = vld [vmem:[%s12049_s1] ss:$0 sm:$0xff] }
 0x235   : > { %v8390_v15 = vpop.eup %8389  ;;  %v1818_v49 = vadd.f32 1e-05, %v1690_v52  ;;  %v1786_v45 = vadd.f32 1e-05, %v1658_v26  ;;  %v2251_v50 = vadd.f32 %v10110_v33, %v2116_v23  ;;  %v1996_v48 = vmul.f32 %v8388_v60, %v12284_v11  ;;  %v12287_v60 = vld [vmem:[#allocation8_spill] sm:$0xff] }
 0x236   : > { %v1514_v55 = vpop.xlane.xlu1 %1513  ;;  %v1418_v44 = vpop.xlane.xlu0 %1417  ;;  %v2219_v59 = vadd.f32 %v10110_v33, %v2084_v41  ;;  %v1964_v36 = vmul.f32 %v8390_v15, %v12285_v22 }
 0x237   : > { %8403 = vrsqrt.f32 %v1818_v49  ;;  %v1674_v37 = vmul.f32 0.03125, %v1514_v55  ;;  %v1642_v0 = vmul.f32 0.03125, %v1418_v44  ;;  %8097 = vmatpush3.xpose.msk.msra.mxu1 %vm409_vm0, %v2251_v50  ;;  %v2131_v38 = vmul.f32 %v10524_v13, %v1996_v48 }
 0x238   : > { %v8392_v32 = vpop.eup %8391  ;;  %8405 = vrsqrt.f32 %v1786_v45  ;;  %8049 = vmatpush3.xpose.msk.msra.mxu0 %vm409_vm0, %v2219_v59  ;;  %v2099_v33 = vmul.f32 %v10524_v13, %v1964_v36 }
 0x239   : > { %v8394_v39 = vpop.eup %8393  ;;  %v1802_v25 = vadd.f32 1e-05, %v1674_v37  ;;  %v1770_v3 = vadd.f32 1e-05, %v1642_v0  ;;  %v2266_v51 = vadd.f32 %v10532_v54, %v2131_v38  ;;  %v1980_v43 = vmul.f32 %v8392_v32, %v12286_v29  ;;  %v12288_v38 = vld [vmem:[#allocation15_spill] sm:$0xff] }
 0x23a   : > { %v1559_v52 = vpop.xlane.xlu1 %1558  ;;  %v1463_v26 = vpop.xlane.xlu0 %1462  ;;  %v2234_v23 = vadd.f32 %v10532_v54, %v2099_v33  ;;  %v1948_v41 = vmul.f32 %v8394_v39, %v12287_v60 }
 0x23b   : > { %8407 = vrsqrt.f32 %v1802_v25  ;;  %v1689_v15 = vmul.f32 0.03125, %v1559_v52  ;;  %v1657_v49 = vmul.f32 0.03125, %v1463_v26  ;;  %8098 = vmatprep.subr.msk.mxu1 %vm409_vm0, %v2266_v51  ;;  %v2115_v45 = vmul.f32 %v10524_v13, %v1980_v43 }
 0x23c   : > { %v8396_v50 = vpop.eup %8395  ;;  %8409 = vrsqrt.f32 %v1770_v3  ;;  %8050 = vmatprep.subr.msk.mxu0 %vm409_vm0, %v2234_v23  ;;  %v2083_v11 = vmul.f32 %v10524_v13, %v1948_v41 }
 0x23d   : > { %v8398_v48 = vpop.eup %8397  ;;  %v1817_v55 = vadd.f32 1e-05, %v1689_v15  ;;  %v1785_v44 = vadd.f32 1e-05, %v1657_v49  ;;  %v2250_v59 = vadd.f32 %v10532_v54, %v2115_v45  ;;  %v1995_v22 = vmul.f32 %v8396_v50, %v9822_v62 }
 0x23e   : > { %v1511_v36 = vpop.xlane.xlu1 %1510  ;;  %v1415_v37 = vpop.xlane.xlu0 %1414  ;;  %v2218_v0 = vadd.f32 %v10532_v54, %v2083_v11  ;;  %v1963_v32 = vmul.f32 %v8398_v48, %v12288_v38 }
 0x23f   : > { %8411 = vrsqrt.f32 %v1817_v55  ;;  %v1673_v33 = vmul.f32 0.03125, %v1511_v36  ;;  %v1641_v39 = vmul.f32 0.03125, %v1415_v37  ;;  %8099 = vmatpush3.xpose.msk.msra.mxu1 %vm409_vm0, %v2250_v59  ;;  %v2130_v25 = vmul.f32 %v10524_v13, %v1995_v22 }
 0x240   : > { %v8400_v3 = vpop.eup %8399  ;;  %8413 = vrsqrt.f32 %v1785_v44  ;;  %8051 = vmatpush3.xpose.msk.msra.mxu0 %vm409_vm0, %v2218_v0  ;;  %v2098_v51 = vmul.f32 %v10524_v13, %v1963_v32 }
 0x241   : > { %v8402_v62 = vpop.eup %8401  ;;  %v1801_v29 = vadd.f32 1e-05, %v1673_v33  ;;  %v1769_v43 = vadd.f32 1e-05, %v1641_v39  ;;  %v2265_v52 = vadd.f32 %v10532_v54, %v2130_v25  ;;  %v1979_v26 = vmul.f32 %v8400_v3, %v9818_v46 }
 0x242   : > { %v1556_v23 = vpop.xlane.xlu1 %1555  ;;  %v1460_v60 = vpop.xlane.xlu0 %1459  ;;  %v2233_v41 = vadd.f32 %v10532_v54, %v2098_v51  ;;  %v1947_v15 = vmul.f32 %v8402_v62, %v9803_v27 }
 0x243   : > { %8415 = vrsqrt.f32 %v1801_v29  ;;  %v1688_v49 = vmul.f32 0.03125, %v1556_v23  ;;  %v1656_v45 = vmul.f32 0.03125, %v1460_v60  ;;  %8100 = vmatprep.subr.msk.mxu1 %vm409_vm0, %v2265_v52  ;;  %v2114_v50 = vmul.f32 %v10524_v13, %v1979_v26  ;;  %v2346_v29 = vld [vmem:[%s12051_s3 + $0x8] sm:$0xff] }
 0x244   : > { %v8404_v11 = vpop.eup %8403  ;;  %8417 = vrsqrt.f32 %v1769_v43  ;;  %8052 = vmatprep.subr.msk.mxu0 %vm409_vm0, %v2233_v41  ;;  %v2082_v48 = vmul.f32 %v10524_v13, %v1947_v15  ;;  %v12289_v43 = vld [vmem:[#allocation17_spill] sm:$0xff] }
 0x245   : > { %v8406_v46 = vpop.eup %8405  ;;  %v1816_v55 = vadd.f32 1e-05, %v1688_v49  ;;  %v1784_v44 = vadd.f32 1e-05, %v1656_v45  ;;  %v2249_v59 = vadd.f32 %v10532_v54, %v2114_v50  ;;  %v2074_v27 = vmul.f32 %v8404_v11, %v9843_v2  ;;  %v10576_v41 = vld [vmem:[%s12051_s3] sm:$0xff] }
 0x246   : > { %v1508_v22 = vpop.xlane.xlu1 %1507  ;;  %v1412_v36 = vpop.xlane.xlu0 %1411  ;;  %v2217_v37 = vadd.f32 %v10532_v54, %v2082_v48  ;;  %v2042_v0 = vmul.f32 %v8406_v46, %v9846_v28 }
 0x247   : > { %8419 = vrsqrt.f32 %v1816_v55  ;;  %v1672_v38 = vmul.f32 0.03125, %v1508_v22  ;;  %v1640_v32 = vmul.f32 0.03125, %v1412_v36  ;;  %8101 = vmatpush3.xpose.msk.msra.mxu1 %vm409_vm0, %v2249_v59  ;;  %v2209_v33 = vmul.f32 %v10524_v13, %v2074_v27  ;;  %v2347_v27 = vld [vmem:[%s12051_s3 + $0x10] sm:$0xff] }
 0x248   : > { %v8408_v39 = vpop.eup %8407  ;;  %8421 = vrsqrt.f32 %v1784_v44  ;;  %8053 = vmatpush3.xpose.msk.msra.mxu0 %vm409_vm0, %v2217_v37  ;;  %v2177_v25 = vmul.f32 %v10524_v13, %v2042_v0  ;;  %v12290_v44 = vld [vmem:[#allocation19_spill] sm:$0xff]  ;;  %v12291_v0 = vld [vmem:[#allocation18_spill] sm:$0xff] }
 0x249   : > { %v8410_v2 = vpop.eup %8409  ;;  %v2058_v3 = vmul.f32 %v8408_v39, %v9851_v21  ;;  %v1800_v51 = vadd.f32 1e-05, %v1672_v38  ;;  %v1768_v62 = vadd.f32 1e-05, %v1640_v32  ;;  %v2344_v28 = vadd.f32 %v10532_v54, %v2209_v33 }
 0x24a   : > { %v2026_v52 = vmul.f32 %v8410_v2, %v12289_v43  ;;  %v1553_v26 = vpop.xlane.xlu1 %1552  ;;  %v1457_v23 = vpop.xlane.xlu0 %1456  ;;  %v2312_v60 = vadd.f32 %v10532_v54, %v2177_v25  ;;  %8103 = vmatmul.mubr.msk.f32.vlgmr.msra.gmra.mxu1 %vm409_vm0, %v10576_v41  ;;  %v2353_v25 = vld [vmem:[%s12052_s4] sm:$0xff] }
 0x24b   : > { %8423 = vrsqrt.f32 %v1800_v51  ;;  %v1687_v21 = vmul.f32 0.03125, %v1553_v26  ;;  %v1655_v15 = vmul.f32 0.03125, %v1457_v23  ;;  %8166 = vmatprep.subr.msk.mxu1 %vm409_vm0, %v2344_v28  ;;  %8055 = vmatmul.mubr.msk.f32.vlgmr.msra.gmra.mxu0 %vm409_vm0, %v10576_v41  ;;  %v2193_v49 = vmul.f32 %v10524_v13, %v2058_v3 }
 0x24c   : > { %v8412_v45 = vpop.eup %8411  ;;  %8425 = vrsqrt.f32 %v1768_v62  ;;  %8118 = vmatprep.subr.msk.mxu0 %vm409_vm0, %v2312_v60  ;;  %v2161_v50 = vmul.f32 %v10524_v13, %v2026_v52  ;;  %8056 = vmatprep.mubr.msk.f32.mxu0 %vm409_vm0, %v2346_v29  ;;  %v8712_v26 = vmov 0  }
 0x24d   : > { %v8414_v11 = vpop.eup %8413  ;;  %v1815_v48 = vadd.f32 1e-05, %v1687_v21  ;;  %v1783_v46 = vadd.f32 1e-05, %v1655_v15  ;;  %v2328_v55 = vadd.f32 %v10532_v54, %v2193_v49  ;;  %v2073_v59 = vmul.f32 %v8412_v45, %v12290_v44  ;;  %8104 = vmatprep.mubr.msk.f32.mxu1 %vm409_vm0, %v2346_v29  ;;  %8273 = vset.pattern.permute.xlu0 %v8712_v26 }
 0x24e   : > { %v1505_v22 = vpop.xlane.xlu1 %1504  ;;  %v1409_v36 = vpop.xlane.xlu0 %1408  ;;  %v2296_v37 = vadd.f32 %v10532_v54, %v2161_v50  ;;  %v2041_v38 = vmul.f32 %v8414_v11, %v12291_v0  ;;  %8105 = vmatmul.mubr.msk.f32.gmra.mxu1 %vm409_vm0, %v2346_v29  ;;  %2363 = vperm.xlu0 %8273, %v2353_v25  }
 0x24f   : > { %8427 = vrsqrt.f32 %v1815_v48  ;;  %v1671_v32 = vmul.f32 0.03125, %v1505_v22  ;;  %v1639_v33 = vmul.f32 0.03125, %v1409_v36  ;;  %8167 = vmatpush3.xpose.msk.msra.mxu1 %vm409_vm0, %v2328_v55  ;;  %v2208_v39 = vmul.f32 %v10524_v13, %v2073_v59  ;;  %8057 = vmatmul.mubr.msk.f32.gmra.mxu0 %vm409_vm0, %v2346_v29  ;;  %v2348_v29 = vld [vmem:[%s12051_s3 + $0x18] sm:$0xff]  ;;  %v2349_v59 = vld [vmem:[%s12051_s3 + $0x20] sm:$0xff] }
 0x250   : > { %v8416_v2 = vpop.eup %8415  ;;  %8429 = vrsqrt.f32 %v1783_v46  ;;  %8119 = vmatpush3.xpose.msk.msra.mxu0 %vm409_vm0, %v2296_v37  ;;  %v2176_v3 = vmul.f32 %v10524_v13, %v2041_v38  ;;  %8058 = vmatprep.mubr.msk.f32.mxu0 %vm409_vm0, %v2347_v27 }
 0x251   : > { %v8418_v51 = vpop.eup %8417  ;;  %v2057_v62 = vmul.f32 %v8416_v2, %v9912_v7  ;;  %v1799_v28 = vadd.f32 1e-05, %v1671_v32  ;;  %v1767_v43 = vadd.f32 1e-05, %v1639_v33  ;;  %v2343_v52 = vadd.f32 %v10532_v54, %v2208_v39  ;;  %8106 = vmatprep.mubr.msk.f32.mxu1 %vm409_vm0, %v2347_v27  ;;  %8274 = vset.pattern.permute.xlu1 %v8712_v26  ;;  %v12292_v39 = vld [vmem:[#allocation20_spill] sm:$0xff] }
 0x252   : > { %v2025_v23 = vmul.f32 %v8418_v51, %v9915_v61  ;;  %v1550_v60 = vpop.xlane.xlu1 %1549  ;;  %v1454_v21 = vpop.xlane.xlu0 %1453  ;;  %v2311_v15 = vadd.f32 %v10532_v54, %v2176_v3  ;;  %8107 = vmatmul.mubr.msk.f32.gmra.mxu1 %vm409_vm0, %v2347_v27 }
 0x253   : > { %8431 = vrsqrt.f32 %v1799_v28  ;;  %v1686_v7 = vmul.f32 0.03125, %v1550_v60  ;;  %v1654_v49 = vmul.f32 0.03125, %v1454_v21  ;;  %8168 = vmatprep.subr.msk.mxu1 %vm409_vm0, %v2343_v52  ;;  %v2192_v45 = vmul.f32 %v10524_v13, %v2057_v62  ;;  %8059 = vmatmul.mubr.msk.f32.gmra.mxu0 %vm409_vm0, %v2347_v27  ;;  %v10641_v62 = vld [vmem:[%s12051_s3 + $0x28] sm:$0xff]  ;;  %v12293_v28 = vld [vmem:[#allocation21_spill] sm:$0xff] }
 0x254   : > { %v8420_v50 = vpop.eup %8419  ;;  %8433 = vrsqrt.f32 %v1767_v43  ;;  %8120 = vmatprep.subr.msk.mxu0 %vm409_vm0, %v2311_v15  ;;  %v2160_v61 = vmul.f32 %v10524_v13, %v2025_v23  ;;  %8060 = vmatprep.mubr.msk.f32.mxu0 %vm409_vm0, %v2348_v29 }
 0x255   : > { %v8422_v11 = vpop.eup %8421  ;;  %v1814_v48 = vadd.f32 1e-05, %v1686_v7  ;;  %v1782_v46 = vadd.f32 1e-05, %v1654_v49  ;;  %v2327_v55 = vadd.f32 %v10532_v54, %v2192_v45  ;;  %v2072_v44 = vmul.f32 %v8420_v50, %v9924_v53  ;;  %8108 = vmatprep.mubr.msk.f32.mxu1 %vm409_vm0, %v2348_v29 }
 0x256   : > { %v1502_v27 = vpop.xlane.xlu1 %1501  ;;  %v1406_v22 = vpop.xlane.xlu0 %1405  ;;  %v2295_v36 = vadd.f32 %v10532_v54, %v2160_v61  ;;  %v2040_v37 = vmul.f32 %v8422_v11, %v9927_v63  ;;  %8109 = vmatmul.mubr.msk.f32.gmra.mxu1 %vm409_vm0, %v2348_v29  ;;  %v12294_v11 = vld [vmem:[#allocation23_spill] sm:$0xff] }
 0x257   : > { %8435 = vrsqrt.f32 %v1814_v48  ;;  %v1670_v0 = vmul.f32 0.03125, %v1502_v27  ;;  %v1638_v38 = vmul.f32 0.03125, %v1406_v22  ;;  %8169 = vmatpush3.xpose.msk.msra.mxu1 %vm409_vm0, %v2327_v55  ;;  %v2207_v53 = vmul.f32 %v10524_v13, %v2072_v44  ;;  %8061 = vmatmul.mubr.msk.f32.gmra.mxu0 %vm409_vm0, %v2348_v29  ;;  %v12295_v27 = vld [vmem:[#allocation22_spill] sm:$0xff] }
 0x258   : > { %v8424_v32 = vpop.eup %8423  ;;  %8437 = vrsqrt.f32 %v1782_v46  ;;  %8121 = vmatpush3.xpose.msk.msra.mxu0 %vm409_vm0, %v2295_v36  ;;  %v2175_v33 = vmul.f32 %v10524_v13, %v2040_v37  ;;  %8062 = vmatprep.mubr.msk.f32.mxu0 %vm409_vm0, %v2349_v59  ;;  %v10660_v46 = vld [vmem:[%s12051_s3 + $0x30] sm:$0xff] }
 0x259   : > { %v8426_v63 = vpop.eup %8425  ;;  %v2056_v25 = vmul.f32 %v8424_v32, %v12292_v39  ;;  %v1798_v2 = vadd.f32 1e-05, %v1670_v0  ;;  %v1766_v3 = vadd.f32 1e-05, %v1638_v38  ;;  %v2342_v51 = vadd.f32 %v10532_v54, %v2207_v53  ;;  %8110 = vmatprep.mubr.msk.f32.mxu1 %vm409_vm0, %v2349_v59 }
 0x25a   : > { %v2024_v43 = vmul.f32 %v8426_v63, %v12293_v28  ;;  %v1547_v52 = vpop.xlane.xlu1 %1546  ;;  %v1451_v29 = vpop.xlane.xlu0 %1450  ;;  %v2310_v26 = vadd.f32 %v10532_v54, %v2175_v33  ;;  %8111 = vmatmul.mubr.msk.f32.gmra.mxu1 %vm409_vm0, %v2349_v59 }
 0x25b   : > { %8439 = vrsqrt.f32 %v1798_v2  ;;  %v1685_v23 = vmul.f32 0.03125, %v1547_v52  ;;  %v1653_v60 = vmul.f32 0.03125, %v1451_v29  ;;  %8170 = vmatprep.subr.msk.mxu1 %vm409_vm0, %v2342_v51  ;;  %v2191_v21 = vmul.f32 %v10524_v13, %v2056_v25  ;;  %8063 = vmatmul.mubr.msk.f32.gmra.mxu0 %vm409_vm0, %v2349_v59  ;;  %v10681_v2 = vld [vmem:[%s12051_s3 + $0x38] sm:$0xff] }
 0x25c   : > { %v8428_v15 = vpop.eup %8427  ;;  %8441 = vrsqrt.f32 %v1766_v3  ;;  %8122 = vmatprep.subr.msk.mxu0 %vm409_vm0, %v2310_v26  ;;  %v2159_v7 = vmul.f32 %v10524_v13, %v2024_v43  ;;  %8064 = vmatprep.mubr.msk.f32.mxu0 %vm409_vm0, %v10641_v62 }
 0x25d   : > { %v8430_v49 = vpop.eup %8429  ;;  %v1813_v45 = vadd.f32 1e-05, %v1685_v23  ;;  %v1781_v50 = vadd.f32 1e-05, %v1653_v60  ;;  %v2326_v61 = vadd.f32 %v10532_v54, %v2191_v21  ;;  %v2071_v48 = vmul.f32 %v8428_v15, %v12294_v11  ;;  %8112 = vmatprep.mubr.msk.f32.mxu1 %vm409_vm0, %v10641_v62 }
 0x25e   : > { %v1499_v55 = vpop.xlane.xlu1 %1498  ;;  %v1403_v44 = vpop.xlane.xlu0 %1402  ;;  %v2294_v59 = vadd.f32 %v10532_v54, %v2159_v7  ;;  %v2039_v22 = vmul.f32 %v8430_v49, %v12295_v27  ;;  %8113 = vmatmul.mubr.msk.f32.gmra.mxu1 %vm409_vm0, %v10641_v62  ;;  %v12296_v27 = vld [vmem:[#allocation25_spill] sm:$0xff] }
 0x25f   : > { %8443 = vrsqrt.f32 %v1813_v45  ;;  %v1669_v36 = vmul.f32 0.03125, %v1499_v55  ;;  %v1637_v37 = vmul.f32 0.03125, %v1403_v44  ;;  %8171 = vmatpush3.xpose.msk.msra.mxu1 %vm409_vm0, %v2326_v61  ;;  %v2206_v0 = vmul.f32 %v10524_v13, %v2071_v48  ;;  %8065 = vmatmul.mubr.msk.f32.gmra.mxu0 %vm409_vm0, %v10641_v62 }
 0x260   : > { %v8432_v38 = vpop.eup %8431  ;;  %8445 = vrsqrt.f32 %v1781_v50  ;;  %8123 = vmatpush3.xpose.msk.msra.mxu0 %vm409_vm0, %v2294_v59  ;;  %v2174_v53 = vmul.f32 %v10524_v13, %v2039_v22  ;;  %8066 = vmatprep.mubr.msk.f32.mxu0 %vm409_vm0, %v10660_v46 }
 0x261   : > { %v8434_v32 = vpop.eup %8433  ;;  %v2055_v33 = vmul.f32 %v8432_v38, %v9992_v57  ;;  %v1797_v63 = vadd.f32 1e-05, %v1669_v36  ;;  %v1765_v39 = vadd.f32 1e-05, %v1637_v37  ;;  %v2341_v25 = vadd.f32 %v10532_v54, %v2206_v0  ;;  %8114 = vmatprep.mubr.msk.f32.mxu1 %vm409_vm0, %v10660_v46  ;;  %v12297_v38 = vld [vmem:[#allocation24_spill] sm:$0xff] }
 0x262   : > { %v2023_v3 = vmul.f32 %v8434_v32, %v9995_v24  ;;  %v1544_v51 = vpop.xlane.xlu1 %1543  ;;  %v1448_v28 = vpop.xlane.xlu0 %1447  ;;  %v2309_v43 = vadd.f32 %v10532_v54, %v2174_v53  ;;  %8115 = vmatmul.mubr.msk.f32.gmra.mxu1 %vm409_vm0, %v10660_v46 }
 0x263   : > { %8447 = vrsqrt.f32 %v1797_v63  ;;  %v1684_v57 = vmul.f32 0.03125, %v1544_v51  ;;  %v1652_v52 = vmul.f32 0.03125, %v1448_v28  ;;  %8172 = vmatprep.subr.msk.mxu1 %vm409_vm0, %v2341_v25  ;;  %v2190_v29 = vmul.f32 %v10524_v13, %v2055_v33  ;;  %8067 = vmatmul.mubr.msk.f32.gmra.mxu0 %vm409_vm0, %v10660_v46 }
 0x264   : > { %v8436_v26 = vpop.eup %8435  ;;  %8449 = vrsqrt.f32 %v1765_v39  ;;  %8124 = vmatprep.subr.msk.mxu0 %vm409_vm0, %v2309_v43  ;;  %v2158_v24 = vmul.f32 %v10524_v13, %v2023_v3  ;;  %8068 = vmatprep.mubr.msk.f32.mxu0 %vm409_vm0, %v10681_v2  ;;  %v2355_v39 = vld [vmem:[%s12052_s4 + $0x10] sm:$0xff] }
 0x265   : > { %v8438_v23 = vpop.eup %8437  ;;  %v1812_v60 = vadd.f32 1e-05, %v1684_v57  ;;  %v1780_v21 = vadd.f32 1e-05, %v1652_v52  ;;  %v2325_v15 = vadd.f32 %v10532_v54, %v2190_v29  ;;  %v2070_v7 = vmul.f32 %v8436_v26, %v10004_v14  ;;  %8116 = vmatprep.mubr.msk.f32.mxu1 %vm409_vm0, %v10681_v2  ;;  %v2354_v14 = vld [vmem:[%s12052_s4 + $0x8] sm:$0xff]  ;;  %v12298_v26 = vld [vmem:[#allocation27_spill] sm:$0xff] }
 0x266   : > { %v1496_v49 = vpop.xlane.xlu1 %1495  ;;  %v1400_v45 = vpop.xlane.xlu0 %1399  ;;  %v2293_v50 = vadd.f32 %v10532_v54, %v2158_v24  ;;  %v2038_v61 = vmul.f32 %v8438_v23, %v10007_v6  ;;  %8117 = vmatmul.mubr.msk.f32.gmra.mxu1 %vm409_vm0, %v10681_v2  ;;  %2368 = vperm.xlu1 %8274, %v2354_v14  }
 0x267   : > { %8451 = vrsqrt.f32 %v1812_v60  ;;  %v1668_v11 = vmul.f32 0.03125, %v1496_v49  ;;  %v1636_v48 = vmul.f32 0.03125, %v1400_v45  ;;  %8173 = vmatpush3.xpose.msk.msra.mxu1 %vm409_vm0, %v2325_v15  ;;  %v2205_v55 = vmul.f32 %v10524_v13, %v2070_v7  ;;  %8069 = vmatmul.mubr.msk.f32.gmra.mxu0 %vm409_vm0, %v10681_v2  ;;  %v12299_v15 = vld [vmem:[#allocation26_spill] sm:$0xff]  ;;  %v2356_v49 = vld [vmem:[%s12052_s4 + $0x18] sm:$0xff] }
 0x268   : > { %v8440_v44 = vpop.eup %8439  ;;  %8453 = vrsqrt.f32 %v1780_v21  ;;  %8125 = vmatpush3.xpose.msk.msra.mxu0 %vm409_vm0, %v2293_v50  ;;  %v2173_v6 = vmul.f32 %v10524_v13, %v2038_v61  ;;  %8150 = vmatprep.mubr.msk.f32.mxu0 %vm409_vm0, %v10576_v41 }
 0x269   : > { %v8442_v59 = vpop.eup %8441  ;;  %v2054_v22 = vmul.f32 %v8440_v44, %v12296_v27  ;;  %v1796_v36 = vadd.f32 1e-05, %v1668_v11  ;;  %v1764_v37 = vadd.f32 1e-05, %v1636_v48  ;;  %v2340_v0 = vadd.f32 %v10532_v54, %v2205_v55  ;;  %8198 = vmatprep.mubr.msk.f32.mxu1 %vm409_vm0, %v10576_v41 }
 0x26a   : > { %v2022_v53 = vmul.f32 %v8442_v59, %v12297_v38  ;;  %v1541_v32 = vpop.xlane.xlu1 %1540  ;;  %v1445_v33 = vpop.xlane.xlu0 %1444  ;;  %v2308_v63 = vadd.f32 %v10532_v54, %v2173_v6  ;;  %2373 = vperm.xlu1 %8274, %v2355_v39  }
 0x26b   : > { %8455 = vrsqrt.f32 %v1796_v36  ;;  %v1683_v25 = vmul.f32 0.03125, %v1541_v32  ;;  %v1651_v3 = vmul.f32 0.03125, %v1445_v33  ;;  %8174 = vmatprep.subr.msk.mxu1 %vm409_vm0, %v2340_v0  ;;  %v2189_v51 = vmul.f32 %v10524_v13, %v2054_v22  ;;  %v2357_v0 = vld [vmem:[%s12052_s4 + $0x20] sm:$0xff] }
 0x26c   : > { %v8444_v28 = vpop.eup %8443  ;;  %8457 = vrsqrt.f32 %v1764_v37  ;;  %8126 = vmatprep.subr.msk.mxu0 %vm409_vm0, %v2308_v63  ;;  %v2157_v41 = vmul.f32 %v10524_v13, %v2022_v53 }
 0x26d   : > { %v8446_v43 = vpop.eup %8445  ;;  %v1811_v57 = vadd.f32 1e-05, %v1683_v25  ;;  %v1779_v52 = vadd.f32 1e-05, %v1651_v3  ;;  %v2324_v29 = vadd.f32 %v10532_v54, %v2189_v51  ;;  %v2069_v24 = vmul.f32 %v8444_v28, %v12298_v26 }
 0x26e   : > { %v1493_v23 = vpop.xlane.xlu1 %1492  ;;  %v1397_v60 = vpop.xlane.xlu0 %1396  ;;  %v2292_v21 = vadd.f32 %v10532_v54, %v2157_v41  ;;  %v2037_v7 = vmul.f32 %v8446_v43, %v12299_v15  ;;  %2378 = vperm.xlu1 %8274, %v2356_v49   ;;  %v12300_v43 = vld [vmem:[#allocation28_spill] sm:$0xff] }
 0x26f   : > { %8459 = vrsqrt.f32 %v1811_v57  ;;  %v1667_v45 = vmul.f32 0.03125, %v1493_v23  ;;  %v1635_v50 = vmul.f32 0.03125, %v1397_v60  ;;  %8175 = vmatpush3.xpose.msk.msra.mxu1 %vm409_vm0, %v2324_v29  ;;  %v2204_v61 = vmul.f32 %v10524_v13, %v2069_v24 }
 0x270   : > { %v8448_v11 = vpop.eup %8447  ;;  %8461 = vrsqrt.f32 %v1779_v52  ;;  %8127 = vmatpush3.xpose.msk.msra.mxu0 %vm409_vm0, %v2292_v21  ;;  %v2172_v48 = vmul.f32 %v10524_v13, %v2037_v7  ;;  %v2358_v52 = vld [vmem:[%s12052_s4 + $0x28] sm:$0xff]  ;;  %v12301_v21 = vld [vmem:[#allocation29_spill] sm:$0xff] }
 0x271   : > { %v8450_v55 = vpop.eup %8449  ;;  %v2053_v14 = vmul.f32 %v8448_v11, %v10074_v16  ;;  %v1795_v44 = vadd.f32 1e-05, %v1667_v45  ;;  %v1763_v6 = vadd.f32 1e-05, %v1635_v50  ;;  %v2339_v59 = vadd.f32 %v10532_v54, %v2204_v61  ;;  %v12302_v50 = vld [vmem:[#allocation12_spill] sm:$0xff] }
 0x272   : > { %v2021_v27 = vmul.f32 %v8450_v55, %v10077_v56  ;;  %v1538_v22 = vpop.xlane.xlu1 %1537  ;;  %v1442_v36 = vpop.xlane.xlu0 %1441  ;;  %v2307_v37 = vadd.f32 %v10532_v54, %v2172_v48  ;;  %2383 = vperm.xlu1 %8274, %v2357_v0  }
 0x273   : > { %8463 = vrsqrt.f32 %v1795_v44  ;;  %v1682_v38 = vmul.f32 0.03125, %v1538_v22  ;;  %v1650_v53 = vmul.f32 0.03125, %v1442_v36  ;;  %8176 = vmatprep.subr.msk.mxu1 %vm409_vm0, %v2339_v59  ;;  %v2188_v16 = vmul.f32 %v10524_v13, %v2053_v14  ;;  %v2359_v14 = vld [vmem:[%s12052_s4 + $0x30] sm:$0xff] }
 0x274   : > { %v8452_v32 = vpop.eup %8451  ;;  %8465 = vrsqrt.f32 %v1763_v6  ;;  %8128 = vmatprep.subr.msk.mxu0 %vm409_vm0, %v2307_v37  ;;  %v2156_v56 = vmul.f32 %v10524_v13, %v2021_v27 }
 0x275   : > { %v8454_v33 = vpop.eup %8453  ;;  %v1810_v63 = vadd.f32 1e-05, %v1682_v38  ;;  %v1778_v39 = vadd.f32 1e-05, %v1650_v53  ;;  %v2323_v25 = vadd.f32 %v10532_v54, %v2188_v16  ;;  %v2068_v3 = vmul.f32 %v8452_v32, %v10086_v58  ;;  %v12303_v53 = vld [vmem:[#allocation31_spill] sm:$0xff] }
 0x276   : > { %v1490_v51 = vpop.xlane.xlu1 %1489  ;;  %v1394_v28 = vpop.xlane.xlu0 %1393  ;;  %v2291_v41 = vadd.f32 %v10532_v54, %v2156_v56  ;;  %v2036_v57 = vmul.f32 %v8454_v33, %v12300_v43  ;;  %2388 = vperm.xlu1 %8274, %v2358_v52  }
 0x277   : > { %8467 = vrsqrt.f32 %v1810_v63  ;;  %v1666_v29 = vmul.f32 0.03125, %v1490_v51  ;;  %v1634_v26 = vmul.f32 0.03125, %v1394_v28  ;;  %8177 = vmatpush3.xpose.msk.msra.mxu1 %vm409_vm0, %v2323_v25  ;;  %v2203_v24 = vmul.f32 %v10524_v13, %v2068_v3  ;;  %v12304_v63 = vld [vmem:[#allocation30_spill] sm:$0xff]  ;;  %v2360_v25 = vld [vmem:[%s12052_s4 + $0x38] sm:$0xff] }
 0x278   : > { %v8456_v23 = vpop.eup %8455  ;;  %8469 = vrsqrt.f32 %v1778_v39  ;;  %8129 = vmatpush3.xpose.msk.msra.mxu0 %vm409_vm0, %v2291_v41  ;;  %v2171_v58 = vmul.f32 %v10524_v13, %v2036_v57 }
 0x279   : > { %v8458_v60 = vpop.eup %8457  ;;  %v2052_v15 = vmul.f32 %v8456_v23, %v12301_v21  ;;  %v1794_v7 = vadd.f32 1e-05, %v1666_v29  ;;  %v1762_v49 = vadd.f32 1e-05, %v1634_v26  ;;  %v2338_v45 = vadd.f32 %v10532_v54, %v2203_v24 }
 0x27a   : > { %v2020_v61 = vmul.f32 %v8458_v60, %v12302_v50  ;;  %v1535_v11 = vpop.xlane.xlu1 %1534  ;;  %v1439_v48 = vpop.xlane.xlu0 %1438  ;;  %v2306_v55 = vadd.f32 %v10532_v54, %v2171_v58  ;;  %2393 = vperm.xlu1 %8274, %v2359_v14  }
 0x27b   : > { %8471 = vrsqrt.f32 %v1794_v7  ;;  %v1681_v44 = vmul.f32 0.03125, %v1535_v11  ;;  %v1649_v6 = vmul.f32 0.03125, %v1439_v48  ;;  %8178 = vmatprep.subr.msk.mxu1 %vm409_vm0, %v2338_v45  ;;  %v2187_v59 = vmul.f32 %v10524_v13, %v2052_v15 }
 0x27c   : > { %v8460_v27 = vpop.eup %8459  ;;  %8473 = vrsqrt.f32 %v1762_v49  ;;  %8130 = vmatprep.subr.msk.mxu0 %vm409_vm0, %v2306_v55  ;;  %v2155_v22 = vmul.f32 %v10524_v13, %v2020_v61 }
 0x27d   : > { %v8462_v36 = vpop.eup %8461  ;;  %v1809_v37 = vadd.f32 1e-05, %v1681_v44  ;;  %v1777_v0 = vadd.f32 1e-05, %v1649_v6  ;;  %v2322_v38 = vadd.f32 %v10532_v54, %v2187_v59  ;;  %v2067_v16 = vmul.f32 %v8460_v27, %v12303_v53 }
 0x27e   : > { %v1487_v32 = vpop.xlane.xlu1 %1486  ;;  %v1391_v56 = vpop.xlane.xlu0 %1390  ;;  %v2290_v33 = vadd.f32 %v10532_v54, %v2155_v22  ;;  %v2035_v39 = vmul.f32 %v8462_v36, %v12304_v63  ;;  %2398 = vperm.xlu1 %8274, %v2360_v25  }
 0x27f   : > { %8475 = vrsqrt.f32 %v1809_v37  ;;  %v1665_v3 = vmul.f32 0.03125, %v1487_v32  ;;  %v1633_v51 = vmul.f32 0.03125, %v1391_v56  ;;  %8179 = vmatpush3.xpose.msk.msra.mxu1 %vm409_vm0, %v2322_v38  ;;  %v2202_v28 = vmul.f32 %v10524_v13, %v2067_v16  ;;  %v12306_v32 = vld [vmem:[#allocation32_spill] sm:$0xff] }
 0x280   : > { %v8464_v41 = vpop.eup %8463  ;;  %8477 = vrsqrt.f32 %v1777_v0  ;;  %8131 = vmatpush3.xpose.msk.msra.mxu0 %vm409_vm0, %v2290_v33  ;;  %v2170_v43 = vmul.f32 %v10524_v13, %v2035_v39  ;;  %v12305_v0 = vld [vmem:[#allocation33_spill] sm:$0xff] }
 0x281   : > { %v8466_v57 = vpop.eup %8465  ;;  %v2051_v52 = vmul.f32 %v8464_v41, %v10170_v17  ;;  %v1793_v29 = vadd.f32 1e-05, %v1665_v3  ;;  %v1761_v26 = vadd.f32 1e-05, %v1633_v51  ;;  %v2337_v24 = vadd.f32 %v10532_v54, %v2202_v28 }
 0x282   : > { %v2019_v23 = vmul.f32 %v8466_v57, %v10173_v34  ;;  %v1532_v58 = vpop.xlane.xlu1 %1531  ;;  %v1436_v60 = vpop.xlane.xlu0 %1435  ;;  %v2305_v21 = vadd.f32 %v10532_v54, %v2170_v43 }
 0x283   : > { %8479 = vrsqrt.f32 %v1793_v29  ;;  %v1680_v15 = vmul.f32 0.03125, %v1532_v58  ;;  %v1648_v7 = vmul.f32 0.03125, %v1436_v60  ;;  %8180 = vmatprep.subr.msk.mxu1 %vm409_vm0, %v2337_v24  ;;  %v2186_v49 = vmul.f32 %v10524_v13, %v2051_v52 }
 0x284   : > { %v8468_v45 = vpop.eup %8467  ;;  %8481 = vrsqrt.f32 %v1761_v26  ;;  %8132 = vmatprep.subr.msk.mxu0 %vm409_vm0, %v2305_v21  ;;  %v2154_v17 = vmul.f32 %v10524_v13, %v2019_v23  ;;  %v12307_v26 = vld [vmem:[#allocation35_spill] sm:$0xff]  ;;  %v12308_v21 = vld [vmem:[#allocation34_spill] sm:$0xff] }
 0x285   : > { %v8470_v50 = vpop.eup %8469  ;;  %v1808_v61 = vadd.f32 1e-05, %v1680_v15  ;;  %v1776_v34 = vadd.f32 1e-05, %v1648_v7  ;;  %v2321_v11 = vadd.f32 %v10532_v54, %v2186_v49  ;;  %v2066_v48 = vmul.f32 %v8468_v45, %v10182_v31 }
 0x286   : > { %v1484_v55 = vpop.xlane.xlu1 %1483  ;;  %v1388_v14 = vpop.xlane.xlu0 %1387  ;;  %v2289_v44 = vadd.f32 %v10532_v54, %v2154_v17  ;;  %v2034_v6 = vmul.f32 %v8470_v50, %v10185_v47 }
 0x287   : > { %8483 = vrsqrt.f32 %v1808_v61  ;;  %v1664_v59 = vmul.f32 0.03125, %v1484_v55  ;;  %v1632_v27 = vmul.f32 0.03125, %v1388_v14  ;;  %8181 = vmatpush3.xpose.msk.msra.mxu1 %vm409_vm0, %v2321_v11  ;;  %v2201_v22 = vmul.f32 %v10524_v13, %v2066_v48 }
 0x288   : > { %v8472_v36 = vpop.eup %8471  ;;  %8485 = vrsqrt.f32 %v1776_v34  ;;  %8133 = vmatpush3.xpose.msk.msra.mxu0 %vm409_vm0, %v2289_v44  ;;  %v2169_v37 = vmul.f32 %v10524_v13, %v2034_v6 }
 0x289   : > { %v8474_v31 = vpop.eup %8473  ;;  %v2050_v38 = vmul.f32 %v8472_v36, %v12305_v0  ;;  %v1792_v53 = vadd.f32 1e-05, %v1664_v59  ;;  %v1760_v16 = vadd.f32 1e-05, %v1632_v27  ;;  %v2336_v47 = vadd.f32 %v10532_v54, %v2201_v22 }
 0x28a   : > { %v2018_v56 = vmul.f32 %v8474_v31, %v12306_v32  ;;  %v1529_v33 = vpop.xlane.xlu1 %1528  ;;  %v1433_v63 = vpop.xlane.xlu0 %1432  ;;  %v2304_v39 = vadd.f32 %v10532_v54, %v2169_v37 }
 0x28b   : > { %8487 = vrsqrt.f32 %v1792_v53  ;;  %v1679_v25 = vmul.f32 0.03125, %v1529_v33  ;;  %v1647_v3 = vmul.f32 0.03125, %v1433_v63  ;;  %8182 = vmatprep.subr.msk.mxu1 %vm409_vm0, %v2336_v47  ;;  %v2185_v51 = vmul.f32 %v10524_v13, %v2050_v38 }
 0x28c   : > { %v8476_v28 = vpop.eup %8475  ;;  %8489 = vrsqrt.f32 %v1760_v16  ;;  %8134 = vmatprep.subr.msk.mxu0 %vm409_vm0, %v2304_v39  ;;  %v2153_v41 = vmul.f32 %v10524_v13, %v2018_v56 }
 0x28d   : > { %v8478_v43 = vpop.eup %8477  ;;  %v1807_v57 = vadd.f32 1e-05, %v1679_v25  ;;  %v1775_v52 = vadd.f32 1e-05, %v1647_v3  ;;  %v2320_v29 = vadd.f32 %v10532_v54, %v2185_v51  ;;  %v2065_v24 = vmul.f32 %v8476_v28, %v12307_v26  ;;  %v12309_v51 = vld [vmem:[#allocation36_spill] sm:$0xff] }
 0x28e   : > { %v1481_v23 = vpop.xlane.xlu1 %1480  ;;  %v1385_v58 = vpop.xlane.xlu0 %1384  ;;  %v2288_v60 = vadd.f32 %v10532_v54, %v2153_v41  ;;  %v2033_v15 = vmul.f32 %v8478_v43, %v12308_v21 }
 0x28f   : > { %8491 = vrsqrt.f32 %v1807_v57  ;;  %v1663_v7 = vmul.f32 0.03125, %v1481_v23  ;;  %v1631_v49 = vmul.f32 0.03125, %v1385_v58  ;;  %8183 = vmatpush3.xpose.msk.msra.mxu1 %vm409_vm0, %v2320_v29  ;;  %v2200_v45 = vmul.f32 %v10524_v13, %v2065_v24  ;;  %v12310_v57 = vld [vmem:[#allocation37_spill] sm:$0xff] }
 0x290   : > { %v8480_v17 = vpop.eup %8479  ;;  %8493 = vrsqrt.f32 %v1775_v52  ;;  %8135 = vmatpush3.xpose.msk.msra.mxu0 %vm409_vm0, %v2288_v60  ;;  %v2168_v50 = vmul.f32 %v10524_v13, %v2033_v15  ;;  %v10840_v15 = vld [vmem:[%s12049_s1] ss:$0 sm:$0xff] }
 0x291   : > { %v8482_v61 = vpop.eup %8481  ;;  %v2049_v34 = vmul.f32 %v8480_v17, %v10250_v5  ;;  %v1791_v11 = vadd.f32 1e-05, %v1663_v7  ;;  %v1759_v48 = vadd.f32 1e-05, %v1631_v49  ;;  %v2335_v55 = vadd.f32 %v10532_v54, %v2200_v45 }
 0x292   : > { %v2017_v14 = vmul.f32 %v8482_v61, %v10253_v4  ;;  %v1526_v44 = vpop.xlane.xlu1 %1525  ;;  %v1430_v6 = vpop.xlane.xlu0 %1429  ;;  %v2303_v59 = vadd.f32 %v10532_v54, %v2168_v50  ;;  %v12311_v61 = vld [vmem:[#allocation39_spill] sm:$0xff] }
 0x293   : > { %8495 = vrsqrt.f32 %v1791_v11  ;;  %v1678_v27 = vmul.f32 0.03125, %v1526_v44  ;;  %v1646_v22 = vmul.f32 0.03125, %v1430_v6  ;;  %8184 = vmatprep.subr.msk.mxu1 %vm409_vm0, %v2335_v55  ;;  %v2184_v36 = vmul.f32 %v10524_v13, %v2049_v34 }
 0x294   : > { %v8484_v37 = vpop.eup %8483  ;;  %8497 = vrsqrt.f32 %v1759_v48  ;;  %8136 = vmatprep.subr.msk.mxu0 %vm409_vm0, %v2303_v59  ;;  %v2152_v5 = vmul.f32 %v10524_v13, %v2017_v14  ;;  %v10848_v48 = vld [vmem:[%s12050_s2] ss:$0 sm:$0xff]  ;;  %v12312_v14 = vld [vmem:[#allocation38_spill] sm:$0xff] }
 0x295   : > { %v8486_v31 = vpop.eup %8485  ;;  %v1806_v0 = vadd.f32 1e-05, %v1678_v27  ;;  %v1774_v4 = vadd.f32 1e-05, %v1646_v22  ;;  %v2319_v38 = vadd.f32 %v10532_v54, %v2184_v36  ;;  %v2064_v53 = vmul.f32 %v8484_v37, %v10262_v18 }
 0x296   : > { %v1478_v16 = vpop.xlane.xlu1 %1477  ;;  %v1382_v47 = vpop.xlane.xlu0 %1381  ;;  %v2287_v32 = vadd.f32 %v10532_v54, %v2152_v5  ;;  %v2032_v56 = vmul.f32 %v8486_v31, %v10265_v10 }
 0x297   : > { %8499 = vrsqrt.f32 %v1806_v0  ;;  %v1662_v33 = vmul.f32 0.03125, %v1478_v16  ;;  %v1630_v63 = vmul.f32 0.03125, %v1382_v47  ;;  %8185 = vmatpush3.xpose.msk.msra.mxu1 %vm409_vm0, %v2319_v38  ;;  %v2199_v39 = vmul.f32 %v10524_v13, %v2064_v53 }
 0x298   : > { %v8488_v25 = vpop.eup %8487  ;;  %8501 = vrsqrt.f32 %v1774_v4  ;;  %8137 = vmatpush3.xpose.msk.msra.mxu0 %vm409_vm0, %v2287_v32  ;;  %v2167_v3 = vmul.f32 %v10524_v13, %v2032_v56 }
 0x299   : > { %v8490_v18 = vpop.eup %8489  ;;  %v2048_v28 = vmul.f32 %v8488_v25, %v12309_v51  ;;  %v1790_v41 = vadd.f32 1e-05, %v1662_v33  ;;  %v1758_v43 = vadd.f32 1e-05, %v1630_v63  ;;  %v2334_v10 = vadd.f32 %v10532_v54, %v2199_v39 }
 0x29a   : > { %v2016_v52 = vmul.f32 %v8490_v18, %v12310_v57  ;;  %v1523_v29 = vpop.xlane.xlu1 %1522  ;;  %v1427_v26 = vpop.xlane.xlu0 %1426  ;;  %v2302_v24 = vadd.f32 %v10532_v54, %v2167_v3  ;;  %v12313_v3 = vld [vmem:[#allocation41_spill] sm:$0xff] }
 0x29b   : > { %8503 = vrsqrt.f32 %v1790_v41  ;;  %v1677_v23 = vmul.f32 0.03125, %v1523_v29  ;;  %v1645_v58 = vmul.f32 0.03125, %v1427_v26  ;;  %8186 = vmatprep.subr.msk.mxu1 %vm409_vm0, %v2334_v10  ;;  %v2183_v60 = vmul.f32 %v10524_v13, %v2048_v28 }
 0x29c   : > { %v8492_v21 = vpop.eup %8491  ;;  %8505 = vrsqrt.f32 %v1758_v43  ;;  %8138 = vmatprep.subr.msk.mxu0 %vm409_vm0, %v2302_v24  ;;  %v2151_v7 = vmul.f32 %v10840_v15, %v2016_v52  ;;  %v12314_v43 = vld [vmem:[#allocation40_spill] sm:$0xff] }
 0x29d   : > { %v8494_v49 = vpop.eup %8493  ;;  %v1805_v45 = vadd.f32 1e-05, %v1677_v23  ;;  %v1773_v17 = vadd.f32 1e-05, %v1645_v58  ;;  %v2318_v50 = vadd.f32 %v10532_v54, %v2183_v60  ;;  %v2063_v34 = vmul.f32 %v8492_v21, %v12311_v61  ;;  %v12315_v58 = vld [vmem:[#allocation43_spill] sm:$0xff] }
 0x29e   : > { %v1475_v11 = vpop.xlane.xlu1 %1474  ;;  %v1379_v13 = vpop.xlane.xlu0 %1378  ;;  %v2286_v55 = vadd.f32 %v10848_v48, %v2151_v7  ;;  %v2031_v44 = vmul.f32 %v8494_v49, %v12312_v14 }
 0x29f   : > { %8507 = vrsqrt.f32 %v1805_v45  ;;  %v1661_v6 = vmul.f32 0.03125, %v1475_v11  ;;  %v1629_v59 = vmul.f32 0.03125, %v1379_v13  ;;  %8187 = vmatpush3.xpose.msk.msra.mxu1 %vm409_vm0, %v2318_v50  ;;  %v2198_v54 = vmul.f32 %v10840_v15, %v2063_v34  ;;  %v12316_v45 = vld [vmem:[#allocation42_spill] sm:$0xff] }
 0x2a0   : > { %v8496_v27 = vpop.eup %8495  ;;  %8509 = vrsqrt.f32 %v1773_v17  ;;  %8139 = vmatpush3.xpose.msk.msra.mxu0 %vm409_vm0, %v2286_v55  ;;  %v2166_v22 = vmul.f32 %v10840_v15, %v2031_v44 }
 0x2a1   : > { %v8498_v36 = vpop.eup %8497  ;;  %v2047_v37 = vmul.f32 %v8496_v27, %v10330_v40  ;;  %v1789_v5 = vadd.f32 1e-05, %v1661_v6  ;;  %v1757_v31 = vadd.f32 1e-05, %v1629_v59  ;;  %v2333_v0 = vadd.f32 %v10848_v48, %v2198_v54 }
 0x2a2   : > { %v2015_v4 = vmul.f32 %v8498_v36, %v10333_v20  ;;  %v1520_v38 = vpop.xlane.xlu1 %1519  ;;  %v1424_v53 = vpop.xlane.xlu0 %1423  ;;  %v2301_v16 = vadd.f32 %v10848_v48, %v2166_v22 }
 0x2a3   : > { %8511 = vrsqrt.f32 %v1789_v5  ;;  %v1676_v47 = vmul.f32 0.03125, %v1520_v38  ;;  %v1644_v32 = vmul.f32 0.03125, %v1424_v53  ;;  %8188 = vmatprep.subr.msk.mxu1 %vm409_vm0, %v2333_v0  ;;  %v2182_v56 = vmul.f32 %v10840_v15, %v2047_v37 }
 0x2a4   : > { %v8500_v33 = vpop.eup %8499  ;;  %8513 = vrsqrt.f32 %v1757_v31  ;;  %8140 = vmatprep.subr.msk.mxu0 %vm409_vm0, %v2301_v16  ;;  %v2150_v40 = vmul.f32 %v10840_v15, %v2015_v4 }
 0x2a5   : > { %v8502_v63 = vpop.eup %8501  ;;  %v1804_v39 = vadd.f32 1e-05, %v1676_v47  ;;  %v1772_v20 = vadd.f32 1e-05, %v1644_v32  ;;  %v2317_v25 = vadd.f32 %v10848_v48, %v2182_v56  ;;  %v2062_v18 = vmul.f32 %v8500_v33, %v12313_v3  ;;  %v12317_v3 = vld [vmem:[#allocation44_spill] sm:$0xff] }
 0x2a6   : > { %v1472_v51 = vpop.xlane.xlu1 %1471  ;;  %v1376_v28 = vpop.xlane.xlu0 %1375  ;;  %v2285_v41 = vadd.f32 %v10848_v48, %v2150_v40  ;;  %v2030_v10 = vmul.f32 %v8502_v63, %v12314_v43 }
 0x2a7   : > { %8515 = vrsqrt.f32 %v1804_v39  ;;  %v1660_v57 = vmul.f32 0.03125, %v1472_v51  ;;  %v1628_v52 = vmul.f32 0.03125, %v1376_v28  ;;  %8189 = vmatpush3.xpose.msk.msra.mxu1 %vm409_vm0, %v2317_v25  ;;  %v2197_v29 = vmul.f32 %v10840_v15, %v2062_v18  ;;  %v12318_v51 = vld [vmem:[#allocation45_spill] sm:$0xff] }
 0x2a8   : > { %v8504_v26 = vpop.eup %8503  ;;  %8517 = vrsqrt.f32 %v1772_v20  ;;  %8141 = vmatpush3.xpose.msk.msra.mxu0 %vm409_vm0, %v2285_v41  ;;  %v2165_v24 = vmul.f32 %v10840_v15, %v2030_v10 }
 0x2a9   : > { %v8506_v23 = vpop.eup %8505  ;;  %v2046_v60 = vmul.f32 %v8504_v26, %v12315_v58  ;;  %v1788_v21 = vadd.f32 1e-05, %v1660_v57  ;;  %v1756_v7 = vadd.f32 1e-05, %v1628_v52  ;;  %v2332_v49 = vadd.f32 %v10848_v48, %v2197_v29  ;;  %v12319_v52 = vld [vmem:[#allocation47_spill] sm:$0xff] }
 0x2aa   : > { %v2014_v17 = vmul.f32 %v8506_v23, %v12316_v45  ;;  %v1517_v50 = vpop.xlane.xlu1 %1516  ;;  %v1421_v61 = vpop.xlane.xlu0 %1420  ;;  %v2300_v34 = vadd.f32 %v10848_v48, %v2165_v24  ;;  %v12320_v24 = vld [vmem:[#allocation46_spill] sm:$0xff] }
 0x2ab   : > { %8519 = vrsqrt.f32 %v1788_v21  ;;  %v1675_v11 = vmul.f32 0.03125, %v1517_v50  ;;  %v1643_v13 = vmul.f32 0.03125, %v1421_v61  ;;  %8190 = vmatprep.subr.msk.mxu1 %vm409_vm0, %v2332_v49  ;;  %v2181_v55 = vmul.f32 %v10840_v15, %v2046_v60 }
 0x2ac   : > { %v8508_v14 = vpop.eup %8507  ;;  %8521 = vrsqrt.f32 %v1756_v7  ;;  %8142 = vmatprep.subr.msk.mxu0 %vm409_vm0, %v2300_v34  ;;  %v2149_v44 = vmul.f32 %v10840_v15, %v2014_v17 }
 0x2ad   : > { %v8510_v6 = vpop.eup %8509  ;;  %v1803_v59 = vadd.f32 1e-05, %v1675_v11  ;;  %v1771_v54 = vadd.f32 1e-05, %v1643_v13  ;;  %v2316_v27 = vadd.f32 %v10848_v48, %v2181_v55  ;;  %v2061_v22 = vmul.f32 %v8508_v14, %v10376_v42 }
 0x2ae   : > { %v1469_v36 = vpop.xlane.xlu1 %1468  ;;  %v1373_v37 = vpop.xlane.xlu0 %1372  ;;  %v2284_v5 = vadd.f32 %v10848_v48, %v2149_v44  ;;  %v2029_v31 = vmul.f32 %v8510_v6, %v10382_v19 }
 0x2af   : > { %8523 = vrsqrt.f32 %v1803_v59  ;;  %v1659_v0 = vmul.f32 0.03125, %v1469_v36  ;;  %v1627_v4 = vmul.f32 0.03125, %v1373_v37  ;;  %8191 = vmatpush3.xpose.msk.msra.mxu1 %vm409_vm0, %v2316_v27  ;;  %v2196_v38 = vmul.f32 %v10840_v15, %v2061_v22  ;;  %v8633_v22 = vld [vmem:[%s12051_s3 + $0x20] sm:$0xff] }
 0x2b0   : > { %v8512_v53 = vpop.eup %8511  ;;  %8525 = vrsqrt.f32 %v1771_v54  ;;  %8143 = vmatpush3.xpose.msk.msra.mxu0 %vm409_vm0, %v2284_v5  ;;  %v2164_v16 = vmul.f32 %v10840_v15, %v2029_v31  ;;  %v3273_v37 = vlaneseq }
 0x2b1   : > { %v8514_v42 = vpop.eup %8513  ;;  %v2045_v47 = vmul.f32 %v8512_v53, %v10403_v30  ;;  %v1787_v32 = vadd.f32 1e-05, %v1659_v0  ;;  %v1755_v56 = vadd.f32 1e-05, %v1627_v4  ;;  %v2331_v19 = vadd.f32 %v10848_v48, %v2196_v38 }
 0x2b2   : > { %v2013_v33 = vmul.f32 %v8514_v42, %v10406_v12  ;;  %v2299_v40 = vadd.f32 %v10848_v48, %v2164_v16  ;;  %v3274_v31 = vshrl.u32 %v3273_v37, 7 }
 0x2b3   : > { %8527 = vrsqrt.f32 %v1787_v32  ;;  %8192 = vmatprep.subr.msk.mxu1 %vm409_vm0, %v2331_v19  ;;  %v2180_v63 = vmul.f32 %v10840_v15, %v2045_v47 }
 0x2b4   : > { %v8516_v39 = vpop.eup %8515  ;;  %8529 = vrsqrt.f32 %v1755_v56  ;;  %8144 = vmatprep.subr.msk.mxu0 %vm409_vm0, %v2299_v40  ;;  %v2148_v20 = vmul.f32 %v10840_v15, %v2013_v33 }
 0x2b5   : > { %v8518_v30 = vpop.eup %8517  ;;  %v2315_v25 = vadd.f32 %v10848_v48, %v2180_v63  ;;  %v2060_v18 = vmul.f32 %v8516_v39, %v12317_v3 }
 0x2b6   : > { %v2283_v12 = vadd.f32 %v10848_v48, %v2148_v20  ;;  %v2028_v28 = vmul.f32 %v8518_v30, %v12318_v51 }
 0x2b7   : > { %8193 = vmatpush3.xpose.msk.msra.mxu1 %vm409_vm0, %v2315_v25  ;;  %v2195_v41 = vmul.f32 %v10840_v15, %v2060_v18 }
 0x2b8   : > { %v8520_v43 = vpop.eup %8519  ;;  %8145 = vmatpush3.xpose.msk.msra.mxu0 %vm409_vm0, %v2283_v12  ;;  %v2163_v10 = vmul.f32 %v10840_v15, %v2028_v28 }
 0x2b9   : > { %v8522_v57 = vpop.eup %8521  ;;  %v2044_v29 = vmul.f32 %v8520_v43, %v12319_v52  ;;  %v2330_v26 = vadd.f32 %v10848_v48, %v2195_v41 }
 0x2ba   : > { %v2012_v23 = vmul.f32 %v8522_v57, %v12320_v24  ;;  %v2298_v58 = vadd.f32 %v10848_v48, %v2163_v10 }
 0x2bb   : > { %8194 = vmatprep.subr.msk.mxu1 %vm409_vm0, %v2330_v26  ;;  %v2179_v60 = vmul.f32 %v10840_v15, %v2044_v29 }
 0x2bc   : > { %v8524_v21 = vpop.eup %8523  ;;  %8146 = vmatprep.subr.msk.mxu0 %vm409_vm0, %v2298_v58  ;;  %v2147_v7 = vmul.f32 %v10840_v15, %v2012_v23 }
 0x2bd   : > { %v8526_v49 = vpop.eup %8525  ;;  %v2314_v45 = vadd.f32 %v10848_v48, %v2179_v60  ;;  %v2059_v17 = vmul.f32 %v8524_v21, %v10449_v1 }
 0x2be   : > { %v2282_v50 = vadd.f32 %v10848_v48, %v2147_v7  ;;  %v2027_v61 = vmul.f32 %v8526_v49, %v10452_v9 }
 0x2bf   : > { %8195 = vmatpush3.xpose.msk.msra.mxu1 %vm409_vm0, %v2314_v45  ;;  %v2194_v34 = vmul.f32 %v10840_v15, %v2059_v17 }
 0x2c0   : > { %v8528_v11 = vpop.eup %8527  ;;  %8147 = vmatpush3.xpose.msk.msra.mxu0 %vm409_vm0, %v2282_v50  ;;  %v2162_v13 = vmul.f32 %v10840_v15, %v2027_v61 }
 0x2c1   : > { %v8530_v55 = vpop.eup %8529  ;;  %v2043_v14 = vmul.f32 %v8528_v11, %v10469_v35  ;;  %v2329_v44 = vadd.f32 %v10848_v48, %v2194_v34  ;;  %v8629_v35 = vld [vmem:[%s12051_s3] sm:$0xff] }
 0x2c2   : > { %v2011_v1 = vmul.f32 %v8530_v55, %v10472_v8  ;;  %v2297_v6 = vadd.f32 %v10848_v48, %v2162_v13  ;;  %v8630_v8 = vld [vmem:[%s12051_s3 + $0x8] sm:$0xff] }
 0x2c3   : > { %8196 = vmatprep.subr.msk.mxu1 %vm409_vm0, %v2329_v44  ;;  %v2178_v9 = vmul.f32 %v10840_v15, %v2043_v14 }
 0x2c4   : > { %8148 = vmatprep.subr.msk.mxu0 %vm409_vm0, %v2297_v6  ;;  %v2146_v59 = vmul.f32 %v10840_v15, %v2011_v1  ;;  %v8631_v15 = vld [vmem:[%s12051_s3 + $0x10] sm:$0xff] }
 0x2c5   : > { %v2313_v54 = vadd.f32 %v10848_v48, %v2178_v9 }
 0x2c6   : > { %v2281_v27 = vadd.f32 %v10848_v48, %v2146_v59  ;;  %v8632_v48 = vld [vmem:[%s12051_s3 + $0x18] sm:$0xff] }
 0x2c7   : > { %8197 = vmatpush3.xpose.msk.msra.mxu1 %vm409_vm0, %v2313_v54 }
 0x2c8   : > { %8149 = vmatpush3.xpose.msk.msra.mxu0 %vm409_vm0, %v2281_v27 }
 0x2c9   : > { %v10990_v0 = vpop.permute.xlu0 %2363 }
 0x2ca   : > { %8199 = vmatmul.mubr.msk.f32.vlgmr.msra.gmra.mxu1 %vm409_vm0, %v8629_v35 }
 0x2cb   : > { %8151 = vmatmul.mubr.msk.f32.vlgmr.msra.gmra.mxu0 %vm409_vm0, %v8629_v35  ;;  %8200 = vmatprep.mubr.msk.f32.mxu1 %vm409_vm0, %v8630_v8 }
 0x2cc   : > { %8152 = vmatprep.mubr.msk.f32.mxu0 %vm409_vm0, %v8630_v8 }
 0x2ce   : > { %8201 = vmatmul.mubr.msk.f32.gmra.mxu1 %vm409_vm0, %v8630_v8 }
 0x2cf   : > { %8153 = vmatmul.mubr.msk.f32.gmra.mxu0 %vm409_vm0, %v8630_v8  ;;  %8202 = vmatprep.mubr.msk.f32.mxu1 %vm409_vm0, %v8631_v15 }
 0x2d0   : > { %8154 = vmatprep.mubr.msk.f32.mxu0 %vm409_vm0, %v8631_v15 }
 0x2d2   : > { %8203 = vmatmul.mubr.msk.f32.gmra.mxu1 %vm409_vm0, %v8631_v15 }
 0x2d3   : > { %8155 = vmatmul.mubr.msk.f32.gmra.mxu0 %vm409_vm0, %v8631_v15  ;;  %8204 = vmatprep.mubr.msk.f32.mxu1 %vm409_vm0, %v8632_v48 }
 0x2d4   : > { %8156 = vmatprep.mubr.msk.f32.mxu0 %vm409_vm0, %v8632_v48 }
 0x2d6   : > { %8205 = vmatmul.mubr.msk.f32.gmra.mxu1 %vm409_vm0, %v8632_v48 }
 0x2d7   : > { %8157 = vmatmul.mubr.msk.f32.gmra.mxu0 %vm409_vm0, %v8632_v48  ;;  %8206 = vmatprep.mubr.msk.f32.mxu1 %vm409_vm0, %v8633_v22 }
 0x2d8   : > { %8158 = vmatprep.mubr.msk.f32.mxu0 %vm409_vm0, %v8633_v22 }
 0x2da   : > { %8207 = vmatmul.mubr.msk.f32.gmra.mxu1 %vm409_vm0, %v8633_v22 }
 0x2db   : > { %8159 = vmatmul.mubr.msk.f32.gmra.mxu0 %vm409_vm0, %v8633_v22  ;;  %8208 = vmatprep.mubr.msk.f32.mxu1 %vm409_vm0, %v10641_v62 }
 0x2dc   : > { %8160 = vmatprep.mubr.msk.f32.mxu0 %vm409_vm0, %v10641_v62 }
 0x2de   : > { %8209 = vmatmul.mubr.msk.f32.gmra.mxu1 %vm409_vm0, %v10641_v62 }
 0x2df   : > { %8161 = vmatmul.mubr.msk.f32.gmra.mxu0 %vm409_vm0, %v10641_v62  ;;  %8210 = vmatprep.mubr.msk.f32.mxu1 %vm409_vm0, %v10660_v46  ;;  %v8713_v62 = vmov 1966171168  }
 0x2e0   : > { %8162 = vmatprep.mubr.msk.f32.mxu0 %vm409_vm0, %v10660_v46  ;;  %v3271_v36 = vunpack.c.l.s4 %v8713_v62 }
 0x2e1   : > { %v11035_v55 = vpop.permute.xlu1 %2368 }
 0x2e2   : > { %8211 = vmatmul.mubr.msk.f32.gmra.mxu1 %vm409_vm0, %v10660_v46  ;;  %v3272_v5 = vunpack.c.0.s8 %v3271_v36 }
 0x2e3   : > { %8163 = vmatmul.mubr.msk.f32.gmra.mxu0 %vm409_vm0, %v10660_v46  ;;  %8212 = vmatprep.mubr.msk.f32.mxu1 %vm409_vm0, %v10681_v2 }
 0x2e4   : > { %8164 = vmatprep.mubr.msk.f32.mxu0 %vm409_vm0, %v10681_v2  ;;  %v10992_v46 = vsub.s32 %v3272_v5, %v3274_v31 }
 0x2e6   : > { %8213 = vmatmul.mubr.msk.f32.gmra.mxu1 %vm409_vm0, %v10681_v2 }
 0x2e7   : > { %8165 = vmatmul.mubr.msk.f32.gmra.mxu0 %vm409_vm0, %v10681_v2 }
 0x30a   : > { %v2988_v4 = vpop.f32.mrf.mxu1 }
 0x30b   : > { %v2875_v38 = vpop.f32.mrf.mxu0  ;;  %v2989_v53 = vadd.f32 %v2988_v4, %v10990_v0 }
 0x30c   : > { %v2990_v16 = vpop.f32.mrf.mxu1  ;;  %v2876_v42 = vadd.f32 %v2875_v38, %v10990_v0 }
 0x30d   : > { %v2877_v2 = vpop.f32.mrf.mxu0  ;;  %v10999_v47 = vadd.f32 %v2990_v16, %v10990_v0  ;;  %v4325_v32 = vcombine.high %v2989_v53, %v2989_v53  ;;  %v4332_v56 = vrot.slane %v2989_v53, %v10992_v46 }
 0x30e   : > { %v2878_v19 = vadd.f32 %v2877_v2, %v10990_v0  ;;  %v3269_v33 = vcombine.high %v2876_v42, %v2876_v42  ;;  %v3276_v40 = vrot.slane %v2876_v42, %v10992_v46  ;;  %v2994_v10 = vpop.f32.mrf.mxu1 }
 0x30f   : > { %v4339_v63 = vrot.slane %v4325_v32, %v10992_v46  ;;  %v4340_v39 = vcombine.high %v4332_v56, %v4332_v56  ;;  %v4348_v20 = vrot.slane %v4332_v56, %v10992_v46  ;;  %7823 = vst.sshfl [vmem:[%s11006_s14 + $0x2] sm:$0x1 pattern:$0x73625140] %v4332_v56  ;;  %v4853_v30 = vcombine.high %v10999_v47, %v10999_v47  ;;  %v2881_v24 = vpop.f32.mrf.mxu0 }
 0x310   : > { %v3283_v25 = vrot.slane %v3269_v33, %v10992_v46  ;;  %v3284_v3 = vcombine.high %v3276_v40, %v3276_v40  ;;  %v3292_v18 = vrot.slane %v3276_v40, %v10992_v46  ;;  %7759 = vst.sshfl [vmem:[%s11006_s14] sm:$0x1 pattern:$0x73625140] %v3276_v40  ;;  %v3797_v12 = vcombine.high %v2878_v19, %v2878_v19  ;;  %v2996_v13 = vpop.f32.mrf.mxu1 }
 0x311   : > { %v3804_v51 = vrot.slane %v2878_v19, %v10992_v46  ;;  %v4341_v28 = vcombine.high %v4339_v63, %v4339_v63  ;;  %v4355_v41 = vrot.slane %v4339_v63, %v10992_v46  ;;  %v4362_v43 = vrot.slane %v4340_v39, %v10992_v46  ;;  %7824 = vst.sshfl [vmem:[%s11006_s14 + $0xa] sm:$0x1 pattern:$0x73625140] %v4340_v39  ;;  %v2883_v9 = vpop.f32.mrf.mxu0 }
 0x312   : > { %7825 = vst.sshfl [vmem:[%s11006_s14 + $0x22] sm:$0x1 pattern:$0x73625140] %v4339_v63  ;;  %v3285_v57 = vcombine.high %v3283_v25, %v3283_v25  ;;  %v3299_v52 = vrot.slane %v3283_v25, %v10992_v46  ;;  %v3306_v29 = vrot.slane %v3284_v3, %v10992_v46  ;;  %v3314_v26 = vcombine.high %v3292_v18, %v3292_v18 }
 0x313   : > { %7760 = vst.sshfl [vmem:[%s11006_s14 + $0x8] sm:$0x1 pattern:$0x73625140] %v3284_v3  ;;  %v3811_v23 = vrot.slane %v3797_v12, %v10992_v46  ;;  %v3812_v58 = vcombine.high %v3804_v51, %v3804_v51  ;;  %v3820_v60 = vrot.slane %v3804_v51, %v10992_v46  ;;  %v4369_v21 = vrot.slane %v4341_v28, %v10992_v46 }
 0x314   : > { %7761 = vst.sshfl [vmem:[%s11006_s14 + $0x20] sm:$0x1 pattern:$0x73625140] %v3283_v25  ;;  %v3313_v7 = vrot.slane %v3285_v57, %v10992_v46  ;;  %v3315_v49 = vcombine.high %v3299_v52, %v3299_v52  ;;  %v3316_v45 = vcombine.high %v3306_v29, %v3306_v29  ;;  %3727 = vst [vmem:[%s11006_s14 + $0x10] sm:$0x1] %v3314_v26  ;;  %v11091_v29 = vpop.permute.xlu1 %2373 }
 0x315   : > { %7791 = vst.sshfl [vmem:[%s11006_s14 + $0x1] sm:$0x1 pattern:$0x73625140] %v3804_v51  ;;  %v4370_v17 = vcombine.high %v4348_v20, %v4348_v20  ;;  %v3813_v50 = vcombine.high %v3811_v23, %v3811_v23  ;;  %v3827_v61 = vrot.slane %v3811_v23, %v10992_v46  ;;  %v3834_v34 = vrot.slane %v3812_v58, %v10992_v46 }
 0x316   : > { %7826 = vst.sshfl [vmem:[%s11006_s14 + $0x2a] sm:$0x1 pattern:$0x73625140] %v4341_v28  ;;  %v3842_v11 = vcombine.high %v3820_v60, %v3820_v60  ;;  %v3317_v14 = vcombine.high %v3313_v7, %v3313_v7  ;;  %3728 = vst [vmem:[%s11006_s14 + $0x18] sm:$0x1] %v3316_v45  ;;  %v4371_v44 = vcombine.high %v4355_v41, %v4355_v41  ;;  %v3000_v60 = vpop.f32.mrf.mxu1 }
 0x317   : > { %7762 = vst.sshfl [vmem:[%s11006_s14 + $0x28] sm:$0x1 pattern:$0x73625140] %v3285_v57  ;;  %3731 = vst [vmem:[%s11006_s14 + $0x30] sm:$0x1] %v3315_v49  ;;  %v4372_v1 = vcombine.high %v4362_v43, %v4362_v43  ;;  %v4373_v6 = vcombine.high %v4369_v21, %v4369_v21  ;;  %v3841_v59 = vrot.slane %v3813_v50, %v10992_v46 }
 0x318   : > { %7792 = vst.sshfl [vmem:[%s11006_s14 + $0x9] sm:$0x1 pattern:$0x73625140] %v3812_v58  ;;  %4783 = vst [vmem:[%s11006_s14 + $0x12] sm:$0x1] %v4370_v17  ;;  %v3843_v54 = vcombine.high %v3827_v61, %v3827_v61  ;;  %v3844_v27 = vcombine.high %v3834_v34, %v3834_v34  ;;  %v4860_v35 = vrot.slane %v10999_v47, %v10992_v46  ;;  %v2887_v17 = vpop.f32.mrf.mxu0 }
 0x319   : > { %7793 = vst.sshfl [vmem:[%s11006_s14 + $0x21] sm:$0x1 pattern:$0x73625140] %v3811_v23  ;;  %4255 = vst [vmem:[%s11006_s14 + $0x11] sm:$0x1] %v3842_v11  ;;  %v4867_v8 = vrot.slane %v4853_v30, %v10992_v46  ;;  %v2882_v15 = vadd.f32 %v2881_v24, %v11035_v55  ;;  %v2995_v48 = vadd.f32 %v2994_v10, %v11035_v55 }
 0x31a   : > { %7794 = vst.sshfl [vmem:[%s11006_s14 + $0x29] sm:$0x1 pattern:$0x73625140] %v3813_v50  ;;  %3732 = vst [vmem:[%s11006_s14 + $0x38] sm:$0x1] %v3317_v14  ;;  %v11053_v22 = vadd.f32 %v2996_v13, %v11035_v55  ;;  %v3845_v62 = vcombine.high %v3841_v59, %v3841_v59  ;;  %v4868_v36 = vcombine.high %v4860_v35, %v4860_v35 }
 0x31b   : > { %4784 = vst [vmem:[%s11006_s14 + $0x1a] sm:$0x1] %v4372_v1  ;;  %4787 = vst [vmem:[%s11006_s14 + $0x32] sm:$0x1] %v4371_v44  ;;  %v4876_v37 = vrot.slane %v4860_v35, %v10992_v46  ;;  %v11060_v5 = vadd.f32 %v2883_v9, %v11035_v55  ;;  %v4869_v31 = vcombine.high %v4867_v8, %v4867_v8 }
 0x31c   : > { %4788 = vst [vmem:[%s11006_s14 + $0x3a] sm:$0x1] %v4373_v6  ;;  %4256 = vst [vmem:[%s11006_s14 + $0x19] sm:$0x1] %v3844_v27  ;;  %v4883_v4 = vrot.slane %v4867_v8, %v10992_v46  ;;  %v3318_v38 = vcombine.high %v2882_v15, %v2882_v15  ;;  %v3325_v53 = vrot.slane %v2882_v15, %v10992_v46  ;;  %v3002_v27 = vpop.f32.mrf.mxu1 }
 0x31d   : > { %4259 = vst [vmem:[%s11006_s14 + $0x31] sm:$0x1] %v3843_v54  ;;  %7855 = vst.sshfl [vmem:[%s11006_s14 + $0x3] sm:$0x1 pattern:$0x73625140] %v4860_v35  ;;  %v4890_v16 = vrot.slane %v4868_v36, %v10992_v46  ;;  %v4898_v42 = vcombine.high %v4876_v37, %v4876_v37  ;;  %v4374_v2 = vcombine.high %v2995_v48, %v2995_v48 }
 0x31e   : > { %7857 = vst.sshfl [vmem:[%s11006_s14 + $0x23] sm:$0x1 pattern:$0x73625140] %v4867_v8  ;;  %4260 = vst [vmem:[%s11006_s14 + $0x39] sm:$0x1] %v3845_v62  ;;  %v4381_v47 = vrot.slane %v2995_v48, %v10992_v46  ;;  %v4897_v32 = vrot.slane %v4869_v31, %v10992_v46  ;;  %v4899_v56 = vcombine.high %v4883_v4, %v4883_v4 }
 0x31f   : > { %7856 = vst.sshfl [vmem:[%s11006_s14 + $0xb] sm:$0x1 pattern:$0x73625140] %v4868_v36  ;;  %v3332_v19 = vrot.slane %v3318_v38, %v10992_v46  ;;  %v3333_v33 = vcombine.high %v3325_v53, %v3325_v53  ;;  %v4900_v40 = vcombine.high %v4890_v16, %v4890_v16  ;;  %5311 = vst [vmem:[%s11006_s14 + $0x13] sm:$0x1] %v4898_v42 }
 0x320   : > { %7858 = vst.sshfl [vmem:[%s11006_s14 + $0x2b] sm:$0x1 pattern:$0x73625140] %v4869_v31  ;;  %v3341_v63 = vrot.slane %v3325_v53, %v10992_v46  ;;  %v4388_v39 = vrot.slane %v4374_v2, %v10992_v46  ;;  %v4389_v20 = vcombine.high %v4381_v47, %v4381_v47  ;;  %v4901_v30 = vcombine.high %v4897_v32, %v4897_v32 }
 0x321   : > { %7763 = vst.sshfl [vmem:[%s11006_s14 + $0x40] sm:$0x1 pattern:$0x73625140] %v3325_v53  ;;  %5315 = vst [vmem:[%s11006_s14 + $0x33] sm:$0x1] %v4899_v56  ;;  %v3334_v25 = vcombine.high %v3332_v19, %v3332_v19  ;;  %v3348_v3 = vrot.slane %v3332_v19, %v10992_v46  ;;  %v3355_v18 = vrot.slane %v3333_v33, %v10992_v46 }
 0x322   : > { %7827 = vst.sshfl [vmem:[%s11006_s14 + $0x42] sm:$0x1 pattern:$0x73625140] %v4381_v47  ;;  %5312 = vst [vmem:[%s11006_s14 + $0x1b] sm:$0x1] %v4900_v40  ;;  %v3363_v12 = vcombine.high %v3341_v63, %v3341_v63  ;;  %v4390_v51 = vcombine.high %v4388_v39, %v4388_v39  ;;  %v4397_v28 = vrot.slane %v4381_v47, %v10992_v46 }
 0x323   : > { %7764 = vst.sshfl [vmem:[%s11006_s14 + $0x48] sm:$0x1 pattern:$0x73625140] %v3333_v33  ;;  %v4404_v41 = vrot.slane %v4388_v39, %v10992_v46  ;;  %5316 = vst [vmem:[%s11006_s14 + $0x3b] sm:$0x1] %v4901_v30  ;;  %v3362_v43 = vrot.slane %v3334_v25, %v10992_v46  ;;  %v3364_v10 = vcombine.high %v3348_v3, %v3348_v3 }
 0x324   : > { %7765 = vst.sshfl [vmem:[%s11006_s14 + $0x60] sm:$0x1 pattern:$0x73625140] %v3332_v19  ;;  %v3365_v57 = vcombine.high %v3355_v18, %v3355_v18  ;;  %v4411_v52 = vrot.slane %v4389_v20, %v10992_v46  ;;  %3735 = vst [vmem:[%s11006_s14 + $0x50] sm:$0x1] %v3363_v12  ;;  %v4418_v26 = vrot.slane %v4390_v51, %v10992_v46 }
 0x325   : > { %7828 = vst.sshfl [vmem:[%s11006_s14 + $0x4a] sm:$0x1 pattern:$0x73625140] %v4389_v20  ;;  %v4419_v24 = vcombine.high %v4397_v28, %v4397_v28  ;;  %v4420_v23 = vcombine.high %v4404_v41, %v4404_v41  ;;  %v4902_v58 = vcombine.high %v11053_v22, %v11053_v22  ;;  %v3366_v21 = vcombine.high %v3362_v43, %v3362_v43  ;;  %v2889_v41 = vpop.f32.mrf.mxu0  ;;  %v3006_v43 = vpop.f32.mrf.mxu1 }
 0x326   : > { %7829 = vst.sshfl [vmem:[%s11006_s14 + $0x62] sm:$0x1 pattern:$0x73625140] %v4388_v39  ;;  %3736 = vst [vmem:[%s11006_s14 + $0x58] sm:$0x1] %v3365_v57  ;;  %v4421_v7 = vcombine.high %v4411_v52, %v4411_v52  ;;  %v4909_v49 = vrot.slane %v11053_v22, %v10992_v46  ;;  %v3846_v45 = vcombine.high %v11060_v5, %v11060_v5 }
 0x327   : > { %7766 = vst.sshfl [vmem:[%s11006_s14 + $0x68] sm:$0x1 pattern:$0x73625140] %v3334_v25  ;;  %3739 = vst [vmem:[%s11006_s14 + $0x70] sm:$0x1] %v3364_v10  ;;  %v4422_v50 = vcombine.high %v4418_v26, %v4418_v26  ;;  %v4916_v61 = vrot.slane %v4902_v58, %v10992_v46  ;;  %v3853_v34 = vrot.slane %v11060_v5, %v10992_v46 }
 0x328   : > { %7830 = vst.sshfl [vmem:[%s11006_s14 + $0x6a] sm:$0x1 pattern:$0x73625140] %v4390_v51  ;;  %4791 = vst [vmem:[%s11006_s14 + $0x52] sm:$0x1] %v4419_v24  ;;  %v2888_v11 = vadd.f32 %v2887_v17, %v11091_v29  ;;  %v4917_v13 = vcombine.high %v4909_v49, %v4909_v49  ;;  %v4925_v14 = vrot.slane %v4909_v49, %v10992_v46 }
 0x329   : > { %4795 = vst [vmem:[%s11006_s14 + $0x72] sm:$0x1] %v4420_v23  ;;  %3740 = vst [vmem:[%s11006_s14 + $0x78] sm:$0x1] %v3366_v21  ;;  %v3860_v44 = vrot.slane %v3846_v45, %v10992_v46  ;;  %v3001_v1 = vadd.f32 %v3000_v60, %v11091_v29  ;;  %v4918_v6 = vcombine.high %v4916_v61, %v4916_v61  ;;  %v11163_v21 = vpop.permute.xlu1 %2378 }
 0x32a   : > { %4792 = vst [vmem:[%s11006_s14 + $0x5a] sm:$0x1] %v4421_v7  ;;  %7859 = vst.sshfl [vmem:[%s11006_s14 + $0x43] sm:$0x1 pattern:$0x73625140] %v4909_v49  ;;  %v4932_v9 = vrot.slane %v4916_v61, %v10992_v46  ;;  %v3861_v59 = vcombine.high %v3853_v34, %v3853_v34  ;;  %v3869_v54 = vrot.slane %v3853_v34, %v10992_v46 }
 0x32b   : > { %4796 = vst [vmem:[%s11006_s14 + $0x7a] sm:$0x1] %v4422_v50  ;;  %7861 = vst.sshfl [vmem:[%s11006_s14 + $0x63] sm:$0x1 pattern:$0x73625140] %v4916_v61  ;;  %v4939_v35 = vrot.slane %v4917_v13, %v10992_v46  ;;  %v4947_v8 = vcombine.high %v4925_v14, %v4925_v14  ;;  %v3862_v15 = vcombine.high %v3860_v44, %v3860_v44  ;;  %v3008_v14 = vpop.f32.mrf.mxu1 }
 0x32c   : > { %7795 = vst.sshfl [vmem:[%s11006_s14 + $0x41] sm:$0x1 pattern:$0x73625140] %v3853_v34  ;;  %v3876_v48 = vrot.slane %v3860_v44, %v10992_v46  ;;  %v4946_v22 = vrot.slane %v4918_v6, %v10992_v46  ;;  %v4948_v62 = vcombine.high %v4932_v9, %v4932_v9  ;;  %v3883_v36 = vrot.slane %v3861_v59, %v10992_v46 }
 0x32d   : > { %7860 = vst.sshfl [vmem:[%s11006_s14 + $0x4b] sm:$0x1 pattern:$0x73625140] %v4917_v13  ;;  %v3891_v37 = vcombine.high %v3869_v54, %v3869_v54  ;;  %v4949_v5 = vcombine.high %v4939_v35, %v4939_v35  ;;  %5319 = vst [vmem:[%s11006_s14 + $0x53] sm:$0x1] %v4947_v8  ;;  %v3890_v31 = vrot.slane %v3862_v15, %v10992_v46  ;;  %v2893_v13 = vpop.f32.mrf.mxu0 }
 0x32e   : > { %7797 = vst.sshfl [vmem:[%s11006_s14 + $0x61] sm:$0x1 pattern:$0x73625140] %v3860_v44  ;;  %v3892_v4 = vcombine.high %v3876_v48, %v3876_v48  ;;  %v3003_v38 = vadd.f32 %v3002_v27, %v11091_v29  ;;  %v4950_v53 = vcombine.high %v4946_v22, %v4946_v22  ;;  %5323 = vst [vmem:[%s11006_s14 + $0x73] sm:$0x1] %v4948_v62 }
 0x32f   : > { %7862 = vst.sshfl [vmem:[%s11006_s14 + $0x6b] sm:$0x1 pattern:$0x73625140] %v4918_v6  ;;  %v3893_v16 = vcombine.high %v3883_v36, %v3883_v36  ;;  %4263 = vst [vmem:[%s11006_s14 + $0x51] sm:$0x1] %v3891_v37  ;;  %v3367_v42 = vcombine.high %v2888_v11, %v2888_v11  ;;  %v3374_v2 = vrot.slane %v2888_v11, %v10992_v46 }
 0x330   : > { %7796 = vst.sshfl [vmem:[%s11006_s14 + $0x49] sm:$0x1 pattern:$0x73625140] %v3861_v59  ;;  %5320 = vst [vmem:[%s11006_s14 + $0x5b] sm:$0x1] %v4949_v5  ;;  %v3894_v47 = vcombine.high %v3890_v31, %v3890_v31  ;;  %v4423_v32 = vcombine.high %v3001_v1, %v3001_v1  ;;  %v4430_v56 = vrot.slane %v3001_v1, %v10992_v46 }
 0x331   : > { %7798 = vst.sshfl [vmem:[%s11006_s14 + $0x69] sm:$0x1 pattern:$0x73625140] %v3862_v15  ;;  %4267 = vst [vmem:[%s11006_s14 + $0x71] sm:$0x1] %v3892_v4  ;;  %v4951_v19 = vcombine.high %v3003_v38, %v3003_v38  ;;  %v3381_v33 = vrot.slane %v3367_v42, %v10992_v46  ;;  %v3382_v40 = vcombine.high %v3374_v2, %v3374_v2 }
 0x332   : > { %5324 = vst [vmem:[%s11006_s14 + $0x7b] sm:$0x1] %v4950_v53  ;;  %4264 = vst [vmem:[%s11006_s14 + $0x59] sm:$0x1] %v3893_v16  ;;  %v3390_v63 = vrot.slane %v3374_v2, %v10992_v46  ;;  %v4958_v39 = vrot.slane %v3003_v38, %v10992_v46  ;;  %v4437_v20 = vrot.slane %v4423_v32, %v10992_v46 }
 0x333   : > { %7767 = vst.sshfl [vmem:[%s11006_s14 + $0x80] sm:$0x1 pattern:$0x73625140] %v3374_v2  ;;  %4268 = vst [vmem:[%s11006_s14 + $0x79] sm:$0x1] %v3894_v47  ;;  %v4438_v30 = vcombine.high %v4430_v56, %v4430_v56  ;;  %v4446_v25 = vrot.slane %v4430_v56, %v10992_v46  ;;  %v4965_v3 = vrot.slane %v4951_v19, %v10992_v46 }
 0x334   : > { %7831 = vst.sshfl [vmem:[%s11006_s14 + $0x82] sm:$0x1 pattern:$0x73625140] %v4430_v56  ;;  %v3383_v18 = vcombine.high %v3381_v33, %v3381_v33  ;;  %v3397_v12 = vrot.slane %v3381_v33, %v10992_v46  ;;  %v3404_v51 = vrot.slane %v3382_v40, %v10992_v46  ;;  %v3412_v28 = vcombine.high %v3390_v63, %v3390_v63 }
 0x335   : > { %7768 = vst.sshfl [vmem:[%s11006_s14 + $0x88] sm:$0x1 pattern:$0x73625140] %v3382_v40  ;;  %v4439_v10 = vcombine.high %v4437_v20, %v4437_v20  ;;  %v4453_v57 = vrot.slane %v4437_v20, %v10992_v46  ;;  %v4460_v52 = vrot.slane %v4438_v30, %v10992_v46  ;;  %v4468_v26 = vcombine.high %v4446_v25, %v4446_v25 }
 0x336   : > { %7769 = vst.sshfl [vmem:[%s11006_s14 + $0xa0] sm:$0x1 pattern:$0x73625140] %v3381_v33  ;;  %v3411_v24 = vrot.slane %v3383_v18, %v10992_v46  ;;  %v3413_v23 = vcombine.high %v3397_v12, %v3397_v12  ;;  %v3414_v58 = vcombine.high %v3404_v51, %v3404_v51  ;;  %3743 = vst [vmem:[%s11006_s14 + $0x90] sm:$0x1] %v3412_v28 }
 0x337   : > { %7863 = vst.sshfl [vmem:[%s11006_s14 + $0x83] sm:$0x1 pattern:$0x73625140] %v4958_v39  ;;  %v4966_v60 = vcombine.high %v4958_v39, %v4958_v39  ;;  %v4467_v7 = vrot.slane %v4439_v10, %v10992_v46  ;;  %v4469_v49 = vcombine.high %v4453_v57, %v4453_v57  ;;  %v4470_v45 = vcombine.high %v4460_v52, %v4460_v52 }
 0x338   : > { %7832 = vst.sshfl [vmem:[%s11006_s14 + $0x8a] sm:$0x1 pattern:$0x73625140] %v4438_v30  ;;  %4799 = vst [vmem:[%s11006_s14 + $0x92] sm:$0x1] %v4468_v26  ;;  %v4967_v17 = vcombine.high %v4965_v3, %v4965_v3  ;;  %v3415_v50 = vcombine.high %v3411_v24, %v3411_v24  ;;  %v4974_v61 = vrot.slane %v4958_v39, %v10992_v46  ;;  %v3012_v24 = vpop.f32.mrf.mxu1 }
 0x339   : > { %7833 = vst.sshfl [vmem:[%s11006_s14 + $0xa2] sm:$0x1 pattern:$0x73625140] %v4437_v20  ;;  %3744 = vst [vmem:[%s11006_s14 + $0x98] sm:$0x1] %v3414_v58  ;;  %v4981_v34 = vrot.slane %v4965_v3, %v10992_v46  ;;  %v4988_v11 = vrot.slane %v4966_v60, %v10992_v46  ;;  %v4471_v44 = vcombine.high %v4467_v7, %v4467_v7 }
 0x33a   : > { %7865 = vst.sshfl [vmem:[%s11006_s14 + $0xa3] sm:$0x1 pattern:$0x73625140] %v4965_v3  ;;  %3747 = vst [vmem:[%s11006_s14 + $0xb0] sm:$0x1] %v3413_v23  ;;  %v4995_v1 = vrot.slane %v4967_v17, %v10992_v46  ;;  %v2890_v6 = vadd.f32 %v2889_v41, %v11091_v29  ;;  %v2894_v9 = vadd.f32 %v2893_v13, %v11163_v21 }
 0x33b   : > { %7770 = vst.sshfl [vmem:[%s11006_s14 + $0xa8] sm:$0x1 pattern:$0x73625140] %v3383_v18  ;;  %4800 = vst [vmem:[%s11006_s14 + $0x9a] sm:$0x1] %v4470_v45  ;;  %v4996_v59 = vcombine.high %v4974_v61, %v4974_v61  ;;  %v4997_v54 = vcombine.high %v4981_v34, %v4981_v34  ;;  %v4998_v27 = vcombine.high %v4988_v11, %v4988_v11 }
 0x33c   : > { %7834 = vst.sshfl [vmem:[%s11006_s14 + $0xaa] sm:$0x1 pattern:$0x73625140] %v4439_v10  ;;  %4803 = vst [vmem:[%s11006_s14 + $0xb2] sm:$0x1] %v4469_v49  ;;  %v3007_v35 = vadd.f32 %v3006_v43, %v11163_v21  ;;  %v4999_v8 = vcombine.high %v4995_v1, %v4995_v1  ;;  %v3895_v15 = vcombine.high %v2890_v6, %v2890_v6  ;;  %v2895_v43 = vpop.f32.mrf.mxu0  ;;  %v11226_v49 = vpop.permute.xlu1 %2383 }
 0x33d   : > { %7864 = vst.sshfl [vmem:[%s11006_s14 + $0x8b] sm:$0x1 pattern:$0x73625140] %v4966_v60  ;;  %3748 = vst [vmem:[%s11006_s14 + $0xb8] sm:$0x1] %v3415_v50  ;;  %v3902_v48 = vrot.slane %v2890_v6, %v10992_v46  ;;  %v3009_v22 = vadd.f32 %v3008_v14, %v11163_v21  ;;  %v3416_v62 = vcombine.high %v2894_v9, %v2894_v9 }
 0x33e   : > { %7866 = vst.sshfl [vmem:[%s11006_s14 + $0xab] sm:$0x1 pattern:$0x73625140] %v4967_v17  ;;  %4804 = vst [vmem:[%s11006_s14 + $0xba] sm:$0x1] %v4471_v44  ;;  %v3423_v36 = vrot.slane %v2894_v9, %v10992_v46  ;;  %v4472_v37 = vcombine.high %v3007_v35, %v3007_v35  ;;  %v4479_v5 = vrot.slane %v3007_v35, %v10992_v46  ;;  %v2899_v44 = vpop.f32.mrf.mxu0 }
 0x33f   : > { %5327 = vst [vmem:[%s11006_s14 + $0x93] sm:$0x1] %v4996_v59  ;;  %5328 = vst [vmem:[%s11006_s14 + $0x9b] sm:$0x1] %v4998_v27  ;;  %v3909_v31 = vrot.slane %v3895_v15, %v10992_v46  ;;  %v3910_v4 = vcombine.high %v3902_v48, %v3902_v48  ;;  %v3918_v38 = vrot.slane %v3902_v48, %v10992_v46  ;;  %v3014_v59 = vpop.f32.mrf.mxu1 }
 0x340   : > { %5331 = vst [vmem:[%s11006_s14 + $0xb3] sm:$0x1] %v4997_v54  ;;  %5332 = vst [vmem:[%s11006_s14 + $0xbb] sm:$0x1] %v4999_v8  ;;  %v5000_v53 = vcombine.high %v3009_v22, %v3009_v22  ;;  %v3430_v16 = vrot.slane %v3416_v62, %v10992_v46  ;;  %v3431_v42 = vcombine.high %v3423_v36, %v3423_v36 }
 0x341   : > { %7799 = vst.sshfl [vmem:[%s11006_s14 + $0x81] sm:$0x1 pattern:$0x73625140] %v3902_v48  ;;  %v3439_v2 = vrot.slane %v3423_v36, %v10992_v46  ;;  %v4486_v47 = vrot.slane %v4472_v37, %v10992_v46  ;;  %v3911_v32 = vcombine.high %v3909_v31, %v3909_v31  ;;  %v3925_v56 = vrot.slane %v3909_v31, %v10992_v46 }
 0x342   : > { %7771 = vst.sshfl [vmem:[%s11006_s14 + $0xc0] sm:$0x1 pattern:$0x73625140] %v3423_v36  ;;  %v3932_v19 = vrot.slane %v3910_v4, %v10992_v46  ;;  %v3940_v33 = vcombine.high %v3918_v38, %v3918_v38  ;;  %v3432_v40 = vcombine.high %v3430_v16, %v3430_v16  ;;  %v3446_v63 = vrot.slane %v3430_v16, %v10992_v46 }
 0x343   : > { %7835 = vst.sshfl [vmem:[%s11006_s14 + $0xc2] sm:$0x1 pattern:$0x73625140] %v4479_v5  ;;  %v3453_v39 = vrot.slane %v3431_v42, %v10992_v46  ;;  %v3461_v20 = vcombine.high %v3439_v2, %v3439_v2  ;;  %v3939_v30 = vrot.slane %v3911_v32, %v10992_v46  ;;  %v3941_v25 = vcombine.high %v3925_v56, %v3925_v56 }
 0x344   : > { %7800 = vst.sshfl [vmem:[%s11006_s14 + $0x89] sm:$0x1 pattern:$0x73625140] %v3910_v4  ;;  %v3942_v3 = vcombine.high %v3932_v19, %v3932_v19  ;;  %4271 = vst [vmem:[%s11006_s14 + $0x91] sm:$0x1] %v3940_v33  ;;  %v4487_v18 = vcombine.high %v4479_v5, %v4479_v5  ;;  %v3460_v12 = vrot.slane %v3432_v40, %v10992_v46 }
 0x345   : > { %7801 = vst.sshfl [vmem:[%s11006_s14 + $0xa1] sm:$0x1 pattern:$0x73625140] %v3909_v31  ;;  %v3462_v51 = vcombine.high %v3446_v63, %v3446_v63  ;;  %v3463_v28 = vcombine.high %v3453_v39, %v3453_v39  ;;  %3751 = vst [vmem:[%s11006_s14 + $0xd0] sm:$0x1] %v3461_v20  ;;  %v4488_v41 = vcombine.high %v4486_v47, %v4486_v47 }
 0x346   : > { %7772 = vst.sshfl [vmem:[%s11006_s14 + $0xc8] sm:$0x1 pattern:$0x73625140] %v3431_v42  ;;  %v3943_v10 = vcombine.high %v3939_v30, %v3939_v30  ;;  %4272 = vst [vmem:[%s11006_s14 + $0x99] sm:$0x1] %v3942_v3  ;;  %v4495_v57 = vrot.slane %v4479_v5, %v10992_v46  ;;  %v4502_v52 = vrot.slane %v4486_v47, %v10992_v46 }
 0x347   : > { %7773 = vst.sshfl [vmem:[%s11006_s14 + $0xe0] sm:$0x1 pattern:$0x73625140] %v3430_v16  ;;  %4275 = vst [vmem:[%s11006_s14 + $0xb1] sm:$0x1] %v3941_v25  ;;  %v4509_v26 = vrot.slane %v4487_v18, %v10992_v46  ;;  %v3464_v23 = vcombine.high %v3460_v12, %v3460_v12  ;;  %v4516_v58 = vrot.slane %v4488_v41, %v10992_v46 }
 0x348   : > { %7837 = vst.sshfl [vmem:[%s11006_s14 + $0xe2] sm:$0x1 pattern:$0x73625140] %v4486_v47  ;;  %3752 = vst [vmem:[%s11006_s14 + $0xd8] sm:$0x1] %v3463_v28  ;;  %v5007_v60 = vrot.slane %v3009_v22, %v10992_v46  ;;  %v5014_v7 = vrot.slane %v5000_v53, %v10992_v46  ;;  %v4517_v45 = vcombine.high %v4495_v57, %v4495_v57  ;;  %v2901_v57 = vpop.f32.mrf.mxu0 }
 0x349   : > { %7802 = vst.sshfl [vmem:[%s11006_s14 + $0xa9] sm:$0x1 pattern:$0x73625140] %v3911_v32  ;;  %3755 = vst [vmem:[%s11006_s14 + $0xf0] sm:$0x1] %v3462_v51  ;;  %v4518_v17 = vcombine.high %v4502_v52, %v4502_v52  ;;  %v4519_v50 = vcombine.high %v4509_v26, %v4509_v26  ;;  %v2896_v61 = vadd.f32 %v2895_v43, %v11163_v21 }
 0x34a   : > { %7774 = vst.sshfl [vmem:[%s11006_s14 + $0xe8] sm:$0x1 pattern:$0x73625140] %v3432_v40  ;;  %4276 = vst [vmem:[%s11006_s14 + $0xb9] sm:$0x1] %v3943_v10  ;;  %v4520_v34 = vcombine.high %v4516_v58, %v4516_v58  ;;  %v5015_v11 = vcombine.high %v5007_v60, %v5007_v60  ;;  %v5016_v13 = vcombine.high %v5014_v7, %v5014_v7  ;;  %v3018_v58 = vpop.f32.mrf.mxu1 }
 0x34b   : > { %7836 = vst.sshfl [vmem:[%s11006_s14 + $0xca] sm:$0x1 pattern:$0x73625140] %v4487_v18  ;;  %3756 = vst [vmem:[%s11006_s14 + $0xf8] sm:$0x1] %v3464_v23  ;;  %v5023_v14 = vrot.slane %v5007_v60, %v10992_v46  ;;  %v5030_v1 = vrot.slane %v5014_v7, %v10992_v46  ;;  %v3944_v6 = vcombine.high %v2896_v61, %v2896_v61 }
 0x34c   : > { %7838 = vst.sshfl [vmem:[%s11006_s14 + $0xea] sm:$0x1 pattern:$0x73625140] %v4488_v41  ;;  %4807 = vst [vmem:[%s11006_s14 + $0xd2] sm:$0x1] %v4517_v45  ;;  %v3951_v9 = vrot.slane %v2896_v61, %v10992_v46  ;;  %v2900_v54 = vadd.f32 %v2899_v44, %v11226_v49  ;;  %v5037_v27 = vrot.slane %v5015_v11, %v10992_v46 }
 0x34d   : > { %7867 = vst.sshfl [vmem:[%s11006_s14 + $0xc3] sm:$0x1 pattern:$0x73625140] %v5007_v60  ;;  %4808 = vst [vmem:[%s11006_s14 + $0xda] sm:$0x1] %v4519_v50  ;;  %v5044_v35 = vrot.slane %v5016_v13, %v10992_v46  ;;  %v5045_v8 = vcombine.high %v5023_v14, %v5023_v14  ;;  %v3013_v15 = vadd.f32 %v3012_v24, %v11226_v49  ;;  %v11286_v50 = vpop.permute.xlu1 %2388 }
 0x34e   : > { %7869 = vst.sshfl [vmem:[%s11006_s14 + $0xe3] sm:$0x1 pattern:$0x73625140] %v5014_v7  ;;  %4811 = vst [vmem:[%s11006_s14 + $0xf2] sm:$0x1] %v4518_v17  ;;  %v5046_v48 = vcombine.high %v5030_v1, %v5030_v1  ;;  %v3958_v22 = vrot.slane %v3944_v6, %v10992_v46  ;;  %v3959_v62 = vcombine.high %v3951_v9, %v3951_v9 }
 0x34f   : > { %4812 = vst [vmem:[%s11006_s14 + $0xfa] sm:$0x1] %v4520_v34  ;;  %7868 = vst.sshfl [vmem:[%s11006_s14 + $0xcb] sm:$0x1 pattern:$0x73625140] %v5015_v11  ;;  %v3967_v36 = vrot.slane %v3951_v9, %v10992_v46  ;;  %v5047_v37 = vcombine.high %v5037_v27, %v5037_v27  ;;  %v5048_v5 = vcombine.high %v5044_v35, %v5044_v35  ;;  %v3020_v35 = vpop.f32.mrf.mxu1 }
 0x350   : > { %7870 = vst.sshfl [vmem:[%s11006_s14 + $0xeb] sm:$0x1 pattern:$0x73625140] %v5016_v13  ;;  %5335 = vst [vmem:[%s11006_s14 + $0xd3] sm:$0x1] %v5045_v8  ;;  %v3015_v31 = vadd.f32 %v3014_v59, %v11226_v49  ;;  %v3465_v4 = vcombine.high %v2900_v54, %v2900_v54  ;;  %v3960_v38 = vcombine.high %v3958_v22, %v3958_v22 }
 0x351   : > { %7803 = vst.sshfl [vmem:[%s11006_s14 + $0xc1] sm:$0x1 pattern:$0x73625140] %v3951_v9  ;;  %5339 = vst [vmem:[%s11006_s14 + $0xf3] sm:$0x1] %v5046_v48  ;;  %v3974_v53 = vrot.slane %v3958_v22, %v10992_v46  ;;  %v3981_v16 = vrot.slane %v3959_v62, %v10992_v46  ;;  %v3989_v42 = vcombine.high %v3967_v36, %v3967_v36  ;;  %v2905_v9 = vpop.f32.mrf.mxu0 }
 0x352   : > { %7804 = vst.sshfl [vmem:[%s11006_s14 + $0xc9] sm:$0x1 pattern:$0x73625140] %v3959_v62  ;;  %5336 = vst [vmem:[%s11006_s14 + $0xdb] sm:$0x1] %v5047_v37  ;;  %v3472_v2 = vrot.slane %v2900_v54, %v10992_v46  ;;  %v3479_v47 = vrot.slane %v3465_v4, %v10992_v46  ;;  %v4521_v32 = vcombine.high %v3013_v15, %v3013_v15 }
 0x353   : > { %7805 = vst.sshfl [vmem:[%s11006_s14 + $0xe1] sm:$0x1 pattern:$0x73625140] %v3958_v22  ;;  %5340 = vst [vmem:[%s11006_s14 + $0xfb] sm:$0x1] %v5048_v5  ;;  %v4528_v56 = vrot.slane %v3013_v15, %v10992_v46  ;;  %v3988_v19 = vrot.slane %v3960_v38, %v10992_v46  ;;  %v3990_v33 = vcombine.high %v3974_v53, %v3974_v53 }
 0x354   : > { %v3991_v40 = vcombine.high %v3981_v16, %v3981_v16  ;;  %4279 = vst [vmem:[%s11006_s14 + $0xd1] sm:$0x1] %v3989_v42  ;;  %7806 = vst.sshfl [vmem:[%s11006_s14 + $0xe9] sm:$0x1 pattern:$0x73625140] %v3960_v38  ;;  %v5049_v63 = vcombine.high %v3015_v31, %v3015_v31  ;;  %v3480_v39 = vcombine.high %v3472_v2, %v3472_v2 }
 0x355   : > { %v3481_v20 = vcombine.high %v3479_v47, %v3479_v47  ;;  %v3488_v30 = vrot.slane %v3472_v2, %v10992_v46  ;;  %v3495_v25 = vrot.slane %v3479_v47, %v10992_v46  ;;  %7775 = vst.sshfl [vmem:[%s11006_s14 + $0x100] sm:$0x1 pattern:$0x73625140] %v3472_v2  ;;  %v3992_v3 = vcombine.high %v3988_v19, %v3988_v19 }
 0x356   : > { %7777 = vst.sshfl [vmem:[%s11006_s14 + $0x120] sm:$0x1 pattern:$0x73625140] %v3479_v47  ;;  %4280 = vst [vmem:[%s11006_s14 + $0xd9] sm:$0x1] %v3991_v40  ;;  %v4535_v18 = vrot.slane %v4521_v32, %v10992_v46  ;;  %v4536_v12 = vcombine.high %v4528_v56, %v4528_v56  ;;  %v4544_v51 = vrot.slane %v4528_v56, %v10992_v46 }
 0x357   : > { %7839 = vst.sshfl [vmem:[%s11006_s14 + $0x102] sm:$0x1 pattern:$0x73625140] %v4528_v56  ;;  %4283 = vst [vmem:[%s11006_s14 + $0xf1] sm:$0x1] %v3990_v33  ;;  %v3502_v28 = vrot.slane %v3480_v39, %v10992_v46  ;;  %v3509_v41 = vrot.slane %v3481_v20, %v10992_v46  ;;  %v3510_v43 = vcombine.high %v3488_v30, %v3488_v30 }
 0x358   : > { %v3511_v10 = vcombine.high %v3495_v25, %v3495_v25  ;;  %7776 = vst.sshfl [vmem:[%s11006_s14 + $0x108] sm:$0x1 pattern:$0x73625140] %v3480_v39  ;;  %4284 = vst [vmem:[%s11006_s14 + $0xf9] sm:$0x1] %v3992_v3  ;;  %v4537_v52 = vcombine.high %v4535_v18, %v4535_v18  ;;  %v4551_v26 = vrot.slane %v4535_v18, %v10992_v46 }
 0x359   : > { %7778 = vst.sshfl [vmem:[%s11006_s14 + $0x128] sm:$0x1 pattern:$0x73625140] %v3481_v20  ;;  %v4558_v24 = vrot.slane %v4536_v12, %v10992_v46  ;;  %v4566_v23 = vcombine.high %v4544_v51, %v4544_v51  ;;  %v3512_v60 = vcombine.high %v3502_v28, %v3502_v28  ;;  %v3513_v7 = vcombine.high %v3509_v41, %v3509_v41 }
 0x35a   : > { %7840 = vst.sshfl [vmem:[%s11006_s14 + $0x10a] sm:$0x1 pattern:$0x73625140] %v4536_v12  ;;  %3759 = vst [vmem:[%s11006_s14 + $0x110] sm:$0x1] %v3510_v43  ;;  %v5056_v45 = vrot.slane %v3015_v31, %v10992_v46  ;;  %v5063_v17 = vrot.slane %v5049_v63, %v10992_v46  ;;  %v4565_v61 = vrot.slane %v4537_v52, %v10992_v46 }
 0x35b   : > { %7841 = vst.sshfl [vmem:[%s11006_s14 + $0x122] sm:$0x1 pattern:$0x73625140] %v4535_v18  ;;  %3763 = vst [vmem:[%s11006_s14 + $0x130] sm:$0x1] %v3511_v10  ;;  %v4567_v34 = vcombine.high %v4551_v26, %v4551_v26  ;;  %v4568_v11 = vcombine.high %v4558_v24, %v4558_v24  ;;  %v2902_v13 = vadd.f32 %v2901_v57, %v11226_v49  ;;  %v2907_v24 = vpop.f32.mrf.mxu0 }
 0x35c   : > { %4815 = vst [vmem:[%s11006_s14 + $0x112] sm:$0x1] %v4566_v23  ;;  %7842 = vst.sshfl [vmem:[%s11006_s14 + $0x12a] sm:$0x1 pattern:$0x73625140] %v4537_v52  ;;  %v5064_v14 = vcombine.high %v5056_v45, %v5056_v45  ;;  %v5065_v44 = vcombine.high %v5063_v17, %v5063_v17  ;;  %v5072_v1 = vrot.slane %v5056_v45, %v10992_v46 }
 0x35d   : > { %3760 = vst [vmem:[%s11006_s14 + $0x118] sm:$0x1] %v3512_v60  ;;  %3764 = vst [vmem:[%s11006_s14 + $0x138] sm:$0x1] %v3513_v7  ;;  %v5079_v6 = vrot.slane %v5063_v17, %v10992_v46  ;;  %v4569_v59 = vcombine.high %v4565_v61, %v4565_v61  ;;  %v3993_v54 = vcombine.high %v2902_v13, %v2902_v13 }
 0x35e   : > { %7871 = vst.sshfl [vmem:[%s11006_s14 + $0x103] sm:$0x1 pattern:$0x73625140] %v5056_v45  ;;  %4816 = vst [vmem:[%s11006_s14 + $0x11a] sm:$0x1] %v4568_v11  ;;  %v4000_v27 = vrot.slane %v2902_v13, %v10992_v46  ;;  %v2906_v8 = vadd.f32 %v2905_v9, %v11286_v50  ;;  %v5086_v15 = vrot.slane %v5064_v14, %v10992_v46  ;;  %v3024_v45 = vpop.f32.mrf.mxu1  ;;  %v11348_v13 = vpop.permute.xlu1 %2393 }
 0x35f   : > { %7873 = vst.sshfl [vmem:[%s11006_s14 + $0x123] sm:$0x1 pattern:$0x73625140] %v5063_v17  ;;  %4819 = vst [vmem:[%s11006_s14 + $0x132] sm:$0x1] %v4567_v34  ;;  %v5093_v48 = vrot.slane %v5065_v44, %v10992_v46  ;;  %v5094_v22 = vcombine.high %v5072_v1, %v5072_v1  ;;  %v5095_v62 = vcombine.high %v5079_v6, %v5079_v6 }
 0x360   : > { %7872 = vst.sshfl [vmem:[%s11006_s14 + $0x10b] sm:$0x1 pattern:$0x73625140] %v5064_v14  ;;  %4820 = vst [vmem:[%s11006_s14 + $0x13a] sm:$0x1] %v4569_v59  ;;  %v4007_v36 = vrot.slane %v3993_v54, %v10992_v46  ;;  %v4008_v37 = vcombine.high %v4000_v27, %v4000_v27  ;;  %v4016_v5 = vrot.slane %v4000_v27, %v10992_v46 }
 0x361   : > { %7874 = vst.sshfl [vmem:[%s11006_s14 + $0x12b] sm:$0x1 pattern:$0x73625140] %v5065_v44  ;;  %v3019_v31 = vadd.f32 %v3018_v58, %v11286_v50  ;;  %v5096_v4 = vcombine.high %v5086_v15, %v5086_v15  ;;  %v5097_v38 = vcombine.high %v5093_v48, %v5093_v48  ;;  %5343 = vst [vmem:[%s11006_s14 + $0x113] sm:$0x1] %v5094_v22  ;;  %v3026_v22 = vpop.f32.mrf.mxu1 }
 0x362   : > { %7807 = vst.sshfl [vmem:[%s11006_s14 + $0x101] sm:$0x1 pattern:$0x73625140] %v4000_v27  ;;  %5347 = vst [vmem:[%s11006_s14 + $0x133] sm:$0x1] %v5095_v62  ;;  %v3021_v53 = vadd.f32 %v3020_v35, %v11286_v50  ;;  %v3514_v16 = vcombine.high %v2906_v8, %v2906_v8  ;;  %v4009_v42 = vcombine.high %v4007_v36, %v4007_v36  ;;  %v2911_v35 = vpop.f32.mrf.mxu0 }
 0x363   : > { %v4023_v2 = vrot.slane %v4007_v36, %v10992_v46  ;;  %v4030_v47 = vrot.slane %v4008_v37, %v10992_v46  ;;  %v4038_v32 = vcombine.high %v4016_v5, %v4016_v5  ;;  %7808 = vst.sshfl [vmem:[%s11006_s14 + $0x109] sm:$0x1 pattern:$0x73625140] %v4008_v37  ;;  %5344 = vst [vmem:[%s11006_s14 + $0x11b] sm:$0x1] %v5096_v4 }
 0x364   : > { %7809 = vst.sshfl [vmem:[%s11006_s14 + $0x121] sm:$0x1 pattern:$0x73625140] %v4007_v36  ;;  %5348 = vst [vmem:[%s11006_s14 + $0x13b] sm:$0x1] %v5097_v38  ;;  %v3521_v56 = vrot.slane %v2906_v8, %v10992_v46  ;;  %v3528_v19 = vrot.slane %v3514_v16, %v10992_v46  ;;  %v4570_v33 = vcombine.high %v3019_v31, %v3019_v31 }
 0x365   : > { %v4577_v40 = vrot.slane %v3019_v31, %v10992_v46  ;;  %v4037_v63 = vrot.slane %v4009_v42, %v10992_v46  ;;  %v4039_v39 = vcombine.high %v4023_v2, %v4023_v2  ;;  %v4040_v20 = vcombine.high %v4030_v47, %v4030_v47  ;;  %4287 = vst [vmem:[%s11006_s14 + $0x111] sm:$0x1] %v4038_v32 }
 0x366   : > { %7810 = vst.sshfl [vmem:[%s11006_s14 + $0x129] sm:$0x1 pattern:$0x73625140] %v4009_v42  ;;  %v5098_v30 = vcombine.high %v3021_v53, %v3021_v53  ;;  %v3529_v25 = vcombine.high %v3521_v56, %v3521_v56  ;;  %v3530_v3 = vcombine.high %v3528_v19, %v3528_v19  ;;  %v3537_v18 = vrot.slane %v3521_v56, %v10992_v46 }
 0x367   : > { %v3544_v12 = vrot.slane %v3528_v19, %v10992_v46  ;;  %7779 = vst.sshfl [vmem:[%s11006_s14 + $0x140] sm:$0x1 pattern:$0x73625140] %v3521_v56  ;;  %v4041_v51 = vcombine.high %v4037_v63, %v4037_v63  ;;  %4288 = vst [vmem:[%s11006_s14 + $0x119] sm:$0x1] %v4040_v20  ;;  %v4584_v28 = vrot.slane %v4570_v33, %v10992_v46 }
 0x368   : > { %7781 = vst.sshfl [vmem:[%s11006_s14 + $0x160] sm:$0x1 pattern:$0x73625140] %v3528_v19  ;;  %4291 = vst [vmem:[%s11006_s14 + $0x131] sm:$0x1] %v4039_v39  ;;  %v4585_v41 = vcombine.high %v4577_v40, %v4577_v40  ;;  %v4593_v43 = vrot.slane %v4577_v40, %v10992_v46  ;;  %v3551_v10 = vrot.slane %v3529_v25, %v10992_v46 }
 0x369   : > { %7843 = vst.sshfl [vmem:[%s11006_s14 + $0x142] sm:$0x1 pattern:$0x73625140] %v4577_v40  ;;  %v3558_v57 = vrot.slane %v3530_v3, %v10992_v46  ;;  %v3559_v52 = vcombine.high %v3537_v18, %v3537_v18  ;;  %v3560_v26 = vcombine.high %v3544_v12, %v3544_v12  ;;  %4292 = vst [vmem:[%s11006_s14 + $0x139] sm:$0x1] %v4041_v51 }
 0x36a   : > { %7780 = vst.sshfl [vmem:[%s11006_s14 + $0x148] sm:$0x1 pattern:$0x73625140] %v3529_v25  ;;  %v4586_v23 = vcombine.high %v4584_v28, %v4584_v28  ;;  %v4600_v58 = vrot.slane %v4584_v28, %v10992_v46  ;;  %v4607_v60 = vrot.slane %v4585_v41, %v10992_v46  ;;  %v4615_v7 = vcombine.high %v4593_v43, %v4593_v43 }
 0x36b   : > { %7782 = vst.sshfl [vmem:[%s11006_s14 + $0x168] sm:$0x1 pattern:$0x73625140] %v3530_v3  ;;  %v3561_v17 = vcombine.high %v3551_v10, %v3551_v10  ;;  %v3562_v61 = vcombine.high %v3558_v57, %v3558_v57  ;;  %3767 = vst [vmem:[%s11006_s14 + $0x150] sm:$0x1] %v3559_v52  ;;  %v5105_v34 = vrot.slane %v3021_v53, %v10992_v46 }
 0x36c   : > { %7844 = vst.sshfl [vmem:[%s11006_s14 + $0x14a] sm:$0x1 pattern:$0x73625140] %v4585_v41  ;;  %3771 = vst [vmem:[%s11006_s14 + $0x170] sm:$0x1] %v3560_v26  ;;  %v5112_v11 = vrot.slane %v5098_v30, %v10992_v46  ;;  %v4614_v14 = vrot.slane %v4586_v23, %v10992_v46  ;;  %v4616_v44 = vcombine.high %v4600_v58, %v4600_v58 }
 0x36d   : > { %7845 = vst.sshfl [vmem:[%s11006_s14 + $0x162] sm:$0x1 pattern:$0x73625140] %v4584_v28  ;;  %v4617_v1 = vcombine.high %v4607_v60, %v4607_v60  ;;  %4823 = vst [vmem:[%s11006_s14 + $0x152] sm:$0x1] %v4615_v7  ;;  %v2908_v6 = vadd.f32 %v2907_v24, %v11286_v50  ;;  %v5113_v9 = vcombine.high %v5105_v34, %v5105_v34  ;;  %v2913_v7 = vpop.f32.mrf.mxu0 }
 0x36e   : > { %7846 = vst.sshfl [vmem:[%s11006_s14 + $0x16a] sm:$0x1 pattern:$0x73625140] %v4586_v23  ;;  %3768 = vst [vmem:[%s11006_s14 + $0x158] sm:$0x1] %v3561_v17  ;;  %v5114_v59 = vcombine.high %v5112_v11, %v5112_v11  ;;  %v5121_v54 = vrot.slane %v5105_v34, %v10992_v46  ;;  %v5128_v27 = vrot.slane %v5112_v11, %v10992_v46 }
 0x36f   : > { %3772 = vst [vmem:[%s11006_s14 + $0x178] sm:$0x1] %v3562_v61  ;;  %7875 = vst.sshfl [vmem:[%s11006_s14 + $0x143] sm:$0x1 pattern:$0x73625140] %v5105_v34  ;;  %v4618_v8 = vcombine.high %v4614_v14, %v4614_v14  ;;  %v4042_v15 = vcombine.high %v2908_v6, %v2908_v6  ;;  %v4049_v48 = vrot.slane %v2908_v6, %v10992_v46 }
 0x370   : > { %7877 = vst.sshfl [vmem:[%s11006_s14 + $0x163] sm:$0x1 pattern:$0x73625140] %v5112_v11  ;;  %4824 = vst [vmem:[%s11006_s14 + $0x15a] sm:$0x1] %v4617_v1  ;;  %v2912_v62 = vadd.f32 %v2911_v35, %v11348_v13  ;;  %v5135_v36 = vrot.slane %v5113_v9, %v10992_v46  ;;  %v5142_v37 = vrot.slane %v5114_v59, %v10992_v46  ;;  %v3030_v11 = vpop.f32.mrf.mxu1 }
 0x371   : > { %4827 = vst [vmem:[%s11006_s14 + $0x172] sm:$0x1] %v4616_v44  ;;  %v5143_v5 = vcombine.high %v5121_v54, %v5121_v54  ;;  %v5144_v31 = vcombine.high %v5128_v27, %v5128_v27  ;;  %7876 = vst.sshfl [vmem:[%s11006_s14 + $0x14b] sm:$0x1 pattern:$0x73625140] %v5113_v9  ;;  %v4056_v4 = vrot.slane %v4042_v15, %v10992_v46  ;;  %v11410_v9 = vpop.permute.xlu1 %2398 }
 0x372   : > { %7878 = vst.sshfl [vmem:[%s11006_s14 + $0x16b] sm:$0x1 pattern:$0x73625140] %v5114_v59  ;;  %4828 = vst [vmem:[%s11006_s14 + $0x17a] sm:$0x1] %v4618_v8  ;;  %v4057_v38 = vcombine.high %v4049_v48, %v4049_v48  ;;  %v4065_v53 = vrot.slane %v4049_v48, %v10992_v46  ;;  %v3025_v16 = vadd.f32 %v3024_v45, %v11348_v13 }
 0x373   : > { %7811 = vst.sshfl [vmem:[%s11006_s14 + $0x141] sm:$0x1 pattern:$0x73625140] %v4049_v48  ;;  %v5145_v42 = vcombine.high %v5135_v36, %v5135_v36  ;;  %v5146_v2 = vcombine.high %v5142_v37, %v5142_v37  ;;  %5351 = vst [vmem:[%s11006_s14 + $0x153] sm:$0x1] %v5143_v5  ;;  %v3027_v47 = vadd.f32 %v3026_v22, %v11348_v13 }
 0x374   : > { %5355 = vst [vmem:[%s11006_s14 + $0x173] sm:$0x1] %v5144_v31  ;;  %v3563_v32 = vcombine.high %v2912_v62, %v2912_v62  ;;  %v4058_v56 = vcombine.high %v4056_v4, %v4056_v4  ;;  %v4072_v19 = vrot.slane %v4056_v4, %v10992_v46  ;;  %v4079_v33 = vrot.slane %v4057_v38, %v10992_v46  ;;  %v3032_v31 = vpop.f32.mrf.mxu1 }
 0x375   : > { %v4087_v40 = vcombine.high %v4065_v53, %v4065_v53  ;;  %7812 = vst.sshfl [vmem:[%s11006_s14 + $0x149] sm:$0x1 pattern:$0x73625140] %v4057_v38  ;;  %5352 = vst [vmem:[%s11006_s14 + $0x15b] sm:$0x1] %v5145_v42  ;;  %v3570_v63 = vrot.slane %v2912_v62, %v10992_v46  ;;  %v4619_v20 = vcombine.high %v3025_v16, %v3025_v16  ;;  %v2917_v62 = vpop.f32.mrf.mxu0 }
 0x376   : > { %7813 = vst.sshfl [vmem:[%s11006_s14 + $0x161] sm:$0x1 pattern:$0x73625140] %v4056_v4  ;;  %5356 = vst [vmem:[%s11006_s14 + $0x17b] sm:$0x1] %v5146_v2  ;;  %v3577_v39 = vrot.slane %v3563_v32, %v10992_v46  ;;  %v4626_v30 = vrot.slane %v3025_v16, %v10992_v46  ;;  %v4086_v25 = vrot.slane %v4058_v56, %v10992_v46 }
 0x377   : > { %v4088_v3 = vcombine.high %v4072_v19, %v4072_v19  ;;  %v4089_v18 = vcombine.high %v4079_v33, %v4079_v33  ;;  %4295 = vst [vmem:[%s11006_s14 + $0x151] sm:$0x1] %v4087_v40  ;;  %7814 = vst.sshfl [vmem:[%s11006_s14 + $0x169] sm:$0x1 pattern:$0x73625140] %v4058_v56  ;;  %v5147_v12 = vcombine.high %v3027_v47, %v3027_v47 }
 0x378   : > { %v3578_v51 = vcombine.high %v3570_v63, %v3570_v63  ;;  %v3579_v28 = vcombine.high %v3577_v39, %v3577_v39  ;;  %v3586_v41 = vrot.slane %v3570_v63, %v10992_v46  ;;  %v3593_v43 = vrot.slane %v3577_v39, %v10992_v46  ;;  %7783 = vst.sshfl [vmem:[%s11006_s14 + $0x180] sm:$0x1 pattern:$0x73625140] %v3570_v63 }
 0x379   : > { %7785 = vst.sshfl [vmem:[%s11006_s14 + $0x1a0] sm:$0x1 pattern:$0x73625140] %v3577_v39  ;;  %v4090_v10 = vcombine.high %v4086_v25, %v4086_v25  ;;  %4296 = vst [vmem:[%s11006_s14 + $0x159] sm:$0x1] %v4089_v18  ;;  %v4633_v57 = vrot.slane %v4619_v20, %v10992_v46  ;;  %v4634_v52 = vcombine.high %v4626_v30, %v4626_v30 }
 0x37a   : > { %7847 = vst.sshfl [vmem:[%s11006_s14 + $0x182] sm:$0x1 pattern:$0x73625140] %v4626_v30  ;;  %4299 = vst [vmem:[%s11006_s14 + $0x171] sm:$0x1] %v4088_v3  ;;  %v4642_v26 = vrot.slane %v4626_v30, %v10992_v46  ;;  %v3600_v24 = vrot.slane %v3578_v51, %v10992_v46  ;;  %v3607_v23 = vrot.slane %v3579_v28, %v10992_v46 }
 0x37b   : > { %v3608_v58 = vcombine.high %v3586_v41, %v3586_v41  ;;  %v3609_v60 = vcombine.high %v3593_v43, %v3593_v43  ;;  %7784 = vst.sshfl [vmem:[%s11006_s14 + $0x188] sm:$0x1 pattern:$0x73625140] %v3578_v51  ;;  %4300 = vst [vmem:[%s11006_s14 + $0x179] sm:$0x1] %v4090_v10  ;;  %v4635_v45 = vcombine.high %v4633_v57, %v4633_v57 }
 0x37c   : > { %7786 = vst.sshfl [vmem:[%s11006_s14 + $0x1a8] sm:$0x1 pattern:$0x73625140] %v3579_v28  ;;  %v4649_v17 = vrot.slane %v4633_v57, %v10992_v46  ;;  %v4656_v61 = vrot.slane %v4634_v52, %v10992_v46  ;;  %v4664_v34 = vcombine.high %v4642_v26, %v4642_v26  ;;  %v3610_v14 = vcombine.high %v3600_v24, %v3600_v24 }
 0x37d   : > { %7848 = vst.sshfl [vmem:[%s11006_s14 + $0x18a] sm:$0x1 pattern:$0x73625140] %v4634_v52  ;;  %v3611_v44 = vcombine.high %v3607_v23, %v3607_v23  ;;  %3775 = vst [vmem:[%s11006_s14 + $0x190] sm:$0x1] %v3608_v58  ;;  %v5154_v1 = vrot.slane %v3027_v47, %v10992_v46  ;;  %v5161_v6 = vrot.slane %v5147_v12, %v10992_v46 }
 0x37e   : > { %7849 = vst.sshfl [vmem:[%s11006_s14 + $0x1a2] sm:$0x1 pattern:$0x73625140] %v4633_v57  ;;  %3779 = vst [vmem:[%s11006_s14 + $0x1b0] sm:$0x1] %v3609_v60  ;;  %v4663_v59 = vrot.slane %v4635_v45, %v10992_v46  ;;  %v4665_v54 = vcombine.high %v4649_v17, %v4649_v17  ;;  %v4666_v27 = vcombine.high %v4656_v61, %v4656_v61 }
 0x37f   : > { %4831 = vst [vmem:[%s11006_s14 + $0x192] sm:$0x1] %v4664_v34  ;;  %7850 = vst.sshfl [vmem:[%s11006_s14 + $0x1aa] sm:$0x1 pattern:$0x73625140] %v4635_v45  ;;  %v2914_v35 = vadd.f32 %v2913_v7, %v11348_v13  ;;  %v5162_v8 = vcombine.high %v5154_v1, %v5154_v1  ;;  %v5163_v15 = vcombine.high %v5161_v6, %v5161_v6 }
 0x380   : > { %3776 = vst [vmem:[%s11006_s14 + $0x198] sm:$0x1] %v3610_v14  ;;  %3780 = vst [vmem:[%s11006_s14 + $0x1b8] sm:$0x1] %v3611_v44  ;;  %v5170_v48 = vrot.slane %v5154_v1, %v10992_v46  ;;  %v5177_v22 = vrot.slane %v5161_v6, %v10992_v46  ;;  %v4667_v36 = vcombine.high %v4663_v59, %v4663_v59 }
 0x381   : > { %7879 = vst.sshfl [vmem:[%s11006_s14 + $0x183] sm:$0x1 pattern:$0x73625140] %v5154_v1  ;;  %4832 = vst [vmem:[%s11006_s14 + $0x19a] sm:$0x1] %v4666_v27  ;;  %v4091_v37 = vcombine.high %v2914_v35, %v2914_v35  ;;  %v4098_v5 = vrot.slane %v2914_v35, %v10992_v46  ;;  %v2918_v4 = vadd.f32 %v2917_v62, %v11410_v9 }
 0x382   : > { %7881 = vst.sshfl [vmem:[%s11006_s14 + $0x1a3] sm:$0x1 pattern:$0x73625140] %v5161_v6  ;;  %4835 = vst [vmem:[%s11006_s14 + $0x1b2] sm:$0x1] %v4665_v54  ;;  %v5184_v38 = vrot.slane %v5162_v8, %v10992_v46  ;;  %v5191_v53 = vrot.slane %v5163_v15, %v10992_v46  ;;  %v5192_v16 = vcombine.high %v5170_v48, %v5170_v48 }
 0x383   : > { %v5193_v42 = vcombine.high %v5177_v22, %v5177_v22  ;;  %7880 = vst.sshfl [vmem:[%s11006_s14 + $0x18b] sm:$0x1 pattern:$0x73625140] %v5162_v8  ;;  %4836 = vst [vmem:[%s11006_s14 + $0x1ba] sm:$0x1] %v4667_v36  ;;  %v4105_v2 = vrot.slane %v4091_v37, %v10992_v46  ;;  %v4106_v47 = vcombine.high %v4098_v5, %v4098_v5 }
 0x384   : > { %7882 = vst.sshfl [vmem:[%s11006_s14 + $0x1ab] sm:$0x1 pattern:$0x73625140] %v5163_v15  ;;  %v4114_v32 = vrot.slane %v4098_v5, %v10992_v46  ;;  %v3031_v56 = vadd.f32 %v3030_v11, %v11410_v9  ;;  %v5194_v19 = vcombine.high %v5184_v38, %v5184_v38  ;;  %v5195_v33 = vcombine.high %v5191_v53, %v5191_v53  ;;  %v2919_v11 = vpop.f32.mrf.mxu0 }
 0x385   : > { %7815 = vst.sshfl [vmem:[%s11006_s14 + $0x181] sm:$0x1 pattern:$0x73625140] %v4098_v5  ;;  %5359 = vst [vmem:[%s11006_s14 + $0x193] sm:$0x1] %v5192_v16  ;;  %v3033_v40 = vadd.f32 %v3032_v31, %v11410_v9  ;;  %v3612_v63 = vcombine.high %v2918_v4, %v2918_v4  ;;  %v4107_v39 = vcombine.high %v4105_v2, %v4105_v2 }
 0x386   : > { %5363 = vst [vmem:[%s11006_s14 + $0x1b3] sm:$0x1] %v5193_v42  ;;  %v4121_v20 = vrot.slane %v4105_v2, %v10992_v46  ;;  %v4128_v30 = vrot.slane %v4106_v47, %v10992_v46  ;;  %v4136_v25 = vcombine.high %v4114_v32, %v4114_v32  ;;  %7816 = vst.sshfl [vmem:[%s11006_s14 + $0x189] sm:$0x1 pattern:$0x73625140] %v4106_v47 }
 0x387   : > { %7817 = vst.sshfl [vmem:[%s11006_s14 + $0x1a1] sm:$0x1 pattern:$0x73625140] %v4105_v2  ;;  %5360 = vst [vmem:[%s11006_s14 + $0x19b] sm:$0x1] %v5194_v19  ;;  %v3619_v3 = vrot.slane %v2918_v4, %v10992_v46  ;;  %v3626_v18 = vrot.slane %v3612_v63, %v10992_v46  ;;  %v4668_v12 = vcombine.high %v3031_v56, %v3031_v56 }
 0x388   : > { %5364 = vst [vmem:[%s11006_s14 + $0x1bb] sm:$0x1] %v5195_v33  ;;  %v4675_v51 = vrot.slane %v3031_v56, %v10992_v46  ;;  %v4135_v28 = vrot.slane %v4107_v39, %v10992_v46  ;;  %v4137_v41 = vcombine.high %v4121_v20, %v4121_v20  ;;  %v4138_v43 = vcombine.high %v4128_v30, %v4128_v30 }
 0x389   : > { %4303 = vst [vmem:[%s11006_s14 + $0x191] sm:$0x1] %v4136_v25  ;;  %7818 = vst.sshfl [vmem:[%s11006_s14 + $0x1a9] sm:$0x1 pattern:$0x73625140] %v4107_v39  ;;  %v5196_v10 = vcombine.high %v3033_v40, %v3033_v40  ;;  %v3627_v57 = vcombine.high %v3619_v3, %v3619_v3  ;;  %v3628_v52 = vcombine.high %v3626_v18, %v3626_v18 }
 0x38a   : > { %v3635_v26 = vrot.slane %v3619_v3, %v10992_v46  ;;  %v3642_v24 = vrot.slane %v3626_v18, %v10992_v46  ;;  %7787 = vst.sshfl [vmem:[%s11006_s14 + $0x1c0] sm:$0x1 pattern:$0x73625140] %v3619_v3  ;;  %v4139_v23 = vcombine.high %v4135_v28, %v4135_v28  ;;  %4304 = vst [vmem:[%s11006_s14 + $0x199] sm:$0x1] %v4138_v43 }
 0x38b   : > { %7789 = vst.sshfl [vmem:[%s11006_s14 + $0x1e0] sm:$0x1 pattern:$0x73625140] %v3626_v18  ;;  %4307 = vst [vmem:[%s11006_s14 + $0x1b1] sm:$0x1] %v4137_v41  ;;  %v4682_v58 = vrot.slane %v4668_v12, %v10992_v46  ;;  %v4683_v60 = vcombine.high %v4675_v51, %v4675_v51  ;;  %v4691_v7 = vrot.slane %v4675_v51, %v10992_v46  ;;  %v3214_v12 = vpop.f32.mrf.mxu1 }
 0x38c   : > { %7851 = vst.sshfl [vmem:[%s11006_s14 + $0x1c2] sm:$0x1 pattern:$0x73625140] %v4675_v51  ;;  %v3649_v45 = vrot.slane %v3627_v57, %v10992_v46  ;;  %v3656_v17 = vrot.slane %v3628_v52, %v10992_v46  ;;  %v3657_v61 = vcombine.high %v3635_v26, %v3635_v26  ;;  %v3658_v34 = vcombine.high %v3642_v24, %v3642_v24  ;;  %v3101_v51 = vpop.f32.mrf.mxu0 }
 0x38d   : > { %7788 = vst.sshfl [vmem:[%s11006_s14 + $0x1c8] sm:$0x1 pattern:$0x73625140] %v3627_v57  ;;  %4308 = vst [vmem:[%s11006_s14 + $0x1b9] sm:$0x1] %v4139_v23  ;;  %v4684_v14 = vcombine.high %v4682_v58, %v4682_v58  ;;  %v4698_v44 = vrot.slane %v4682_v58, %v10992_v46  ;;  %v4705_v1 = vrot.slane %v4683_v60, %v10992_v46  ;;  %v3216_v43 = vpop.f32.mrf.mxu1 }
 0x38e   : > { %7790 = vst.sshfl [vmem:[%s11006_s14 + $0x1e8] sm:$0x1 pattern:$0x73625140] %v3628_v52  ;;  %v4713_v6 = vcombine.high %v4691_v7, %v4691_v7  ;;  %v3659_v59 = vcombine.high %v3649_v45, %v3649_v45  ;;  %v3660_v54 = vcombine.high %v3656_v17, %v3656_v17  ;;  %3783 = vst [vmem:[%s11006_s14 + $0x1d0] sm:$0x1] %v3657_v61  ;;  %v3103_v52 = vpop.f32.mrf.mxu0 }
 0x38f   : > { %7852 = vst.sshfl [vmem:[%s11006_s14 + $0x1ca] sm:$0x1 pattern:$0x73625140] %v4683_v60  ;;  %3787 = vst [vmem:[%s11006_s14 + $0x1f0] sm:$0x1] %v3658_v34  ;;  %v5203_v27 = vrot.slane %v3033_v40, %v10992_v46  ;;  %v5210_v35 = vrot.slane %v5196_v10, %v10992_v46  ;;  %v4712_v8 = vrot.slane %v4684_v14, %v10992_v46 }
 0x390   : > { %7853 = vst.sshfl [vmem:[%s11006_s14 + $0x1e2] sm:$0x1 pattern:$0x73625140] %v4682_v58  ;;  %v4714_v15 = vcombine.high %v4698_v44, %v4698_v44  ;;  %v4715_v48 = vcombine.high %v4705_v1, %v4705_v1  ;;  %4839 = vst [vmem:[%s11006_s14 + $0x1d2] sm:$0x1] %v4713_v6  ;;  %v2920_v22 = vadd.f32 %v2919_v11, %v11410_v9 }
 0x391   : > { %7854 = vst.sshfl [vmem:[%s11006_s14 + $0x1ea] sm:$0x1 pattern:$0x73625140] %v4684_v14  ;;  %3784 = vst [vmem:[%s11006_s14 + $0x1d8] sm:$0x1] %v3659_v59  ;;  %v5211_v62 = vcombine.high %v5203_v27, %v5203_v27  ;;  %v5212_v36 = vcombine.high %v5210_v35, %v5210_v35  ;;  %v5219_v37 = vrot.slane %v5203_v27, %v10992_v46 }
 0x392   : > { %3788 = vst [vmem:[%s11006_s14 + $0x1f8] sm:$0x1] %v3660_v54  ;;  %v5226_v5 = vrot.slane %v5210_v35, %v10992_v46  ;;  %7883 = vst.sshfl [vmem:[%s11006_s14 + $0x1c3] sm:$0x1 pattern:$0x73625140] %v5203_v27  ;;  %v4716_v31 = vcombine.high %v4712_v8, %v4712_v8  ;;  %v4140_v4 = vcombine.high %v2920_v22, %v2920_v22 }
 0x393   : > { %7885 = vst.sshfl [vmem:[%s11006_s14 + $0x1e3] sm:$0x1 pattern:$0x73625140] %v5210_v35  ;;  %4840 = vst [vmem:[%s11006_s14 + $0x1da] sm:$0x1] %v4715_v48  ;;  %v4147_v38 = vrot.slane %v2920_v22, %v10992_v46  ;;  %v5233_v53 = vrot.slane %v5211_v62, %v10992_v46  ;;  %v5240_v16 = vrot.slane %v5212_v36, %v10992_v46 }
 0x394   : > { %4843 = vst [vmem:[%s11006_s14 + $0x1f2] sm:$0x1] %v4714_v15  ;;  %v5241_v42 = vcombine.high %v5219_v37, %v5219_v37  ;;  %v5242_v2 = vcombine.high %v5226_v5, %v5226_v5  ;;  %7884 = vst.sshfl [vmem:[%s11006_s14 + $0x1cb] sm:$0x1 pattern:$0x73625140] %v5211_v62  ;;  %v4154_v47 = vrot.slane %v4140_v4, %v10992_v46 }
 0x395   : > { %7886 = vst.sshfl [vmem:[%s11006_s14 + $0x1eb] sm:$0x1 pattern:$0x73625140] %v5212_v36  ;;  %4844 = vst [vmem:[%s11006_s14 + $0x1fa] sm:$0x1] %v4716_v31  ;;  %v4155_v32 = vcombine.high %v4147_v38, %v4147_v38  ;;  %v4163_v56 = vrot.slane %v4147_v38, %v10992_v46  ;;  %v5243_v19 = vcombine.high %v5233_v53, %v5233_v53  ;;  %v3107_v31 = vpop.f32.mrf.mxu0 }
 0x396   : > { %7819 = vst.sshfl [vmem:[%s11006_s14 + $0x1c1] sm:$0x1 pattern:$0x73625140] %v4147_v38  ;;  %v5244_v33 = vcombine.high %v5240_v16, %v5240_v16  ;;  %5367 = vst [vmem:[%s11006_s14 + $0x1d3] sm:$0x1] %v5241_v42  ;;  %v4156_v40 = vcombine.high %v4154_v47, %v4154_v47  ;;  %v4170_v63 = vrot.slane %v4154_v47, %v10992_v46  ;;  %v3220_v42 = vpop.f32.mrf.mxu1 }
 0x397   : > { %5371 = vst [vmem:[%s11006_s14 + $0x1f3] sm:$0x1] %v5242_v2  ;;  %v4177_v39 = vrot.slane %v4155_v32, %v10992_v46  ;;  %v4185_v20 = vcombine.high %v4163_v56, %v4163_v56  ;;  %7820 = vst.sshfl [vmem:[%s11006_s14 + $0x1c9] sm:$0x1 pattern:$0x73625140] %v4155_v32  ;;  %v3215_v28 = vadd.f32 %v3214_v12, %v10990_v0 }
 0x398   : > { %7821 = vst.sshfl [vmem:[%s11006_s14 + $0x1e1] sm:$0x1 pattern:$0x73625140] %v4154_v47  ;;  %5368 = vst [vmem:[%s11006_s14 + $0x1db] sm:$0x1] %v5243_v19  ;;  %v4184_v30 = vrot.slane %v4156_v40, %v10992_v46  ;;  %v4186_v25 = vcombine.high %v4170_v63, %v4170_v63  ;;  %v3102_v41 = vadd.f32 %v3101_v51, %v10990_v0 }
 0x399   : > { %5372 = vst [vmem:[%s11006_s14 + $0x1fb] sm:$0x1] %v5244_v33  ;;  %v4187_v3 = vcombine.high %v4177_v39, %v4177_v39  ;;  %4311 = vst [vmem:[%s11006_s14 + $0x1d1] sm:$0x1] %v4185_v20  ;;  %v6437_v10 = vcombine.high %v3215_v28, %v3215_v28  ;;  %v6444_v57 = vrot.slane %v3215_v28, %v10992_v46 }
 0x39a   : > { %7822 = vst.sshfl [vmem:[%s11006_s14 + $0x1e9] sm:$0x1 pattern:$0x73625140] %v4156_v40  ;;  %v4188_v18 = vcombine.high %v4184_v30, %v4184_v30  ;;  %4315 = vst [vmem:[%s11006_s14 + $0x1f1] sm:$0x1] %v4186_v25  ;;  %v3217_v26 = vadd.f32 %v3216_v43, %v10990_v0  ;;  %v5381_v24 = vcombine.high %v3102_v41, %v3102_v41 }
 0x39b   : > { %4312 = vst [vmem:[%s11006_s14 + $0x1d9] sm:$0x1] %v4187_v3  ;;  %v5388_v23 = vrot.slane %v3102_v41, %v10992_v46  ;;  %v3104_v58 = vadd.f32 %v3103_v52, %v10990_v0  ;;  %v6451_v60 = vrot.slane %v6437_v10, %v10992_v46  ;;  %v6452_v7 = vcombine.high %v6444_v57, %v6444_v57  ;;  %v3109_v3 = vpop.f32.mrf.mxu0  ;;  %v3222_v41 = vpop.f32.mrf.mxu1 }
 0x39c   : > { %4316 = vst [vmem:[%s11006_s14 + $0x1f9] sm:$0x1] %v4188_v18  ;;  %v6460_v45 = vrot.slane %v6444_v57, %v10992_v46  ;;  %7951 = vst.sshfl [vmem:[%s11006_s14 + $0x6] sm:$0x1 pattern:$0x73625140] %v6444_v57  ;;  %v6965_v17 = vcombine.high %v3217_v26, %v3217_v26  ;;  %v5395_v61 = vrot.slane %v5381_v24, %v10992_v46 }
 0x39d   : > { %v5396_v34 = vcombine.high %v5388_v23, %v5388_v23  ;;  %v5404_v11 = vrot.slane %v5388_v23, %v10992_v46  ;;  %7887 = vst.sshfl [vmem:[%s11006_s14 + $0x4] sm:$0x1 pattern:$0x73625140] %v5388_v23  ;;  %v5909_v14 = vcombine.high %v3104_v58, %v3104_v58  ;;  %v6453_v44 = vcombine.high %v6451_v60, %v6451_v60 }
 0x39e   : > { %v6467_v0 = vrot.slane %v6451_v60, %v10992_v46  ;;  %v6474_v1 = vrot.slane %v6452_v7, %v10992_v46  ;;  %v6482_v6 = vcombine.high %v6460_v45, %v6460_v45  ;;  %7952 = vst.sshfl [vmem:[%s11006_s14 + $0xe] sm:$0x1 pattern:$0x73625140] %v6452_v7  ;;  %v5397_v59 = vcombine.high %v5395_v61, %v5395_v61 }
 0x39f   : > { %7953 = vst.sshfl [vmem:[%s11006_s14 + $0x26] sm:$0x1 pattern:$0x73625140] %v6451_v60  ;;  %v5411_v54 = vrot.slane %v5395_v61, %v10992_v46  ;;  %v5418_v27 = vrot.slane %v5396_v34, %v10992_v46  ;;  %v5426_v35 = vcombine.high %v5404_v11, %v5404_v11  ;;  %v6481_v8 = vrot.slane %v6453_v44, %v10992_v46 }
 0x3a0   : > { %7888 = vst.sshfl [vmem:[%s11006_s14 + $0xc] sm:$0x1 pattern:$0x73625140] %v5396_v34  ;;  %v6483_v15 = vcombine.high %v6467_v0, %v6467_v0  ;;  %v6484_v48 = vcombine.high %v6474_v1, %v6474_v1  ;;  %6895 = vst [vmem:[%s11006_s14 + $0x16] sm:$0x1] %v6482_v6  ;;  %v5916_v22 = vrot.slane %v3104_v58, %v10992_v46 }
 0x3a1   : > { %7889 = vst.sshfl [vmem:[%s11006_s14 + $0x24] sm:$0x1 pattern:$0x73625140] %v5395_v61  ;;  %v5425_v62 = vrot.slane %v5397_v59, %v10992_v46  ;;  %v5427_v36 = vcombine.high %v5411_v54, %v5411_v54  ;;  %v5428_v37 = vcombine.high %v5418_v27, %v5418_v27  ;;  %5839 = vst [vmem:[%s11006_s14 + $0x14] sm:$0x1] %v5426_v35 }
 0x3a2   : > { %7954 = vst.sshfl [vmem:[%s11006_s14 + $0x2e] sm:$0x1 pattern:$0x73625140] %v6453_v44  ;;  %v5923_v5 = vrot.slane %v5909_v14, %v10992_v46  ;;  %v6485_v4 = vcombine.high %v6481_v8, %v6481_v8  ;;  %6896 = vst [vmem:[%s11006_s14 + $0x1e] sm:$0x1] %v6484_v48  ;;  %v5924_v38 = vcombine.high %v5916_v22, %v5916_v22 }
 0x3a3   : > { %7890 = vst.sshfl [vmem:[%s11006_s14 + $0x2c] sm:$0x1 pattern:$0x73625140] %v5397_v59  ;;  %6899 = vst [vmem:[%s11006_s14 + $0x36] sm:$0x1] %v6483_v15  ;;  %v5932_v53 = vrot.slane %v5916_v22, %v10992_v46  ;;  %v6972_v16 = vrot.slane %v3217_v26, %v10992_v46  ;;  %v5429_v2 = vcombine.high %v5425_v62, %v5425_v62 }
 0x3a4   : > { %7919 = vst.sshfl [vmem:[%s11006_s14 + $0x5] sm:$0x1 pattern:$0x73625140] %v5916_v22  ;;  %5840 = vst [vmem:[%s11006_s14 + $0x1c] sm:$0x1] %v5428_v37  ;;  %v5925_v47 = vcombine.high %v5923_v5, %v5923_v5  ;;  %v5939_v32 = vrot.slane %v5923_v5, %v10992_v46  ;;  %v6979_v56 = vrot.slane %v6965_v17, %v10992_v46 }
 0x3a5   : > { %5843 = vst [vmem:[%s11006_s14 + $0x34] sm:$0x1] %v5427_v36  ;;  %7921 = vst.sshfl [vmem:[%s11006_s14 + $0x25] sm:$0x1 pattern:$0x73625140] %v5923_v5  ;;  %v5946_v19 = vrot.slane %v5924_v38, %v10992_v46  ;;  %v5954_v33 = vcombine.high %v5932_v53, %v5932_v53  ;;  %v6980_v40 = vcombine.high %v6972_v16, %v6972_v16  ;;  %v3113_v53 = vpop.f32.mrf.mxu0 }
 0x3a6   : > { %6900 = vst [vmem:[%s11006_s14 + $0x3e] sm:$0x1] %v6485_v4  ;;  %7920 = vst.sshfl [vmem:[%s11006_s14 + $0xd] sm:$0x1 pattern:$0x73625140] %v5924_v38  ;;  %v6988_v63 = vrot.slane %v6972_v16, %v10992_v46  ;;  %v5953_v39 = vrot.slane %v5925_v47, %v10992_v46  ;;  %v5955_v20 = vcombine.high %v5939_v32, %v5939_v32 }
 0x3a7   : > { %7983 = vst.sshfl [vmem:[%s11006_s14 + $0x7] sm:$0x1 pattern:$0x73625140] %v6972_v16  ;;  %5844 = vst [vmem:[%s11006_s14 + $0x3c] sm:$0x1] %v5429_v2  ;;  %v6981_v30 = vcombine.high %v6979_v56, %v6979_v56  ;;  %v6995_v25 = vrot.slane %v6979_v56, %v10992_v46  ;;  %v5956_v18 = vcombine.high %v5946_v19, %v5946_v19 }
 0x3a8   : > { %7922 = vst.sshfl [vmem:[%s11006_s14 + $0x2d] sm:$0x1 pattern:$0x73625140] %v5925_v47  ;;  %6367 = vst [vmem:[%s11006_s14 + $0x15] sm:$0x1] %v5954_v33  ;;  %v7002_v12 = vrot.slane %v6980_v40, %v10992_v46  ;;  %v7010_v51 = vcombine.high %v6988_v63, %v6988_v63  ;;  %v3108_v28 = vadd.f32 %v3107_v31, %v11035_v55 }
 0x3a9   : > { %7985 = vst.sshfl [vmem:[%s11006_s14 + $0x27] sm:$0x1 pattern:$0x73625140] %v6979_v56  ;;  %v5957_v43 = vcombine.high %v5953_v39, %v5953_v39  ;;  %6371 = vst [vmem:[%s11006_s14 + $0x35] sm:$0x1] %v5955_v20  ;;  %v7009_v10 = vrot.slane %v6981_v30, %v10992_v46  ;;  %v7011_v57 = vcombine.high %v6995_v25, %v6995_v25 }
 0x3aa   : > { %7984 = vst.sshfl [vmem:[%s11006_s14 + $0xf] sm:$0x1 pattern:$0x73625140] %v6980_v40  ;;  %v3221_v52 = vadd.f32 %v3220_v42, %v11035_v55  ;;  %6368 = vst [vmem:[%s11006_s14 + $0x1d] sm:$0x1] %v5956_v18  ;;  %v7012_v26 = vcombine.high %v7002_v12, %v7002_v12  ;;  %v5430_v24 = vcombine.high %v3108_v28, %v3108_v28  ;;  %v3226_v40 = vpop.f32.mrf.mxu1 }
 0x3ab   : > { %7986 = vst.sshfl [vmem:[%s11006_s14 + $0x2f] sm:$0x1 pattern:$0x73625140] %v6981_v30  ;;  %7423 = vst [vmem:[%s11006_s14 + $0x17] sm:$0x1] %v7010_v51  ;;  %v5437_v23 = vrot.slane %v3108_v28, %v10992_v46  ;;  %v3110_v58 = vadd.f32 %v3109_v3, %v11035_v55  ;;  %v7013_v60 = vcombine.high %v7009_v10, %v7009_v10 }
 0x3ac   : > { %6372 = vst [vmem:[%s11006_s14 + $0x3d] sm:$0x1] %v5957_v43  ;;  %7427 = vst [vmem:[%s11006_s14 + $0x37] sm:$0x1] %v7011_v57  ;;  %v6486_v7 = vcombine.high %v3221_v52, %v3221_v52  ;;  %v6493_v45 = vrot.slane %v3221_v52, %v10992_v46  ;;  %v11571_v17 = vadd.f32 %v3222_v41, %v11035_v55 }
 0x3ad   : > { %7424 = vst [vmem:[%s11006_s14 + $0x1f] sm:$0x1] %v7012_v26  ;;  %v5444_v61 = vrot.slane %v5430_v24, %v10992_v46  ;;  %v5445_v34 = vcombine.high %v5437_v23, %v5437_v23  ;;  %v5453_v11 = vrot.slane %v5437_v23, %v10992_v46  ;;  %7891 = vst.sshfl [vmem:[%s11006_s14 + $0x44] sm:$0x1 pattern:$0x73625140] %v5437_v23 }
 0x3ae   : > { %v5958_v14 = vcombine.high %v3110_v58, %v3110_v58  ;;  %7428 = vst [vmem:[%s11006_s14 + $0x3f] sm:$0x1] %v7013_v60  ;;  %v6500_v44 = vrot.slane %v6486_v7, %v10992_v46  ;;  %v6501_v0 = vcombine.high %v6493_v45, %v6493_v45  ;;  %v6509_v55 = vrot.slane %v6493_v45, %v10992_v46  ;;  %v3115_v7 = vpop.f32.mrf.mxu0 }
 0x3af   : > { %7955 = vst.sshfl [vmem:[%s11006_s14 + $0x46] sm:$0x1 pattern:$0x73625140] %v6493_v45  ;;  %v5965_v1 = vrot.slane %v3110_v58, %v10992_v46  ;;  %v5446_v6 = vcombine.high %v5444_v61, %v5444_v61  ;;  %v5460_v59 = vrot.slane %v5444_v61, %v10992_v46  ;;  %v5467_v54 = vrot.slane %v5445_v34, %v10992_v46 }
 0x3b0   : > { %v5475_v27 = vcombine.high %v5453_v11, %v5453_v11  ;;  %7892 = vst.sshfl [vmem:[%s11006_s14 + $0x4c] sm:$0x1 pattern:$0x73625140] %v5445_v34  ;;  %v6502_v35 = vcombine.high %v6500_v44, %v6500_v44  ;;  %v6516_v8 = vrot.slane %v6500_v44, %v10992_v46  ;;  %v6523_v15 = vrot.slane %v6501_v0, %v10992_v46 }
 0x3b1   : > { %7893 = vst.sshfl [vmem:[%s11006_s14 + $0x64] sm:$0x1 pattern:$0x73625140] %v5444_v61  ;;  %v6531_v48 = vcombine.high %v6509_v55, %v6509_v55  ;;  %v5474_v22 = vrot.slane %v5446_v6, %v10992_v46  ;;  %v5476_v62 = vcombine.high %v5460_v59, %v5460_v59  ;;  %v5477_v36 = vcombine.high %v5467_v54, %v5467_v54  ;;  %v3228_v54 = vpop.f32.mrf.mxu1 }
 0x3b2   : > { %7956 = vst.sshfl [vmem:[%s11006_s14 + $0x4e] sm:$0x1 pattern:$0x73625140] %v6501_v0  ;;  %5847 = vst [vmem:[%s11006_s14 + $0x54] sm:$0x1] %v5475_v27  ;;  %v5972_v37 = vrot.slane %v5958_v14, %v10992_v46  ;;  %v6530_v5 = vrot.slane %v6502_v35, %v10992_v46  ;;  %v6532_v31 = vcombine.high %v6516_v8, %v6516_v8 }
 0x3b3   : > { %7957 = vst.sshfl [vmem:[%s11006_s14 + $0x66] sm:$0x1 pattern:$0x73625140] %v6500_v44  ;;  %v6533_v4 = vcombine.high %v6523_v15, %v6523_v15  ;;  %6903 = vst [vmem:[%s11006_s14 + $0x56] sm:$0x1] %v6531_v48  ;;  %v5973_v38 = vcombine.high %v5965_v1, %v5965_v1  ;;  %v5478_v16 = vcombine.high %v5474_v22, %v5474_v22  ;;  %v3119_v48 = vpop.f32.mrf.mxu0 }
 0x3b4   : > { %7923 = vst.sshfl [vmem:[%s11006_s14 + $0x45] sm:$0x1 pattern:$0x73625140] %v5965_v1  ;;  %5848 = vst [vmem:[%s11006_s14 + $0x5c] sm:$0x1] %v5477_v36  ;;  %v5974_v42 = vcombine.high %v5972_v37, %v5972_v37  ;;  %v5981_v2 = vrot.slane %v5965_v1, %v10992_v46  ;;  %v5988_v47 = vrot.slane %v5972_v37, %v10992_v46 }
 0x3b5   : > { %7894 = vst.sshfl [vmem:[%s11006_s14 + $0x6c] sm:$0x1 pattern:$0x73625140] %v5446_v6  ;;  %5851 = vst [vmem:[%s11006_s14 + $0x74] sm:$0x1] %v5476_v62  ;;  %v6534_v32 = vcombine.high %v6530_v5, %v6530_v5  ;;  %v5995_v56 = vrot.slane %v5973_v38, %v10992_v46  ;;  %v7014_v19 = vcombine.high %v11571_v17, %v11571_v17 }
 0x3b6   : > { %7958 = vst.sshfl [vmem:[%s11006_s14 + $0x6e] sm:$0x1 pattern:$0x73625140] %v6502_v35  ;;  %6904 = vst [vmem:[%s11006_s14 + $0x5e] sm:$0x1] %v6533_v4  ;;  %v7021_v33 = vrot.slane %v11571_v17, %v10992_v46  ;;  %v6002_v63 = vrot.slane %v5974_v42, %v10992_v46  ;;  %v6003_v39 = vcombine.high %v5981_v2, %v5981_v2 }
 0x3b7   : > { %7925 = vst.sshfl [vmem:[%s11006_s14 + $0x65] sm:$0x1 pattern:$0x73625140] %v5972_v37  ;;  %6907 = vst [vmem:[%s11006_s14 + $0x76] sm:$0x1] %v6532_v31  ;;  %v6004_v20 = vcombine.high %v5988_v47, %v5988_v47  ;;  %v3114_v30 = vadd.f32 %v3113_v53, %v11091_v29  ;;  %v6005_v25 = vcombine.high %v5995_v56, %v5995_v56 }
 0x3b8   : > { %7924 = vst.sshfl [vmem:[%s11006_s14 + $0x4d] sm:$0x1 pattern:$0x73625140] %v5973_v38  ;;  %5852 = vst [vmem:[%s11006_s14 + $0x7c] sm:$0x1] %v5478_v16  ;;  %v7028_v3 = vrot.slane %v7014_v19, %v10992_v46  ;;  %v7029_v18 = vcombine.high %v7021_v33, %v7021_v33  ;;  %v7037_v12 = vrot.slane %v7021_v33, %v10992_v46 }
 0x3b9   : > { %7926 = vst.sshfl [vmem:[%s11006_s14 + $0x6d] sm:$0x1 pattern:$0x73625140] %v5974_v42  ;;  %6908 = vst [vmem:[%s11006_s14 + $0x7e] sm:$0x1] %v6534_v32  ;;  %v6006_v51 = vcombine.high %v6002_v63, %v6002_v63  ;;  %v5479_v28 = vcombine.high %v3114_v30, %v3114_v30  ;;  %v5486_v41 = vrot.slane %v3114_v30, %v10992_v46 }
 0x3ba   : > { %7987 = vst.sshfl [vmem:[%s11006_s14 + $0x47] sm:$0x1 pattern:$0x73625140] %v7021_v33  ;;  %6375 = vst [vmem:[%s11006_s14 + $0x55] sm:$0x1] %v6003_v39  ;;  %v3227_v43 = vadd.f32 %v3226_v40, %v11091_v29  ;;  %v7030_v10 = vcombine.high %v7028_v3, %v7028_v3  ;;  %v7044_v57 = vrot.slane %v7028_v3, %v10992_v46 }
 0x3bb   : > { %6379 = vst [vmem:[%s11006_s14 + $0x75] sm:$0x1] %v6004_v20  ;;  %6376 = vst [vmem:[%s11006_s14 + $0x5d] sm:$0x1] %v6005_v25  ;;  %v7051_v52 = vrot.slane %v7029_v18, %v10992_v46  ;;  %v7059_v26 = vcombine.high %v7037_v12, %v7037_v12  ;;  %v5493_v24 = vrot.slane %v5479_v28, %v10992_v46 }
 0x3bc   : > { %7988 = vst.sshfl [vmem:[%s11006_s14 + $0x4f] sm:$0x1 pattern:$0x73625140] %v7029_v18  ;;  %6380 = vst [vmem:[%s11006_s14 + $0x7d] sm:$0x1] %v6006_v51  ;;  %v5494_v23 = vcombine.high %v5486_v41, %v5486_v41  ;;  %v5502_v58 = vrot.slane %v5486_v41, %v10992_v46  ;;  %v6535_v60 = vcombine.high %v3227_v43, %v3227_v43 }
 0x3bd   : > { %7989 = vst.sshfl [vmem:[%s11006_s14 + $0x67] sm:$0x1 pattern:$0x73625140] %v7028_v3  ;;  %v7058_v45 = vrot.slane %v7030_v10, %v10992_v46  ;;  %v7060_v17 = vcombine.high %v7044_v57, %v7044_v57  ;;  %v7061_v61 = vcombine.high %v7051_v52, %v7051_v52  ;;  %7431 = vst [vmem:[%s11006_s14 + $0x57] sm:$0x1] %v7059_v26  ;;  %v3232_v3 = vpop.f32.mrf.mxu1 }
 0x3be   : > { %7895 = vst.sshfl [vmem:[%s11006_s14 + $0x84] sm:$0x1 pattern:$0x73625140] %v5486_v41  ;;  %v6542_v34 = vrot.slane %v3227_v43, %v10992_v46  ;;  %v5495_v11 = vcombine.high %v5493_v24, %v5493_v24  ;;  %v5509_v14 = vrot.slane %v5493_v24, %v10992_v46  ;;  %v5516_v44 = vrot.slane %v5494_v23, %v10992_v46  ;;  %v3121_v41 = vpop.f32.mrf.mxu0 }
 0x3bf   : > { %7990 = vst.sshfl [vmem:[%s11006_s14 + $0x6f] sm:$0x1 pattern:$0x73625140] %v7030_v10  ;;  %v5524_v0 = vcombine.high %v5502_v58, %v5502_v58  ;;  %v7062_v55 = vcombine.high %v7058_v45, %v7058_v45  ;;  %7432 = vst [vmem:[%s11006_s14 + $0x5f] sm:$0x1] %v7061_v61  ;;  %v6549_v1 = vrot.slane %v6535_v60, %v10992_v46  ;;  %v3234_v61 = vpop.f32.mrf.mxu1 }
 0x3c0   : > { %7896 = vst.sshfl [vmem:[%s11006_s14 + $0x8c] sm:$0x1 pattern:$0x73625140] %v5494_v23  ;;  %7435 = vst [vmem:[%s11006_s14 + $0x77] sm:$0x1] %v7060_v17  ;;  %v6550_v6 = vcombine.high %v6542_v34, %v6542_v34  ;;  %v6558_v59 = vrot.slane %v6542_v34, %v10992_v46  ;;  %v5523_v27 = vrot.slane %v5495_v11, %v10992_v46 }
 0x3c1   : > { %7897 = vst.sshfl [vmem:[%s11006_s14 + $0xa4] sm:$0x1 pattern:$0x73625140] %v5493_v24  ;;  %v5525_v35 = vcombine.high %v5509_v14, %v5509_v14  ;;  %v5526_v8 = vcombine.high %v5516_v44, %v5516_v44  ;;  %5855 = vst [vmem:[%s11006_s14 + $0x94] sm:$0x1] %v5524_v0  ;;  %v3116_v15 = vadd.f32 %v3115_v7, %v11091_v29  ;;  %v3125_v0 = vpop.f32.mrf.mxu0 }
 0x3c2   : > { %7959 = vst.sshfl [vmem:[%s11006_s14 + $0x86] sm:$0x1 pattern:$0x73625140] %v6542_v34  ;;  %7436 = vst [vmem:[%s11006_s14 + $0x7f] sm:$0x1] %v7062_v55  ;;  %v6551_v22 = vcombine.high %v6549_v1, %v6549_v1  ;;  %v6565_v62 = vrot.slane %v6549_v1, %v10992_v46  ;;  %v6572_v36 = vrot.slane %v6550_v6, %v10992_v46 }
 0x3c3   : > { %7898 = vst.sshfl [vmem:[%s11006_s14 + $0xac] sm:$0x1 pattern:$0x73625140] %v5495_v11  ;;  %v6580_v37 = vcombine.high %v6558_v59, %v6558_v59  ;;  %v5527_v5 = vcombine.high %v5523_v27, %v5523_v27  ;;  %5856 = vst [vmem:[%s11006_s14 + $0x9c] sm:$0x1] %v5526_v8  ;;  %v6007_v31 = vcombine.high %v3116_v15, %v3116_v15 }
 0x3c4   : > { %7960 = vst.sshfl [vmem:[%s11006_s14 + $0x8e] sm:$0x1 pattern:$0x73625140] %v6550_v6  ;;  %5859 = vst [vmem:[%s11006_s14 + $0xb4] sm:$0x1] %v5525_v35  ;;  %v6014_v4 = vrot.slane %v3116_v15, %v10992_v46  ;;  %v3229_v38 = vadd.f32 %v3228_v54, %v11091_v29  ;;  %v6579_v53 = vrot.slane %v6551_v22, %v10992_v46 }
 0x3c5   : > { %7961 = vst.sshfl [vmem:[%s11006_s14 + $0xa6] sm:$0x1 pattern:$0x73625140] %v6549_v1  ;;  %v6581_v16 = vcombine.high %v6565_v62, %v6565_v62  ;;  %v6582_v42 = vcombine.high %v6572_v36, %v6572_v36  ;;  %6911 = vst [vmem:[%s11006_s14 + $0x96] sm:$0x1] %v6580_v37  ;;  %v3120_v2 = vadd.f32 %v3119_v48, %v11163_v21 }
 0x3c6   : > { %7962 = vst.sshfl [vmem:[%s11006_s14 + $0xae] sm:$0x1 pattern:$0x73625140] %v6551_v22  ;;  %5860 = vst [vmem:[%s11006_s14 + $0xbc] sm:$0x1] %v5527_v5  ;;  %v6021_v47 = vrot.slane %v6007_v31, %v10992_v46  ;;  %v6022_v32 = vcombine.high %v6014_v4, %v6014_v4  ;;  %v6030_v56 = vrot.slane %v6014_v4, %v10992_v46 }
 0x3c7   : > { %7927 = vst.sshfl [vmem:[%s11006_s14 + $0x85] sm:$0x1 pattern:$0x73625140] %v6014_v4  ;;  %v7063_v19 = vcombine.high %v3229_v38, %v3229_v38  ;;  %v6583_v29 = vcombine.high %v6579_v53, %v6579_v53  ;;  %6912 = vst [vmem:[%s11006_s14 + $0x9e] sm:$0x1] %v6582_v42  ;;  %v7070_v33 = vrot.slane %v3229_v38, %v10992_v46 }
 0x3c8   : > { %6915 = vst [vmem:[%s11006_s14 + $0xb6] sm:$0x1] %v6581_v16  ;;  %v5528_v40 = vcombine.high %v3120_v2, %v3120_v2  ;;  %v5535_v63 = vrot.slane %v3120_v2, %v10992_v46  ;;  %v6023_v39 = vcombine.high %v6021_v47, %v6021_v47  ;;  %v6037_v20 = vrot.slane %v6021_v47, %v10992_v46 }
 0x3c9   : > { %v6044_v30 = vrot.slane %v6022_v32, %v10992_v46  ;;  %v6052_v25 = vcombine.high %v6030_v56, %v6030_v56  ;;  %7928 = vst.sshfl [vmem:[%s11006_s14 + $0x8d] sm:$0x1 pattern:$0x73625140] %v6022_v32  ;;  %6916 = vst [vmem:[%s11006_s14 + $0xbe] sm:$0x1] %v6583_v29  ;;  %v7077_v18 = vrot.slane %v7063_v19, %v10992_v46 }
 0x3ca   : > { %7929 = vst.sshfl [vmem:[%s11006_s14 + $0xa5] sm:$0x1 pattern:$0x73625140] %v6021_v47  ;;  %v7078_v12 = vcombine.high %v7070_v33, %v7070_v33  ;;  %v7086_v51 = vrot.slane %v7070_v33, %v10992_v46  ;;  %v5542_v28 = vrot.slane %v5528_v40, %v10992_v46  ;;  %v6051_v43 = vrot.slane %v6023_v39, %v10992_v46 }
 0x3cb   : > { %7991 = vst.sshfl [vmem:[%s11006_s14 + $0x87] sm:$0x1 pattern:$0x73625140] %v7070_v33  ;;  %v6053_v10 = vcombine.high %v6037_v20, %v6037_v20  ;;  %v6054_v57 = vcombine.high %v6044_v30, %v6044_v30  ;;  %6383 = vst [vmem:[%s11006_s14 + $0x95] sm:$0x1] %v6052_v25  ;;  %v5543_v52 = vcombine.high %v5535_v63, %v5535_v63 }
 0x3cc   : > { %7899 = vst.sshfl [vmem:[%s11006_s14 + $0xc4] sm:$0x1 pattern:$0x73625140] %v5535_v63  ;;  %v7079_v26 = vcombine.high %v7077_v18, %v7077_v18  ;;  %v7093_v24 = vrot.slane %v7077_v18, %v10992_v46  ;;  %v7100_v23 = vrot.slane %v7078_v12, %v10992_v46  ;;  %v7108_v58 = vcombine.high %v7086_v51, %v7086_v51 }
 0x3cd   : > { %7930 = vst.sshfl [vmem:[%s11006_s14 + $0xad] sm:$0x1 pattern:$0x73625140] %v6023_v39  ;;  %v6055_v60 = vcombine.high %v6051_v43, %v6051_v43  ;;  %6384 = vst [vmem:[%s11006_s14 + $0x9d] sm:$0x1] %v6054_v57  ;;  %v5544_v7 = vcombine.high %v5542_v28, %v5542_v28  ;;  %v5551_v45 = vrot.slane %v5535_v63, %v10992_v46 }
 0x3ce   : > { %7992 = vst.sshfl [vmem:[%s11006_s14 + $0x8f] sm:$0x1 pattern:$0x73625140] %v7078_v12  ;;  %6387 = vst [vmem:[%s11006_s14 + $0xb5] sm:$0x1] %v6053_v10  ;;  %v5558_v17 = vrot.slane %v5542_v28, %v10992_v46  ;;  %v7107_v34 = vrot.slane %v7079_v26, %v10992_v46  ;;  %v7109_v11 = vcombine.high %v7093_v24, %v7093_v24 }
 0x3cf   : > { %7993 = vst.sshfl [vmem:[%s11006_s14 + $0xa7] sm:$0x1 pattern:$0x73625140] %v7077_v18  ;;  %v7110_v14 = vcombine.high %v7100_v23, %v7100_v23  ;;  %7439 = vst [vmem:[%s11006_s14 + $0x97] sm:$0x1] %v7108_v58  ;;  %v5565_v44 = vrot.slane %v5543_v52, %v10992_v46  ;;  %v5572_v55 = vrot.slane %v5544_v7, %v10992_v46  ;;  %v3238_v18 = vpop.f32.mrf.mxu1 }
 0x3d0   : > { %7901 = vst.sshfl [vmem:[%s11006_s14 + $0xe4] sm:$0x1 pattern:$0x73625140] %v5542_v28  ;;  %6388 = vst [vmem:[%s11006_s14 + $0xbd] sm:$0x1] %v6055_v60  ;;  %v5573_v1 = vcombine.high %v5551_v45, %v5551_v45  ;;  %v5574_v6 = vcombine.high %v5558_v17, %v5558_v17  ;;  %v3233_v59 = vadd.f32 %v3232_v3, %v11163_v21  ;;  %v3127_v60 = vpop.f32.mrf.mxu0 }
 0x3d1   : > { %7900 = vst.sshfl [vmem:[%s11006_s14 + $0xcc] sm:$0x1 pattern:$0x73625140] %v5543_v52  ;;  %v7111_v54 = vcombine.high %v7107_v34, %v7107_v34  ;;  %7440 = vst [vmem:[%s11006_s14 + $0x9f] sm:$0x1] %v7110_v14  ;;  %v5575_v27 = vcombine.high %v5565_v44, %v5565_v44  ;;  %v3122_v35 = vadd.f32 %v3121_v41, %v11163_v21  ;;  %v3240_v34 = vpop.f32.mrf.mxu1 }
 0x3d2   : > { %7994 = vst.sshfl [vmem:[%s11006_s14 + $0xaf] sm:$0x1 pattern:$0x73625140] %v7079_v26  ;;  %7443 = vst [vmem:[%s11006_s14 + $0xb7] sm:$0x1] %v7109_v11  ;;  %v3235_v8 = vadd.f32 %v3234_v61, %v11163_v21  ;;  %v5576_v15 = vcombine.high %v5572_v55, %v5572_v55  ;;  %v6584_v48 = vcombine.high %v3233_v59, %v3233_v59 }
 0x3d3   : > { %7902 = vst.sshfl [vmem:[%s11006_s14 + $0xec] sm:$0x1 pattern:$0x73625140] %v5544_v7  ;;  %5863 = vst [vmem:[%s11006_s14 + $0xd4] sm:$0x1] %v5573_v1  ;;  %v6591_v22 = vrot.slane %v3233_v59, %v10992_v46  ;;  %v3126_v62 = vadd.f32 %v3125_v0, %v11226_v49  ;;  %v6056_v36 = vcombine.high %v3122_v35, %v3122_v35 }
 0x3d4   : > { %5867 = vst [vmem:[%s11006_s14 + $0xf4] sm:$0x1] %v5574_v6  ;;  %7444 = vst [vmem:[%s11006_s14 + $0xbf] sm:$0x1] %v7111_v54  ;;  %v6063_v37 = vrot.slane %v3122_v35, %v10992_v46  ;;  %v7112_v5 = vcombine.high %v3235_v8, %v3235_v8  ;;  %v7119_v31 = vrot.slane %v3235_v8, %v10992_v46 }
 0x3d5   : > { %5864 = vst [vmem:[%s11006_s14 + $0xdc] sm:$0x1] %v5575_v27  ;;  %5868 = vst [vmem:[%s11006_s14 + $0xfc] sm:$0x1] %v5576_v15  ;;  %v6598_v21 = vrot.slane %v6584_v48, %v10992_v46  ;;  %v6599_v4 = vcombine.high %v6591_v22, %v6591_v22  ;;  %v6607_v38 = vrot.slane %v6591_v22, %v10992_v46 }
 0x3d6   : > { %7963 = vst.sshfl [vmem:[%s11006_s14 + $0xc6] sm:$0x1 pattern:$0x73625140] %v6591_v22  ;;  %v5577_v53 = vcombine.high %v3126_v62, %v3126_v62  ;;  %v6070_v16 = vrot.slane %v6056_v36, %v10992_v46  ;;  %v6071_v42 = vcombine.high %v6063_v37, %v6063_v37  ;;  %v6079_v2 = vrot.slane %v6063_v37, %v10992_v46 }
 0x3d7   : > { %7931 = vst.sshfl [vmem:[%s11006_s14 + $0xc5] sm:$0x1 pattern:$0x73625140] %v6063_v37  ;;  %v7126_v47 = vrot.slane %v7112_v5, %v10992_v46  ;;  %v6600_v32 = vcombine.high %v6598_v21, %v6598_v21  ;;  %v6614_v56 = vrot.slane %v6598_v21, %v10992_v46  ;;  %v6621_v19 = vrot.slane %v6599_v4, %v10992_v46 }
 0x3d8   : > { %7995 = vst.sshfl [vmem:[%s11006_s14 + $0xc7] sm:$0x1 pattern:$0x73625140] %v7119_v31  ;;  %v6629_v29 = vcombine.high %v6607_v38, %v6607_v38  ;;  %v6072_v33 = vcombine.high %v6070_v16, %v6070_v16  ;;  %v6086_v40 = vrot.slane %v6070_v16, %v10992_v46  ;;  %v6093_v63 = vrot.slane %v6071_v42, %v10992_v46 }
 0x3d9   : > { %7964 = vst.sshfl [vmem:[%s11006_s14 + $0xce] sm:$0x1 pattern:$0x73625140] %v6599_v4  ;;  %v6101_v39 = vcombine.high %v6079_v2, %v6079_v2  ;;  %v6628_v20 = vrot.slane %v6600_v32, %v10992_v46  ;;  %v6630_v30 = vcombine.high %v6614_v56, %v6614_v56  ;;  %v6631_v25 = vcombine.high %v6621_v19, %v6621_v19 }
 0x3da   : > { %7965 = vst.sshfl [vmem:[%s11006_s14 + $0xe6] sm:$0x1 pattern:$0x73625140] %v6598_v21  ;;  %6919 = vst [vmem:[%s11006_s14 + $0xd6] sm:$0x1] %v6629_v29  ;;  %v7127_v3 = vcombine.high %v7119_v31, %v7119_v31  ;;  %v6100_v12 = vrot.slane %v6072_v33, %v10992_v46  ;;  %v6102_v51 = vcombine.high %v6086_v40, %v6086_v40 }
 0x3db   : > { %7932 = vst.sshfl [vmem:[%s11006_s14 + $0xcd] sm:$0x1 pattern:$0x73625140] %v6071_v42  ;;  %v6103_v28 = vcombine.high %v6093_v63, %v6093_v63  ;;  %6391 = vst [vmem:[%s11006_s14 + $0xd5] sm:$0x1] %v6101_v39  ;;  %v7128_v41 = vcombine.high %v7126_v47, %v7126_v47  ;;  %v6632_v43 = vcombine.high %v6628_v20, %v6628_v20 }
 0x3dc   : > { %7933 = vst.sshfl [vmem:[%s11006_s14 + $0xe5] sm:$0x1 pattern:$0x73625140] %v6070_v16  ;;  %6920 = vst [vmem:[%s11006_s14 + $0xde] sm:$0x1] %v6631_v25  ;;  %v7135_v10 = vrot.slane %v7119_v31, %v10992_v46  ;;  %v7142_v57 = vrot.slane %v7126_v47, %v10992_v46  ;;  %v7149_v52 = vrot.slane %v7127_v3, %v10992_v46 }
 0x3dd   : > { %7997 = vst.sshfl [vmem:[%s11006_s14 + $0xe7] sm:$0x1 pattern:$0x73625140] %v7126_v47  ;;  %6923 = vst [vmem:[%s11006_s14 + $0xf6] sm:$0x1] %v6630_v30  ;;  %v6104_v26 = vcombine.high %v6100_v12, %v6100_v12  ;;  %v7156_v24 = vrot.slane %v7128_v41, %v10992_v46  ;;  %v5584_v23 = vrot.slane %v3126_v62, %v10992_v46  ;;  %v3131_v47 = vpop.f32.mrf.mxu0 }
 0x3de   : > { %7966 = vst.sshfl [vmem:[%s11006_s14 + $0xee] sm:$0x1 pattern:$0x73625140] %v6600_v32  ;;  %6392 = vst [vmem:[%s11006_s14 + $0xdd] sm:$0x1] %v6103_v28  ;;  %v5591_v58 = vrot.slane %v5577_v53, %v10992_v46  ;;  %v7157_v7 = vcombine.high %v7135_v10, %v7135_v10  ;;  %v7158_v45 = vcombine.high %v7142_v57, %v7142_v57 }
 0x3df   : > { %7934 = vst.sshfl [vmem:[%s11006_s14 + $0xed] sm:$0x1 pattern:$0x73625140] %v6072_v33  ;;  %6395 = vst [vmem:[%s11006_s14 + $0xf5] sm:$0x1] %v6102_v51  ;;  %v7159_v17 = vcombine.high %v7149_v52, %v7149_v52  ;;  %v3239_v61 = vadd.f32 %v3238_v18, %v11226_v49  ;;  %v7160_v11 = vcombine.high %v7156_v24, %v7156_v24  ;;  %v3244_v18 = vpop.f32.mrf.mxu1 }
 0x3e0   : > { %7996 = vst.sshfl [vmem:[%s11006_s14 + $0xcf] sm:$0x1 pattern:$0x73625140] %v7127_v3  ;;  %6924 = vst [vmem:[%s11006_s14 + $0xfe] sm:$0x1] %v6632_v43  ;;  %v5592_v14 = vcombine.high %v5584_v23, %v5584_v23  ;;  %v5593_v44 = vcombine.high %v5591_v58, %v5591_v58  ;;  %v5600_v0 = vrot.slane %v5584_v23, %v10992_v46  ;;  %v3133_v43 = vpop.f32.mrf.mxu0 }
 0x3e1   : > { %7998 = vst.sshfl [vmem:[%s11006_s14 + $0xef] sm:$0x1 pattern:$0x73625140] %v7128_v41  ;;  %6396 = vst [vmem:[%s11006_s14 + $0xfd] sm:$0x1] %v6104_v26  ;;  %v5607_v55 = vrot.slane %v5591_v58, %v10992_v46  ;;  %v6633_v1 = vcombine.high %v3239_v61, %v3239_v61  ;;  %v6640_v6 = vrot.slane %v3239_v61, %v10992_v46 }
 0x3e2   : > { %7903 = vst.sshfl [vmem:[%s11006_s14 + $0x104] sm:$0x1 pattern:$0x73625140] %v5584_v23  ;;  %7447 = vst [vmem:[%s11006_s14 + $0xd7] sm:$0x1] %v7157_v7  ;;  %v3128_v59 = vadd.f32 %v3127_v60, %v11226_v49  ;;  %v5614_v54 = vrot.slane %v5592_v14, %v10992_v46  ;;  %v5621_v27 = vrot.slane %v5593_v44, %v10992_v46 }
 0x3e3   : > { %7905 = vst.sshfl [vmem:[%s11006_s14 + $0x124] sm:$0x1 pattern:$0x73625140] %v5591_v58  ;;  %7448 = vst [vmem:[%s11006_s14 + $0xdf] sm:$0x1] %v7159_v17  ;;  %v5622_v35 = vcombine.high %v5600_v0, %v5600_v0  ;;  %v3241_v8 = vadd.f32 %v3240_v34, %v11226_v49  ;;  %v5623_v15 = vcombine.high %v5607_v55, %v5607_v55 }
 0x3e4   : > { %7451 = vst [vmem:[%s11006_s14 + $0xf7] sm:$0x1] %v7158_v45  ;;  %7452 = vst [vmem:[%s11006_s14 + $0xff] sm:$0x1] %v7160_v11  ;;  %v6647_v48 = vrot.slane %v6633_v1, %v10992_v46  ;;  %v6648_v22 = vcombine.high %v6640_v6, %v6640_v6  ;;  %v6656_v62 = vrot.slane %v6640_v6, %v10992_v46 }
 0x3e5   : > { %7904 = vst.sshfl [vmem:[%s11006_s14 + $0x10c] sm:$0x1 pattern:$0x73625140] %v5592_v14  ;;  %v5624_v36 = vcombine.high %v5614_v54, %v5614_v54  ;;  %v5625_v37 = vcombine.high %v5621_v27, %v5621_v27  ;;  %5871 = vst [vmem:[%s11006_s14 + $0x114] sm:$0x1] %v5622_v35  ;;  %v6105_v5 = vcombine.high %v3128_v59, %v3128_v59 }
 0x3e6   : > { %7906 = vst.sshfl [vmem:[%s11006_s14 + $0x12c] sm:$0x1 pattern:$0x73625140] %v5593_v44  ;;  %v6112_v31 = vrot.slane %v3128_v59, %v10992_v46  ;;  %5875 = vst [vmem:[%s11006_s14 + $0x134] sm:$0x1] %v5623_v15  ;;  %v6649_v49 = vcombine.high %v6647_v48, %v6647_v48  ;;  %v6663_v21 = vrot.slane %v6647_v48, %v10992_v46 }
 0x3e7   : > { %7967 = vst.sshfl [vmem:[%s11006_s14 + $0x106] sm:$0x1 pattern:$0x73625140] %v6640_v6  ;;  %v6670_v4 = vrot.slane %v6648_v22, %v10992_v46  ;;  %v6678_v38 = vcombine.high %v6656_v62, %v6656_v62  ;;  %5872 = vst [vmem:[%s11006_s14 + $0x11c] sm:$0x1] %v5624_v36  ;;  %v6119_v53 = vrot.slane %v6105_v5, %v10992_v46  ;;  %v3137_v36 = vpop.f32.mrf.mxu0 }
 0x3e8   : > { %7968 = vst.sshfl [vmem:[%s11006_s14 + $0x10e] sm:$0x1 pattern:$0x73625140] %v6648_v22  ;;  %5876 = vst [vmem:[%s11006_s14 + $0x13c] sm:$0x1] %v5625_v37  ;;  %v6120_v16 = vcombine.high %v6112_v31, %v6112_v31  ;;  %v6128_v42 = vrot.slane %v6112_v31, %v10992_v46  ;;  %v7161_v2 = vcombine.high %v3241_v8, %v3241_v8 }
 0x3e9   : > { %7969 = vst.sshfl [vmem:[%s11006_s14 + $0x126] sm:$0x1 pattern:$0x73625140] %v6647_v48  ;;  %v6677_v32 = vrot.slane %v6649_v49, %v10992_v46  ;;  %v6679_v56 = vcombine.high %v6663_v21, %v6663_v21  ;;  %v6680_v19 = vcombine.high %v6670_v4, %v6670_v4  ;;  %6927 = vst [vmem:[%s11006_s14 + $0x116] sm:$0x1] %v6678_v38 }
 0x3ea   : > { %7935 = vst.sshfl [vmem:[%s11006_s14 + $0x105] sm:$0x1 pattern:$0x73625140] %v6112_v31  ;;  %v7168_v29 = vrot.slane %v3241_v8, %v10992_v46  ;;  %v6121_v33 = vcombine.high %v6119_v53, %v6119_v53  ;;  %v6135_v40 = vrot.slane %v6119_v53, %v10992_v46  ;;  %v6142_v63 = vrot.slane %v6120_v16, %v10992_v46  ;;  %v3246_v8 = vpop.f32.mrf.mxu1 }
 0x3eb   : > { %7970 = vst.sshfl [vmem:[%s11006_s14 + $0x12e] sm:$0x1 pattern:$0x73625140] %v6649_v49  ;;  %v6150_v39 = vcombine.high %v6128_v42, %v6128_v42  ;;  %v6681_v20 = vcombine.high %v6677_v32, %v6677_v32  ;;  %6928 = vst [vmem:[%s11006_s14 + $0x11e] sm:$0x1] %v6680_v19  ;;  %v7175_v30 = vrot.slane %v7161_v2, %v10992_v46 }
 0x3ec   : > { %7936 = vst.sshfl [vmem:[%s11006_s14 + $0x10d] sm:$0x1 pattern:$0x73625140] %v6120_v16  ;;  %6931 = vst [vmem:[%s11006_s14 + $0x136] sm:$0x1] %v6679_v56  ;;  %v7176_v25 = vcombine.high %v7168_v29, %v7168_v29  ;;  %v7184_v3 = vrot.slane %v7168_v29, %v10992_v46  ;;  %v6149_v12 = vrot.slane %v6121_v33, %v10992_v46  ;;  %v3250_v32 = vpop.f32.mrf.mxu1 }
 0x3ed   : > { %7937 = vst.sshfl [vmem:[%s11006_s14 + $0x125] sm:$0x1 pattern:$0x73625140] %v6119_v53  ;;  %v6151_v51 = vcombine.high %v6135_v40, %v6135_v40  ;;  %v6152_v28 = vcombine.high %v6142_v63, %v6142_v63  ;;  %6399 = vst [vmem:[%s11006_s14 + $0x115] sm:$0x1] %v6150_v39  ;;  %v3132_v41 = vadd.f32 %v3131_v47, %v11286_v50  ;;  %v3139_v40 = vpop.f32.mrf.mxu0 }
 0x3ee   : > { %7999 = vst.sshfl [vmem:[%s11006_s14 + $0x107] sm:$0x1 pattern:$0x73625140] %v7168_v29  ;;  %6932 = vst [vmem:[%s11006_s14 + $0x13e] sm:$0x1] %v6681_v20  ;;  %v7177_v10 = vcombine.high %v7175_v30, %v7175_v30  ;;  %v7191_v57 = vrot.slane %v7175_v30, %v10992_v46  ;;  %v7198_v52 = vrot.slane %v7176_v25, %v10992_v46 }
 0x3ef   : > { %7938 = vst.sshfl [vmem:[%s11006_s14 + $0x12d] sm:$0x1 pattern:$0x73625140] %v6121_v33  ;;  %v7206_v26 = vcombine.high %v7184_v3, %v7184_v3  ;;  %v6153_v24 = vcombine.high %v6149_v12, %v6149_v12  ;;  %6400 = vst [vmem:[%s11006_s14 + $0x11d] sm:$0x1] %v6152_v28  ;;  %v5626_v23 = vcombine.high %v3132_v41, %v3132_v41 }
 0x3f0   : > { %8000 = vst.sshfl [vmem:[%s11006_s14 + $0x10f] sm:$0x1 pattern:$0x73625140] %v7176_v25  ;;  %6403 = vst [vmem:[%s11006_s14 + $0x135] sm:$0x1] %v6151_v51  ;;  %v5633_v58 = vrot.slane %v3132_v41, %v10992_v46  ;;  %v3245_v60 = vadd.f32 %v3244_v18, %v11286_v50  ;;  %v7205_v7 = vrot.slane %v7177_v10, %v10992_v46 }
 0x3f1   : > { %8001 = vst.sshfl [vmem:[%s11006_s14 + $0x127] sm:$0x1 pattern:$0x73625140] %v7175_v30  ;;  %v7207_v45 = vcombine.high %v7191_v57, %v7191_v57  ;;  %v7208_v17 = vcombine.high %v7198_v52, %v7198_v52  ;;  %7455 = vst [vmem:[%s11006_s14 + $0x117] sm:$0x1] %v7206_v26  ;;  %v3134_v61 = vadd.f32 %v3133_v43, %v11286_v50 }
 0x3f2   : > { %8002 = vst.sshfl [vmem:[%s11006_s14 + $0x12f] sm:$0x1 pattern:$0x73625140] %v7177_v10  ;;  %6404 = vst [vmem:[%s11006_s14 + $0x13d] sm:$0x1] %v6153_v24  ;;  %v5640_v34 = vrot.slane %v5626_v23, %v10992_v46  ;;  %v5641_v11 = vcombine.high %v5633_v58, %v5633_v58  ;;  %v5649_v14 = vrot.slane %v5633_v58, %v10992_v46 }
 0x3f3   : > { %7907 = vst.sshfl [vmem:[%s11006_s14 + $0x144] sm:$0x1 pattern:$0x73625140] %v5633_v58  ;;  %v6682_v44 = vcombine.high %v3245_v60, %v3245_v60  ;;  %v7209_v0 = vcombine.high %v7205_v7, %v7205_v7  ;;  %7456 = vst [vmem:[%s11006_s14 + $0x11f] sm:$0x1] %v7208_v17  ;;  %v6689_v55 = vrot.slane %v3245_v60, %v10992_v46 }
 0x3f4   : > { %7459 = vst [vmem:[%s11006_s14 + $0x137] sm:$0x1] %v7207_v45  ;;  %v6154_v1 = vcombine.high %v3134_v61, %v3134_v61  ;;  %v6161_v6 = vrot.slane %v3134_v61, %v10992_v46  ;;  %v5642_v59 = vcombine.high %v5640_v34, %v5640_v34  ;;  %v5656_v54 = vrot.slane %v5640_v34, %v10992_v46 }
 0x3f5   : > { %v5663_v27 = vrot.slane %v5641_v11, %v10992_v46  ;;  %v5671_v35 = vcombine.high %v5649_v14, %v5649_v14  ;;  %7908 = vst.sshfl [vmem:[%s11006_s14 + $0x14c] sm:$0x1 pattern:$0x73625140] %v5641_v11  ;;  %7460 = vst [vmem:[%s11006_s14 + $0x13f] sm:$0x1] %v7209_v0  ;;  %v6696_v15 = vrot.slane %v6682_v44, %v10992_v46 }
 0x3f6   : > { %7909 = vst.sshfl [vmem:[%s11006_s14 + $0x164] sm:$0x1 pattern:$0x73625140] %v5640_v34  ;;  %v6697_v48 = vcombine.high %v6689_v55, %v6689_v55  ;;  %v6705_v22 = vrot.slane %v6689_v55, %v10992_v46  ;;  %v6168_v62 = vrot.slane %v6154_v1, %v10992_v46  ;;  %v5670_v37 = vrot.slane %v5642_v59, %v10992_v46 }
 0x3f7   : > { %7971 = vst.sshfl [vmem:[%s11006_s14 + $0x146] sm:$0x1 pattern:$0x73625140] %v6689_v55  ;;  %v5672_v5 = vcombine.high %v5656_v54, %v5656_v54  ;;  %v5673_v31 = vcombine.high %v5663_v27, %v5663_v27  ;;  %5879 = vst [vmem:[%s11006_s14 + $0x154] sm:$0x1] %v5671_v35  ;;  %v6169_v49 = vcombine.high %v6161_v6, %v6161_v6  ;;  %v3252_v35 = vpop.f32.mrf.mxu1 }
 0x3f8   : > { %7939 = vst.sshfl [vmem:[%s11006_s14 + $0x145] sm:$0x1 pattern:$0x73625140] %v6161_v6  ;;  %v6698_v21 = vcombine.high %v6696_v15, %v6696_v15  ;;  %v6712_v4 = vrot.slane %v6696_v15, %v10992_v46  ;;  %v6719_v38 = vrot.slane %v6697_v48, %v10992_v46  ;;  %v6727_v53 = vcombine.high %v6705_v22, %v6705_v22 }
 0x3f9   : > { %7910 = vst.sshfl [vmem:[%s11006_s14 + $0x16c] sm:$0x1 pattern:$0x73625140] %v5642_v59  ;;  %v5674_v16 = vcombine.high %v5670_v37, %v5670_v37  ;;  %5880 = vst [vmem:[%s11006_s14 + $0x15c] sm:$0x1] %v5673_v31  ;;  %v6170_v42 = vcombine.high %v6168_v62, %v6168_v62  ;;  %v6177_v2 = vrot.slane %v6161_v6, %v10992_v46 }
 0x3fa   : > { %7972 = vst.sshfl [vmem:[%s11006_s14 + $0x14e] sm:$0x1 pattern:$0x73625140] %v6697_v48  ;;  %5883 = vst [vmem:[%s11006_s14 + $0x174] sm:$0x1] %v5672_v5  ;;  %v6184_v47 = vrot.slane %v6168_v62, %v10992_v46  ;;  %v6726_v56 = vrot.slane %v6698_v21, %v10992_v46  ;;  %v6728_v19 = vcombine.high %v6712_v4, %v6712_v4 }
 0x3fb   : > { %7973 = vst.sshfl [vmem:[%s11006_s14 + $0x166] sm:$0x1 pattern:$0x73625140] %v6696_v15  ;;  %v6729_v29 = vcombine.high %v6719_v38, %v6719_v38  ;;  %6935 = vst [vmem:[%s11006_s14 + $0x156] sm:$0x1] %v6727_v53  ;;  %v6191_v33 = vrot.slane %v6169_v49, %v10992_v46  ;;  %v6198_v63 = vrot.slane %v6170_v42, %v10992_v46  ;;  %v3143_v38 = vpop.f32.mrf.mxu0 }
 0x3fc   : > { %7941 = vst.sshfl [vmem:[%s11006_s14 + $0x165] sm:$0x1 pattern:$0x73625140] %v6168_v62  ;;  %5884 = vst [vmem:[%s11006_s14 + $0x17c] sm:$0x1] %v5674_v16  ;;  %v6199_v39 = vcombine.high %v6177_v2, %v6177_v2  ;;  %v6200_v20 = vcombine.high %v6184_v47, %v6184_v47  ;;  %v3247_v30 = vadd.f32 %v3246_v8, %v11286_v50  ;;  %v3256_v47 = vpop.f32.mrf.mxu1 }
 0x3fd   : > { %7940 = vst.sshfl [vmem:[%s11006_s14 + $0x14d] sm:$0x1 pattern:$0x73625140] %v6169_v49  ;;  %v6730_v25 = vcombine.high %v6726_v56, %v6726_v56  ;;  %6936 = vst [vmem:[%s11006_s14 + $0x15e] sm:$0x1] %v6729_v29  ;;  %v6201_v3 = vcombine.high %v6191_v33, %v6191_v33  ;;  %v3138_v18 = vadd.f32 %v3137_v36, %v11348_v13 }
 0x3fe   : > { %7974 = vst.sshfl [vmem:[%s11006_s14 + $0x16e] sm:$0x1 pattern:$0x73625140] %v6698_v21  ;;  %6939 = vst [vmem:[%s11006_s14 + $0x176] sm:$0x1] %v6728_v19  ;;  %v3251_v12 = vadd.f32 %v3250_v32, %v11348_v13  ;;  %v6202_v51 = vcombine.high %v6198_v63, %v6198_v63  ;;  %v7210_v28 = vcombine.high %v3247_v30, %v3247_v30 }
 0x3ff   : > { %7942 = vst.sshfl [vmem:[%s11006_s14 + $0x16d] sm:$0x1 pattern:$0x73625140] %v6170_v42  ;;  %6407 = vst [vmem:[%s11006_s14 + $0x155] sm:$0x1] %v6199_v39  ;;  %v7217_v41 = vrot.slane %v3247_v30, %v10992_v46  ;;  %v3140_v43 = vadd.f32 %v3139_v40, %v11348_v13  ;;  %v5675_v50 = vcombine.high %v3138_v18, %v3138_v18 }
 0x400   : > { %6411 = vst [vmem:[%s11006_s14 + $0x175] sm:$0x1] %v6200_v20  ;;  %6940 = vst [vmem:[%s11006_s14 + $0x17e] sm:$0x1] %v6730_v25  ;;  %v5682_v10 = vrot.slane %v3138_v18, %v10992_v46  ;;  %v6731_v57 = vcombine.high %v3251_v12, %v3251_v12  ;;  %v6738_v52 = vrot.slane %v3251_v12, %v10992_v46 }
 0x401   : > { %6408 = vst [vmem:[%s11006_s14 + $0x15d] sm:$0x1] %v6201_v3  ;;  %6412 = vst [vmem:[%s11006_s14 + $0x17d] sm:$0x1] %v6202_v51  ;;  %v7224_v26 = vrot.slane %v7210_v28, %v10992_v46  ;;  %v7225_v24 = vcombine.high %v7217_v41, %v7217_v41  ;;  %v7233_v23 = vrot.slane %v7217_v41, %v10992_v46 }
 0x402   : > { %8003 = vst.sshfl [vmem:[%s11006_s14 + $0x147] sm:$0x1 pattern:$0x73625140] %v7217_v41  ;;  %v6203_v58 = vcombine.high %v3140_v43, %v3140_v43  ;;  %v5689_v60 = vrot.slane %v5675_v50, %v10992_v46  ;;  %v5690_v7 = vcombine.high %v5682_v10, %v5682_v10  ;;  %v5698_v45 = vrot.slane %v5682_v10, %v10992_v46 }
 0x403   : > { %7911 = vst.sshfl [vmem:[%s11006_s14 + $0x184] sm:$0x1 pattern:$0x73625140] %v5682_v10  ;;  %v6745_v17 = vrot.slane %v6731_v57, %v10992_v46  ;;  %v7226_v61 = vcombine.high %v7224_v26, %v7224_v26  ;;  %v7240_v34 = vrot.slane %v7224_v26, %v10992_v46  ;;  %v7247_v11 = vrot.slane %v7225_v24, %v10992_v46 }
 0x404   : > { %7975 = vst.sshfl [vmem:[%s11006_s14 + $0x186] sm:$0x1 pattern:$0x73625140] %v6738_v52  ;;  %v7255_v14 = vcombine.high %v7233_v23, %v7233_v23  ;;  %v5691_v44 = vcombine.high %v5689_v60, %v5689_v60  ;;  %v5705_v0 = vrot.slane %v5689_v60, %v10992_v46  ;;  %v5712_v55 = vrot.slane %v5690_v7, %v10992_v46 }
 0x405   : > { %8004 = vst.sshfl [vmem:[%s11006_s14 + $0x14f] sm:$0x1 pattern:$0x73625140] %v7225_v24  ;;  %v5720_v1 = vcombine.high %v5698_v45, %v5698_v45  ;;  %v7254_v6 = vrot.slane %v7226_v61, %v10992_v46  ;;  %v7256_v59 = vcombine.high %v7240_v34, %v7240_v34  ;;  %v7257_v54 = vcombine.high %v7247_v11, %v7247_v11  ;;  %v3145_v34 = vpop.f32.mrf.mxu0 }
 0x406   : > { %8005 = vst.sshfl [vmem:[%s11006_s14 + $0x167] sm:$0x1 pattern:$0x73625140] %v7224_v26  ;;  %7463 = vst [vmem:[%s11006_s14 + $0x157] sm:$0x1] %v7255_v14  ;;  %v6746_v27 = vcombine.high %v6738_v52, %v6738_v52  ;;  %v5719_v8 = vrot.slane %v5691_v44, %v10992_v46  ;;  %v5721_v15 = vcombine.high %v5705_v0, %v5705_v0 }
 0x407   : > { %7912 = vst.sshfl [vmem:[%s11006_s14 + $0x18c] sm:$0x1 pattern:$0x73625140] %v5690_v7  ;;  %v5722_v48 = vcombine.high %v5712_v55, %v5712_v55  ;;  %5887 = vst [vmem:[%s11006_s14 + $0x194] sm:$0x1] %v5720_v1  ;;  %v6747_v22 = vcombine.high %v6745_v17, %v6745_v17  ;;  %v7258_v62 = vcombine.high %v7254_v6, %v7254_v6 }
 0x408   : > { %7913 = vst.sshfl [vmem:[%s11006_s14 + $0x1a4] sm:$0x1 pattern:$0x73625140] %v5689_v60  ;;  %7464 = vst [vmem:[%s11006_s14 + $0x15f] sm:$0x1] %v7257_v54  ;;  %v6754_v36 = vrot.slane %v6738_v52, %v10992_v46  ;;  %v6761_v37 = vrot.slane %v6745_v17, %v10992_v46  ;;  %v6768_v5 = vrot.slane %v6746_v27, %v10992_v46  ;;  %v3258_v54 = vpop.f32.mrf.mxu1 }
 0x409   : > { %7977 = vst.sshfl [vmem:[%s11006_s14 + $0x1a6] sm:$0x1 pattern:$0x73625140] %v6745_v17  ;;  %7467 = vst [vmem:[%s11006_s14 + $0x177] sm:$0x1] %v7256_v59  ;;  %v5723_v31 = vcombine.high %v5719_v8, %v5719_v8  ;;  %v6775_v49 = vrot.slane %v6747_v22, %v10992_v46  ;;  %v6210_v21 = vrot.slane %v3140_v43, %v10992_v46 }
 0x40a   : > { %8006 = vst.sshfl [vmem:[%s11006_s14 + $0x16f] sm:$0x1 pattern:$0x73625140] %v7226_v61  ;;  %5888 = vst [vmem:[%s11006_s14 + $0x19c] sm:$0x1] %v5722_v48  ;;  %v6217_v4 = vrot.slane %v6203_v58, %v10992_v46  ;;  %v6776_v53 = vcombine.high %v6754_v36, %v6754_v36  ;;  %v6777_v16 = vcombine.high %v6761_v37, %v6761_v37 }
 0x40b   : > { %7914 = vst.sshfl [vmem:[%s11006_s14 + $0x1ac] sm:$0x1 pattern:$0x73625140] %v5691_v44  ;;  %5891 = vst [vmem:[%s11006_s14 + $0x1b4] sm:$0x1] %v5721_v15  ;;  %v6778_v42 = vcombine.high %v6768_v5, %v6768_v5  ;;  %v3253_v2 = vadd.f32 %v3252_v35, %v11348_v13  ;;  %v6779_v32 = vcombine.high %v6775_v49, %v6775_v49 }
 0x40c   : > { %7976 = vst.sshfl [vmem:[%s11006_s14 + $0x18e] sm:$0x1 pattern:$0x73625140] %v6746_v27  ;;  %7468 = vst [vmem:[%s11006_s14 + $0x17f] sm:$0x1] %v7258_v62  ;;  %v6218_v56 = vcombine.high %v6210_v21, %v6210_v21  ;;  %v6219_v19 = vcombine.high %v6217_v4, %v6217_v4  ;;  %v6226_v29 = vrot.slane %v6210_v21, %v10992_v46 }
 0x40d   : > { %7978 = vst.sshfl [vmem:[%s11006_s14 + $0x1ae] sm:$0x1 pattern:$0x73625140] %v6747_v22  ;;  %5892 = vst [vmem:[%s11006_s14 + $0x1bc] sm:$0x1] %v5723_v31  ;;  %v6233_v33 = vrot.slane %v6217_v4, %v10992_v46  ;;  %v7259_v40 = vcombine.high %v3253_v2, %v3253_v2  ;;  %v7266_v13 = vrot.slane %v3253_v2, %v10992_v46 }
 0x40e   : > { %7943 = vst.sshfl [vmem:[%s11006_s14 + $0x185] sm:$0x1 pattern:$0x73625140] %v6210_v21  ;;  %6943 = vst [vmem:[%s11006_s14 + $0x196] sm:$0x1] %v6776_v53  ;;  %v3144_v63 = vadd.f32 %v3143_v38, %v11410_v9  ;;  %v6240_v39 = vrot.slane %v6218_v56, %v10992_v46  ;;  %v6247_v20 = vrot.slane %v6219_v19, %v10992_v46 }
 0x40f   : > { %7945 = vst.sshfl [vmem:[%s11006_s14 + $0x1a5] sm:$0x1 pattern:$0x73625140] %v6217_v4  ;;  %6944 = vst [vmem:[%s11006_s14 + $0x19e] sm:$0x1] %v6778_v42  ;;  %v6248_v30 = vcombine.high %v6226_v29, %v6226_v29  ;;  %v3257_v25 = vadd.f32 %v3256_v47, %v11410_v9  ;;  %v6249_v3 = vcombine.high %v6233_v33, %v6233_v33 }
 0x410   : > { %6947 = vst [vmem:[%s11006_s14 + $0x1b6] sm:$0x1] %v6777_v16  ;;  %6948 = vst [vmem:[%s11006_s14 + $0x1be] sm:$0x1] %v6779_v32  ;;  %v7273_v18 = vrot.slane %v7259_v40, %v10992_v46  ;;  %v7274_v12 = vcombine.high %v7266_v13, %v7266_v13  ;;  %v7282_v51 = vrot.slane %v7266_v13, %v10992_v46 }
 0x411   : > { %7944 = vst.sshfl [vmem:[%s11006_s14 + $0x18d] sm:$0x1 pattern:$0x73625140] %v6218_v56  ;;  %v6250_v28 = vcombine.high %v6240_v39, %v6240_v39  ;;  %v6251_v41 = vcombine.high %v6247_v20, %v6247_v20  ;;  %6415 = vst [vmem:[%s11006_s14 + $0x195] sm:$0x1] %v6248_v30  ;;  %v5724_v43 = vcombine.high %v3144_v63, %v3144_v63 }
 0x412   : > { %7946 = vst.sshfl [vmem:[%s11006_s14 + $0x1ad] sm:$0x1 pattern:$0x73625140] %v6219_v19  ;;  %v5731_v50 = vrot.slane %v3144_v63, %v10992_v46  ;;  %6419 = vst [vmem:[%s11006_s14 + $0x1b5] sm:$0x1] %v6249_v3  ;;  %v7275_v10 = vcombine.high %v7273_v18, %v7273_v18  ;;  %v7289_v57 = vrot.slane %v7273_v18, %v10992_v46 }
 0x413   : > { %8007 = vst.sshfl [vmem:[%s11006_s14 + $0x187] sm:$0x1 pattern:$0x73625140] %v7266_v13  ;;  %v7296_v52 = vrot.slane %v7274_v12, %v10992_v46  ;;  %v7304_v26 = vcombine.high %v7282_v51, %v7282_v51  ;;  %6416 = vst [vmem:[%s11006_s14 + $0x19d] sm:$0x1] %v6250_v28  ;;  %v5738_v24 = vrot.slane %v5724_v43, %v10992_v46 }
 0x414   : > { %8008 = vst.sshfl [vmem:[%s11006_s14 + $0x18f] sm:$0x1 pattern:$0x73625140] %v7274_v12  ;;  %6420 = vst [vmem:[%s11006_s14 + $0x1bd] sm:$0x1] %v6251_v41  ;;  %v5739_v23 = vcombine.high %v5731_v50, %v5731_v50  ;;  %v5747_v58 = vrot.slane %v5731_v50, %v10992_v46  ;;  %v6780_v60 = vcombine.high %v3257_v25, %v3257_v25 }
 0x415   : > { %8009 = vst.sshfl [vmem:[%s11006_s14 + $0x1a7] sm:$0x1 pattern:$0x73625140] %v7273_v18  ;;  %v7303_v7 = vrot.slane %v7275_v10, %v10992_v46  ;;  %v7305_v45 = vcombine.high %v7289_v57, %v7289_v57  ;;  %v7306_v17 = vcombine.high %v7296_v52, %v7296_v52  ;;  %7471 = vst [vmem:[%s11006_s14 + $0x197] sm:$0x1] %v7304_v26 }
 0x416   : > { %7915 = vst.sshfl [vmem:[%s11006_s14 + $0x1c4] sm:$0x1 pattern:$0x73625140] %v5731_v50  ;;  %v6787_v61 = vrot.slane %v3257_v25, %v10992_v46  ;;  %v5740_v11 = vcombine.high %v5738_v24, %v5738_v24  ;;  %v5754_v14 = vrot.slane %v5738_v24, %v10992_v46  ;;  %v5761_v44 = vrot.slane %v5739_v23, %v10992_v46 }
 0x417   : > { %8010 = vst.sshfl [vmem:[%s11006_s14 + $0x1af] sm:$0x1 pattern:$0x73625140] %v7275_v10  ;;  %v5769_v0 = vcombine.high %v5747_v58, %v5747_v58  ;;  %v7307_v55 = vcombine.high %v7303_v7, %v7303_v7  ;;  %7472 = vst [vmem:[%s11006_s14 + $0x19f] sm:$0x1] %v7306_v17  ;;  %v6794_v1 = vrot.slane %v6780_v60, %v10992_v46 }
 0x418   : > { %7916 = vst.sshfl [vmem:[%s11006_s14 + $0x1cc] sm:$0x1 pattern:$0x73625140] %v5739_v23  ;;  %7475 = vst [vmem:[%s11006_s14 + $0x1b7] sm:$0x1] %v7305_v45  ;;  %v6795_v6 = vcombine.high %v6787_v61, %v6787_v61  ;;  %v6803_v59 = vrot.slane %v6787_v61, %v10992_v46  ;;  %v5768_v27 = vrot.slane %v5740_v11, %v10992_v46 }
 0x419   : > { %7917 = vst.sshfl [vmem:[%s11006_s14 + $0x1e4] sm:$0x1 pattern:$0x73625140] %v5738_v24  ;;  %v5770_v35 = vcombine.high %v5754_v14, %v5754_v14  ;;  %v5771_v8 = vcombine.high %v5761_v44, %v5761_v44  ;;  %5895 = vst [vmem:[%s11006_s14 + $0x1d4] sm:$0x1] %v5769_v0  ;;  %v3146_v15 = vadd.f32 %v3145_v34, %v11410_v9 }
 0x41a   : > { %7979 = vst.sshfl [vmem:[%s11006_s14 + $0x1c6] sm:$0x1 pattern:$0x73625140] %v6787_v61  ;;  %7476 = vst [vmem:[%s11006_s14 + $0x1bf] sm:$0x1] %v7307_v55  ;;  %v6796_v48 = vcombine.high %v6794_v1, %v6794_v1  ;;  %v6810_v22 = vrot.slane %v6794_v1, %v10992_v46  ;;  %v6817_v62 = vrot.slane %v6795_v6, %v10992_v46 }
 0x41b   : > { %7918 = vst.sshfl [vmem:[%s11006_s14 + $0x1ec] sm:$0x1 pattern:$0x73625140] %v5740_v11  ;;  %v6825_v36 = vcombine.high %v6803_v59, %v6803_v59  ;;  %v5772_v37 = vcombine.high %v5768_v27, %v5768_v27  ;;  %5896 = vst [vmem:[%s11006_s14 + $0x1dc] sm:$0x1] %v5771_v8  ;;  %v6252_v5 = vcombine.high %v3146_v15, %v3146_v15 }
 0x41c   : > { %7980 = vst.sshfl [vmem:[%s11006_s14 + $0x1ce] sm:$0x1 pattern:$0x73625140] %v6795_v6  ;;  %5899 = vst [vmem:[%s11006_s14 + $0x1f4] sm:$0x1] %v5770_v35  ;;  %v6259_v31 = vrot.slane %v3146_v15, %v10992_v46  ;;  %v3259_v49 = vadd.f32 %v3258_v54, %v11410_v9  ;;  %v6824_v21 = vrot.slane %v6796_v48, %v10992_v46 }
 0x41d   : > { %7981 = vst.sshfl [vmem:[%s11006_s14 + $0x1e6] sm:$0x1 pattern:$0x73625140] %v6794_v1  ;;  %v6826_v4 = vcombine.high %v6810_v22, %v6810_v22  ;;  %v6827_v38 = vcombine.high %v6817_v62, %v6817_v62  ;;  %6951 = vst [vmem:[%s11006_s14 + $0x1d6] sm:$0x1] %v6825_v36  ;;  %v6266_v53 = vrot.slane %v6252_v5, %v10992_v46 }
 0x41e   : > { %7982 = vst.sshfl [vmem:[%s11006_s14 + $0x1ee] sm:$0x1 pattern:$0x73625140] %v6796_v48  ;;  %5900 = vst [vmem:[%s11006_s14 + $0x1fc] sm:$0x1] %v5772_v37  ;;  %v6267_v16 = vcombine.high %v6259_v31, %v6259_v31  ;;  %v6275_v42 = vrot.slane %v6259_v31, %v10992_v46  ;;  %v7308_v2 = vcombine.high %v3259_v49, %v3259_v49 }
 0x41f   : > { %7947 = vst.sshfl [vmem:[%s11006_s14 + $0x1c5] sm:$0x1 pattern:$0x73625140] %v6259_v31  ;;  %v6828_v47 = vcombine.high %v6824_v21, %v6824_v21  ;;  %6952 = vst [vmem:[%s11006_s14 + $0x1de] sm:$0x1] %v6827_v38  ;;  %v7315_v9 = vrot.slane %v3259_v49, %v10992_v46  ;;  %v6268_v32 = vcombine.high %v6266_v53, %v6266_v53 }
 0x420   : > { %6955 = vst [vmem:[%s11006_s14 + $0x1f6] sm:$0x1] %v6826_v4  ;;  %v6282_v56 = vrot.slane %v6266_v53, %v10992_v46  ;;  %v6289_v19 = vrot.slane %v6267_v16, %v10992_v46  ;;  %v6297_v29 = vcombine.high %v6275_v42, %v6275_v42  ;;  %7948 = vst.sshfl [vmem:[%s11006_s14 + $0x1cd] sm:$0x1 pattern:$0x73625140] %v6267_v16 }
 0x421   : > { %7949 = vst.sshfl [vmem:[%s11006_s14 + $0x1e5] sm:$0x1 pattern:$0x73625140] %v6266_v53  ;;  %6956 = vst [vmem:[%s11006_s14 + $0x1fe] sm:$0x1] %v6828_v47  ;;  %v7322_v33 = vrot.slane %v7308_v2, %v10992_v46  ;;  %v7323_v40 = vcombine.high %v7315_v9, %v7315_v9  ;;  %v7331_v13 = vrot.slane %v7315_v9, %v10992_v46 }
 0x422   : > { %8011 = vst.sshfl [vmem:[%s11006_s14 + $0x1c7] sm:$0x1 pattern:$0x73625140] %v7315_v9  ;;  %v6296_v63 = vrot.slane %v6268_v32, %v10992_v46  ;;  %v6298_v39 = vcombine.high %v6282_v56, %v6282_v56  ;;  %v6299_v20 = vcombine.high %v6289_v19, %v6289_v19  ;;  %6423 = vst [vmem:[%s11006_s14 + $0x1d5] sm:$0x1] %v6297_v29 }
 0x423   : > { %7950 = vst.sshfl [vmem:[%s11006_s14 + $0x1ed] sm:$0x1 pattern:$0x73625140] %v6268_v32  ;;  %v7324_v30 = vcombine.high %v7322_v33, %v7322_v33  ;;  %v7338_v25 = vrot.slane %v7322_v33, %v10992_v46  ;;  %v7345_v3 = vrot.slane %v7323_v40, %v10992_v46  ;;  %v7353_v18 = vcombine.high %v7331_v13, %v7331_v13 }
 0x424   : > { %8012 = vst.sshfl [vmem:[%s11006_s14 + $0x1cf] sm:$0x1 pattern:$0x73625140] %v7323_v40  ;;  %v6300_v12 = vcombine.high %v6296_v63, %v6296_v63  ;;  %6424 = vst [vmem:[%s11006_s14 + $0x1dd] sm:$0x1] %v6299_v20 }
 0x425   : > { %8013 = vst.sshfl [vmem:[%s11006_s14 + $0x1e7] sm:$0x1 pattern:$0x73625140] %v7322_v33  ;;  %6427 = vst [vmem:[%s11006_s14 + $0x1f5] sm:$0x1] %v6298_v39  ;;  %v7352_v51 = vrot.slane %v7324_v30, %v10992_v46  ;;  %v7354_v28 = vcombine.high %v7338_v25, %v7338_v25  ;;  %v7355_v41 = vcombine.high %v7345_v3, %v7345_v3 }
 0x426   : > { %7479 = vst [vmem:[%s11006_s14 + $0x1d7] sm:$0x1] %v7353_v18  ;;  %8014 = vst.sshfl [vmem:[%s11006_s14 + $0x1ef] sm:$0x1 pattern:$0x73625140] %v7324_v30 }
 0x427   : > { %6428 = vst [vmem:[%s11006_s14 + $0x1fd] sm:$0x1] %v6300_v12  ;;  %v7356_v43 = vcombine.high %v7352_v51, %v7352_v51  ;;  %7480 = vst [vmem:[%s11006_s14 + $0x1df] sm:$0x1] %v7355_v41 }
 0x428   : > { %7483 = vst [vmem:[%s11006_s14 + $0x1f7] sm:$0x1] %v7354_v28 }
 0x429   : > { %7484 = vst [vmem:[%s11006_s14 + $0x1ff] sm:$0x1] %v7356_v43 }
 0x42a   : > { %8647 = shalt.err (!%p8644_p5)
}
 0x42b   : > { %s8648_s9 = scalar_lea.hbm %s11994_s25, 8192  ;;  %s8652_s12 = scalar_lea.hbm %s12053_s5, 16384 }
 0x42c   : > { %p8649_p6 = scmp.ne.s32.totalorder %s11994_s25, %s8648_s9  ;;  %p8653_p10 = scmp.lt.s32.totalorder %s11994_s25, %s12053_s5 }
 0x42d   : > { %p8654_p11 = scmp.lt.s32.totalorder %s8652_s12, %s8648_s9 }
 0x42e   : > { %p8650_p7 = pnand %p8649_p6, %p8787_p4 }
 0x42f   : > { %p8655_p12 = por %p8654_p11, %p8653_p10 }
 0x430   : > { %p8651_p9 = pneg %p8650_p7 }
 0x432   : > { %p8656_p13 = pnand %p8655_p12, %p8651_p9 }
 0x434   : > { %8659 = shalt.err (!%p8656_p13)
}
 0x435   : > { %s8715_s15 = smov 128   ;;  %s8716_s17 = smov 8  }
 0x436   : > { %8214 = dma.vmem_to_hbm [thread:$0]  (%p8787_p4), %s11996_s16, 8192, %s11994_s25, %s12003_s21, %s8715_s15, %s8715_s15, %s8716_s17  }
 0x437 PF: > { %p8220_p0 = scmp.ge.s32.totalorder %s8710_s23, 2  ;;  %s7516_s24 = sand.u32 1, %s8690_s18  }
 0x438   : > { %s7517_s27 = scalar_lea.sflag [#allocation3], %s7516_s24 }
 0x439   : > { %p8217_p1 = pnand %p8220_p0, %p8794_p8 }
 0x43b   : > { %p8218_p2 = pneg %p8217_p1 }
 0x43d   : > { %8685 = dma.done.wait (%p8218_p2), %s7517_s27, 8192  }
 0x43e   : > { %8687 = vsyncadd (%p8218_p2), %s7517_s27, 4294959104  ;;  %s18_s23 = sadd.s32 1, %s8710_s23   ;;  %s12321_s18 = smov %s8694_s19 }
 0x43f   : > { %p15_p3 = scmp.ge.s32.totalorder %s18_s23, 4   ;;  %s12322_s19 = smov %s8698_s20 }
 0x440   : > { %s12323_s20 = smov %s8800_s6  ;;  %s12324_s21 = smov %s8706_s22 }
 0x441   : > { %s12325_s22 = smov %s12327_s26  ;;  %17 = sbr.rel (!%p15_p3) target bundleno = 4 (0x4), region = 75 }
 0x446   :  { %7522 = vsyncpa [#allocation3], 1 }
 0x447   :  { %7524 = vsyncpa [#allocation3 + $0x1], 1 }

</bundles_post_ra>
